<compile_context>
chip_gen: v6e
topology: v6e:2x2x1
jax: 0.10.0
libtpu: 0.0.40
codegen_flags: <defaults>
</compile_context>

<pallas_src>
import functools

import jax
import jax.numpy as jnp
from jax.experimental import pallas as pl
from jax.experimental.pallas import tpu as pltpu

BN_EPS = 1e-5
C_PAD = 128      # lane-dense channel padding
CLS_PAD = 128    # lane-dense class padding


# --------------------------------------------------------------------------
# Fused Pallas kernel (whole forward pass)
# --------------------------------------------------------------------------
def _make_fused_kernel(*, B, H, W, n_blocks, is_plain, nb_classes):
    Hp, Wp = H + 2, W + 2
    RT = B * Hp * Wp          # rows of the flattened, spatially padded activation
    MARGIN = 8                # >= Wp + 1 (max |row shift|), sublane aligned
    M_VALID = B * H * W       # rows contributing to BN statistics / conv outputs
    inv_m = 1.0 / float(M_VALID)

    # row shift for kernel tap (dh, dw): output row p reads input row p + k
    shifts = [(dh - 1) * Wp + (dw - 1) for dh in range(3) for dw in range(3)]

    def kernel(x_ref, mask_ref, pool_ref, convw_ref, gamma_ref, beta_ref,
               fcw_ref, fcb_ref, out_ref, xpad_scr):
        mask = mask_ref[...]                                  # (RT, 1) interior-row mask
        # zero once; margins / borders stay zero for the whole kernel
        xpad_scr[...] = jnp.zeros(xpad_scr.shape, jnp.float32)

        def conv_bn(act, li, relu, residual=None):
            # act: (RT, C_PAD) f32, zero on border rows and padded channels.
            xpad_scr[MARGIN:MARGIN + RT, :] = act
            acc = jnp.zeros((RT, C_PAD), jnp.float32)
            for s, k in enumerate(shifts):
                xs = xpad_scr[MARGIN + k:MARGIN + k + RT, :]
                acc = acc + jnp.dot(xs.astype(jnp.bfloat16),
                                    convw_ref[li * 9 + s],
                                    preferred_element_type=jnp.float32)
            # BatchNorm2d (train-mode batch stats over the M_VALID interior
            # rows), single-pass.  Conv bias omitted: cancelled by (x - mean).
            s1 = jnp.sum(acc * mask, axis=0, keepdims=True)
            s2 = jnp.sum(acc * acc * mask, axis=0, keepdims=True)
            mean = s1 * inv_m
            var = jnp.maximum(s2 * inv_m - mean * mean, 0.0)
            y = (acc - mean) * jax.lax.rsqrt(var + BN_EPS)
            y = y * gamma_ref[li] + beta_ref[li]
            if residual is not None:
                y = y + residual
            if relu:
                y = jnp.maximum(y, 0.0)
            return y * mask          # re-zero border rows for the next layer

        # stem: conv1 -> bn -> relu
        act = conv_bn(x_ref[...], 0, relu=True)

        # residual blocks
        for blk in range(n_blocks):
            li1, li2 = 1 + 2 * blk, 2 + 2 * blk
            h = conv_bn(act, li1, relu=True)
            act = conv_bn(h, li2, relu=True,
                          residual=None if is_plain else act)

        # head: AvgPool(4x4) -> Linear -> Softmax
        pooled = jnp.dot(pool_ref[...], act,
                         preferred_element_type=jnp.float32)          # (B, C_PAD)
        logits = jnp.dot(pooled, fcw_ref[...],
                         preferred_element_type=jnp.float32) + fcb_ref[...]
        col = jax.lax.broadcasted_iota(jnp.int32, logits.shape, 1)
        logits = jnp.where(col < nb_classes, logits, -1e30)
        mx = jnp.max(logits, axis=1, keepdims=True)
        e = jnp.exp(logits - mx)
        denom = jnp.sum(e, axis=1, keepdims=True)
        out_ref[...] = e * pl.reciprocal(denom, approx=True)

    return kernel, RT, MARGIN


# --------------------------------------------------------------------------
# JAX wrapper
# --------------------------------------------------------------------------
def resnet_forward(x_nchw, packed, *, n_blocks, is_plain, nb_classes):
    B, Cin, H, W = x_nchw.shape
    # spatial must be 4x4 so AvgPool2d((4,4), stride=1) -> 1x1 and
    # fc.in_features == last block's output_channels (as the module implies).
    assert H == 4 and W == 4

    kernel, RT, MARGIN = _make_fused_kernel(
        B=B, H=H, W=W, n_blocks=n_blocks, is_plain=is_plain,
        nb_classes=nb_classes)

    # one-time input prep: NCHW -> NHWC, pad spatial(1) + channels(to 128), flatten
    x = jnp.transpose(x_nchw, (0, 2, 3, 1)).astype(jnp.float32)
    x = jnp.pad(x, ((0, 0), (1, 1), (1, 1), (0, C_PAD - Cin)))
    x = x.reshape(RT, C_PAD)

    args = (x, packed["mask"], packed["pool"], packed["convw"],
            packed["gamma"], packed["beta"], packed["fcw"], packed["fcb"])

    out = pl.pallas_call(
        kernel,
        out_shape=jax.ShapeDtypeStruct((B, CLS_PAD), jnp.float32),
        in_specs=[pl.BlockSpec(memory_space=pltpu.MemorySpace.VMEM)] * len(args),
        out_specs=pl.BlockSpec(memory_space=pltpu.MemorySpace.VMEM),
        scratch_shapes=[pltpu.VMEM((RT + 2 * MARGIN, C_PAD), jnp.float32)],
    )(*args)
    return out[:, :nb_classes]


# --------------------------------------------------------------------------
# One-time parameter packing (layout transforms outside the jitted forward)
# --------------------------------------------------------------------------
def pack_params(params, *, B, H, W):
    Hp, Wp = H + 2, W + 2
    RT = B * Hp * Wp

    def pack_conv(w):                       # (Cout, Cin, 3, 3) PyTorch layout
        cout, cin = w.shape[0], w.shape[1]
        wm = jnp.transpose(w, (2, 3, 1, 0)).reshape(9, cin, cout)
        wm = jnp.pad(wm, ((0, 0), (0, C_PAD - cin), (0, C_PAD - cout)))
        return wm.astype(jnp.bfloat16)

    def pack_vec(v):                        # (C,) -> (1, C_PAD), zero padded
        return jnp.pad(v, (0, C_PAD - v.shape[0])).reshape(1, C_PAD) \
                  .astype(jnp.float32)

    convw = [pack_conv(params["conv1_w"])]
    gamma = [pack_vec(params["bn_g"])]
    beta = [pack_vec(params["bn_b"])]
    for blk in params["blocks"]:
        convw += [pack_conv(blk["w1"]), pack_conv(blk["w2"])]
        gamma += [pack_vec(blk["g1"]), pack_vec(blk["g2"])]
        beta += [pack_vec(blk["be1"]), pack_vec(blk["be2"])]
    convw = jnp.concatenate(convw, axis=0)          # (L*9, C_PAD, C_PAD) bf16
    gamma = jnp.stack(gamma, axis=0)                # (L, 1, C_PAD)
    beta = jnp.stack(beta, axis=0)

    fc_w, fc_b = params["fc_w"], params["fc_b"]     # (cls, C), (cls,)
    cls, c = fc_w.shape
    fcw = jnp.pad(fc_w.T, ((0, C_PAD - c), (0, CLS_PAD - cls))).astype(jnp.float32)
    fcb = jnp.pad(fc_b, (0, CLS_PAD - cls)).reshape(1, CLS_PAD).astype(jnp.float32)

    # geometry: interior-row mask and per-batch average-pool matrix
    r = jnp.arange(RT)
    rem = r % (Hp * Wp)
    hp, wp = rem // Wp, rem % Wp
    b = r // (Hp * Wp)
    interior = (hp >= 1) & (hp <= H) & (wp >= 1) & (wp <= W)
    mask = interior.astype(jnp.float32).reshape(RT, 1)
    pool = ((b[None, :] == jnp.arange(B)[:, None]) & interior[None, :]) \
               .astype(jnp.float32) / float(H * W)               # (B, RT)

    return {"convw": convw, "gamma": gamma, "beta": beta,
            "fcw": fcw, "fcb": fcb, "mask": mask, "pool": pool}


# --------------------------------------------------------------------------
# Deterministic parameter initialization (PyTorch layouts)
# --------------------------------------------------------------------------
def init_params(key, *, nb_classes=10, n_blocks=2, channels=16):
    # NOTE: conv biases are intentionally omitted — a bias feeding straight
    # into BatchNorm is exactly cancelled by the mean subtraction.
    def conv_init(k, cout, cin):
        scale = 1.0 / jnp.sqrt(cin * 9.0)
        return jax.random.uniform(k, (cout, cin, 3, 3), jnp.float32,
                                  -scale, scale)

    keys = iter(jax.random.split(key, 64))
    params = {
        "conv1_w": conv_init(next(keys), channels, 3),
        "bn_g": jnp.ones((channels,), jnp.float32),
        "bn_b": jnp.zeros((channels,), jnp.float32),
        "blocks": [],
    }
    for _ in range(n_blocks):
        params["blocks"].append({
            "w1": conv_init(next(keys), channels, channels),
            "g1": jnp.ones((channels,), jnp.float32),
            "be1": jnp.zeros((channels,), jnp.float32),
            "w2": conv_init(next(keys), channels, channels),
            "g2": jnp.ones((channels,), jnp.float32),
            "be2": jnp.zeros((channels,), jnp.float32),
        })
    fscale = 1.0 / jnp.sqrt(float(channels))
    params["fc_w"] = jax.random.uniform(next(keys), (nb_classes, channels),
                                        jnp.float32, -fscale, fscale)
    params["fc_b"] = jax.random.uniform(next(keys), (nb_classes,),
                                        jnp.float32, -fscale, fscale)
    return params


# --------------------------------------------------------------------------
if __name__ == "__main__":
    key = jax.random.PRNGKey(0)
    k_params, k_x = jax.random.split(key)

    B, Cin, H, W = 2, 3, 4, 4
    nb_classes, n_blocks, channels = 10, 2, 16

    params = init_params(k_params, nb_classes=nb_classes, n_blocks=n_blocks,
                         channels=channels)
    packed = pack_params(params, B=B, H=H, W=W)
    x = jax.random.normal(k_x, (B, Cin, H, W), jnp.float32)

    fwd = jax.jit(functools.partial(resnet_forward, n_blocks=n_blocks,
                                    is_plain=False, nb_classes=nb_classes))
    out = fwd(x, packed)
    jax.block_until_ready(out)

    assert out.shape == (B, nb_classes)
    # softmax rows must sum to ~1 (tolerance loosened for pl.reciprocal approx)
    assert jnp.allclose(jnp.sum(out, axis=1), 1.0, atol=5e-3)
    print("KERNEL_OK")
</pallas_src>

<mosaic_0001>
module attributes {stable_mosaic.version = 11 : i64} {
  func.func @kernel(%arg0: memref<72x128xf32, #tpu.memory_space<vmem>>, %arg1: memref<72x1xf32, #tpu.memory_space<vmem>>, %arg2: memref<2x72xf32, #tpu.memory_space<vmem>>, %arg3: memref<45x128x128xbf16, #tpu.memory_space<vmem>>, %arg4: memref<5x1x128xf32, #tpu.memory_space<vmem>>, %arg5: memref<5x1x128xf32, #tpu.memory_space<vmem>>, %arg6: memref<128x128xf32, #tpu.memory_space<vmem>>, %arg7: memref<1x128xf32, #tpu.memory_space<vmem>>, %arg8: memref<2x128xf32, #tpu.memory_space<vmem>>, %arg9: memref<88x128xf32, #tpu.memory_space<vmem>>) attributes {dimension_semantics = [], scalar_prefetch = 0 : i64, scratch_operands = 1 : i64, tpu.core_type = #tpu.core_type<tc>} {
    %c0 = arith.constant 0 : index
    %c0_0 = arith.constant 0 : index
    %0 = vector.load %arg1[%c0, %c0_0] : memref<72x1xf32, #tpu.memory_space<vmem>>, vector<72x1xf32>
    %cst = arith.constant 0.000000e+00 : f32
    %1 = vector.broadcast %cst : f32 to vector<88x128xf32>
    %c0_1 = arith.constant 0 : index
    %c0_2 = arith.constant 0 : index
    %2 = vector.load %arg9[%c0_1, %c0_2] : memref<88x128xf32, #tpu.memory_space<vmem>>, vector<88x128xf32>
    tpu.vector_store %arg9[%c0_1, %c0_2], %1 {strides = array<i32>} : memref<88x128xf32, #tpu.memory_space<vmem>>, vector<88x128xf32>,
    %c0_3 = arith.constant 0 : index
    %c0_4 = arith.constant 0 : index
    %3 = vector.load %arg0[%c0_3, %c0_4] : memref<72x128xf32, #tpu.memory_space<vmem>>, vector<72x128xf32>
    %c8 = arith.constant 8 : index
    %c0_5 = arith.constant 0 : index
    %4 = vector.load %arg9[%c8, %c0_5] : memref<88x128xf32, #tpu.memory_space<vmem>>, vector<72x128xf32>
    tpu.vector_store %arg9[%c8, %c0_5], %3 {strides = array<i32>} : memref<88x128xf32, #tpu.memory_space<vmem>>, vector<72x128xf32>,
    %cst_6 = arith.constant 0.000000e+00 : f32
    %5 = vector.broadcast %cst_6 : f32 to vector<72x128xf32>
    %c1 = arith.constant 1 : index
    %c0_7 = arith.constant 0 : index
    %6 = vector.load %arg9[%c1, %c0_7] : memref<88x128xf32, #tpu.memory_space<vmem>>, vector<72x128xf32>
    %7 = arith.truncf %6 : vector<72x128xf32> to vector<72x128xbf16>
    %c0_8 = arith.constant 0 : index
    %c0_9 = arith.constant 0 : index
    %c0_10 = arith.constant 0 : index
    %8 = vector.load %arg3[%c0_8, %c0_9, %c0_10] : memref<45x128x128xbf16, #tpu.memory_space<vmem>>, vector<1x128x128xbf16>
    %9 = vector.shape_cast %8 : vector<1x128x128xbf16> to vector<128x128xbf16>
    %cst_11 = arith.constant dense<0.000000e+00> : vector<72x128xf32>
    %10 = tpu.matmul %7, %9, %cst_11 {dimension_numbers = #tpu.dot_dimension_numbers<[1], [0], [0], [1], [0, 0, 1, 1], [], []>} : vector<72x128xbf16>, vector<128x128xbf16>, vector<72x128xf32> -> vector<72x128xf32>
    %11 = arith.addf %5, %10 : vector<72x128xf32>
    %c2 = arith.constant 2 : index
    %c0_12 = arith.constant 0 : index
    %12 = vector.load %arg9[%c2, %c0_12] : memref<88x128xf32, #tpu.memory_space<vmem>>, vector<72x128xf32>
    %13 = arith.truncf %12 : vector<72x128xf32> to vector<72x128xbf16>
    %c1_13 = arith.constant 1 : index
    %c0_14 = arith.constant 0 : index
    %c0_15 = arith.constant 0 : index
    %14 = vector.load %arg3[%c1_13, %c0_14, %c0_15] : memref<45x128x128xbf16, #tpu.memory_space<vmem>>, vector<1x128x128xbf16>
    %15 = vector.shape_cast %14 : vector<1x128x128xbf16> to vector<128x128xbf16>
    %cst_16 = arith.constant dense<0.000000e+00> : vector<72x128xf32>
    %16 = tpu.matmul %13, %15, %cst_16 {dimension_numbers = #tpu.dot_dimension_numbers<[1], [0], [0], [1], [0, 0, 1, 1], [], []>} : vector<72x128xbf16>, vector<128x128xbf16>, vector<72x128xf32> -> vector<72x128xf32>
    %17 = arith.addf %11, %16 : vector<72x128xf32>
    %c3 = arith.constant 3 : index
    %c0_17 = arith.constant 0 : index
    %18 = vector.load %arg9[%c3, %c0_17] : memref<88x128xf32, #tpu.memory_space<vmem>>, vector<72x128xf32>
    %19 = arith.truncf %18 : vector<72x128xf32> to vector<72x128xbf16>
    %c2_18 = arith.constant 2 : index
    %c0_19 = arith.constant 0 : index
    %c0_20 = arith.constant 0 : index
    %20 = vector.load %arg3[%c2_18, %c0_19, %c0_20] : memref<45x128x128xbf16, #tpu.memory_space<vmem>>, vector<1x128x128xbf16>
    %21 = vector.shape_cast %20 : vector<1x128x128xbf16> to vector<128x128xbf16>
    %cst_21 = arith.constant dense<0.000000e+00> : vector<72x128xf32>
    %22 = tpu.matmul %19, %21, %cst_21 {dimension_numbers = #tpu.dot_dimension_numbers<[1], [0], [0], [1], [0, 0, 1, 1], [], []>} : vector<72x128xbf16>, vector<128x128xbf16>, vector<72x128xf32> -> vector<72x128xf32>
    %23 = arith.addf %17, %22 : vector<72x128xf32>
    %c7 = arith.constant 7 : index
    %c0_22 = arith.constant 0 : index
    %24 = vector.load %arg9[%c7, %c0_22] : memref<88x128xf32, #tpu.memory_space<vmem>>, vector<72x128xf32>
    %25 = arith.truncf %24 : vector<72x128xf32> to vector<72x128xbf16>
    %c3_23 = arith.constant 3 : index
    %c0_24 = arith.constant 0 : index
    %c0_25 = arith.constant 0 : index
    %26 = vector.load %arg3[%c3_23, %c0_24, %c0_25] : memref<45x128x128xbf16, #tpu.memory_space<vmem>>, vector<1x128x128xbf16>
    %27 = vector.shape_cast %26 : vector<1x128x128xbf16> to vector<128x128xbf16>
    %cst_26 = arith.constant dense<0.000000e+00> : vector<72x128xf32>
    %28 = tpu.matmul %25, %27, %cst_26 {dimension_numbers = #tpu.dot_dimension_numbers<[1], [0], [0], [1], [0, 0, 1, 1], [], []>} : vector<72x128xbf16>, vector<128x128xbf16>, vector<72x128xf32> -> vector<72x128xf32>
    %29 = arith.addf %23, %28 : vector<72x128xf32>
    %c8_27 = arith.constant 8 : index
    %c0_28 = arith.constant 0 : index
    %30 = vector.load %arg9[%c8_27, %c0_28] : memref<88x128xf32, #tpu.memory_space<vmem>>, vector<72x128xf32>
    %31 = arith.truncf %30 : vector<72x128xf32> to vector<72x128xbf16>
    %c4 = arith.constant 4 : index
    %c0_29 = arith.constant 0 : index
    %c0_30 = arith.constant 0 : index
    %32 = vector.load %arg3[%c4, %c0_29, %c0_30] : memref<45x128x128xbf16, #tpu.memory_space<vmem>>, vector<1x128x128xbf16>
    %33 = vector.shape_cast %32 : vector<1x128x128xbf16> to vector<128x128xbf16>
    %cst_31 = arith.constant dense<0.000000e+00> : vector<72x128xf32>
    %34 = tpu.matmul %31, %33, %cst_31 {dimension_numbers = #tpu.dot_dimension_numbers<[1], [0], [0], [1], [0, 0, 1, 1], [], []>} : vector<72x128xbf16>, vector<128x128xbf16>, vector<72x128xf32> -> vector<72x128xf32>
    %35 = arith.addf %29, %34 : vector<72x128xf32>
    %c9 = arith.constant 9 : index
    %c0_32 = arith.constant 0 : index
    %36 = vector.load %arg9[%c9, %c0_32] : memref<88x128xf32, #tpu.memory_space<vmem>>, vector<72x128xf32>
    %37 = arith.truncf %36 : vector<72x128xf32> to vector<72x128xbf16>
    %c5 = arith.constant 5 : index
    %c0_33 = arith.constant 0 : index
    %c0_34 = arith.constant 0 : index
    %38 = vector.load %arg3[%c5, %c0_33, %c0_34] : memref<45x128x128xbf16, #tpu.memory_space<vmem>>, vector<1x128x128xbf16>
    %39 = vector.shape_cast %38 : vector<1x128x128xbf16> to vector<128x128xbf16>
    %cst_35 = arith.constant dense<0.000000e+00> : vector<72x128xf32>
    %40 = tpu.matmul %37, %39, %cst_35 {dimension_numbers = #tpu.dot_dimension_numbers<[1], [0], [0], [1], [0, 0, 1, 1], [], []>} : vector<72x128xbf16>, vector<128x128xbf16>, vector<72x128xf32> -> vector<72x128xf32>
    %41 = arith.addf %35, %40 : vector<72x128xf32>
    %c13 = arith.constant 13 : index
    %c0_36 = arith.constant 0 : index
    %42 = vector.load %arg9[%c13, %c0_36] : memref<88x128xf32, #tpu.memory_space<vmem>>, vector<72x128xf32>
    %43 = arith.truncf %42 : vector<72x128xf32> to vector<72x128xbf16>
    %c6 = arith.constant 6 : index
    %c0_37 = arith.constant 0 : index
    %c0_38 = arith.constant 0 : index
    %44 = vector.load %arg3[%c6, %c0_37, %c0_38] : memref<45x128x128xbf16, #tpu.memory_space<vmem>>, vector<1x128x128xbf16>
    %45 = vector.shape_cast %44 : vector<1x128x128xbf16> to vector<128x128xbf16>
    %cst_39 = arith.constant dense<0.000000e+00> : vector<72x128xf32>
    %46 = tpu.matmul %43, %45, %cst_39 {dimension_numbers = #tpu.dot_dimension_numbers<[1], [0], [0], [1], [0, 0, 1, 1], [], []>} : vector<72x128xbf16>, vector<128x128xbf16>, vector<72x128xf32> -> vector<72x128xf32>
    %47 = arith.addf %41, %46 : vector<72x128xf32>
    %c14 = arith.constant 14 : index
    %c0_40 = arith.constant 0 : index
    %48 = vector.load %arg9[%c14, %c0_40] : memref<88x128xf32, #tpu.memory_space<vmem>>, vector<72x128xf32>
    %49 = arith.truncf %48 : vector<72x128xf32> to vector<72x128xbf16>
    %c7_41 = arith.constant 7 : index
    %c0_42 = arith.constant 0 : index
    %c0_43 = arith.constant 0 : index
    %50 = vector.load %arg3[%c7_41, %c0_42, %c0_43] : memref<45x128x128xbf16, #tpu.memory_space<vmem>>, vector<1x128x128xbf16>
    %51 = vector.shape_cast %50 : vector<1x128x128xbf16> to vector<128x128xbf16>
    %cst_44 = arith.constant dense<0.000000e+00> : vector<72x128xf32>
    %52 = tpu.matmul %49, %51, %cst_44 {dimension_numbers = #tpu.dot_dimension_numbers<[1], [0], [0], [1], [0, 0, 1, 1], [], []>} : vector<72x128xbf16>, vector<128x128xbf16>, vector<72x128xf32> -> vector<72x128xf32>
    %53 = arith.addf %47, %52 : vector<72x128xf32>
    %c15 = arith.constant 15 : index
    %c0_45 = arith.constant 0 : index
    %54 = vector.load %arg9[%c15, %c0_45] : memref<88x128xf32, #tpu.memory_space<vmem>>, vector<72x128xf32>
    %55 = arith.truncf %54 : vector<72x128xf32> to vector<72x128xbf16>
    %c8_46 = arith.constant 8 : index
    %c0_47 = arith.constant 0 : index
    %c0_48 = arith.constant 0 : index
    %56 = vector.load %arg3[%c8_46, %c0_47, %c0_48] : memref<45x128x128xbf16, #tpu.memory_space<vmem>>, vector<1x128x128xbf16>
    %57 = vector.shape_cast %56 : vector<1x128x128xbf16> to vector<128x128xbf16>
    %cst_49 = arith.constant dense<0.000000e+00> : vector<72x128xf32>
    %58 = tpu.matmul %55, %57, %cst_49 {dimension_numbers = #tpu.dot_dimension_numbers<[1], [0], [0], [1], [0, 0, 1, 1], [], []>} : vector<72x128xbf16>, vector<128x128xbf16>, vector<72x128xf32> -> vector<72x128xf32>
    %59 = arith.addf %53, %58 : vector<72x128xf32>
    %60 = vector.broadcast %0 : vector<72x1xf32> to vector<72x128xf32>
    %61 = arith.mulf %59, %60 : vector<72x128xf32>
    %cst_50 = arith.constant dense<0.000000e+00> : vector<128xf32>
    %62 = vector.multi_reduction <add>, %61, %cst_50 [0] : vector<72x128xf32> to vector<128xf32>
    %63 = vector.shape_cast %62 : vector<128xf32> to vector<1x128xf32>
    %64 = arith.mulf %59, %59 : vector<72x128xf32>
    %65 = vector.broadcast %0 : vector<72x1xf32> to vector<72x128xf32>
    %66 = arith.mulf %64, %65 : vector<72x128xf32>
    %cst_51 = arith.constant dense<0.000000e+00> : vector<128xf32>
    %67 = vector.multi_reduction <add>, %66, %cst_51 [0] : vector<72x128xf32> to vector<128xf32>
    %68 = vector.shape_cast %67 : vector<128xf32> to vector<1x128xf32>
    %cst_52 = arith.constant 3.125000e-02 : f32
    %69 = vector.broadcast %cst_52 : f32 to vector<1x128xf32>
    %70 = arith.mulf %63, %69 : vector<1x128xf32>
    %cst_53 = arith.constant 3.125000e-02 : f32
    %71 = vector.broadcast %cst_53 : f32 to vector<1x128xf32>
    %72 = arith.mulf %68, %71 : vector<1x128xf32>
    %73 = arith.mulf %70, %70 : vector<1x128xf32>
    %74 = arith.subf %72, %73 : vector<1x128xf32>
    %cst_54 = arith.constant 0.000000e+00 : f32
    %75 = vector.broadcast %cst_54 : f32 to vector<1x128xf32>
    %76 = arith.maximumf %74, %75 : vector<1x128xf32>
    %77 = vector.broadcast %70 : vector<1x128xf32> to vector<72x128xf32>
    %78 = arith.subf %59, %77 : vector<72x128xf32>
    %cst_55 = arith.constant 9.99999974E-6 : f32
    %79 = vector.broadcast %cst_55 : f32 to vector<1x128xf32>
    %80 = arith.addf %76, %79 : vector<1x128xf32>
    %81 = math.rsqrt %80 : vector<1x128xf32>
    %82 = vector.broadcast %81 : vector<1x128xf32> to vector<72x128xf32>
    %83 = arith.mulf %78, %82 : vector<72x128xf32>
    %c0_56 = arith.constant 0 : index
    %c0_57 = arith.constant 0 : index
    %c0_58 = arith.constant 0 : index
    %84 = vector.load %arg4[%c0_56, %c0_57, %c0_58] : memref<5x1x128xf32, #tpu.memory_space<vmem>>, vector<1x1x128xf32>
    %85 = vector.shape_cast %84 : vector<1x1x128xf32> to vector<1x128xf32>
    %86 = vector.broadcast %85 : vector<1x128xf32> to vector<72x128xf32>
    %87 = arith.mulf %83, %86 : vector<72x128xf32>
    %c0_59 = arith.constant 0 : index
    %c0_60 = arith.constant 0 : index
    %c0_61 = arith.constant 0 : index
    %88 = vector.load %arg5[%c0_59, %c0_60, %c0_61] : memref<5x1x128xf32, #tpu.memory_space<vmem>>, vector<1x1x128xf32>
    %89 = vector.shape_cast %88 : vector<1x1x128xf32> to vector<1x128xf32>
    %90 = vector.broadcast %89 : vector<1x128xf32> to vector<72x128xf32>
    %91 = arith.addf %87, %90 : vector<72x128xf32>
    %cst_62 = arith.constant 0.000000e+00 : f32
    %92 = vector.broadcast %cst_62 : f32 to vector<72x128xf32>
    %93 = arith.maximumf %91, %92 : vector<72x128xf32>
    %94 = vector.broadcast %0 : vector<72x1xf32> to vector<72x128xf32>
    %95 = arith.mulf %93, %94 : vector<72x128xf32>
    %c8_63 = arith.constant 8 : index
    %c0_64 = arith.constant 0 : index
    %96 = vector.load %arg9[%c8_63, %c0_64] : memref<88x128xf32, #tpu.memory_space<vmem>>, vector<72x128xf32>
    tpu.vector_store %arg9[%c8_63, %c0_64], %95 {strides = array<i32>} : memref<88x128xf32, #tpu.memory_space<vmem>>, vector<72x128xf32>,
    %cst_65 = arith.constant 0.000000e+00 : f32
    %97 = vector.broadcast %cst_65 : f32 to vector<72x128xf32>
    %c1_66 = arith.constant 1 : index
    %c0_67 = arith.constant 0 : index
    %98 = vector.load %arg9[%c1_66, %c0_67] : memref<88x128xf32, #tpu.memory_space<vmem>>, vector<72x128xf32>
    %99 = arith.truncf %98 : vector<72x128xf32> to vector<72x128xbf16>
    %c9_68 = arith.constant 9 : index
    %c0_69 = arith.constant 0 : index
    %c0_70 = arith.constant 0 : index
    %100 = vector.load %arg3[%c9_68, %c0_69, %c0_70] : memref<45x128x128xbf16, #tpu.memory_space<vmem>>, vector<1x128x128xbf16>
    %101 = vector.shape_cast %100 : vector<1x128x128xbf16> to vector<128x128xbf16>
    %cst_71 = arith.constant dense<0.000000e+00> : vector<72x128xf32>
    %102 = tpu.matmul %99, %101, %cst_71 {dimension_numbers = #tpu.dot_dimension_numbers<[1], [0], [0], [1], [0, 0, 1, 1], [], []>} : vector<72x128xbf16>, vector<128x128xbf16>, vector<72x128xf32> -> vector<72x128xf32>
    %103 = arith.addf %97, %102 : vector<72x128xf32>
    %c2_72 = arith.constant 2 : index
    %c0_73 = arith.constant 0 : index
    %104 = vector.load %arg9[%c2_72, %c0_73] : memref<88x128xf32, #tpu.memory_space<vmem>>, vector<72x128xf32>
    %105 = arith.truncf %104 : vector<72x128xf32> to vector<72x128xbf16>
    %c10 = arith.constant 10 : index
    %c0_74 = arith.constant 0 : index
    %c0_75 = arith.constant 0 : index
    %106 = vector.load %arg3[%c10, %c0_74, %c0_75] : memref<45x128x128xbf16, #tpu.memory_space<vmem>>, vector<1x128x128xbf16>
    %107 = vector.shape_cast %106 : vector<1x128x128xbf16> to vector<128x128xbf16>
    %cst_76 = arith.constant dense<0.000000e+00> : vector<72x128xf32>
    %108 = tpu.matmul %105, %107, %cst_76 {dimension_numbers = #tpu.dot_dimension_numbers<[1], [0], [0], [1], [0, 0, 1, 1], [], []>} : vector<72x128xbf16>, vector<128x128xbf16>, vector<72x128xf32> -> vector<72x128xf32>
    %109 = arith.addf %103, %108 : vector<72x128xf32>
    %c3_77 = arith.constant 3 : index
    %c0_78 = arith.constant 0 : index
    %110 = vector.load %arg9[%c3_77, %c0_78] : memref<88x128xf32, #tpu.memory_space<vmem>>, vector<72x128xf32>
    %111 = arith.truncf %110 : vector<72x128xf32> to vector<72x128xbf16>
    %c11 = arith.constant 11 : index
    %c0_79 = arith.constant 0 : index
    %c0_80 = arith.constant 0 : index
    %112 = vector.load %arg3[%c11, %c0_79, %c0_80] : memref<45x128x128xbf16, #tpu.memory_space<vmem>>, vector<1x128x128xbf16>
    %113 = vector.shape_cast %112 : vector<1x128x128xbf16> to vector<128x128xbf16>
    %cst_81 = arith.constant dense<0.000000e+00> : vector<72x128xf32>
    %114 = tpu.matmul %111, %113, %cst_81 {dimension_numbers = #tpu.dot_dimension_numbers<[1], [0], [0], [1], [0, 0, 1, 1], [], []>} : vector<72x128xbf16>, vector<128x128xbf16>, vector<72x128xf32> -> vector<72x128xf32>
    %115 = arith.addf %109, %114 : vector<72x128xf32>
    %c7_82 = arith.constant 7 : index
    %c0_83 = arith.constant 0 : index
    %116 = vector.load %arg9[%c7_82, %c0_83] : memref<88x128xf32, #tpu.memory_space<vmem>>, vector<72x128xf32>
    %117 = arith.truncf %116 : vector<72x128xf32> to vector<72x128xbf16>
    %c12 = arith.constant 12 : index
    %c0_84 = arith.constant 0 : index
    %c0_85 = arith.constant 0 : index
    %118 = vector.load %arg3[%c12, %c0_84, %c0_85] : memref<45x128x128xbf16, #tpu.memory_space<vmem>>, vector<1x128x128xbf16>
    %119 = vector.shape_cast %118 : vector<1x128x128xbf16> to vector<128x128xbf16>
    %cst_86 = arith.constant dense<0.000000e+00> : vector<72x128xf32>
    %120 = tpu.matmul %117, %119, %cst_86 {dimension_numbers = #tpu.dot_dimension_numbers<[1], [0], [0], [1], [0, 0, 1, 1], [], []>} : vector<72x128xbf16>, vector<128x128xbf16>, vector<72x128xf32> -> vector<72x128xf32>
    %121 = arith.addf %115, %120 : vector<72x128xf32>
    %c8_87 = arith.constant 8 : index
    %c0_88 = arith.constant 0 : index
    %122 = vector.load %arg9[%c8_87, %c0_88] : memref<88x128xf32, #tpu.memory_space<vmem>>, vector<72x128xf32>
    %123 = arith.truncf %122 : vector<72x128xf32> to vector<72x128xbf16>
    %c13_89 = arith.constant 13 : index
    %c0_90 = arith.constant 0 : index
    %c0_91 = arith.constant 0 : index
    %124 = vector.load %arg3[%c13_89, %c0_90, %c0_91] : memref<45x128x128xbf16, #tpu.memory_space<vmem>>, vector<1x128x128xbf16>
    %125 = vector.shape_cast %124 : vector<1x128x128xbf16> to vector<128x128xbf16>
    %cst_92 = arith.constant dense<0.000000e+00> : vector<72x128xf32>
    %126 = tpu.matmul %123, %125, %cst_92 {dimension_numbers = #tpu.dot_dimension_numbers<[1], [0], [0], [1], [0, 0, 1, 1], [], []>} : vector<72x128xbf16>, vector<128x128xbf16>, vector<72x128xf32> -> vector<72x128xf32>
    %127 = arith.addf %121, %126 : vector<72x128xf32>
    %c9_93 = arith.constant 9 : index
    %c0_94 = arith.constant 0 : index
    %128 = vector.load %arg9[%c9_93, %c0_94] : memref<88x128xf32, #tpu.memory_space<vmem>>, vector<72x128xf32>
    %129 = arith.truncf %128 : vector<72x128xf32> to vector<72x128xbf16>
    %c14_95 = arith.constant 14 : index
    %c0_96 = arith.constant 0 : index
    %c0_97 = arith.constant 0 : index
    %130 = vector.load %arg3[%c14_95, %c0_96, %c0_97] : memref<45x128x128xbf16, #tpu.memory_space<vmem>>, vector<1x128x128xbf16>
    %131 = vector.shape_cast %130 : vector<1x128x128xbf16> to vector<128x128xbf16>
    %cst_98 = arith.constant dense<0.000000e+00> : vector<72x128xf32>
    %132 = tpu.matmul %129, %131, %cst_98 {dimension_numbers = #tpu.dot_dimension_numbers<[1], [0], [0], [1], [0, 0, 1, 1], [], []>} : vector<72x128xbf16>, vector<128x128xbf16>, vector<72x128xf32> -> vector<72x128xf32>
    %133 = arith.addf %127, %132 : vector<72x128xf32>
    %c13_99 = arith.constant 13 : index
    %c0_100 = arith.constant 0 : index
    %134 = vector.load %arg9[%c13_99, %c0_100] : memref<88x128xf32, #tpu.memory_space<vmem>>, vector<72x128xf32>
    %135 = arith.truncf %134 : vector<72x128xf32> to vector<72x128xbf16>
    %c15_101 = arith.constant 15 : index
    %c0_102 = arith.constant 0 : index
    %c0_103 = arith.constant 0 : index
    %136 = vector.load %arg3[%c15_101, %c0_102, %c0_103] : memref<45x128x128xbf16, #tpu.memory_space<vmem>>, vector<1x128x128xbf16>
    %137 = vector.shape_cast %136 : vector<1x128x128xbf16> to vector<128x128xbf16>
    %cst_104 = arith.constant dense<0.000000e+00> : vector<72x128xf32>
    %138 = tpu.matmul %135, %137, %cst_104 {dimension_numbers = #tpu.dot_dimension_numbers<[1], [0], [0], [1], [0, 0, 1, 1], [], []>} : vector<72x128xbf16>, vector<128x128xbf16>, vector<72x128xf32> -> vector<72x128xf32>
    %139 = arith.addf %133, %138 : vector<72x128xf32>
    %c14_105 = arith.constant 14 : index
    %c0_106 = arith.constant 0 : index
    %140 = vector.load %arg9[%c14_105, %c0_106] : memref<88x128xf32, #tpu.memory_space<vmem>>, vector<72x128xf32>
    %141 = arith.truncf %140 : vector<72x128xf32> to vector<72x128xbf16>
    %c16 = arith.constant 16 : index
    %c0_107 = arith.constant 0 : index
    %c0_108 = arith.constant 0 : index
    %142 = vector.load %arg3[%c16, %c0_107, %c0_108] : memref<45x128x128xbf16, #tpu.memory_space<vmem>>, vector<1x128x128xbf16>
    %143 = vector.shape_cast %142 : vector<1x128x128xbf16> to vector<128x128xbf16>
    %cst_109 = arith.constant dense<0.000000e+00> : vector<72x128xf32>
    %144 = tpu.matmul %141, %143, %cst_109 {dimension_numbers = #tpu.dot_dimension_numbers<[1], [0], [0], [1], [0, 0, 1, 1], [], []>} : vector<72x128xbf16>, vector<128x128xbf16>, vector<72x128xf32> -> vector<72x128xf32>
    %145 = arith.addf %139, %144 : vector<72x128xf32>
    %c15_110 = arith.constant 15 : index
    %c0_111 = arith.constant 0 : index
    %146 = vector.load %arg9[%c15_110, %c0_111] : memref<88x128xf32, #tpu.memory_space<vmem>>, vector<72x128xf32>
    %147 = arith.truncf %146 : vector<72x128xf32> to vector<72x128xbf16>
    %c17 = arith.constant 17 : index
    %c0_112 = arith.constant 0 : index
    %c0_113 = arith.constant 0 : index
    %148 = vector.load %arg3[%c17, %c0_112, %c0_113] : memref<45x128x128xbf16, #tpu.memory_space<vmem>>, vector<1x128x128xbf16>
    %149 = vector.shape_cast %148 : vector<1x128x128xbf16> to vector<128x128xbf16>
    %cst_114 = arith.constant dense<0.000000e+00> : vector<72x128xf32>
    %150 = tpu.matmul %147, %149, %cst_114 {dimension_numbers = #tpu.dot_dimension_numbers<[1], [0], [0], [1], [0, 0, 1, 1], [], []>} : vector<72x128xbf16>, vector<128x128xbf16>, vector<72x128xf32> -> vector<72x128xf32>
    %151 = arith.addf %145, %150 : vector<72x128xf32>
    %152 = vector.broadcast %0 : vector<72x1xf32> to vector<72x128xf32>
    %153 = arith.mulf %151, %152 : vector<72x128xf32>
    %cst_115 = arith.constant dense<0.000000e+00> : vector<128xf32>
    %154 = vector.multi_reduction <add>, %153, %cst_115 [0] : vector<72x128xf32> to vector<128xf32>
    %155 = vector.shape_cast %154 : vector<128xf32> to vector<1x128xf32>
    %156 = arith.mulf %151, %151 : vector<72x128xf32>
    %157 = vector.broadcast %0 : vector<72x1xf32> to vector<72x128xf32>
    %158 = arith.mulf %156, %157 : vector<72x128xf32>
    %cst_116 = arith.constant dense<0.000000e+00> : vector<128xf32>
    %159 = vector.multi_reduction <add>, %158, %cst_116 [0] : vector<72x128xf32> to vector<128xf32>
    %160 = vector.shape_cast %159 : vector<128xf32> to vector<1x128xf32>
    %cst_117 = arith.constant 3.125000e-02 : f32
    %161 = vector.broadcast %cst_117 : f32 to vector<1x128xf32>
    %162 = arith.mulf %155, %161 : vector<1x128xf32>
    %cst_118 = arith.constant 3.125000e-02 : f32
    %163 = vector.broadcast %cst_118 : f32 to vector<1x128xf32>
    %164 = arith.mulf %160, %163 : vector<1x128xf32>
    %165 = arith.mulf %162, %162 : vector<1x128xf32>
    %166 = arith.subf %164, %165 : vector<1x128xf32>
    %cst_119 = arith.constant 0.000000e+00 : f32
    %167 = vector.broadcast %cst_119 : f32 to vector<1x128xf32>
    %168 = arith.maximumf %166, %167 : vector<1x128xf32>
    %169 = vector.broadcast %162 : vector<1x128xf32> to vector<72x128xf32>
    %170 = arith.subf %151, %169 : vector<72x128xf32>
    %cst_120 = arith.constant 9.99999974E-6 : f32
    %171 = vector.broadcast %cst_120 : f32 to vector<1x128xf32>
    %172 = arith.addf %168, %171 : vector<1x128xf32>
    %173 = math.rsqrt %172 : vector<1x128xf32>
    %174 = vector.broadcast %173 : vector<1x128xf32> to vector<72x128xf32>
    %175 = arith.mulf %170, %174 : vector<72x128xf32>
    %c1_121 = arith.constant 1 : index
    %c0_122 = arith.constant 0 : index
    %c0_123 = arith.constant 0 : index
    %176 = vector.load %arg4[%c1_121, %c0_122, %c0_123] : memref<5x1x128xf32, #tpu.memory_space<vmem>>, vector<1x1x128xf32>
    %177 = vector.shape_cast %176 : vector<1x1x128xf32> to vector<1x128xf32>
    %178 = vector.broadcast %177 : vector<1x128xf32> to vector<72x128xf32>
    %179 = arith.mulf %175, %178 : vector<72x128xf32>
    %c1_124 = arith.constant 1 : index
    %c0_125 = arith.constant 0 : index
    %c0_126 = arith.constant 0 : index
    %180 = vector.load %arg5[%c1_124, %c0_125, %c0_126] : memref<5x1x128xf32, #tpu.memory_space<vmem>>, vector<1x1x128xf32>
    %181 = vector.shape_cast %180 : vector<1x1x128xf32> to vector<1x128xf32>
    %182 = vector.broadcast %181 : vector<1x128xf32> to vector<72x128xf32>
    %183 = arith.addf %179, %182 : vector<72x128xf32>
    %cst_127 = arith.constant 0.000000e+00 : f32
    %184 = vector.broadcast %cst_127 : f32 to vector<72x128xf32>
    %185 = arith.maximumf %183, %184 : vector<72x128xf32>
    %186 = vector.broadcast %0 : vector<72x1xf32> to vector<72x128xf32>
    %187 = arith.mulf %185, %186 : vector<72x128xf32>
    %c8_128 = arith.constant 8 : index
    %c0_129 = arith.constant 0 : index
    %188 = vector.load %arg9[%c8_128, %c0_129] : memref<88x128xf32, #tpu.memory_space<vmem>>, vector<72x128xf32>
    tpu.vector_store %arg9[%c8_128, %c0_129], %187 {strides = array<i32>} : memref<88x128xf32, #tpu.memory_space<vmem>>, vector<72x128xf32>,
    %cst_130 = arith.constant 0.000000e+00 : f32
    %189 = vector.broadcast %cst_130 : f32 to vector<72x128xf32>
    %c1_131 = arith.constant 1 : index
    %c0_132 = arith.constant 0 : index
    %190 = vector.load %arg9[%c1_131, %c0_132] : memref<88x128xf32, #tpu.memory_space<vmem>>, vector<72x128xf32>
    %191 = arith.truncf %190 : vector<72x128xf32> to vector<72x128xbf16>
    %c18 = arith.constant 18 : index
    %c0_133 = arith.constant 0 : index
    %c0_134 = arith.constant 0 : index
    %192 = vector.load %arg3[%c18, %c0_133, %c0_134] : memref<45x128x128xbf16, #tpu.memory_space<vmem>>, vector<1x128x128xbf16>
    %193 = vector.shape_cast %192 : vector<1x128x128xbf16> to vector<128x128xbf16>
    %cst_135 = arith.constant dense<0.000000e+00> : vector<72x128xf32>
    %194 = tpu.matmul %191, %193, %cst_135 {dimension_numbers = #tpu.dot_dimension_numbers<[1], [0], [0], [1], [0, 0, 1, 1], [], []>} : vector<72x128xbf16>, vector<128x128xbf16>, vector<72x128xf32> -> vector<72x128xf32>
    %195 = arith.addf %189, %194 : vector<72x128xf32>
    %c2_136 = arith.constant 2 : index
    %c0_137 = arith.constant 0 : index
    %196 = vector.load %arg9[%c2_136, %c0_137] : memref<88x128xf32, #tpu.memory_space<vmem>>, vector<72x128xf32>
    %197 = arith.truncf %196 : vector<72x128xf32> to vector<72x128xbf16>
    %c19 = arith.constant 19 : index
    %c0_138 = arith.constant 0 : index
    %c0_139 = arith.constant 0 : index
    %198 = vector.load %arg3[%c19, %c0_138, %c0_139] : memref<45x128x128xbf16, #tpu.memory_space<vmem>>, vector<1x128x128xbf16>
    %199 = vector.shape_cast %198 : vector<1x128x128xbf16> to vector<128x128xbf16>
    %cst_140 = arith.constant dense<0.000000e+00> : vector<72x128xf32>
    %200 = tpu.matmul %197, %199, %cst_140 {dimension_numbers = #tpu.dot_dimension_numbers<[1], [0], [0], [1], [0, 0, 1, 1], [], []>} : vector<72x128xbf16>, vector<128x128xbf16>, vector<72x128xf32> -> vector<72x128xf32>
    %201 = arith.addf %195, %200 : vector<72x128xf32>
    %c3_141 = arith.constant 3 : index
    %c0_142 = arith.constant 0 : index
    %202 = vector.load %arg9[%c3_141, %c0_142] : memref<88x128xf32, #tpu.memory_space<vmem>>, vector<72x128xf32>
    %203 = arith.truncf %202 : vector<72x128xf32> to vector<72x128xbf16>
    %c20 = arith.constant 20 : index
    %c0_143 = arith.constant 0 : index
    %c0_144 = arith.constant 0 : index
    %204 = vector.load %arg3[%c20, %c0_143, %c0_144] : memref<45x128x128xbf16, #tpu.memory_space<vmem>>, vector<1x128x128xbf16>
    %205 = vector.shape_cast %204 : vector<1x128x128xbf16> to vector<128x128xbf16>
    %cst_145 = arith.constant dense<0.000000e+00> : vector<72x128xf32>
    %206 = tpu.matmul %203, %205, %cst_145 {dimension_numbers = #tpu.dot_dimension_numbers<[1], [0], [0], [1], [0, 0, 1, 1], [], []>} : vector<72x128xbf16>, vector<128x128xbf16>, vector<72x128xf32> -> vector<72x128xf32>
    %207 = arith.addf %201, %206 : vector<72x128xf32>
    %c7_146 = arith.constant 7 : index
    %c0_147 = arith.constant 0 : index
    %208 = vector.load %arg9[%c7_146, %c0_147] : memref<88x128xf32, #tpu.memory_space<vmem>>, vector<72x128xf32>
    %209 = arith.truncf %208 : vector<72x128xf32> to vector<72x128xbf16>
    %c21 = arith.constant 21 : index
    %c0_148 = arith.constant 0 : index
    %c0_149 = arith.constant 0 : index
    %210 = vector.load %arg3[%c21, %c0_148, %c0_149] : memref<45x128x128xbf16, #tpu.memory_space<vmem>>, vector<1x128x128xbf16>
    %211 = vector.shape_cast %210 : vector<1x128x128xbf16> to vector<128x128xbf16>
    %cst_150 = arith.constant dense<0.000000e+00> : vector<72x128xf32>
    %212 = tpu.matmul %209, %211, %cst_150 {dimension_numbers = #tpu.dot_dimension_numbers<[1], [0], [0], [1], [0, 0, 1, 1], [], []>} : vector<72x128xbf16>, vector<128x128xbf16>, vector<72x128xf32> -> vector<72x128xf32>
    %213 = arith.addf %207, %212 : vector<72x128xf32>
    %c8_151 = arith.constant 8 : index
    %c0_152 = arith.constant 0 : index
    %214 = vector.load %arg9[%c8_151, %c0_152] : memref<88x128xf32, #tpu.memory_space<vmem>>, vector<72x128xf32>
    %215 = arith.truncf %214 : vector<72x128xf32> to vector<72x128xbf16>
    %c22 = arith.constant 22 : index
    %c0_153 = arith.constant 0 : index
    %c0_154 = arith.constant 0 : index
    %216 = vector.load %arg3[%c22, %c0_153, %c0_154] : memref<45x128x128xbf16, #tpu.memory_space<vmem>>, vector<1x128x128xbf16>
    %217 = vector.shape_cast %216 : vector<1x128x128xbf16> to vector<128x128xbf16>
    %cst_155 = arith.constant dense<0.000000e+00> : vector<72x128xf32>
    %218 = tpu.matmul %215, %217, %cst_155 {dimension_numbers = #tpu.dot_dimension_numbers<[1], [0], [0], [1], [0, 0, 1, 1], [], []>} : vector<72x128xbf16>, vector<128x128xbf16>, vector<72x128xf32> -> vector<72x128xf32>
    %219 = arith.addf %213, %218 : vector<72x128xf32>
    %c9_156 = arith.constant 9 : index
    %c0_157 = arith.constant 0 : index
    %220 = vector.load %arg9[%c9_156, %c0_157] : memref<88x128xf32, #tpu.memory_space<vmem>>, vector<72x128xf32>
    %221 = arith.truncf %220 : vector<72x128xf32> to vector<72x128xbf16>
    %c23 = arith.constant 23 : index
    %c0_158 = arith.constant 0 : index
    %c0_159 = arith.constant 0 : index
    %222 = vector.load %arg3[%c23, %c0_158, %c0_159] : memref<45x128x128xbf16, #tpu.memory_space<vmem>>, vector<1x128x128xbf16>
    %223 = vector.shape_cast %222 : vector<1x128x128xbf16> to vector<128x128xbf16>
    %cst_160 = arith.constant dense<0.000000e+00> : vector<72x128xf32>
    %224 = tpu.matmul %221, %223, %cst_160 {dimension_numbers = #tpu.dot_dimension_numbers<[1], [0], [0], [1], [0, 0, 1, 1], [], []>} : vector<72x128xbf16>, vector<128x128xbf16>, vector<72x128xf32> -> vector<72x128xf32>
    %225 = arith.addf %219, %224 : vector<72x128xf32>
    %c13_161 = arith.constant 13 : index
    %c0_162 = arith.constant 0 : index
    %226 = vector.load %arg9[%c13_161, %c0_162] : memref<88x128xf32, #tpu.memory_space<vmem>>, vector<72x128xf32>
    %227 = arith.truncf %226 : vector<72x128xf32> to vector<72x128xbf16>
    %c24 = arith.constant 24 : index
    %c0_163 = arith.constant 0 : index
    %c0_164 = arith.constant 0 : index
    %228 = vector.load %arg3[%c24, %c0_163, %c0_164] : memref<45x128x128xbf16, #tpu.memory_space<vmem>>, vector<1x128x128xbf16>
    %229 = vector.shape_cast %228 : vector<1x128x128xbf16> to vector<128x128xbf16>
    %cst_165 = arith.constant dense<0.000000e+00> : vector<72x128xf32>
    %230 = tpu.matmul %227, %229, %cst_165 {dimension_numbers = #tpu.dot_dimension_numbers<[1], [0], [0], [1], [0, 0, 1, 1], [], []>} : vector<72x128xbf16>, vector<128x128xbf16>, vector<72x128xf32> -> vector<72x128xf32>
    %231 = arith.addf %225, %230 : vector<72x128xf32>
    %c14_166 = arith.constant 14 : index
    %c0_167 = arith.constant 0 : index
    %232 = vector.load %arg9[%c14_166, %c0_167] : memref<88x128xf32, #tpu.memory_space<vmem>>, vector<72x128xf32>
    %233 = arith.truncf %232 : vector<72x128xf32> to vector<72x128xbf16>
    %c25 = arith.constant 25 : index
    %c0_168 = arith.constant 0 : index
    %c0_169 = arith.constant 0 : index
    %234 = vector.load %arg3[%c25, %c0_168, %c0_169] : memref<45x128x128xbf16, #tpu.memory_space<vmem>>, vector<1x128x128xbf16>
    %235 = vector.shape_cast %234 : vector<1x128x128xbf16> to vector<128x128xbf16>
    %cst_170 = arith.constant dense<0.000000e+00> : vector<72x128xf32>
    %236 = tpu.matmul %233, %235, %cst_170 {dimension_numbers = #tpu.dot_dimension_numbers<[1], [0], [0], [1], [0, 0, 1, 1], [], []>} : vector<72x128xbf16>, vector<128x128xbf16>, vector<72x128xf32> -> vector<72x128xf32>
    %237 = arith.addf %231, %236 : vector<72x128xf32>
    %c15_171 = arith.constant 15 : index
    %c0_172 = arith.constant 0 : index
    %238 = vector.load %arg9[%c15_171, %c0_172] : memref<88x128xf32, #tpu.memory_space<vmem>>, vector<72x128xf32>
    %239 = arith.truncf %238 : vector<72x128xf32> to vector<72x128xbf16>
    %c26 = arith.constant 26 : index
    %c0_173 = arith.constant 0 : index
    %c0_174 = arith.constant 0 : index
    %240 = vector.load %arg3[%c26, %c0_173, %c0_174] : memref<45x128x128xbf16, #tpu.memory_space<vmem>>, vector<1x128x128xbf16>
    %241 = vector.shape_cast %240 : vector<1x128x128xbf16> to vector<128x128xbf16>
    %cst_175 = arith.constant dense<0.000000e+00> : vector<72x128xf32>
    %242 = tpu.matmul %239, %241, %cst_175 {dimension_numbers = #tpu.dot_dimension_numbers<[1], [0], [0], [1], [0, 0, 1, 1], [], []>} : vector<72x128xbf16>, vector<128x128xbf16>, vector<72x128xf32> -> vector<72x128xf32>
    %243 = arith.addf %237, %242 : vector<72x128xf32>
    %244 = vector.broadcast %0 : vector<72x1xf32> to vector<72x128xf32>
    %245 = arith.mulf %243, %244 : vector<72x128xf32>
    %cst_176 = arith.constant dense<0.000000e+00> : vector<128xf32>
    %246 = vector.multi_reduction <add>, %245, %cst_176 [0] : vector<72x128xf32> to vector<128xf32>
    %247 = vector.shape_cast %246 : vector<128xf32> to vector<1x128xf32>
    %248 = arith.mulf %243, %243 : vector<72x128xf32>
    %249 = vector.broadcast %0 : vector<72x1xf32> to vector<72x128xf32>
    %250 = arith.mulf %248, %249 : vector<72x128xf32>
    %cst_177 = arith.constant dense<0.000000e+00> : vector<128xf32>
    %251 = vector.multi_reduction <add>, %250, %cst_177 [0] : vector<72x128xf32> to vector<128xf32>
    %252 = vector.shape_cast %251 : vector<128xf32> to vector<1x128xf32>
    %cst_178 = arith.constant 3.125000e-02 : f32
    %253 = vector.broadcast %cst_178 : f32 to vector<1x128xf32>
    %254 = arith.mulf %247, %253 : vector<1x128xf32>
    %cst_179 = arith.constant 3.125000e-02 : f32
    %255 = vector.broadcast %cst_179 : f32 to vector<1x128xf32>
    %256 = arith.mulf %252, %255 : vector<1x128xf32>
    %257 = arith.mulf %254, %254 : vector<1x128xf32>
    %258 = arith.subf %256, %257 : vector<1x128xf32>
    %cst_180 = arith.constant 0.000000e+00 : f32
    %259 = vector.broadcast %cst_180 : f32 to vector<1x128xf32>
    %260 = arith.maximumf %258, %259 : vector<1x128xf32>
    %261 = vector.broadcast %254 : vector<1x128xf32> to vector<72x128xf32>
    %262 = arith.subf %243, %261 : vector<72x128xf32>
    %cst_181 = arith.constant 9.99999974E-6 : f32
    %263 = vector.broadcast %cst_181 : f32 to vector<1x128xf32>
    %264 = arith.addf %260, %263 : vector<1x128xf32>
    %265 = math.rsqrt %264 : vector<1x128xf32>
    %266 = vector.broadcast %265 : vector<1x128xf32> to vector<72x128xf32>
    %267 = arith.mulf %262, %266 : vector<72x128xf32>
    %c2_182 = arith.constant 2 : index
    %c0_183 = arith.constant 0 : index
    %c0_184 = arith.constant 0 : index
    %268 = vector.load %arg4[%c2_182, %c0_183, %c0_184] : memref<5x1x128xf32, #tpu.memory_space<vmem>>, vector<1x1x128xf32>
    %269 = vector.shape_cast %268 : vector<1x1x128xf32> to vector<1x128xf32>
    %270 = vector.broadcast %269 : vector<1x128xf32> to vector<72x128xf32>
    %271 = arith.mulf %267, %270 : vector<72x128xf32>
    %c2_185 = arith.constant 2 : index
    %c0_186 = arith.constant 0 : index
    %c0_187 = arith.constant 0 : index
    %272 = vector.load %arg5[%c2_185, %c0_186, %c0_187] : memref<5x1x128xf32, #tpu.memory_space<vmem>>, vector<1x1x128xf32>
    %273 = vector.shape_cast %272 : vector<1x1x128xf32> to vector<1x128xf32>
    %274 = vector.broadcast %273 : vector<1x128xf32> to vector<72x128xf32>
    %275 = arith.addf %271, %274 : vector<72x128xf32>
    %276 = arith.addf %275, %95 : vector<72x128xf32>
    %cst_188 = arith.constant 0.000000e+00 : f32
    %277 = vector.broadcast %cst_188 : f32 to vector<72x128xf32>
    %278 = arith.maximumf %276, %277 : vector<72x128xf32>
    %279 = vector.broadcast %0 : vector<72x1xf32> to vector<72x128xf32>
    %280 = arith.mulf %278, %279 : vector<72x128xf32>
    %c8_189 = arith.constant 8 : index
    %c0_190 = arith.constant 0 : index
    %281 = vector.load %arg9[%c8_189, %c0_190] : memref<88x128xf32, #tpu.memory_space<vmem>>, vector<72x128xf32>
    tpu.vector_store %arg9[%c8_189, %c0_190], %280 {strides = array<i32>} : memref<88x128xf32, #tpu.memory_space<vmem>>, vector<72x128xf32>,
    %cst_191 = arith.constant 0.000000e+00 : f32
    %282 = vector.broadcast %cst_191 : f32 to vector<72x128xf32>
    %c1_192 = arith.constant 1 : index
    %c0_193 = arith.constant 0 : index
    %283 = vector.load %arg9[%c1_192, %c0_193] : memref<88x128xf32, #tpu.memory_space<vmem>>, vector<72x128xf32>
    %284 = arith.truncf %283 : vector<72x128xf32> to vector<72x128xbf16>
    %c27 = arith.constant 27 : index
    %c0_194 = arith.constant 0 : index
    %c0_195 = arith.constant 0 : index
    %285 = vector.load %arg3[%c27, %c0_194, %c0_195] : memref<45x128x128xbf16, #tpu.memory_space<vmem>>, vector<1x128x128xbf16>
    %286 = vector.shape_cast %285 : vector<1x128x128xbf16> to vector<128x128xbf16>
    %cst_196 = arith.constant dense<0.000000e+00> : vector<72x128xf32>
    %287 = tpu.matmul %284, %286, %cst_196 {dimension_numbers = #tpu.dot_dimension_numbers<[1], [0], [0], [1], [0, 0, 1, 1], [], []>} : vector<72x128xbf16>, vector<128x128xbf16>, vector<72x128xf32> -> vector<72x128xf32>
    %288 = arith.addf %282, %287 : vector<72x128xf32>
    %c2_197 = arith.constant 2 : index
    %c0_198 = arith.constant 0 : index
    %289 = vector.load %arg9[%c2_197, %c0_198] : memref<88x128xf32, #tpu.memory_space<vmem>>, vector<72x128xf32>
    %290 = arith.truncf %289 : vector<72x128xf32> to vector<72x128xbf16>
    %c28 = arith.constant 28 : index
    %c0_199 = arith.constant 0 : index
    %c0_200 = arith.constant 0 : index
    %291 = vector.load %arg3[%c28, %c0_199, %c0_200] : memref<45x128x128xbf16, #tpu.memory_space<vmem>>, vector<1x128x128xbf16>
    %292 = vector.shape_cast %291 : vector<1x128x128xbf16> to vector<128x128xbf16>
    %cst_201 = arith.constant dense<0.000000e+00> : vector<72x128xf32>
    %293 = tpu.matmul %290, %292, %cst_201 {dimension_numbers = #tpu.dot_dimension_numbers<[1], [0], [0], [1], [0, 0, 1, 1], [], []>} : vector<72x128xbf16>, vector<128x128xbf16>, vector<72x128xf32> -> vector<72x128xf32>
    %294 = arith.addf %288, %293 : vector<72x128xf32>
    %c3_202 = arith.constant 3 : index
    %c0_203 = arith.constant 0 : index
    %295 = vector.load %arg9[%c3_202, %c0_203] : memref<88x128xf32, #tpu.memory_space<vmem>>, vector<72x128xf32>
    %296 = arith.truncf %295 : vector<72x128xf32> to vector<72x128xbf16>
    %c29 = arith.constant 29 : index
    %c0_204 = arith.constant 0 : index
    %c0_205 = arith.constant 0 : index
    %297 = vector.load %arg3[%c29, %c0_204, %c0_205] : memref<45x128x128xbf16, #tpu.memory_space<vmem>>, vector<1x128x128xbf16>
    %298 = vector.shape_cast %297 : vector<1x128x128xbf16> to vector<128x128xbf16>
    %cst_206 = arith.constant dense<0.000000e+00> : vector<72x128xf32>
    %299 = tpu.matmul %296, %298, %cst_206 {dimension_numbers = #tpu.dot_dimension_numbers<[1], [0], [0], [1], [0, 0, 1, 1], [], []>} : vector<72x128xbf16>, vector<128x128xbf16>, vector<72x128xf32> -> vector<72x128xf32>
    %300 = arith.addf %294, %299 : vector<72x128xf32>
    %c7_207 = arith.constant 7 : index
    %c0_208 = arith.constant 0 : index
    %301 = vector.load %arg9[%c7_207, %c0_208] : memref<88x128xf32, #tpu.memory_space<vmem>>, vector<72x128xf32>
    %302 = arith.truncf %301 : vector<72x128xf32> to vector<72x128xbf16>
    %c30 = arith.constant 30 : index
    %c0_209 = arith.constant 0 : index
    %c0_210 = arith.constant 0 : index
    %303 = vector.load %arg3[%c30, %c0_209, %c0_210] : memref<45x128x128xbf16, #tpu.memory_space<vmem>>, vector<1x128x128xbf16>
    %304 = vector.shape_cast %303 : vector<1x128x128xbf16> to vector<128x128xbf16>
    %cst_211 = arith.constant dense<0.000000e+00> : vector<72x128xf32>
    %305 = tpu.matmul %302, %304, %cst_211 {dimension_numbers = #tpu.dot_dimension_numbers<[1], [0], [0], [1], [0, 0, 1, 1], [], []>} : vector<72x128xbf16>, vector<128x128xbf16>, vector<72x128xf32> -> vector<72x128xf32>
    %306 = arith.addf %300, %305 : vector<72x128xf32>
    %c8_212 = arith.constant 8 : index
    %c0_213 = arith.constant 0 : index
    %307 = vector.load %arg9[%c8_212, %c0_213] : memref<88x128xf32, #tpu.memory_space<vmem>>, vector<72x128xf32>
    %308 = arith.truncf %307 : vector<72x128xf32> to vector<72x128xbf16>
    %c31 = arith.constant 31 : index
    %c0_214 = arith.constant 0 : index
    %c0_215 = arith.constant 0 : index
    %309 = vector.load %arg3[%c31, %c0_214, %c0_215] : memref<45x128x128xbf16, #tpu.memory_space<vmem>>, vector<1x128x128xbf16>
    %310 = vector.shape_cast %309 : vector<1x128x128xbf16> to vector<128x128xbf16>
    %cst_216 = arith.constant dense<0.000000e+00> : vector<72x128xf32>
    %311 = tpu.matmul %308, %310, %cst_216 {dimension_numbers = #tpu.dot_dimension_numbers<[1], [0], [0], [1], [0, 0, 1, 1], [], []>} : vector<72x128xbf16>, vector<128x128xbf16>, vector<72x128xf32> -> vector<72x128xf32>
    %312 = arith.addf %306, %311 : vector<72x128xf32>
    %c9_217 = arith.constant 9 : index
    %c0_218 = arith.constant 0 : index
    %313 = vector.load %arg9[%c9_217, %c0_218] : memref<88x128xf32, #tpu.memory_space<vmem>>, vector<72x128xf32>
    %314 = arith.truncf %313 : vector<72x128xf32> to vector<72x128xbf16>
    %c32 = arith.constant 32 : index
    %c0_219 = arith.constant 0 : index
    %c0_220 = arith.constant 0 : index
    %315 = vector.load %arg3[%c32, %c0_219, %c0_220] : memref<45x128x128xbf16, #tpu.memory_space<vmem>>, vector<1x128x128xbf16>
    %316 = vector.shape_cast %315 : vector<1x128x128xbf16> to vector<128x128xbf16>
    %cst_221 = arith.constant dense<0.000000e+00> : vector<72x128xf32>
    %317 = tpu.matmul %314, %316, %cst_221 {dimension_numbers = #tpu.dot_dimension_numbers<[1], [0], [0], [1], [0, 0, 1, 1], [], []>} : vector<72x128xbf16>, vector<128x128xbf16>, vector<72x128xf32> -> vector<72x128xf32>
    %318 = arith.addf %312, %317 : vector<72x128xf32>
    %c13_222 = arith.constant 13 : index
    %c0_223 = arith.constant 0 : index
    %319 = vector.load %arg9[%c13_222, %c0_223] : memref<88x128xf32, #tpu.memory_space<vmem>>, vector<72x128xf32>
    %320 = arith.truncf %319 : vector<72x128xf32> to vector<72x128xbf16>
    %c33 = arith.constant 33 : index
    %c0_224 = arith.constant 0 : index
    %c0_225 = arith.constant 0 : index
    %321 = vector.load %arg3[%c33, %c0_224, %c0_225] : memref<45x128x128xbf16, #tpu.memory_space<vmem>>, vector<1x128x128xbf16>
    %322 = vector.shape_cast %321 : vector<1x128x128xbf16> to vector<128x128xbf16>
    %cst_226 = arith.constant dense<0.000000e+00> : vector<72x128xf32>
    %323 = tpu.matmul %320, %322, %cst_226 {dimension_numbers = #tpu.dot_dimension_numbers<[1], [0], [0], [1], [0, 0, 1, 1], [], []>} : vector<72x128xbf16>, vector<128x128xbf16>, vector<72x128xf32> -> vector<72x128xf32>
    %324 = arith.addf %318, %323 : vector<72x128xf32>
    %c14_227 = arith.constant 14 : index
    %c0_228 = arith.constant 0 : index
    %325 = vector.load %arg9[%c14_227, %c0_228] : memref<88x128xf32, #tpu.memory_space<vmem>>, vector<72x128xf32>
    %326 = arith.truncf %325 : vector<72x128xf32> to vector<72x128xbf16>
    %c34 = arith.constant 34 : index
    %c0_229 = arith.constant 0 : index
    %c0_230 = arith.constant 0 : index
    %327 = vector.load %arg3[%c34, %c0_229, %c0_230] : memref<45x128x128xbf16, #tpu.memory_space<vmem>>, vector<1x128x128xbf16>
    %328 = vector.shape_cast %327 : vector<1x128x128xbf16> to vector<128x128xbf16>
    %cst_231 = arith.constant dense<0.000000e+00> : vector<72x128xf32>
    %329 = tpu.matmul %326, %328, %cst_231 {dimension_numbers = #tpu.dot_dimension_numbers<[1], [0], [0], [1], [0, 0, 1, 1], [], []>} : vector<72x128xbf16>, vector<128x128xbf16>, vector<72x128xf32> -> vector<72x128xf32>
    %330 = arith.addf %324, %329 : vector<72x128xf32>
    %c15_232 = arith.constant 15 : index
    %c0_233 = arith.constant 0 : index
    %331 = vector.load %arg9[%c15_232, %c0_233] : memref<88x128xf32, #tpu.memory_space<vmem>>, vector<72x128xf32>
    %332 = arith.truncf %331 : vector<72x128xf32> to vector<72x128xbf16>
    %c35 = arith.constant 35 : index
    %c0_234 = arith.constant 0 : index
    %c0_235 = arith.constant 0 : index
    %333 = vector.load %arg3[%c35, %c0_234, %c0_235] : memref<45x128x128xbf16, #tpu.memory_space<vmem>>, vector<1x128x128xbf16>
    %334 = vector.shape_cast %333 : vector<1x128x128xbf16> to vector<128x128xbf16>
    %cst_236 = arith.constant dense<0.000000e+00> : vector<72x128xf32>
    %335 = tpu.matmul %332, %334, %cst_236 {dimension_numbers = #tpu.dot_dimension_numbers<[1], [0], [0], [1], [0, 0, 1, 1], [], []>} : vector<72x128xbf16>, vector<128x128xbf16>, vector<72x128xf32> -> vector<72x128xf32>
    %336 = arith.addf %330, %335 : vector<72x128xf32>
    %337 = vector.broadcast %0 : vector<72x1xf32> to vector<72x128xf32>
    %338 = arith.mulf %336, %337 : vector<72x128xf32>
    %cst_237 = arith.constant dense<0.000000e+00> : vector<128xf32>
    %339 = vector.multi_reduction <add>, %338, %cst_237 [0] : vector<72x128xf32> to vector<128xf32>
    %340 = vector.shape_cast %339 : vector<128xf32> to vector<1x128xf32>
    %341 = arith.mulf %336, %336 : vector<72x128xf32>
    %342 = vector.broadcast %0 : vector<72x1xf32> to vector<72x128xf32>
    %343 = arith.mulf %341, %342 : vector<72x128xf32>
    %cst_238 = arith.constant dense<0.000000e+00> : vector<128xf32>
    %344 = vector.multi_reduction <add>, %343, %cst_238 [0] : vector<72x128xf32> to vector<128xf32>
    %345 = vector.shape_cast %344 : vector<128xf32> to vector<1x128xf32>
    %cst_239 = arith.constant 3.125000e-02 : f32
    %346 = vector.broadcast %cst_239 : f32 to vector<1x128xf32>
    %347 = arith.mulf %340, %346 : vector<1x128xf32>
    %cst_240 = arith.constant 3.125000e-02 : f32
    %348 = vector.broadcast %cst_240 : f32 to vector<1x128xf32>
    %349 = arith.mulf %345, %348 : vector<1x128xf32>
    %350 = arith.mulf %347, %347 : vector<1x128xf32>
    %351 = arith.subf %349, %350 : vector<1x128xf32>
    %cst_241 = arith.constant 0.000000e+00 : f32
    %352 = vector.broadcast %cst_241 : f32 to vector<1x128xf32>
    %353 = arith.maximumf %351, %352 : vector<1x128xf32>
    %354 = vector.broadcast %347 : vector<1x128xf32> to vector<72x128xf32>
    %355 = arith.subf %336, %354 : vector<72x128xf32>
    %cst_242 = arith.constant 9.99999974E-6 : f32
    %356 = vector.broadcast %cst_242 : f32 to vector<1x128xf32>
    %357 = arith.addf %353, %356 : vector<1x128xf32>
    %358 = math.rsqrt %357 : vector<1x128xf32>
    %359 = vector.broadcast %358 : vector<1x128xf32> to vector<72x128xf32>
    %360 = arith.mulf %355, %359 : vector<72x128xf32>
    %c3_243 = arith.constant 3 : index
    %c0_244 = arith.constant 0 : index
    %c0_245 = arith.constant 0 : index
    %361 = vector.load %arg4[%c3_243, %c0_244, %c0_245] : memref<5x1x128xf32, #tpu.memory_space<vmem>>, vector<1x1x128xf32>
    %362 = vector.shape_cast %361 : vector<1x1x128xf32> to vector<1x128xf32>
    %363 = vector.broadcast %362 : vector<1x128xf32> to vector<72x128xf32>
    %364 = arith.mulf %360, %363 : vector<72x128xf32>
    %c3_246 = arith.constant 3 : index
    %c0_247 = arith.constant 0 : index
    %c0_248 = arith.constant 0 : index
    %365 = vector.load %arg5[%c3_246, %c0_247, %c0_248] : memref<5x1x128xf32, #tpu.memory_space<vmem>>, vector<1x1x128xf32>
    %366 = vector.shape_cast %365 : vector<1x1x128xf32> to vector<1x128xf32>
    %367 = vector.broadcast %366 : vector<1x128xf32> to vector<72x128xf32>
    %368 = arith.addf %364, %367 : vector<72x128xf32>
    %cst_249 = arith.constant 0.000000e+00 : f32
    %369 = vector.broadcast %cst_249 : f32 to vector<72x128xf32>
    %370 = arith.maximumf %368, %369 : vector<72x128xf32>
    %371 = vector.broadcast %0 : vector<72x1xf32> to vector<72x128xf32>
    %372 = arith.mulf %370, %371 : vector<72x128xf32>
    %c8_250 = arith.constant 8 : index
    %c0_251 = arith.constant 0 : index
    %373 = vector.load %arg9[%c8_250, %c0_251] : memref<88x128xf32, #tpu.memory_space<vmem>>, vector<72x128xf32>
    tpu.vector_store %arg9[%c8_250, %c0_251], %372 {strides = array<i32>} : memref<88x128xf32, #tpu.memory_space<vmem>>, vector<72x128xf32>,
    %cst_252 = arith.constant 0.000000e+00 : f32
    %374 = vector.broadcast %cst_252 : f32 to vector<72x128xf32>
    %c1_253 = arith.constant 1 : index
    %c0_254 = arith.constant 0 : index
    %375 = vector.load %arg9[%c1_253, %c0_254] : memref<88x128xf32, #tpu.memory_space<vmem>>, vector<72x128xf32>
    %376 = arith.truncf %375 : vector<72x128xf32> to vector<72x128xbf16>
    %c36 = arith.constant 36 : index
    %c0_255 = arith.constant 0 : index
    %c0_256 = arith.constant 0 : index
    %377 = vector.load %arg3[%c36, %c0_255, %c0_256] : memref<45x128x128xbf16, #tpu.memory_space<vmem>>, vector<1x128x128xbf16>
    %378 = vector.shape_cast %377 : vector<1x128x128xbf16> to vector<128x128xbf16>
    %cst_257 = arith.constant dense<0.000000e+00> : vector<72x128xf32>
    %379 = tpu.matmul %376, %378, %cst_257 {dimension_numbers = #tpu.dot_dimension_numbers<[1], [0], [0], [1], [0, 0, 1, 1], [], []>} : vector<72x128xbf16>, vector<128x128xbf16>, vector<72x128xf32> -> vector<72x128xf32>
    %380 = arith.addf %374, %379 : vector<72x128xf32>
    %c2_258 = arith.constant 2 : index
    %c0_259 = arith.constant 0 : index
    %381 = vector.load %arg9[%c2_258, %c0_259] : memref<88x128xf32, #tpu.memory_space<vmem>>, vector<72x128xf32>
    %382 = arith.truncf %381 : vector<72x128xf32> to vector<72x128xbf16>
    %c37 = arith.constant 37 : index
    %c0_260 = arith.constant 0 : index
    %c0_261 = arith.constant 0 : index
    %383 = vector.load %arg3[%c37, %c0_260, %c0_261] : memref<45x128x128xbf16, #tpu.memory_space<vmem>>, vector<1x128x128xbf16>
    %384 = vector.shape_cast %383 : vector<1x128x128xbf16> to vector<128x128xbf16>
    %cst_262 = arith.constant dense<0.000000e+00> : vector<72x128xf32>
    %385 = tpu.matmul %382, %384, %cst_262 {dimension_numbers = #tpu.dot_dimension_numbers<[1], [0], [0], [1], [0, 0, 1, 1], [], []>} : vector<72x128xbf16>, vector<128x128xbf16>, vector<72x128xf32> -> vector<72x128xf32>
    %386 = arith.addf %380, %385 : vector<72x128xf32>
    %c3_263 = arith.constant 3 : index
    %c0_264 = arith.constant 0 : index
    %387 = vector.load %arg9[%c3_263, %c0_264] : memref<88x128xf32, #tpu.memory_space<vmem>>, vector<72x128xf32>
    %388 = arith.truncf %387 : vector<72x128xf32> to vector<72x128xbf16>
    %c38 = arith.constant 38 : index
    %c0_265 = arith.constant 0 : index
    %c0_266 = arith.constant 0 : index
    %389 = vector.load %arg3[%c38, %c0_265, %c0_266] : memref<45x128x128xbf16, #tpu.memory_space<vmem>>, vector<1x128x128xbf16>
    %390 = vector.shape_cast %389 : vector<1x128x128xbf16> to vector<128x128xbf16>
    %cst_267 = arith.constant dense<0.000000e+00> : vector<72x128xf32>
    %391 = tpu.matmul %388, %390, %cst_267 {dimension_numbers = #tpu.dot_dimension_numbers<[1], [0], [0], [1], [0, 0, 1, 1], [], []>} : vector<72x128xbf16>, vector<128x128xbf16>, vector<72x128xf32> -> vector<72x128xf32>
    %392 = arith.addf %386, %391 : vector<72x128xf32>
    %c7_268 = arith.constant 7 : index
    %c0_269 = arith.constant 0 : index
    %393 = vector.load %arg9[%c7_268, %c0_269] : memref<88x128xf32, #tpu.memory_space<vmem>>, vector<72x128xf32>
    %394 = arith.truncf %393 : vector<72x128xf32> to vector<72x128xbf16>
    %c39 = arith.constant 39 : index
    %c0_270 = arith.constant 0 : index
    %c0_271 = arith.constant 0 : index
    %395 = vector.load %arg3[%c39, %c0_270, %c0_271] : memref<45x128x128xbf16, #tpu.memory_space<vmem>>, vector<1x128x128xbf16>
    %396 = vector.shape_cast %395 : vector<1x128x128xbf16> to vector<128x128xbf16>
    %cst_272 = arith.constant dense<0.000000e+00> : vector<72x128xf32>
    %397 = tpu.matmul %394, %396, %cst_272 {dimension_numbers = #tpu.dot_dimension_numbers<[1], [0], [0], [1], [0, 0, 1, 1], [], []>} : vector<72x128xbf16>, vector<128x128xbf16>, vector<72x128xf32> -> vector<72x128xf32>
    %398 = arith.addf %392, %397 : vector<72x128xf32>
    %c8_273 = arith.constant 8 : index
    %c0_274 = arith.constant 0 : index
    %399 = vector.load %arg9[%c8_273, %c0_274] : memref<88x128xf32, #tpu.memory_space<vmem>>, vector<72x128xf32>
    %400 = arith.truncf %399 : vector<72x128xf32> to vector<72x128xbf16>
    %c40 = arith.constant 40 : index
    %c0_275 = arith.constant 0 : index
    %c0_276 = arith.constant 0 : index
    %401 = vector.load %arg3[%c40, %c0_275, %c0_276] : memref<45x128x128xbf16, #tpu.memory_space<vmem>>, vector<1x128x128xbf16>
    %402 = vector.shape_cast %401 : vector<1x128x128xbf16> to vector<128x128xbf16>
    %cst_277 = arith.constant dense<0.000000e+00> : vector<72x128xf32>
    %403 = tpu.matmul %400, %402, %cst_277 {dimension_numbers = #tpu.dot_dimension_numbers<[1], [0], [0], [1], [0, 0, 1, 1], [], []>} : vector<72x128xbf16>, vector<128x128xbf16>, vector<72x128xf32> -> vector<72x128xf32>
    %404 = arith.addf %398, %403 : vector<72x128xf32>
    %c9_278 = arith.constant 9 : index
    %c0_279 = arith.constant 0 : index
    %405 = vector.load %arg9[%c9_278, %c0_279] : memref<88x128xf32, #tpu.memory_space<vmem>>, vector<72x128xf32>
    %406 = arith.truncf %405 : vector<72x128xf32> to vector<72x128xbf16>
    %c41 = arith.constant 41 : index
    %c0_280 = arith.constant 0 : index
    %c0_281 = arith.constant 0 : index
    %407 = vector.load %arg3[%c41, %c0_280, %c0_281] : memref<45x128x128xbf16, #tpu.memory_space<vmem>>, vector<1x128x128xbf16>
    %408 = vector.shape_cast %407 : vector<1x128x128xbf16> to vector<128x128xbf16>
    %cst_282 = arith.constant dense<0.000000e+00> : vector<72x128xf32>
    %409 = tpu.matmul %406, %408, %cst_282 {dimension_numbers = #tpu.dot_dimension_numbers<[1], [0], [0], [1], [0, 0, 1, 1], [], []>} : vector<72x128xbf16>, vector<128x128xbf16>, vector<72x128xf32> -> vector<72x128xf32>
    %410 = arith.addf %404, %409 : vector<72x128xf32>
    %c13_283 = arith.constant 13 : index
    %c0_284 = arith.constant 0 : index
    %411 = vector.load %arg9[%c13_283, %c0_284] : memref<88x128xf32, #tpu.memory_space<vmem>>, vector<72x128xf32>
    %412 = arith.truncf %411 : vector<72x128xf32> to vector<72x128xbf16>
    %c42 = arith.constant 42 : index
    %c0_285 = arith.constant 0 : index
    %c0_286 = arith.constant 0 : index
    %413 = vector.load %arg3[%c42, %c0_285, %c0_286] : memref<45x128x128xbf16, #tpu.memory_space<vmem>>, vector<1x128x128xbf16>
    %414 = vector.shape_cast %413 : vector<1x128x128xbf16> to vector<128x128xbf16>
    %cst_287 = arith.constant dense<0.000000e+00> : vector<72x128xf32>
    %415 = tpu.matmul %412, %414, %cst_287 {dimension_numbers = #tpu.dot_dimension_numbers<[1], [0], [0], [1], [0, 0, 1, 1], [], []>} : vector<72x128xbf16>, vector<128x128xbf16>, vector<72x128xf32> -> vector<72x128xf32>
    %416 = arith.addf %410, %415 : vector<72x128xf32>
    %c14_288 = arith.constant 14 : index
    %c0_289 = arith.constant 0 : index
    %417 = vector.load %arg9[%c14_288, %c0_289] : memref<88x128xf32, #tpu.memory_space<vmem>>, vector<72x128xf32>
    %418 = arith.truncf %417 : vector<72x128xf32> to vector<72x128xbf16>
    %c43 = arith.constant 43 : index
    %c0_290 = arith.constant 0 : index
    %c0_291 = arith.constant 0 : index
    %419 = vector.load %arg3[%c43, %c0_290, %c0_291] : memref<45x128x128xbf16, #tpu.memory_space<vmem>>, vector<1x128x128xbf16>
    %420 = vector.shape_cast %419 : vector<1x128x128xbf16> to vector<128x128xbf16>
    %cst_292 = arith.constant dense<0.000000e+00> : vector<72x128xf32>
    %421 = tpu.matmul %418, %420, %cst_292 {dimension_numbers = #tpu.dot_dimension_numbers<[1], [0], [0], [1], [0, 0, 1, 1], [], []>} : vector<72x128xbf16>, vector<128x128xbf16>, vector<72x128xf32> -> vector<72x128xf32>
    %422 = arith.addf %416, %421 : vector<72x128xf32>
    %c15_293 = arith.constant 15 : index
    %c0_294 = arith.constant 0 : index
    %423 = vector.load %arg9[%c15_293, %c0_294] : memref<88x128xf32, #tpu.memory_space<vmem>>, vector<72x128xf32>
    %424 = arith.truncf %423 : vector<72x128xf32> to vector<72x128xbf16>
    %c44 = arith.constant 44 : index
    %c0_295 = arith.constant 0 : index
    %c0_296 = arith.constant 0 : index
    %425 = vector.load %arg3[%c44, %c0_295, %c0_296] : memref<45x128x128xbf16, #tpu.memory_space<vmem>>, vector<1x128x128xbf16>
    %426 = vector.shape_cast %425 : vector<1x128x128xbf16> to vector<128x128xbf16>
    %cst_297 = arith.constant dense<0.000000e+00> : vector<72x128xf32>
    %427 = tpu.matmul %424, %426, %cst_297 {dimension_numbers = #tpu.dot_dimension_numbers<[1], [0], [0], [1], [0, 0, 1, 1], [], []>} : vector<72x128xbf16>, vector<128x128xbf16>, vector<72x128xf32> -> vector<72x128xf32>
    %428 = arith.addf %422, %427 : vector<72x128xf32>
    %429 = vector.broadcast %0 : vector<72x1xf32> to vector<72x128xf32>
    %430 = arith.mulf %428, %429 : vector<72x128xf32>
    %cst_298 = arith.constant dense<0.000000e+00> : vector<128xf32>
    %431 = vector.multi_reduction <add>, %430, %cst_298 [0] : vector<72x128xf32> to vector<128xf32>
    %432 = vector.shape_cast %431 : vector<128xf32> to vector<1x128xf32>
    %433 = arith.mulf %428, %428 : vector<72x128xf32>
    %434 = vector.broadcast %0 : vector<72x1xf32> to vector<72x128xf32>
    %435 = arith.mulf %433, %434 : vector<72x128xf32>
    %cst_299 = arith.constant dense<0.000000e+00> : vector<128xf32>
    %436 = vector.multi_reduction <add>, %435, %cst_299 [0] : vector<72x128xf32> to vector<128xf32>
    %437 = vector.shape_cast %436 : vector<128xf32> to vector<1x128xf32>
    %cst_300 = arith.constant 3.125000e-02 : f32
    %438 = vector.broadcast %cst_300 : f32 to vector<1x128xf32>
    %439 = arith.mulf %432, %438 : vector<1x128xf32>
    %cst_301 = arith.constant 3.125000e-02 : f32
    %440 = vector.broadcast %cst_301 : f32 to vector<1x128xf32>
    %441 = arith.mulf %437, %440 : vector<1x128xf32>
    %442 = arith.mulf %439, %439 : vector<1x128xf32>
    %443 = arith.subf %441, %442 : vector<1x128xf32>
    %cst_302 = arith.constant 0.000000e+00 : f32
    %444 = vector.broadcast %cst_302 : f32 to vector<1x128xf32>
    %445 = arith.maximumf %443, %444 : vector<1x128xf32>
    %446 = vector.broadcast %439 : vector<1x128xf32> to vector<72x128xf32>
    %447 = arith.subf %428, %446 : vector<72x128xf32>
    %cst_303 = arith.constant 9.99999974E-6 : f32
    %448 = vector.broadcast %cst_303 : f32 to vector<1x128xf32>
    %449 = arith.addf %445, %448 : vector<1x128xf32>
    %450 = math.rsqrt %449 : vector<1x128xf32>
    %451 = vector.broadcast %450 : vector<1x128xf32> to vector<72x128xf32>
    %452 = arith.mulf %447, %451 : vector<72x128xf32>
    %c4_304 = arith.constant 4 : index
    %c0_305 = arith.constant 0 : index
    %c0_306 = arith.constant 0 : index
    %453 = vector.load %arg4[%c4_304, %c0_305, %c0_306] : memref<5x1x128xf32, #tpu.memory_space<vmem>>, vector<1x1x128xf32>
    %454 = vector.shape_cast %453 : vector<1x1x128xf32> to vector<1x128xf32>
    %455 = vector.broadcast %454 : vector<1x128xf32> to vector<72x128xf32>
    %456 = arith.mulf %452, %455 : vector<72x128xf32>
    %c4_307 = arith.constant 4 : index
    %c0_308 = arith.constant 0 : index
    %c0_309 = arith.constant 0 : index
    %457 = vector.load %arg5[%c4_307, %c0_308, %c0_309] : memref<5x1x128xf32, #tpu.memory_space<vmem>>, vector<1x1x128xf32>
    %458 = vector.shape_cast %457 : vector<1x1x128xf32> to vector<1x128xf32>
    %459 = vector.broadcast %458 : vector<1x128xf32> to vector<72x128xf32>
    %460 = arith.addf %456, %459 : vector<72x128xf32>
    %461 = arith.addf %460, %280 : vector<72x128xf32>
    %cst_310 = arith.constant 0.000000e+00 : f32
    %462 = vector.broadcast %cst_310 : f32 to vector<72x128xf32>
    %463 = arith.maximumf %461, %462 : vector<72x128xf32>
    %464 = vector.broadcast %0 : vector<72x1xf32> to vector<72x128xf32>
    %465 = arith.mulf %463, %464 : vector<72x128xf32>
    %c0_311 = arith.constant 0 : index
    %c0_312 = arith.constant 0 : index
    %466 = vector.load %arg2[%c0_311, %c0_312] : memref<2x72xf32, #tpu.memory_space<vmem>>, vector<2x72xf32>
    %cst_313 = arith.constant dense<0.000000e+00> : vector<2x128xf32>
    %467 = tpu.matmul %466, %465, %cst_313 {dimension_numbers = #tpu.dot_dimension_numbers<[1], [0], [0], [1], [0, 0, 1, 1], [], []>} : vector<2x72xf32>, vector<72x128xf32>, vector<2x128xf32> -> vector<2x128xf32>
    %c0_314 = arith.constant 0 : index
    %c0_315 = arith.constant 0 : index
    %468 = vector.load %arg6[%c0_314, %c0_315] : memref<128x128xf32, #tpu.memory_space<vmem>>, vector<128x128xf32>
    %cst_316 = arith.constant dense<0.000000e+00> : vector<2x128xf32>
    %469 = tpu.matmul %467, %468, %cst_316 {dimension_numbers = #tpu.dot_dimension_numbers<[1], [0], [0], [1], [0, 0, 1, 1], [], []>} : vector<2x128xf32>, vector<128x128xf32>, vector<2x128xf32> -> vector<2x128xf32>
    %c0_317 = arith.constant 0 : index
    %c0_318 = arith.constant 0 : index
    %470 = vector.load %arg7[%c0_317, %c0_318] : memref<1x128xf32, #tpu.memory_space<vmem>>, vector<1x128xf32>
    %471 = vector.broadcast %470 : vector<1x128xf32> to vector<2x128xf32>
    %472 = arith.addf %469, %471 : vector<2x128xf32>
    %473 = tpu.iota {dimensions = array<i32: 1>} : vector<2x128xi32>
    %c10_i32 = arith.constant 10 : i32
    %474 = vector.broadcast %c10_i32 : i32 to vector<2x128xi32>
    %475 = arith.cmpi slt, %473, %474 : vector<2x128xi32>
    %cst_319 = arith.constant -1.000000e+30 : f32
    %476 = vector.broadcast %cst_319 : f32 to vector<2x128xf32>
    %477 = arith.select %475, %472, %476 : vector<2x128xi1>, vector<2x128xf32>
    %cst_320 = arith.constant dense<0xFF800000> : vector<2xf32>
    %478 = vector.multi_reduction <maximumf>, %477, %cst_320 [1] : vector<2x128xf32> to vector<2xf32>
    %479 = vector.shape_cast %478 : vector<2xf32> to vector<2x1xf32>
    %480 = vector.broadcast %479 : vector<2x1xf32> to vector<2x128xf32>
    %481 = arith.subf %477, %480 : vector<2x128xf32>
    %482 = math.exp %481 : vector<2x128xf32>
    %cst_321 = arith.constant dense<0.000000e+00> : vector<2xf32>
    %483 = vector.multi_reduction <add>, %482, %cst_321 [1] : vector<2x128xf32> to vector<2xf32>
    %484 = vector.shape_cast %483 : vector<2xf32> to vector<2x1xf32>
    %485 = tpu.reciprocal %484 {approx = true} : vector<2x1xf32> -> vector<2x1xf32>
    %486 = vector.broadcast %485 : vector<2x1xf32> to vector<2x128xf32>
    %487 = arith.mulf %482, %486 : vector<2x128xf32>
    %c0_322 = arith.constant 0 : index
    %c0_323 = arith.constant 0 : index
    %488 = vector.load %arg8[%c0_322, %c0_323] : memref<2x128xf32, #tpu.memory_space<vmem>>, vector<2x128xf32>
    tpu.vector_store %arg8[%c0_322, %c0_323], %487 {strides = array<i32>} : memref<2x128xf32, #tpu.memory_space<vmem>>, vector<2x128xf32>,
    return
  }
}

</mosaic_0001>

<bundles_post_ra>
// kernel: resnet_forward.1
= control target key start
LH: loop header
LB: loop body
LE: loop exit
PB: predicated region body
PF: predicated region fallthrough
CT: control target
= control target key end

     0   :  { %13 = vsyncpa [#allocation4], 0  ;;  %s13656_s0 = inlined_call_operand.vmem [shape: f32[72,128], index: 0, kind: input, shape index: {}]   ;;  %s13657_s1 = inlined_call_operand.vmem [shape: f32[72,1], index: 1, kind: input, shape index: {}]   ;;  %s13658_s2 = inlined_call_operand.hbm [shape: f32[2,72], index: 2, kind: input, shape index: {}]   ;;  %s13659_s3 = inlined_call_operand.hbm [shape: bf16[45,128,128], index: 3, kind: input, shape index: {}]   ;;  %s13660_s4 = inlined_call_operand.hbm [shape: f32[5,1,128], index: 4, kind: input, shape index: {}]   ;;  %s13661_s5 = inlined_call_operand.hbm [shape: f32[5,1,128], index: 5, kind: input, shape index: {}]   ;;  %s13662_s6 = inlined_call_operand.hbm [shape: f32[128,128], index: 6, kind: input, shape index: {}]   ;;  %s13663_s7 = inlined_call_operand.hbm [shape: f32[1,128], index: 7, kind: input, shape index: {}]   ;;  %s13664_s8 = inlined_call_operand.hbm [shape: f32[2,128], index: 8, kind: output, shape index: {}]  }
   0x1   :  { %14 = vsyncpa [#allocation7], 0 }
   0x2   :  { %15 = vsyncpa [#allocation10], 0 }
   0x3   :  { %16 = vsyncpa [#allocation13], 0 }
   0x4   :  { %17 = vsyncpa [#allocation5], 0  ;;  %s11434_s27 = smov [#allocation6]  }
   0x5   :  { %s37_s28 = sshll.u32 %s11434_s27, 4  ;;  %s38_s28 = int_to_ptr.vmem [resolvable:$true] %s37_s28 }
   0x6   :  { %s11292_s29 = scalar_lea.vmem %s38_s28, 46080  ;;  %p11297_p1 = scmp.lt.s32.totalorder %s38_s28, %s38_s28 }
   0x7   :  { %p11293_p0 = scmp.ne.s32.totalorder %s38_s28, %s11292_s29  ;;  %p11298_p2 = scmp.lt.s32.totalorder %s11292_s29, %s11292_s29 }
   0x9   :  { %p11299_p3 = por %p11298_p2, %p11297_p1 }
   0xb   :  { %p11300_p4 = pnand %p11299_p3, %p11293_p0 }
   0xd   :  { %11303 = shalt.err (!%p11300_p4)
}
   0xe   :  { %s11435_s30 = smov 64   ;;  %s11436_s9 = smov 4  }
   0xf   :  { %43 = dma.hbm_to_vmem [thread:$0]  %s13659_s3, 46080, %s38_s28, [#allocation7], %s11435_s30, %s11435_s30, %s11436_s9  }
  0x10   :  { %s11437_s12 = smov [#allocation9]   ;;  %s11438_s14 = smov [#allocation3]  }
  0x11   :  { %s61_s13 = sshll.u32 %s11437_s12, 4  ;;  %s28_s15 = sshll.u32 %s11438_s14, 4  ;;  %s62_s13 = int_to_ptr.vmem [resolvable:$true] %s61_s13  ;;  %s29_s15 = int_to_ptr.vmem [resolvable:$true] %s28_s15 }
  0x12   :  { %s11312_s16 = scalar_lea.vmem %s62_s13, 80  ;;  %s11316_s17 = scalar_lea.vmem %s62_s13, 96 }
  0x13   :  { %p11313_p5 = scmp.ne.s32.totalorder %s62_s13, %s11312_s16  ;;  %p11317_p6 = scmp.lt.s32.totalorder %s62_s13, %s62_s13 }
  0x14   :  { %p11318_p7 = scmp.lt.s32.totalorder %s11316_s17, %s11312_s16 }
  0x16   :  { %p11319_p8 = por %p11318_p7, %p11317_p6 }
  0x18   :  { %p11320_p9 = pnand %p11319_p8, %p11313_p5 }
  0x1a   :  { %11323 = shalt.err (!%p11320_p9)
}
  0x1b   :  { %s11439_s18 = smov 16   ;;  %s11440_s19 = smov 1  }
  0x1c   :  { %67 = dma.hbm_to_vmem [thread:$0]  %s13661_s5, 80, %s62_s13, [#allocation10], %s11439_s18, %s11439_s18, %s11440_s19  }
  0x1d   :  { %s11332_s3 = scalar_lea.vmem %s29_s15, 32  ;;  %p11337_p11 = scmp.lt.s32.totalorder %s29_s15, %s29_s15 }
  0x1e   :  { %p11333_p10 = scmp.ne.s32.totalorder %s29_s15, %s11332_s3  ;;  %p11338_p12 = scmp.lt.s32.totalorder %s11332_s3, %s11332_s3 }
  0x20   :  { %p11339_p13 = por %p11338_p12, %p11337_p11 }
  0x22   :  { %p11340_p0 = pnand %p11339_p13, %p11333_p10 }
  0x24   :  { %11343 = shalt.err (!%p11340_p0)
}
  0x25   :  { %31 = dma.hbm_to_vmem [thread:$0]  %s13658_s2, 32, %s29_s15, [#allocation4]  }
  0x26   :  { %s11441_s24 = smov [#allocation8]   ;;  %s11442_s26 = smov [#allocation11]  }
  0x27   :  { %s49_s25 = sshll.u32 %s11441_s24, 4  ;;  %s73_s27 = sshll.u32 %s11442_s26, 4  ;;  %s50_s25 = int_to_ptr.vmem [resolvable:$true] %s49_s25  ;;  %s74_s27 = int_to_ptr.vmem [resolvable:$true] %s73_s27 }
  0x28   :  { %s11352_s28 = scalar_lea.vmem %s50_s25, 80  ;;  %s11356_s5 = scalar_lea.vmem %s50_s25, 96 }
  0x29   :  { %p11353_p1 = scmp.ne.s32.totalorder %s50_s25, %s11352_s28  ;;  %p11357_p2 = scmp.lt.s32.totalorder %s50_s25, %s50_s25 }
  0x2a   :  { %p11358_p3 = scmp.lt.s32.totalorder %s11356_s5, %s11352_s28 }
  0x2c   :  { %p11359_p4 = por %p11358_p3, %p11357_p2 }
  0x2e   :  { %p11360_p5 = pnand %p11359_p4, %p11353_p1 }
  0x30   :  { %11363 = shalt.err (!%p11360_p5)
}
  0x31   :  { %55 = dma.hbm_to_vmem [thread:$0]  %s13660_s4, 80, %s50_s25, [#allocation7], %s11439_s18, %s11439_s18, %s11440_s19  }
  0x32   :  { %s11372_s9 = scalar_lea.vmem %s74_s27, 2048  ;;  %p11377_p7 = scmp.lt.s32.totalorder %s74_s27, %s74_s27 }
  0x33   :  { %p11373_p6 = scmp.ne.s32.totalorder %s74_s27, %s11372_s9  ;;  %p11378_p8 = scmp.lt.s32.totalorder %s11372_s9, %s11372_s9 }
  0x35   :  { %p11379_p9 = por %p11378_p8, %p11377_p7 }
  0x37   :  { %p11380_p10 = pnand %p11379_p9, %p11373_p6 }
  0x39   :  { %11383 = shalt.err (!%p11380_p10)
}
  0x3a   :  { %s11443_s2 = smov 128   ;;  %s11444_s10 = smov 8  }
  0x3b   :  { %79 = dma.hbm_to_vmem [thread:$0]  %s13662_s6, 2048, %s74_s27, [#allocation10], %s11443_s2, %s11443_s2, %s11444_s10  }
  0x3c   :  { %s11445_s13 = smov [#allocation12]  }
  0x3d   :  { %s86_s14 = sshll.u32 %s11445_s13, 4  ;;  %s87_s14 = int_to_ptr.vmem [resolvable:$true] %s86_s14 }
  0x3e   :  { %s11392_s15 = scalar_lea.vmem %s87_s14, 16  ;;  %s11396_s4 = scalar_lea.vmem %s87_s14, 32 }
  0x3f   :  { %p11393_p11 = scmp.ne.s32.totalorder %s87_s14, %s11392_s15  ;;  %p11397_p12 = scmp.lt.s32.totalorder %s87_s14, %s87_s14 }
  0x40   :  { %p11398_p13 = scmp.lt.s32.totalorder %s11396_s4, %s11392_s15 }
  0x42   :  { %p11399_p0 = por %p11398_p13, %p11397_p12 }
  0x44   :  { %p11400_p1 = pnand %p11399_p0, %p11393_p11 }
  0x46   :  { %11403 = shalt.err (!%p11400_p1)
}
  0x47   :  { %89 = dma.hbm_to_vmem [thread:$0]  %s13663_s7, 16, %s87_s14, [#allocation13]  }
  0x48   :  { %11424 = dma.done.wait [#allocation4], 32  }
  0x49   :  { %11425 = vsyncadd [#allocation4], 4294967264 }
  0x4a   :  { %11426 = dma.done.wait [#allocation7], 46160  }
  0x4b   :  { %11427 = vsyncadd [#allocation7], 4294921136 }
  0x4c   :  { %11428 = dma.done.wait [#allocation10], 2128  }
  0x4d   :  { %11429 = vsyncadd [#allocation10], 4294965168 }
  0x4e   :  { %11430 = dma.done.wait [#allocation13], 16  }
  0x4f   :  { %11431 = vsyncadd [#allocation13], 4294967280  ;;  %v11446_v0 = vmov 0.0   ;;  %vm11447_vm0 = vmmov 0   ;;  %v10894_v1 = vld [vmem:[#allocation6 + $0x78] sm:$0xff]   ;;  %v10896_v3 = vld [vmem:[#allocation6 + $0x70] sm:$0xff]  }
  0x50   :  { %9200 = vmatprep.subr.bf16.mxu0 %v11446_v0  ;;  %118 = vst [vmem:[#allocation2] sm:$0xff] %v11446_v0  ;;  %128 = vst [vmem:[#allocation2 + $0x50] sm:$0xff] %v11446_v0  ;;  %9236 = vmatprep.subr.bf16.mxu1 %v11446_v0  ;;  %v10895_v2 = vld [vmem:[#allocation6 + $0x38] sm:$0xff]   ;;  %v10897_v4 = vld [vmem:[#allocation6 + $0x30] sm:$0xff]   ;;  %vm8014_vm1 = vcmask 588800   ;;  %vm8185_vm3 = vcmask 1041408  }
  0x51   :  { %9216 = vmatprep.mubr.msk.bf16.mxu0 %vm11447_vm0, %v11446_v0  ;;  %9252 = vmatprep.mubr.msk.bf16.mxu1 %vm11447_vm0, %v11446_v0  ;;  %v10898_v5 = vld [vmem:[#allocation6 + $0x68] sm:$0xff]   ;;  %v10900_v7 = vld [vmem:[#allocation6 + $0x60] sm:$0xff]   ;;  %v10902_v9 = vld [vmem:[#allocation6 + $0x58] sm:$0xff]  }
  0x52   :  { %9201 = vmatpush3.bf16.msra.mxu0 %v10894_v1  ;;  %9237 = vmatpush3.bf16.msra.mxu1 %v10895_v2  ;;  %v10899_v6 = vld [vmem:[#allocation6 + $0x28] sm:$0xff]   ;;  %v10901_v8 = vld [vmem:[#allocation6 + $0x20] sm:$0xff]   ;;  %v10903_v10 = vld [vmem:[#allocation6 + $0x18] sm:$0xff]  }
  0x53   :  { %9202 = vmatprep.subr.bf16.mxu0 %v11446_v0  ;;  %9238 = vmatprep.subr.bf16.mxu1 %v11446_v0  ;;  %v11532_v11 = vld [vmem:[%s13656_s0] sm:$0xff]  ;;  %v11537_v12 = vld [vmem:[%s13656_s0 + $0x8] sm:$0xff]  ;;  %v11542_v13 = vld [vmem:[%s13656_s0 + $0x10] sm:$0xff] }
  0x54   :  { %138 = vst [vmem:[#allocation2 + $0x8] sm:$0xff] %v11532_v11  ;;  %139 = vst [vmem:[#allocation2 + $0x10] sm:$0xff] %v11537_v12  ;;  %v11549_v14 = vld [vmem:[%s13656_s0 + $0x18] sm:$0xff]  ;;  %v777_v15 = vpack.c.bf16 %v11537_v12, %v11532_v11  ;;  %v10904_v16 = vld [vmem:[#allocation6 + $0x50] sm:$0xff]  }
  0x55   :  { %140 = vst [vmem:[#allocation2 + $0x18] sm:$0xff] %v11542_v13  ;;  %141 = vst [vmem:[#allocation2 + $0x20] sm:$0xff] %v11549_v14  ;;  %v778_v17 = vpack.c.bf16 %v11549_v14, %v11542_v13  ;;  %v10905_v18 = vld [vmem:[#allocation6 + $0x10] sm:$0xff]   ;;  %v11562_v19 = vld [vmem:[%s13656_s0 + $0x20] sm:$0xff] }
  0x56   :  { %9203 = vmatpush3.bf16.msra.mxu0 %v10896_v3  ;;  %9239 = vmatpush3.bf16.msra.mxu1 %v10897_v4  ;;  %v11567_v20 = vld [vmem:[%s13656_s0 + $0x28] sm:$0xff]  ;;  %142 = vst [vmem:[#allocation2 + $0x28] sm:$0xff] %v11562_v19  ;;  %v10908_v24 = vld [vmem:[#allocation6 + $0x40] sm:$0xff]   ;;  %v11582_v30 = vld [vmem:[%s13656_s0 + $0x30] sm:$0xff] }
  0x57   :  { %9204 = vmatprep.subr.bf16.mxu0 %v11446_v0  ;;  %9240 = vmatprep.subr.bf16.mxu1 %v11446_v0  ;;  %v10906_v21 = vld [vmem:[#allocation6 + $0x48] sm:$0xff]   ;;  %143 = vst [vmem:[#allocation2 + $0x30] sm:$0xff] %v11567_v20  ;;  %v779_v22 = vpack.c.bf16 %v11567_v20, %v11562_v19  ;;  %v10909_v25 = vld [vmem:[#allocation6] sm:$0xff]   ;;  %144 = vst [vmem:[#allocation2 + $0x38] sm:$0xff] %v11582_v30  ;;  %v11448_v19 = vmov 0  }
  0x58   :  { %v10907_v23 = vld [vmem:[#allocation6 + $0x8] sm:$0xff]   ;;  %v10910_v33 = vld [vmem:[#allocation6 + $0xb8] sm:$0xff]   ;;  %v10912_v39 = vld [vmem:[#allocation6 + $0xb0] sm:$0xff]   ;;  %10892 = vset.pattern.permute.xlu0 %v11448_v19  ;;  %10893 = vset.pattern.permute.xlu1 %v11448_v19 }
  0x59   :  { %v11589_v34 = vld [vmem:[%s13656_s0 + $0x38] sm:$0xff]  ;;  %v11603_v41 = vld [vmem:[%s13656_s0 + $0x40] sm:$0xff]  ;;  %v10913_v43 = vld [vmem:[#allocation6 + $0xf0] sm:$0xff]  }
  0x5a   :  { %9205 = vmatpush3.bf16.msra.mxu0 %v10898_v5  ;;  %9241 = vmatpush3.bf16.msra.mxu1 %v10899_v6  ;;  %v10911_v35 = vld [vmem:[#allocation6 + $0xf8] sm:$0xff]   ;;  %145 = vst [vmem:[#allocation2 + $0x40] sm:$0xff] %v11589_v34  ;;  %v780_v36 = vpack.c.bf16 %v11589_v34, %v11582_v30  ;;  %146 = vst [vmem:[#allocation2 + $0x48] sm:$0xff] %v11603_v41  ;;  %v10914_v46 = vld [vmem:[#allocation6 + $0xa8] sm:$0xff]   ;;  %v781_v30 = vpack.c.bf16 %v11603_v41, %v11603_v41 }
  0x5b   :  { %9206 = vmatprep.subr.bf16.mxu0 %v11446_v0  ;;  %9242 = vmatprep.subr.bf16.mxu1 %v11446_v0  ;;  %v177_v26 = vld [vmem:[#allocation2 + $0x2] sm:$0xff]  ;;  %v178_v27 = vld [vmem:[#allocation2 + $0xa] sm:$0xff]  ;;  %v10916_v48 = vld [vmem:[#allocation6 + $0xa0] sm:$0xff]  }
  0x5c   :  { %v147_v28 = vld [vmem:[#allocation2 + $0x1] sm:$0xff]  ;;  %v11576_v29 = vld [vmem:[#allocation2 + $0x9] sm:$0xff]  ;;  %v186_v31 = vpack.c.bf16 %v178_v27, %v177_v26  ;;  %v179_v37 = vld [vmem:[#allocation2 + $0x12] sm:$0xff] }
  0x5d   :  { %v156_v32 = vpack.c.bf16 %v11576_v29, %v147_v28  ;;  %v180_v38 = vld [vmem:[#allocation2 + $0x1a] sm:$0xff]  ;;  %v11598_v40 = vld [vmem:[#allocation2 + $0x11] sm:$0xff]  ;;  %v10915_v47 = vld [vmem:[#allocation6 + $0xe8] sm:$0xff]  }
  0x5e   :  { %9207 = vmatpush3.bf16.msra.mxu0 %v10900_v7  ;;  %9243 = vmatpush3.bf16.msra.mxu1 %v10901_v8  ;;  %v11607_v42 = vld [vmem:[#allocation2 + $0x19] sm:$0xff]  ;;  %v187_v44 = vpack.c.bf16 %v180_v38, %v179_v37  ;;  %v181_v49 = vld [vmem:[#allocation2 + $0x22] sm:$0xff]  ;;  %v182_v50 = vld [vmem:[#allocation2 + $0x2a] sm:$0xff] }
  0x5f   :  { %9208 = vmatprep.subr.bf16.mxu0 %v11446_v0  ;;  %9244 = vmatprep.subr.bf16.mxu1 %v11446_v0  ;;  %v157_v45 = vpack.c.bf16 %v11607_v42, %v11598_v40  ;;  %v11618_v51 = vld [vmem:[#allocation2 + $0x21] sm:$0xff]  ;;  %v11622_v52 = vld [vmem:[#allocation2 + $0x29] sm:$0xff]  ;;  %v188_v54 = vpack.c.bf16 %v182_v50, %v181_v49  ;;  %v10918_v56 = vld [vmem:[#allocation6 + $0x98] sm:$0xff]  }
  0x60   :  { %v10917_v53 = vld [vmem:[#allocation6 + $0xe0] sm:$0xff]   ;;  %v158_v55 = vpack.c.bf16 %v11622_v52, %v11618_v51  ;;  %v10919_v57 = vld [vmem:[#allocation6 + $0xd8] sm:$0xff]   ;;  %v10920_v60 = vld [vmem:[#allocation6 + $0x90] sm:$0xff]   ;;  %v938_v11 = vpack.c.bf16 %v11618_v51, %v11607_v42 }
  0x61   :  { %v183_v58 = vld [vmem:[#allocation2 + $0x32] sm:$0xff]  ;;  %v184_v61 = vld [vmem:[#allocation2 + $0x3a] sm:$0xff]  ;;  %v10921_v63 = vld [vmem:[#allocation6 + $0xd0] sm:$0xff]  }
  0x62   :  { %9209 = vmatpush3.bf16.msra.mxu0 %v10902_v9  ;;  %9245 = vmatpush3.bf16.msra.mxu1 %v10903_v10  ;;  %v11629_v59 = vld [vmem:[#allocation2 + $0x31] sm:$0xff]  ;;  %v11636_v62 = vld [vmem:[#allocation2 + $0x39] sm:$0xff]  ;;  %v189_v1 = vpack.c.bf16 %v184_v61, %v183_v58  ;;  %v10922_v3 = vld [vmem:[#allocation6 + $0x88] sm:$0xff]  }
  0x63   :  { %9210 = vmatprep.subr.bf16.mxu0 %v11446_v0  ;;  %9246 = vmatprep.subr.bf16.mxu1 %v11446_v0  ;;  %v159_v2 = vpack.c.bf16 %v11636_v62, %v11629_v59  ;;  %v10923_v4 = vld [vmem:[#allocation6 + $0xc8] sm:$0xff]   ;;  %v10924_v7 = vld [vmem:[#allocation6 + $0x80] sm:$0xff]   ;;  %v10926_v26 = vld [vmem:[#allocation6 + $0x138] sm:$0xff]   ;;  %v939_v13 = vpack.c.bf16 %v11629_v59, %v11622_v52 }
  0x64   :  { %v185_v5 = vld [vmem:[#allocation2 + $0x42] sm:$0xff]  ;;  %v10925_v8 = vld [vmem:[#allocation6 + $0xc0] sm:$0xff]   ;;  %v10929_v37 = vld [vmem:[#allocation6 + $0x170] sm:$0xff]  }
  0x65   :  { %v11648_v6 = vld [vmem:[#allocation2 + $0x41] sm:$0xff]  ;;  %v190_v9 = vpack.c.bf16 %v185_v5, %v185_v5  ;;  %v450_v27 = vld [vmem:[#allocation2 + $0x13] sm:$0xff]  ;;  %v10953_v42 = vld [vmem:[#allocation6 + $0x1d0] sm:$0xff]  }
  0x66   :  { %9211 = vmatpush3.bf16.msra.mxu0 %v10904_v16  ;;  %9247 = vmatpush3.bf16.msra.mxu1 %v10905_v18  ;;  %v160_v10 = vpack.c.bf16 %v11648_v6, %v11648_v6  ;;  %v448_v16 = vld [vmem:[#allocation2 + $0x3] sm:$0xff]  ;;  %v449_v18 = vld [vmem:[#allocation2 + $0xb] sm:$0xff]  ;;  %v451_v28 = vld [vmem:[#allocation2 + $0x1b] sm:$0xff] }
  0x67   :  { %9212 = vmatprep.subr.bf16.mxu0 %v11446_v0  ;;  %9248 = vmatprep.subr.bf16.mxu1 %v11446_v0  ;;  %v458_v38 = vpack.c.bf16 %v451_v28, %v450_v27  ;;  %v10932_v49 = vld [vmem:[#allocation6 + $0x120] sm:$0xff]   ;;  %v10939_v5 = vld [vmem:[#allocation6 + $0x148] sm:$0xff]   ;;  %v10951_v14 = vld [vmem:[#allocation6 + $0x1d8] sm:$0xff]  }
  0x68   :  { %v10933_v50 = vld [vmem:[#allocation6 + $0x160] sm:$0xff]   ;;  %v10947_v12 = vld [vmem:[#allocation6 + $0x1e8] sm:$0xff]   ;;  %v1248_v41 = vld [vmem:[#allocation2 + $0xe] sm:$0xff] }
  0x69   :  { %v455_v58 = vld [vmem:[#allocation2 + $0x3b] sm:$0xff]  ;;  %v936_v59 = vld [vmem:[#allocation2 + $0x49] sm:$0xff] }
  0x6a   :  { %9213 = vmatpush3.bf16.msra.mxu0 %v10906_v21  ;;  %9249 = vmatpush3.bf16.msra.mxu1 %v10907_v23  ;;  %v608_v21 = vld [vmem:[#allocation2 + $0x7] sm:$0xff]  ;;  %v609_v23 = vld [vmem:[#allocation2 + $0xf] sm:$0xff]  ;;  %v615_v61 = vld [vmem:[#allocation2 + $0x3f] sm:$0xff]  ;;  %v941_v34 = vpack.c.bf16 %v936_v59, %v936_v59 }
  0x6b   :  { %9214 = vmatprep.subr.bf16.mxu0 %v11446_v0  ;;  %9250 = vmatprep.subr.bf16.mxu1 %v11446_v0  ;;  %v10949_v27 = vld [vmem:[#allocation6 + $0x1e0] sm:$0xff]   ;;  %v10954_v51 = vld [vmem:[#allocation6 + $0x188] sm:$0xff]  }
  0x6c   :  { %v109_v20 = vld [vmem:[%s13657_s1] sm:$0xff] }
  0x6d   :  { %v10955_v52 = vld [vmem:[#allocation6 + $0x1c8] sm:$0xff]   ;;  %1570 = vperm.xlu0 %10892, %v109_v20   ;;  %v10956_v28 = vld [vmem:[#allocation6 + $0x180] sm:$0xff]  }
  0x6e   :  { %9215 = vmatpush3.bf16.msra.mxu0 %v10908_v24  ;;  %9251 = vmatpush3.bf16.msra.mxu1 %v10909_v25  ;;  %v457_v24 = vpack.c.bf16 %v449_v18, %v448_v16  ;;  %v617_v25 = vpack.c.bf16 %v609_v23, %v608_v21  ;;  %v10942_v21 = vld [vmem:[#allocation6 + $0x1b8] sm:$0xff]   ;;  %v937_v23 = vpack.c.bf16 %v11598_v40, %v11576_v29  ;;  %v10946_v29 = vld [vmem:[#allocation6 + $0x1a8] sm:$0xff]   ;;  %v10948_v40 = vld [vmem:[#allocation6 + $0x1a0] sm:$0xff]  }
  0x6f   :  { %9272 = vmatprep.subr.bf16.mxu0 %v11446_v0  ;;  %9308 = vmatprep.subr.bf16.mxu1 %v11446_v0  ;;  %v11276_v19 = vld [vmem:[#allocation2 + $0x47] sm:$0xff] }
  0x71   :  { %9217 = vmatmul.mubr.bf16.vlgmr.msra.gmra.mxu0 %v186_v31  ;;  %9253 = vmatmul.mubr.bf16.vlgmr.msra.gmra.mxu1 %v156_v32  ;;  %v10927_v31 = vld [vmem:[#allocation6 + $0x178] sm:$0xff]  }
  0x72   :  { %9220 = vmatprep.mubr.msk.bf16.mxu0 %vm11447_vm0, %v11446_v0  ;;  %9256 = vmatprep.mubr.msk.bf16.mxu1 %vm11447_vm0, %v11446_v0  ;;  %v610_v32 = vld [vmem:[#allocation2 + $0x17] sm:$0xff] }
  0x73   :  { %9273 = vmatpush3.bf16.msra.mxu0 %v10910_v33  ;;  %9309 = vmatpush3.bf16.msra.mxu1 %v10911_v35  ;;  %v611_v33 = vld [vmem:[#allocation2 + $0x1f] sm:$0xff]  ;;  %v10928_v35 = vld [vmem:[#allocation6 + $0x130] sm:$0xff]  }
  0x74   :  { %9274 = vmatprep.subr.bf16.mxu0 %v11446_v0  ;;  %9310 = vmatprep.subr.bf16.mxu1 %v11446_v0 }
  0x77   :  { %9275 = vmatpush3.bf16.msra.mxu0 %v10912_v39  ;;  %9311 = vmatpush3.bf16.msra.mxu1 %v10913_v43  ;;  %v618_v39 = vpack.c.bf16 %v611_v33, %v610_v32  ;;  %v10930_v43 = vld [vmem:[#allocation6 + $0x128] sm:$0xff]   ;;  %v1088_v32 = vld [vmem:[#allocation2 + $0xd] sm:$0xff]  ;;  %v1089_v33 = vld [vmem:[#allocation2 + $0x15] sm:$0xff] }
  0x78   :  { %9276 = vmatprep.subr.bf16.mxu0 %v11446_v0  ;;  %9312 = vmatprep.subr.bf16.mxu1 %v11446_v0 }
  0x79   :  { %9221 = vmatmul.mubr.bf16.gmra.mxu0 %v187_v44  ;;  %9257 = vmatmul.mubr.bf16.gmra.mxu1 %v157_v45  ;;  %v10931_v44 = vld [vmem:[#allocation6 + $0x168] sm:$0xff]  }
  0x7a   :  { %9224 = vmatprep.mubr.msk.bf16.mxu0 %vm11447_vm0, %v11446_v0  ;;  %9260 = vmatprep.mubr.msk.bf16.mxu1 %vm11447_vm0, %v11446_v0  ;;  %v452_v45 = vld [vmem:[#allocation2 + $0x23] sm:$0xff] }
  0x7b   :  { %9277 = vmatpush3.bf16.msra.mxu0 %v10914_v46  ;;  %9313 = vmatpush3.bf16.msra.mxu1 %v10915_v47  ;;  %v453_v46 = vld [vmem:[#allocation2 + $0x2b] sm:$0xff] }
  0x7c   :  { %9278 = vmatprep.subr.bf16.mxu0 %v11446_v0  ;;  %9314 = vmatprep.subr.bf16.mxu1 %v11446_v0  ;;  %v612_v47 = vld [vmem:[#allocation2 + $0x27] sm:$0xff] }
  0x7f   :  { %9279 = vmatpush3.bf16.msra.mxu0 %v10916_v48  ;;  %9315 = vmatpush3.bf16.msra.mxu1 %v10917_v53  ;;  %v613_v48 = vld [vmem:[#allocation2 + $0x2f] sm:$0xff]  ;;  %v459_v53 = vpack.c.bf16 %v453_v46, %v452_v45  ;;  %v117_v46 = vld [vmem:[%s13657_s1 + $0x40] sm:$0xff] }
  0x80   :  { %9280 = vmatprep.subr.bf16.mxu0 %v11446_v0  ;;  %9316 = vmatprep.subr.bf16.mxu1 %v11446_v0  ;;  %v114_v45 = vld [vmem:[%s13657_s1 + $0x28] sm:$0xff] }
  0x81   :  { %9225 = vmatmul.mubr.bf16.gmra.mxu0 %v188_v54  ;;  %9261 = vmatmul.mubr.bf16.gmra.mxu1 %v158_v55  ;;  %v619_v54 = vpack.c.bf16 %v613_v48, %v612_v47  ;;  %v10934_v55 = vld [vmem:[#allocation6 + $0x118] sm:$0xff]   ;;  %v1090_v47 = vld [vmem:[#allocation2 + $0x1d] sm:$0xff]  ;;  %v1091_v48 = vld [vmem:[#allocation2 + $0x25] sm:$0xff] }
  0x82   :  { %9228 = vmatprep.mubr.msk.bf16.mxu0 %vm11447_vm0, %v11446_v0  ;;  %9264 = vmatprep.mubr.msk.bf16.mxu1 %vm11447_vm0, %v11446_v0 }
  0x83   :  { %9281 = vmatpush3.bf16.msra.mxu0 %v10918_v56  ;;  %9317 = vmatpush3.bf16.msra.mxu1 %v10919_v57  ;;  %v10935_v56 = vld [vmem:[#allocation6 + $0x158] sm:$0xff]  }
  0x84   :  { %9282 = vmatprep.subr.bf16.mxu0 %v11446_v0  ;;  %9318 = vmatprep.subr.bf16.mxu1 %v11446_v0  ;;  %v454_v57 = vld [vmem:[#allocation2 + $0x33] sm:$0xff] }
  0x87   :  { %9283 = vmatpush3.bf16.msra.mxu0 %v10920_v60  ;;  %9319 = vmatpush3.bf16.msra.mxu1 %v10921_v63  ;;  %v614_v60 = vld [vmem:[#allocation2 + $0x37] sm:$0xff]  ;;  %v10936_v63 = vld [vmem:[#allocation6 + $0x110] sm:$0xff]  }
  0x88   :  { %9284 = vmatprep.subr.bf16.mxu0 %v11446_v0  ;;  %9320 = vmatprep.subr.bf16.mxu1 %v11446_v0 }
  0x89   :  { %9229 = vmatmul.mubr.bf16.gmra.mxu0 %v189_v1  ;;  %9265 = vmatmul.mubr.bf16.gmra.mxu1 %v159_v2  ;;  %v10937_v1 = vld [vmem:[#allocation6 + $0x150] sm:$0xff]   ;;  %v460_v2 = vpack.c.bf16 %v455_v58, %v454_v57 }
  0x8a   :  { %9232 = vmatprep.mubr.msk.bf16.mxu0 %vm11447_vm0, %v11446_v0  ;;  %9268 = vmatprep.mubr.msk.bf16.mxu1 %vm11447_vm0, %v11446_v0  ;;  %v1092_v58 = vld [vmem:[#allocation2 + $0x2d] sm:$0xff] }
  0x8b   :  { %9285 = vmatpush3.bf16.msra.mxu0 %v10922_v3  ;;  %9321 = vmatpush3.bf16.msra.mxu1 %v10923_v4  ;;  %v10938_v3 = vld [vmem:[#allocation6 + $0x108] sm:$0xff]   ;;  %v620_v4 = vpack.c.bf16 %v615_v61, %v614_v60  ;;  %v1093_v60 = vld [vmem:[#allocation2 + $0x35] sm:$0xff] }
  0x8c   :  { %9286 = vmatprep.subr.bf16.mxu0 %v11446_v0  ;;  %9322 = vmatprep.subr.bf16.mxu1 %v11446_v0  ;;  %v1252_v61 = vld [vmem:[#allocation2 + $0x2e] sm:$0xff] }
  0x8f   :  { %9287 = vmatpush3.bf16.msra.mxu0 %v10924_v7  ;;  %9323 = vmatpush3.bf16.msra.mxu1 %v10925_v8  ;;  %v456_v7 = vld [vmem:[#allocation2 + $0x43] sm:$0xff] }
  0x90   :  { %9344 = vmatprep.subr.bf16.mxu0 %v11446_v0  ;;  %9380 = vmatprep.subr.bf16.mxu1 %v11446_v0  ;;  %v616_v8 = vld [vmem:[#allocation2 + $0x47] sm:$0xff]  ;;  %v461_v16 = vpack.c.bf16 %v456_v7, %v456_v7 }
  0x91   :  { %9233 = vmatmul.mubr.bf16.gmra.mxu0 %v190_v9  ;;  %9269 = vmatmul.mubr.bf16.gmra.mxu1 %v160_v10  ;;  %v10940_v9 = vld [vmem:[#allocation6 + $0x100] sm:$0xff]   ;;  %v621_v18 = vpack.c.bf16 %v616_v8, %v616_v8  ;;  %v1095_v7 = vld [vmem:[#allocation2 + $0x45] sm:$0xff] }
  0x92   :  { %9288 = vmatprep.mubr.msk.bf16.mxu0 %vm11447_vm0, %v11446_v0  ;;  %9324 = vmatprep.mubr.msk.bf16.mxu1 %vm11447_vm0, %v11446_v0  ;;  %v10941_v10 = vld [vmem:[#allocation6 + $0x140] sm:$0xff]  }
  0x93   :  { %v1254_v8 = vld [vmem:[#allocation2 + $0x3e] sm:$0xff] }
  0x99   :  { %9289 = vmatmul.mubr.bf16.vlgmr.msra.gmra.mxu0 %v457_v24  ;;  %9325 = vmatmul.mubr.bf16.vlgmr.msra.gmra.mxu1 %v617_v25  ;;  %v10943_v24 = vld [vmem:[#allocation6 + $0x1f8] sm:$0xff]   ;;  %v10944_v25 = vld [vmem:[#allocation6 + $0x1b0] sm:$0xff]  }
  0x9a   :  { %9292 = vmatprep.mubr.msk.bf16.mxu0 %vm11447_vm0, %v11446_v0  ;;  %9328 = vmatprep.mubr.msk.bf16.mxu1 %vm11447_vm0, %v11446_v0 }
  0x9b   :  { %9345 = vmatpush3.bf16.msra.mxu0 %v10926_v26  ;;  %9381 = vmatpush3.bf16.msra.mxu1 %v10927_v31  ;;  %v10945_v26 = vld [vmem:[#allocation6 + $0x1f0] sm:$0xff]   ;;  %v113_v31 = vld [vmem:[%s13657_s1 + $0x20] sm:$0xff] }
  0x9c   :  { %9346 = vmatprep.subr.bf16.mxu0 %v11446_v0  ;;  %9382 = vmatprep.subr.bf16.mxu1 %v11446_v0 }
  0x9f   :  { %9347 = vmatpush3.bf16.msra.mxu0 %v10928_v35  ;;  %9383 = vmatpush3.bf16.msra.mxu1 %v10929_v37  ;;  %v1249_v35 = vld [vmem:[#allocation2 + $0x16] sm:$0xff] }
  0xa0   :  { %9348 = vmatprep.subr.bf16.mxu0 %v11446_v0  ;;  %9384 = vmatprep.subr.bf16.mxu1 %v11446_v0  ;;  %v112_v37 = vld [vmem:[%s13657_s1 + $0x18] sm:$0xff] }
  0xa1   :  { %9293 = vmatmul.mubr.bf16.gmra.mxu0 %v458_v38  ;;  %9329 = vmatmul.mubr.bf16.gmra.mxu1 %v618_v39  ;;  %v115_v38 = vld [vmem:[%s13657_s1 + $0x30] sm:$0xff]  ;;  %v1097_v39 = vpack.c.bf16 %v1089_v33, %v1088_v32 }
  0xa2   :  { %9296 = vmatprep.mubr.msk.bf16.mxu0 %vm11447_vm0, %v11446_v0  ;;  %9332 = vmatprep.mubr.msk.bf16.mxu1 %vm11447_vm0, %v11446_v0 }
  0xa3   :  { %9349 = vmatpush3.bf16.msra.mxu0 %v10930_v43  ;;  %9385 = vmatpush3.bf16.msra.mxu1 %v10931_v44  ;;  %v10958_v43 = vld [vmem:[#allocation6 + $0x238] sm:$0xff]   ;;  %v1257_v44 = vpack.c.bf16 %v1249_v35, %v1248_v41 }
  0xa4   :  { %9350 = vmatprep.subr.bf16.mxu0 %v11446_v0  ;;  %9386 = vmatprep.subr.bf16.mxu1 %v11446_v0 }
  0xa7   :  { %9351 = vmatpush3.bf16.msra.mxu0 %v10932_v49  ;;  %9387 = vmatpush3.bf16.msra.mxu1 %v10933_v50  ;;  %v1250_v49 = vld [vmem:[#allocation2 + $0x1e] sm:$0xff]  ;;  %v1251_v50 = vld [vmem:[#allocation2 + $0x26] sm:$0xff] }
  0xa8   :  { %9352 = vmatprep.subr.bf16.mxu0 %v11446_v0  ;;  %9388 = vmatprep.subr.bf16.mxu1 %v11446_v0  ;;  %v1258_v57 = vpack.c.bf16 %v1251_v50, %v1250_v49 }
  0xa9   :  { %9297 = vmatmul.mubr.bf16.gmra.mxu0 %v459_v53  ;;  %9333 = vmatmul.mubr.bf16.gmra.mxu1 %v619_v54  ;;  %v10959_v53 = vld [vmem:[#allocation6 + $0x230] sm:$0xff]   ;;  %v116_v54 = vld [vmem:[%s13657_s1 + $0x38] sm:$0xff] }
  0xaa   :  { %9300 = vmatprep.mubr.msk.bf16.mxu0 %vm11447_vm0, %v11446_v0  ;;  %9336 = vmatprep.mubr.msk.bf16.mxu1 %vm11447_vm0, %v11446_v0 }
  0xab   :  { %9353 = vmatpush3.bf16.msra.mxu0 %v10934_v55  ;;  %9389 = vmatpush3.bf16.msra.mxu1 %v10935_v56  ;;  %v1098_v55 = vpack.c.bf16 %v1091_v48, %v1090_v47  ;;  %v10960_v56 = vld [vmem:[#allocation6 + $0x228] sm:$0xff]  }
  0xac   :  { %9354 = vmatprep.subr.bf16.mxu0 %v11446_v0  ;;  %9390 = vmatprep.subr.bf16.mxu1 %v11446_v0 }
  0xaf   :  { %9355 = vmatpush3.bf16.msra.mxu0 %v10936_v63  ;;  %9391 = vmatpush3.bf16.msra.mxu1 %v10937_v1  ;;  %v1253_v63 = vld [vmem:[#allocation2 + $0x36] sm:$0xff] }
  0xb0   :  { %9356 = vmatprep.subr.bf16.mxu0 %v11446_v0  ;;  %9392 = vmatprep.subr.bf16.mxu1 %v11446_v0  ;;  %v10961_v1 = vld [vmem:[#allocation6 + $0x220] sm:$0xff]  }
  0xb1   :  { %9301 = vmatmul.mubr.bf16.gmra.mxu0 %v460_v2  ;;  %9337 = vmatmul.mubr.bf16.gmra.mxu1 %v620_v4  ;;  %v1099_v2 = vpack.c.bf16 %v1093_v60, %v1092_v58  ;;  %v1259_v4 = vpack.c.bf16 %v1253_v63, %v1252_v61 }
  0xb2   :  { %9304 = vmatprep.mubr.msk.bf16.mxu0 %vm11447_vm0, %v11446_v0  ;;  %9340 = vmatprep.mubr.msk.bf16.mxu1 %vm11447_vm0, %v11446_v0 }
  0xb3   :  { %9357 = vmatpush3.bf16.msra.mxu0 %v10938_v3  ;;  %9393 = vmatpush3.bf16.msra.mxu1 %v10939_v5  ;;  %v10962_v3 = vld [vmem:[#allocation6 + $0x218] sm:$0xff]   ;;  %v1094_v5 = vld [vmem:[#allocation2 + $0x3d] sm:$0xff] }
  0xb4   :  { %9358 = vmatprep.subr.bf16.mxu0 %v11446_v0  ;;  %9394 = vmatprep.subr.bf16.mxu1 %v11446_v0 }
  0xb7   :  { %9359 = vmatpush3.bf16.msra.mxu0 %v10940_v9  ;;  %9395 = vmatpush3.bf16.msra.mxu1 %v10941_v10  ;;  %v1255_v9 = vld [vmem:[#allocation2 + $0x46] sm:$0xff] }
  0xb8   :  { %9416 = vmatprep.subr.bf16.mxu0 %v11446_v0  ;;  %9452 = vmatprep.subr.bf16.mxu1 %v11446_v0  ;;  %v10963_v10 = vld [vmem:[#allocation6 + $0x210] sm:$0xff]  }
  0xb9   :  { %9305 = vmatmul.mubr.bf16.gmra.mxu0 %v461_v16  ;;  %9341 = vmatmul.mubr.bf16.gmra.mxu1 %v621_v18  ;;  %v1100_v16 = vpack.c.bf16 %v1095_v7, %v1094_v5  ;;  %v10964_v18 = vld [vmem:[#allocation6 + $0x208] sm:$0xff]  }
  0xba   :  { %9360 = vmatprep.mubr.msk.bf16.mxu0 %vm11447_vm0, %v11446_v0  ;;  %9396 = vmatprep.mubr.msk.bf16.mxu1 %vm11447_vm0, %v11446_v0 }
  0xc1   :  { %9361 = vmatmul.mubr.bf16.vlgmr.msra.gmra.mxu0 %v777_v15  ;;  %9397 = vmatmul.mubr.bf16.vlgmr.msra.gmra.mxu1 %v937_v23  ;;  %v11713_v15 = vld [vmem:[#allocation2] sm:$0xff]  ;;  %v1096_v23 = vld [vmem:[#allocation2 + $0x4d] sm:$0xff] }
  0xc2   :  { %9364 = vmatprep.mubr.msk.bf16.mxu0 %vm11447_vm0, %v11446_v0  ;;  %9400 = vmatprep.mubr.msk.bf16.mxu1 %vm11447_vm0, %v11446_v0 }
  0xc3   :  { %9417 = vmatpush3.bf16.msra.mxu0 %v10942_v21  ;;  %9453 = vmatpush3.bf16.msra.mxu1 %v10943_v24  ;;  %v1260_v21 = vpack.c.bf16 %v1255_v9, %v1254_v8  ;;  %v1256_v24 = vld [vmem:[#allocation2 + $0x4e] sm:$0xff] }
  0xc4   :  { %9418 = vmatprep.subr.bf16.mxu0 %v11446_v0  ;;  %9454 = vmatprep.subr.bf16.mxu1 %v11446_v0 }
  0xc7   :  { %9419 = vmatpush3.bf16.msra.mxu0 %v10944_v25  ;;  %9455 = vmatpush3.bf16.msra.mxu1 %v10945_v26  ;;  %v10965_v25 = vld [vmem:[#allocation6 + $0x200] sm:$0xff]   ;;  %v1101_v26 = vpack.c.bf16 %v1096_v23, %v1096_v23 }
  0xc8   :  { %9420 = vmatprep.subr.bf16.mxu0 %v11446_v0  ;;  %9456 = vmatprep.subr.bf16.mxu1 %v11713_v15  ;;  %v10950_v0 = vld [vmem:[#allocation6 + $0x198] sm:$0xff]  }
  0xc9   :  { %9365 = vmatmul.mubr.bf16.gmra.mxu0 %v778_v17  ;;  %9401 = vmatmul.mubr.bf16.gmra.mxu1 %v938_v11  ;;  %v10952_v17 = vld [vmem:[#allocation6 + $0x190] sm:$0xff]  }
  0xca   :  { %9368 = vmatprep.mubr.msk.bf16.mxu0 %vm11447_vm0, %v11713_v15  ;;  %9404 = vmatprep.mubr.msk.bf16.mxu1 %vm11447_vm0, %v11713_v15  ;;  %v11269_v11 = vld [vmem:[#allocation2 + $0xf] sm:$0xff] }
  0xcb   :  { %9421 = vmatpush3.bf16.msra.mxu0 %v10946_v29  ;;  %9457 = vmatpush3.bf16.msra.mxu1 %v10947_v12  ;;  %v1261_v29 = vpack.c.bf16 %v1256_v24, %v1256_v24  ;;  %v11270_v12 = vld [vmem:[#allocation2 + $0x17] sm:$0xff] }
  0xcc   :  { %9422 = vmatprep.subr.bf16.mxu0 %v11713_v15  ;;  %9458 = vmatprep.subr.bf16.mxu1 %v11713_v15 }
  0xcf   :  { %9423 = vmatpush3.bf16.msra.mxu0 %v10948_v40  ;;  %9459 = vmatpush3.bf16.msra.mxu1 %v10949_v27  ;;  %v1417_v40 = vpack.c.bf16 %v11270_v12, %v11269_v11  ;;  %v11271_v27 = vld [vmem:[#allocation2 + $0x1f] sm:$0xff] }
  0xd0   :  { %9424 = vmatprep.subr.bf16.mxu0 %v11713_v15  ;;  %9460 = vmatprep.subr.bf16.mxu1 %v11713_v15 }
  0xd1   :  { %9369 = vmatmul.mubr.bf16.gmra.mxu0 %v779_v22  ;;  %9405 = vmatmul.mubr.bf16.gmra.mxu1 %v939_v13  ;;  %v940_v22 = vpack.c.bf16 %v11648_v6, %v11636_v62  ;;  %v10957_v62 = vld [vmem:[#allocation6 + $0x1c0] sm:$0xff]   ;;  %v110_v6 = vld [vmem:[%s13657_s1 + $0x8] sm:$0xff] }
  0xd2   :  { %9372 = vmatprep.mubr.msk.bf16.mxu0 %vm11447_vm0, %v11713_v15  ;;  %9408 = vmatprep.mubr.msk.bf16.mxu1 %vm11447_vm0, %v11713_v15 }
  0xd3   :  { %9425 = vmatpush3.bf16.msra.mxu0 %v10950_v0  ;;  %9461 = vmatpush3.bf16.msra.mxu1 %v10951_v14  ;;  %v11272_v0 = vld [vmem:[#allocation2 + $0x27] sm:$0xff]  ;;  %v11273_v14 = vld [vmem:[#allocation2 + $0x2f] sm:$0xff] }
  0xd4   :  { %9426 = vmatprep.subr.bf16.mxu0 %v11713_v15  ;;  %9462 = vmatprep.subr.bf16.mxu1 %v11713_v15  ;;  %v1418_v13 = vpack.c.bf16 %v11272_v0, %v11271_v27 }
  0xd5   :  { %1575 = vperm.xlu0 %10892, %v110_v6  }
  0xd7   :  { %9427 = vmatpush3.bf16.msra.mxu0 %v10952_v17  ;;  %9463 = vmatpush3.bf16.msra.mxu1 %v10953_v42  ;;  %v11274_v17 = vld [vmem:[#allocation2 + $0x37] sm:$0xff] }
  0xd8   :  { %9428 = vmatprep.subr.bf16.mxu0 %v11713_v15  ;;  %9464 = vmatprep.subr.bf16.mxu1 %v11713_v15  ;;  %v1419_v42 = vpack.c.bf16 %v11274_v17, %v11273_v14 }
  0xd9   :  { %9373 = vmatmul.mubr.bf16.gmra.mxu0 %v780_v36  ;;  %9409 = vmatmul.mubr.bf16.gmra.mxu1 %v940_v22  ;;  %v111_v36 = vld [vmem:[%s13657_s1 + $0x10] sm:$0xff]  ;;  %s11449_s1 = smov [#allocation14]  }
  0xda   :  { %9376 = vmatprep.mubr.msk.bf16.mxu0 %vm11447_vm0, %v11713_v15  ;;  %9412 = vmatprep.mubr.msk.bf16.mxu1 %vm11447_vm0, %v11713_v15  ;;  %v1416_v22 = vld [vmem:[#allocation2 + $0x4f] sm:$0xff]  ;;  %s8204_s22 = sshll.u32 %s11449_s1, 4  ;;  %s8205_s22 = int_to_ptr.vmem [resolvable:$true] %s8204_s22 }
  0xdb   :  { %9429 = vmatpush3.bf16.msra.mxu0 %v10954_v51  ;;  %9465 = vmatpush3.bf16.msra.mxu1 %v10955_v52  ;;  %v11275_v51 = vld [vmem:[#allocation2 + $0x3f] sm:$0xff]  ;;  %v1421_v52 = vpack.c.bf16 %v1416_v22, %v1416_v22  ;;  %s11404_s23 = scalar_lea.vmem %s8205_s22, 32  ;;  %p11409_p3 = scmp.lt.s32.totalorder %s8205_s22, %s8205_s22 }
  0xdc   :  { %9430 = vmatprep.subr.bf16.mxu0 %v11713_v15  ;;  %9466 = vmatprep.subr.bf16.mxu1 %v11713_v15  ;;  %v1420_v20 = vpack.c.bf16 %v11276_v19, %v11275_v51  ;;  %p11405_p2 = scmp.ne.s32.totalorder %s8205_s22, %s11404_s23  ;;  %p11410_p4 = scmp.lt.s32.totalorder %s11404_s23, %s11404_s23 }
  0xdd   :  { %1580 = vperm.xlu1 %10893, %v111_v36   ;;  %1590 = vperm.xlu0 %10892, %v113_v31  }
  0xde   :  { %p11411_p5 = por %p11410_p4, %p11409_p3 }
  0xdf   :  { %9431 = vmatpush3.bf16.msra.mxu0 %v10956_v28  ;;  %9467 = vmatpush3.bf16.msra.mxu1 %v10957_v62 }
  0xe0   :  { %9488 = vmatprep.subr.bf16.mxu0 %v11713_v15  ;;  %9524 = vmatprep.subr.bf16.mxu1 %v11713_v15  ;;  %p11412_p6 = pnand %p11411_p5, %p11405_p2 }
  0xe1   :  { %9377 = vmatmul.mubr.bf16.gmra.mxu0 %v781_v30  ;;  %9413 = vmatmul.mubr.bf16.gmra.mxu1 %v941_v34 }
  0xe2   :  { %9432 = vmatprep.mubr.msk.bf16.mxu0 %vm11447_vm0, %v11713_v15  ;;  %9468 = vmatprep.mubr.msk.bf16.mxu1 %vm11447_vm0, %v11713_v15 }
  0xe3   :  { %1585 = vperm.xlu1 %10893, %v112_v37   ;;  %1600 = vperm.xlu0 %10892, %v115_v38  }
  0xe7   :  { %1595 = vperm.xlu1 %10893, %v114_v45   ;;  %1610 = vperm.xlu0 %10892, %v117_v46  }
  0xe9   :  { %9433 = vmatmul.mubr.bf16.vlgmr.msra.gmra.mxu0 %v1097_v39  ;;  %9469 = vmatmul.mubr.bf16.vlgmr.msra.gmra.mxu1 %v1257_v44 }
  0xea   :  { %9436 = vmatprep.mubr.msk.bf16.mxu0 %vm11447_vm0, %v11713_v15  ;;  %9472 = vmatprep.mubr.msk.bf16.mxu1 %vm11447_vm0, %v11713_v15 }
  0xeb   :  { %9489 = vmatpush3.bf16.msra.mxu0 %v10958_v43  ;;  %1605 = vperm.xlu1 %10893, %v116_v54  }
  0xec   :  { %9490 = vmatprep.subr.bf16.mxu0 %v11713_v15 }
  0xef   :  { %9491 = vmatpush3.bf16.msra.mxu0 %v10959_v53 }
  0xf0   :  { %9492 = vmatprep.subr.bf16.mxu0 %v11713_v15 }
  0xf1   :  { %9437 = vmatmul.mubr.bf16.gmra.mxu0 %v1098_v55  ;;  %9473 = vmatmul.mubr.bf16.gmra.mxu1 %v1258_v57 }
  0xf2   :  { %9440 = vmatprep.mubr.msk.bf16.mxu0 %vm11447_vm0, %v11713_v15  ;;  %9476 = vmatprep.mubr.msk.bf16.mxu1 %vm11447_vm0, %v11713_v15 }
  0xf3   :  { %9493 = vmatpush3.bf16.msra.mxu0 %v10960_v56 }
  0xf4   :  { %9494 = vmatprep.subr.bf16.mxu0 %v11713_v15 }
  0xf7   :  { %9495 = vmatpush3.bf16.msra.mxu0 %v10961_v1 }
  0xf8   :  { %9496 = vmatprep.subr.bf16.mxu0 %v11713_v15 }
  0xf9   :  { %9441 = vmatmul.mubr.bf16.gmra.mxu0 %v1099_v2  ;;  %9477 = vmatmul.mubr.bf16.gmra.mxu1 %v1259_v4 }
  0xfa   :  { %9444 = vmatprep.mubr.msk.bf16.mxu0 %vm11447_vm0, %v11713_v15  ;;  %9480 = vmatprep.mubr.msk.bf16.mxu1 %vm11447_vm0, %v11713_v15 }
  0xfb   :  { %9497 = vmatpush3.bf16.msra.mxu0 %v10962_v3 }
  0xfc   :  { %9498 = vmatprep.subr.bf16.mxu0 %v11713_v15 }
  0xff   :  { %9499 = vmatpush3.bf16.msra.mxu0 %v10963_v10 }
 0x100   :  { %9500 = vmatprep.subr.bf16.mxu0 %v11713_v15 }
 0x101   :  { %9445 = vmatmul.mubr.bf16.gmra.mxu0 %v1100_v16  ;;  %9481 = vmatmul.mubr.bf16.gmra.mxu1 %v1260_v21 }
 0x102   :  { %9448 = vmatprep.mubr.msk.bf16.mxu0 %vm11447_vm0, %v11713_v15  ;;  %9484 = vmatprep.mubr.msk.bf16.mxu1 %vm11447_vm0, %v11713_v15 }
 0x103   :  { %9501 = vmatpush3.bf16.msra.mxu0 %v10964_v18 }
 0x104   :  { %9502 = vmatprep.subr.bf16.mxu0 %v11713_v15 }
 0x107   :  { %9503 = vmatpush3.bf16.msra.mxu0 %v10965_v25 }
 0x108   :  { %9560 = vmatprep.subr.bf16.mxu0 %v11713_v15 }
 0x109   :  { %9449 = vmatmul.mubr.bf16.gmra.mxu0 %v1101_v26  ;;  %9485 = vmatmul.mubr.bf16.gmra.mxu1 %v1261_v29 }
 0x10a   :  { %9504 = vmatprep.mubr.msk.bf16.mxu0 %vm11447_vm0, %v11713_v15  ;;  %9540 = vmatprep.mubr.msk.bf16.mxu1 %vm11447_vm0, %v11713_v15 }
 0x111   :  { %9505 = vmatmul.mubr.bf16.vlgmr.msra.gmra.mxu0 %v1417_v40 }
 0x112   :  { %9508 = vmatprep.mubr.msk.bf16.mxu0 %vm11447_vm0, %v11713_v15 }
 0x119   :  { %9509 = vmatmul.mubr.bf16.gmra.mxu0 %v1418_v13 }
 0x11a   :  { %9512 = vmatprep.mubr.msk.bf16.mxu0 %vm11447_vm0, %v11713_v15 }
 0x121   :  { %9513 = vmatmul.mubr.bf16.gmra.mxu0 %v1419_v42 }
 0x122   :  { %9516 = vmatprep.mubr.msk.bf16.mxu0 %vm11447_vm0, %v11713_v15 }
 0x129   :  { %9517 = vmatmul.mubr.bf16.gmra.mxu0 %v1420_v20 }
 0x12a   :  { %9520 = vmatprep.mubr.msk.bf16.mxu0 %vm11447_vm0, %v11713_v15 }
 0x131   :  { %v290_v59 = vpop.f32.mrf.mxu0  ;;  %9521 = vmatmul.mubr.bf16.gmra.mxu0 %v1421_v52  ;;  %v410_v28 = vpop.f32.mrf.mxu1 }
 0x132   :  { %9576 = vmatprep.mubr.msk.bf16.mxu0 %vm11447_vm0, %v11713_v15  ;;  %v411_v62 = vadd.f32 %v410_v28, %v290_v59 }
 0x133   :  { %v9218_v6 = vpop.f32.mrf.mxu0  ;;  %v9254_v30 = vpop.f32.mrf.mxu1 }
 0x135   :  { %v293_v34 = vpop.f32.mrf.mxu0  ;;  %v413_v36 = vpop.f32.mrf.mxu1 }
 0x136   :  { %v414_v31 = vadd.f32 %v413_v36, %v293_v34 }
 0x137   :  { %v9219_v32 = vpop.f32.mrf.mxu0  ;;  %v9255_v33 = vpop.f32.mrf.mxu1 }
 0x139   :  { %v298_v41 = vpop.f32.mrf.mxu0  ;;  %v418_v35 = vpop.f32.mrf.mxu1 }
 0x13a   :  { %v419_v37 = vadd.f32 %v418_v35, %v298_v41 }
 0x13b   :  { %v9222_v38 = vpop.f32.mrf.mxu0  ;;  %v9258_v39 = vpop.f32.mrf.mxu1 }
 0x13d   :  { %v301_v43 = vpop.f32.mrf.mxu0  ;;  %v421_v44 = vpop.f32.mrf.mxu1 }
 0x13e   :  { %v422_v45 = vadd.f32 %v421_v44, %v301_v43 }
 0x13f   :  { %v9223_v46 = vpop.f32.mrf.mxu0  ;;  %v9259_v47 = vpop.f32.mrf.mxu1 }
 0x141   :  { %v306_v48 = vpop.f32.mrf.mxu0  ;;  %v426_v15 = vpop.f32.mrf.mxu1 }
 0x142   :  { %v427_v49 = vadd.f32 %v426_v15, %v306_v48 }
 0x143   :  { %v9226_v50 = vpop.f32.mrf.mxu0  ;;  %v9262_v53 = vpop.f32.mrf.mxu1 }
 0x145   :  { %v309_v54 = vpop.f32.mrf.mxu0  ;;  %v429_v55 = vpop.f32.mrf.mxu1 }
 0x146   :  { %v430_v56 = vadd.f32 %v429_v55, %v309_v54 }
 0x147   :  { %v9227_v57 = vpop.f32.mrf.mxu0  ;;  %v9263_v58 = vpop.f32.mrf.mxu1 }
 0x149   :  { %v314_v60 = vpop.f32.mrf.mxu0  ;;  %v434_v61 = vpop.f32.mrf.mxu1 }
 0x14a   :  { %v435_v63 = vadd.f32 %v434_v61, %v314_v60 }
 0x14b   :  { %v9230_v1 = vpop.f32.mrf.mxu0  ;;  %v9266_v2 = vpop.f32.mrf.mxu1 }
 0x14d   :  { %v317_v3 = vpop.f32.mrf.mxu0  ;;  %v437_v4 = vpop.f32.mrf.mxu1 }
 0x14e   :  { %v438_v5 = vadd.f32 %v437_v4, %v317_v3 }
 0x14f   :  { %v9231_v7 = vpop.f32.mrf.mxu0  ;;  %v9267_v8 = vpop.f32.mrf.mxu1 }
 0x151   :  { %v322_v9 = vpop.f32.mrf.mxu0  ;;  %v442_v10 = vpop.f32.mrf.mxu1 }
 0x152   :  { %v443_v16 = vadd.f32 %v442_v10, %v322_v9 }
 0x153   :  { %v9234_v18 = vpop.f32.mrf.mxu0  ;;  %v9270_v21 = vpop.f32.mrf.mxu1 }
 0x155   :  { %v325_v23 = vpop.f32.mrf.mxu0  ;;  %v445_v24 = vpop.f32.mrf.mxu1 }
 0x157   :  { %v9235_v25 = vpop.f32.mrf.mxu0  ;;  %v9271_v26 = vpop.f32.mrf.mxu1 }
 0x159   :  { %v561_v29 = vpop.f32.mrf.mxu0  ;;  %v721_v12 = vpop.f32.mrf.mxu1 }
 0x15a   :  { %v599_v11 = vadd.f32 %v561_v29, %v411_v62 }
 0x15b   :  { %v9290_v40 = vpop.f32.mrf.mxu0  ;;  %v9326_v0 = vpop.f32.mrf.mxu1 }
 0x15c   :  { %v759_v27 = vadd.f32 %v721_v12, %v599_v11 }
 0x15d   :  { %v564_v13 = vpop.f32.mrf.mxu0  ;;  %v724_v17 = vpop.f32.mrf.mxu1 }
 0x15e   :  { %v600_v14 = vadd.f32 %v564_v13, %v414_v31 }
 0x15f   :  { %v9291_v42 = vpop.f32.mrf.mxu0  ;;  %v9327_v19 = vpop.f32.mrf.mxu1 }
 0x160   :  { %v760_v51 = vadd.f32 %v724_v17, %v600_v14 }
 0x161   :  { %v569_v20 = vpop.f32.mrf.mxu0  ;;  %v729_v52 = vpop.f32.mrf.mxu1 }
 0x162   :  { %v601_v22 = vadd.f32 %v569_v20, %v419_v37 }
 0x163   :  { %v9294_v59 = vpop.f32.mrf.mxu0  ;;  %v9330_v6 = vpop.f32.mrf.mxu1 }
 0x164   :  { %v761_v28 = vadd.f32 %v729_v52, %v601_v22 }
 0x165   :  { %v572_v30 = vpop.f32.mrf.mxu0  ;;  %v732_v36 = vpop.f32.mrf.mxu1 }
 0x166   :  { %v602_v34 = vadd.f32 %v572_v30, %v422_v45 }
 0x167   :  { %v9295_v62 = vpop.f32.mrf.mxu0  ;;  %v9331_v33 = vpop.f32.mrf.mxu1 }
 0x168   :  { %v762_v32 = vadd.f32 %v732_v36, %v602_v34  ;;  %v10966_v33 = vld [vmem:[#allocation6 + $0x2b8] sm:$0xff]  }
 0x169   :  { %v577_v41 = vpop.f32.mrf.mxu0  ;;  %v737_v38 = vpop.f32.mrf.mxu1  ;;  %9525 = vmatpush3.bf16.msra.mxu1 %v10966_v33 }
 0x16a   :  { %v603_v35 = vadd.f32 %v577_v41, %v427_v49  ;;  %v10967_v41 = vld [vmem:[#allocation6 + $0x278] sm:$0xff]  }
 0x16b   :  { %v9298_v31 = vpop.f32.mrf.mxu0  ;;  %v9334_v43 = vpop.f32.mrf.mxu1  ;;  %9561 = vmatpush3.bf16.msra.mxu0 %v10967_v41 }
 0x16c   :  { %v763_v39 = vadd.f32 %v737_v38, %v603_v35  ;;  %v11837_v43 = vld [vmem:[#allocation2] sm:$0xff] }
 0x16d   :  { %v580_v44 = vpop.f32.mrf.mxu0  ;;  %v740_v47 = vpop.f32.mrf.mxu1  ;;  %9526 = vmatprep.subr.bf16.mxu1 %v11837_v43  ;;  %9562 = vmatprep.subr.bf16.mxu0 %v11837_v43 }
 0x16e   :  { %v604_v46 = vadd.f32 %v580_v44, %v430_v56 }
 0x16f   :  { %v9299_v37 = vpop.f32.mrf.mxu0  ;;  %v9335_v15 = vpop.f32.mrf.mxu1 }
 0x170   :  { %v764_v48 = vadd.f32 %v740_v47, %v604_v46  ;;  %v10968_v46 = vld [vmem:[#allocation6 + $0x2b0] sm:$0xff]  }
 0x171   :  { %v585_v50 = vpop.f32.mrf.mxu0  ;;  %v745_v54 = vpop.f32.mrf.mxu1  ;;  %9527 = vmatpush3.bf16.msra.mxu1 %v10968_v46 }
 0x172   :  { %v605_v53 = vadd.f32 %v585_v50, %v435_v63  ;;  %9528 = vmatprep.subr.bf16.mxu1 %v11837_v43 }
 0x173   :  { %v9302_v45 = vpop.f32.mrf.mxu0  ;;  %v9338_v57 = vpop.f32.mrf.mxu1 }
 0x174   :  { %v11821_v55 = vadd.f32 %v745_v54, %v605_v53  ;;  %v10970_v45 = vld [vmem:[#allocation6 + $0x2a8] sm:$0xff]  }
 0x175   :  { %v588_v58 = vpop.f32.mrf.mxu0  ;;  %v748_v49 = vpop.f32.mrf.mxu1  ;;  %v10971_v57 = vld [vmem:[#allocation6 + $0x268] sm:$0xff]   ;;  %9529 = vmatpush3.bf16.msra.mxu1 %v10970_v45 }
 0x176   :  { %v606_v60 = vadd.f32 %v588_v58, %v438_v5  ;;  %9530 = vmatprep.subr.bf16.mxu1 %v11837_v43 }
 0x177   :  { %v9303_v61 = vpop.f32.mrf.mxu0  ;;  %v9339_v2 = vpop.f32.mrf.mxu1 }
 0x178   :  { %v11823_v1 = vadd.f32 %v748_v49, %v606_v60 }
 0x179   :  { %v593_v3 = vpop.f32.mrf.mxu0  ;;  %v753_v4 = vpop.f32.mrf.mxu1 }
 0x17a   :  { %v607_v56 = vadd.f32 %v593_v3, %v443_v16  ;;  %v10972_v3 = vld [vmem:[#allocation6 + $0x2a0] sm:$0xff]  }
 0x17b   :  { %v9306_v7 = vpop.f32.mrf.mxu0  ;;  %v9342_v9 = vpop.f32.mrf.mxu1  ;;  %9531 = vmatpush3.bf16.msra.mxu1 %v10972_v3 }
 0x17c   :  { %v11825_v8 = vadd.f32 %v753_v4, %v607_v56  ;;  %v10973_v56 = vld [vmem:[#allocation6 + $0x260] sm:$0xff]   ;;  %9532 = vmatprep.subr.bf16.mxu1 %v11837_v43 }
 0x17d   :  { %v596_v63 = vpop.f32.mrf.mxu0  ;;  %v756_v10 = vpop.f32.mrf.mxu1 }
 0x17f   :  { %v9307_v18 = vpop.f32.mrf.mxu0  ;;  %v9343_v21 = vpop.f32.mrf.mxu1 }
 0x180   :  { %v10974_v18 = vld [vmem:[#allocation6 + $0x298] sm:$0xff]  }
 0x181   :  { %v881_v23 = vpop.f32.mrf.mxu0  ;;  %v1041_v25 = vpop.f32.mrf.mxu1  ;;  %v10975_v21 = vld [vmem:[#allocation6 + $0x258] sm:$0xff]   ;;  %9533 = vmatpush3.bf16.msra.mxu1 %v10974_v18 }
 0x182   :  { %v919_v24 = vadd.f32 %v881_v23, %v759_v27  ;;  %9534 = vmatprep.subr.bf16.mxu1 %v11837_v43 }
 0x183   :  { %v9362_v5 = vpop.f32.mrf.mxu0  ;;  %v9398_v29 = vpop.f32.mrf.mxu1 }
 0x184   :  { %v11827_v26 = vadd.f32 %v1041_v25, %v919_v24  ;;  %v10976_v29 = vld [vmem:[#allocation6 + $0x290] sm:$0xff]  }
 0x185   :  { %v884_v11 = vpop.f32.mrf.mxu0  ;;  %v1044_v40 = vpop.f32.mrf.mxu1  ;;  %9535 = vmatpush3.bf16.msra.mxu1 %v10976_v29 }
 0x186   :  { %v920_v12 = vadd.f32 %v884_v11, %v760_v51  ;;  %v10977_v11 = vld [vmem:[#allocation6 + $0x250] sm:$0xff]   ;;  %9536 = vmatprep.subr.bf16.mxu1 %v11837_v43 }
 0x187   :  { %v9363_v16 = vpop.f32.mrf.mxu0  ;;  %v9399_v13 = vpop.f32.mrf.mxu1 }
 0x188   :  { %v11829_v0 = vadd.f32 %v1044_v40, %v920_v12  ;;  %v10978_v16 = vld [vmem:[#allocation6 + $0x288] sm:$0xff]  }
 0x189   :  { %v889_v14 = vpop.f32.mrf.mxu0  ;;  %v1049_v42 = vpop.f32.mrf.mxu1  ;;  %v10979_v13 = vld [vmem:[#allocation6 + $0x248] sm:$0xff]   ;;  %9537 = vmatpush3.bf16.msra.mxu1 %v10978_v16 }
 0x18a   :  { %v921_v17 = vadd.f32 %v889_v14, %v761_v28  ;;  %9538 = vmatprep.subr.bf16.mxu1 %v11837_v43 }
 0x18b   :  { %v9366_v19 = vpop.f32.mrf.mxu0  ;;  %v9402_v22 = vpop.f32.mrf.mxu1 }
 0x18c   :  { %v11831_v20 = vadd.f32 %v1049_v42, %v921_v17  ;;  %v10980_v19 = vld [vmem:[#allocation6 + $0x280] sm:$0xff]  }
 0x18d   :  { %v892_v27 = vpop.f32.mrf.mxu0  ;;  %v1052_v59 = vpop.f32.mrf.mxu1  ;;  %v10981_v22 = vld [vmem:[#allocation6 + $0x240] sm:$0xff]   ;;  %9539 = vmatpush3.bf16.msra.mxu1 %v10980_v19 }
 0x18e   :  { %v922_v52 = vadd.f32 %v892_v27, %v762_v32  ;;  %9596 = vmatprep.subr.bf16.mxu1 %v11837_v43 }
 0x18f   :  { %v9367_v6 = vpop.f32.mrf.mxu0  ;;  %v9403_v34 = vpop.f32.mrf.mxu1 }
 0x190   :  { %v11833_v30 = vadd.f32 %v1052_v59, %v922_v52 }
 0x191   :  { %v897_v51 = vpop.f32.mrf.mxu0  ;;  %v1057_v62 = vpop.f32.mrf.mxu1 }
 0x192   :  { %v923_v36 = vadd.f32 %v897_v51, %v763_v39  ;;  %v10969_v39 = vld [vmem:[#allocation6 + $0x270] sm:$0xff]  }
 0x193   :  { %v9370_v35 = vpop.f32.mrf.mxu0  ;;  %v9406_v28 = vpop.f32.mrf.mxu1  ;;  %9563 = vmatpush3.bf16.msra.mxu0 %v10969_v39 }
 0x194   :  { %v11835_v38 = vadd.f32 %v1057_v62, %v923_v36  ;;  %9564 = vmatprep.subr.bf16.mxu0 %v11837_v43 }
 0x195   :  { %v900_v31 = vpop.f32.mrf.mxu0  ;;  %v1060_v44 = vpop.f32.mrf.mxu1 }
 0x196   :  { %v924_v32 = vadd.f32 %v900_v31, %v764_v48 }
 0x197   :  { %v9371_v47 = vpop.f32.mrf.mxu0  ;;  %v9407_v15 = vpop.f32.mrf.mxu1  ;;  %9565 = vmatpush3.bf16.msra.mxu0 %v10971_v57 }
 0x198   :  { %v11841_v37 = vadd.f32 %v1060_v44, %v924_v32  ;;  %9566 = vmatprep.subr.bf16.mxu0 %v11837_v43 }
 0x199   :  { %v905_v50 = vpop.f32.mrf.mxu0  ;;  %v1065_v54 = vpop.f32.mrf.mxu1 }
 0x19a   :  { %v925_v53 = vadd.f32 %v905_v50, %v11821_v55 }
 0x19b   :  { %v9374_v48 = vpop.f32.mrf.mxu0  ;;  %v9410_v60 = vpop.f32.mrf.mxu1  ;;  %9567 = vmatpush3.bf16.msra.mxu0 %v10973_v56 }
 0x19c   :  { %v11846_v58 = vadd.f32 %v1065_v54, %v925_v53  ;;  %9568 = vmatprep.subr.bf16.mxu0 %v11837_v43 }
 0x19d   :  { %v908_v49 = vpop.f32.mrf.mxu0  ;;  %v1068_v2 = vpop.f32.mrf.mxu1 }
 0x19e   :  { %v926_v61 = vadd.f32 %v908_v49, %v11823_v1 }
 0x19f   :  { %v9375_v55 = vpop.f32.mrf.mxu0  ;;  %v9411_v7 = vpop.f32.mrf.mxu1  ;;  %9569 = vmatpush3.bf16.msra.mxu0 %v10975_v21 }
 0x1a0   :  { %v11851_v4 = vadd.f32 %v1068_v2, %v926_v61  ;;  %9570 = vmatprep.subr.bf16.mxu0 %v11837_v43 }
 0x1a1   :  { %v913_v9 = vpop.f32.mrf.mxu0  ;;  %v1073_v10 = vpop.f32.mrf.mxu1 }
 0x1a2   :  { %v927_v63 = vadd.f32 %v913_v9, %v11825_v8 }
 0x1a3   :  { %v9378_v1 = vpop.f32.mrf.mxu0  ;;  %v9414_v24 = vpop.f32.mrf.mxu1  ;;  %9571 = vmatpush3.bf16.msra.mxu0 %v10977_v11 }
 0x1a4   :  { %v11856_v23 = vadd.f32 %v1073_v10, %v927_v63  ;;  %9572 = vmatprep.subr.bf16.mxu0 %v11837_v43 }
 0x1a5   :  { %v916_v25 = vpop.f32.mrf.mxu0  ;;  %v1076_v5 = vpop.f32.mrf.mxu1 }
 0x1a6   :  { %v11882_v25 = vpop.permute.xlu0 %1570 }
 0x1a7   :  { %v9379_v12 = vpop.f32.mrf.mxu0  ;;  %v9415_v40 = vpop.f32.mrf.mxu1  ;;  %9573 = vmatpush3.bf16.msra.mxu0 %v10979_v13 }
 0x1a8   :  { %9574 = vmatprep.subr.bf16.mxu0 %v11837_v43 }
 0x1a9   :  { %v1201_v8 = vpop.f32.mrf.mxu0  ;;  %v1361_v14 = vpop.f32.mrf.mxu1 }
 0x1aa   :  { %v1239_v55 = vadd.f32 %v1201_v8, %v11827_v26  ;;  %v11892_v13 = vpop.permute.xlu0 %1575 }
 0x1ab   :  { %v9434_v17 = vpop.f32.mrf.mxu0  ;;  %v9470_v42 = vpop.f32.mrf.mxu1  ;;  %9575 = vmatpush3.bf16.msra.mxu0 %v10981_v22 }
 0x1ac   :  { %9632 = vmatprep.subr.bf16.mxu0 %v11837_v43  ;;  %v1399_v18 = vadd.f32 %v1361_v14, %v1239_v55  ;;  %v11900_v22 = vpop.permute.xlu1 %1580 }
 0x1ad   :  { %v1204_v27 = vpop.f32.mrf.mxu0  ;;  %v1364_v52 = vpop.f32.mrf.mxu1 }
 0x1ae   :  { %v1240_v21 = vadd.f32 %v1204_v27, %v11829_v0 }
 0x1af   :  { %v9435_v59 = vpop.f32.mrf.mxu0  ;;  %v9471_v6 = vpop.f32.mrf.mxu1 }
 0x1b0   :  { %v1400_v11 = vadd.f32 %v1364_v52, %v1240_v21 }
 0x1b1   :  { %v1209_v34 = vpop.f32.mrf.mxu0  ;;  %v1369_v51 = vpop.f32.mrf.mxu1 }
 0x1b2   :  { %v1241_v12 = vadd.f32 %v1209_v34, %v11831_v20 }
 0x1b3   :  { %v9438_v36 = vpop.f32.mrf.mxu0  ;;  %v9474_v62 = vpop.f32.mrf.mxu1 }
 0x1b4   :  { %v1401_v14 = vadd.f32 %v1369_v51, %v1241_v12 }
 0x1b5   :  { %v1212_v33 = vpop.f32.mrf.mxu0  ;;  %v1372_v41 = vpop.f32.mrf.mxu1 }
 0x1b6   :  { %v1242_v16 = vadd.f32 %v1212_v33, %v11833_v30 }
 0x1b7   :  { %v9439_v35 = vpop.f32.mrf.mxu0  ;;  %v9475_v28 = vpop.f32.mrf.mxu1 }
 0x1b8   :  { %v1402_v6 = vadd.f32 %v1372_v41, %v1242_v16 }
 0x1b9   :  { %v1217_v31 = vpop.f32.mrf.mxu0  ;;  %v1377_v32 = vpop.f32.mrf.mxu1 }
 0x1ba   :  { %v1243_v51 = vadd.f32 %v1217_v31, %v11835_v38 }
 0x1bb   :  { %v9442_v44 = vpop.f32.mrf.mxu0  ;;  %v9478_v46 = vpop.f32.mrf.mxu1 }
 0x1bd   :  { %v1220_v39 = vpop.f32.mrf.mxu0  ;;  %v11866_v47 = vpop.f32.mrf.mxu1 }
 0x1bf   :  { %v9443_v15 = vpop.f32.mrf.mxu0  ;;  %v9479_v50 = vpop.f32.mrf.mxu1 }
 0x1c0   :  { %v1244_v15 = vadd.f32 %v1220_v39, %v11841_v37  ;;  %v11915_v50 = vpop.permute.xlu1 %1585  ;;  %v11925_v37 = vpop.permute.xlu0 %1590 }
 0x1c1   :  { %v11868_v53 = vpop.f32.mrf.mxu0  ;;  %v11870_v54 = vpop.f32.mrf.mxu1 }
 0x1c3   :  { %v9446_v45 = vpop.f32.mrf.mxu0  ;;  %v9482_v57 = vpop.f32.mrf.mxu1 }
 0x1c4   :  { %v1403_v45 = vadd.f32 %v1377_v32, %v1243_v51  ;;  %v1245_v32 = vadd.f32 %v11868_v53, %v11846_v58 }
 0x1c5   :  { %v11872_v48 = vpop.f32.mrf.mxu0  ;;  %v11874_v60 = vpop.f32.mrf.mxu1 }
 0x1c6   :  { %v1405_v58 = vadd.f32 %v11870_v54, %v1245_v32 }
 0x1c7   :  { %v9447_v49 = vpop.f32.mrf.mxu0  ;;  %v9483_v61 = vpop.f32.mrf.mxu1 }
 0x1c9   :  { %v11876_v2 = vpop.f32.mrf.mxu0  ;;  %v11878_v3 = vpop.f32.mrf.mxu1 }
 0x1ca   :  { %v1247_v54 = vadd.f32 %v11876_v2, %v11856_v23 }
 0x1cb   :  { %v9450_v56 = vpop.f32.mrf.mxu0  ;;  %v9486_v7 = vpop.f32.mrf.mxu1 }
 0x1cc   :  { %v1404_v7 = vadd.f32 %v11866_v47, %v1244_v15  ;;  %v1246_v47 = vadd.f32 %v11872_v48, %v11851_v4  ;;  %v11949_v48 = vpop.permute.xlu0 %1600  ;;  %v1407_v51 = vadd.f32 %v11878_v3, %v1247_v54 }
 0x1cd   :  { %v1236_v9 = vpop.f32.mrf.mxu0  ;;  %v1396_v63 = vpop.f32.mrf.mxu1 }
 0x1ce   :  { %v1406_v4 = vadd.f32 %v11874_v60, %v1246_v47 }
 0x1cf   :  { %v9451_v10 = vpop.f32.mrf.mxu0  ;;  %v9487_v1 = vpop.f32.mrf.mxu1 }
 0x1d1   :  { %v1521_v24 = vpop.f32.mrf.mxu0 }
 0x1d2   :  { %v11884_v5 = vadd.f32 %v1521_v24, %v1399_v18 }
 0x1d3   :  { %v9506_v29 = vpop.f32.mrf.mxu0 }
 0x1d4   :  { %v1636_v26 = vmul.f32 %v11884_v5, %v11884_v5  ;;  %v1613_v42 = vmul.f32 %v11882_v25, %v11884_v5  ;;  %v11938_v29 = vpop.permute.xlu1 %1595 }
 0x1d5   :  { %v1524_v40 = vpop.f32.mrf.mxu0 }
 0x1d6   :  { %v11889_v8 = vadd.f32 %v1524_v40, %v1400_v11  ;;  %v1645_v30 = vmul.f32 %v1636_v26, %v11882_v25 }
 0x1d7   :  { %v9507_v0 = vpop.f32.mrf.mxu0 }
 0x1d8   :  { %v1637_v17 = vmul.f32 %v11889_v8, %v11889_v8  ;;  %v1614_v20 = vmul.f32 %v11892_v13, %v11889_v8 }
 0x1d9   :  { %v1529_v19 = vpop.f32.mrf.mxu0 }
 0x1da   :  { %v11902_v27 = vadd.f32 %v1529_v19, %v1401_v14  ;;  %v1622_v52 = vadd.f32 %v1614_v20, %v1613_v42  ;;  %v1646_v59 = vmul.f32 %v1637_v17, %v11892_v13 }
 0x1db   :  { %v9510_v34 = vpop.f32.mrf.mxu0 }
 0x1dc   :  { %v1638_v36 = vmul.f32 %v11902_v27, %v11902_v27  ;;  %v1615_v62 = vmul.f32 %v11900_v22, %v11902_v27  ;;  %v1654_v33 = vadd.f32 %v1646_v59, %v1645_v30  ;;  %v11958_v34 = vpop.permute.xlu1 %1605 }
 0x1dd   :  { %v1532_v35 = vpop.f32.mrf.mxu0 }
 0x1de   :  { %v11911_v28 = vadd.f32 %v1532_v35, %v1402_v6  ;;  %v1623_v44 = vadd.f32 %v1622_v52, %v1615_v62  ;;  %v1647_v46 = vmul.f32 %v1638_v36, %v11900_v22 }
 0x1df   :  { %v9511_v41 = vpop.f32.mrf.mxu0 }
 0x1e0   :  { %v1639_v38 = vmul.f32 %v11911_v28, %v11911_v28  ;;  %v1616_v31 = vmul.f32 %v11915_v50, %v11911_v28  ;;  %v1655_v57 = vadd.f32 %v1654_v33, %v1647_v46  ;;  %v11963_v46 = vpop.permute.xlu0 %1610 }
 0x1e1   :  { %v1537_v49 = vpop.f32.mrf.mxu0 }
 0x1e2   :  { %v11921_v61 = vadd.f32 %v1537_v49, %v1403_v45  ;;  %v1624_v56 = vadd.f32 %v1623_v44, %v1616_v31  ;;  %v1648_v55 = vmul.f32 %v1639_v38, %v11915_v50 }
 0x1e3   :  { %v9514_v39 = vpop.f32.mrf.mxu0 }
 0x1e4   :  { %v1617_v9 = vmul.f32 %v11925_v37, %v11921_v61  ;;  %v1640_v63 = vmul.f32 %v11921_v61, %v11921_v61  ;;  %v1656_v10 = vadd.f32 %v1655_v57, %v1648_v55 }
 0x1e5   :  { %v1540_v18 = vpop.f32.mrf.mxu0 }
 0x1e6   :  { %v1625_v21 = vadd.f32 %v1624_v56, %v1617_v9  ;;  %v1649_v1 = vmul.f32 %v1640_v63, %v11925_v37  ;;  %v11934_v24 = vadd.f32 %v1540_v18, %v1404_v7 }
 0x1e7   :  { %v9515_v11 = vpop.f32.mrf.mxu0 }
 0x1e8   :  { %v1657_v53 = vadd.f32 %v1656_v10, %v1649_v1  ;;  %v1618_v12 = vmul.f32 %v11938_v29, %v11934_v24  ;;  %v1641_v40 = vmul.f32 %v11934_v24, %v11934_v24 }
 0x1e9   :  { %v1545_v26 = vpop.f32.mrf.mxu0 }
 0x1ea   :  { %v1626_v16 = vadd.f32 %v1625_v21, %v1618_v12  ;;  %v1650_v0 = vmul.f32 %v1641_v40, %v11938_v29  ;;  %v11946_v14 = vadd.f32 %v1545_v26, %v1405_v58 }
 0x1eb   :  { %v9518_v17 = vpop.f32.mrf.mxu0 }
 0x1ec   :  { %v1658_v42 = vadd.f32 %v1657_v53, %v1650_v0  ;;  %v1619_v20 = vmul.f32 %v11949_v48, %v11946_v14  ;;  %v1642_v19 = vmul.f32 %v11946_v14, %v11946_v14 }
 0x1ed   :  { %v1548_v52 = vpop.f32.mrf.mxu0 }
 0x1ee   :  { %v1627_v30 = vadd.f32 %v1626_v16, %v1619_v20  ;;  %v1651_v59 = vmul.f32 %v1642_v19, %v11949_v48  ;;  %v1566_v6 = vadd.f32 %v1548_v52, %v1406_v4 }
 0x1ef   :  { %v9519_v60 = vpop.f32.mrf.mxu0 }
 0x1f0   :  { %v1659_v36 = vadd.f32 %v1658_v42, %v1651_v59  ;;  %v1620_v23 = vmul.f32 %v11958_v34, %v1566_v6  ;;  %v1643_v2 = vmul.f32 %v1566_v6, %v1566_v6 }
 0x1f1   :  { %v1553_v62 = vpop.f32.mrf.mxu0 }
 0x1f2   :  { %v1628_v33 = vadd.f32 %v1627_v30, %v1620_v23  ;;  %v1652_v35 = vmul.f32 %v1643_v2, %v11958_v34  ;;  %v1567_v44 = vadd.f32 %v1553_v62, %v1407_v51  ;;  %v8289_v2 = vld [vmem:[#allocation9] ss:$0 sm:$0xff] }
 0x1f3   :  { %v9522_v15 = vpop.f32.mrf.mxu0 }
 0x1f4   :  { %v1660_v41 = vadd.f32 %v1659_v36, %v1652_v35  ;;  %v1621_v45 = vmul.f32 %v11963_v46, %v1567_v44  ;;  %v1644_v38 = vmul.f32 %v1567_v44, %v1567_v44 }
 0x1f5   :  { %v1556_v31 = vpop.f32.mrf.mxu0 }
 0x1f6   :  { %v1629_v57 = vadd.f32 %v1628_v33, %v1621_v45  ;;  %v1653_v3 = vmul.f32 %v1644_v38, %v11963_v46 }
 0x1f7   :  { %v9523_v49 = vpop.f32.mrf.mxu0 }
 0x1f8   :  { %v1630_v56 = vrot.slane %v1629_v57, 4  ;;  %v1661_v55 = vadd.f32 %v1660_v41, %v1653_v3 }
 0x1fa   :  { %v1631_v7 = vadd.f32 %v1630_v56, %v1629_v57  ;;  %v1662_v39 = vrot.slane %v1661_v55, 4 }
 0x1fc   :  { %v1632_v32 = vrot.slane %v1631_v7, 2  ;;  %v1663_v9 = vadd.f32 %v1662_v39, %v1661_v55 }
 0x1fe   :  { %v1633_v63 = vadd.f32 %v1632_v32, %v1631_v7  ;;  %v1664_v10 = vrot.slane %v1663_v9, 2 }
 0x200   :  { %v1634_v18 = vrot.slane %v1633_v63, 1  ;;  %v1665_v21 = vadd.f32 %v1664_v10, %v1663_v9 }
 0x202   :  { %v1635_v1 = vadd.f32 %v1634_v18, %v1633_v63  ;;  %v1666_v47 = vrot.slane %v1665_v21, 1 }
 0x204   :  { %v1667_v11 = vadd.f32 %v1666_v47, %v1665_v21  ;;  %v1668_v58 = vmul.f32 0.03125, %v1635_v1 }
 0x206   :  { %v1669_v53 = vmul.f32 0.03125, %v1667_v11  ;;  %v1670_v12 = vmul.f32 %v1668_v58, %v1668_v58  ;;  %v1673_v40 = vsub.f32 %v11884_v5, %v1668_v58  ;;  %v1674_v26 = vsub.f32 %v11889_v8, %v1668_v58  ;;  %v8288_v5 = vld [vmem:[#allocation8] ss:$0 sm:$0xff] }
 0x207   :  { %v1675_v16 = vsub.f32 %v11902_v27, %v1668_v58  ;;  %v1676_v0 = vsub.f32 %v11911_v28, %v1668_v58  ;;  %v1677_v4 = vsub.f32 %v11921_v61, %v1668_v58  ;;  %v1678_v17 = vsub.f32 %v11934_v24, %v1668_v58 }
 0x208   :  { %v1671_v54 = vsub.f32 %v1669_v53, %v1670_v12  ;;  %v1679_v42 = vsub.f32 %v11946_v14, %v1668_v58  ;;  %v1680_v20 = vsub.f32 %v1566_v6, %v1668_v58  ;;  %v1681_v19 = vsub.f32 %v1567_v44, %v1668_v58 }
 0x20a   :  { %v1672_v52 = vmax.f32 %v1671_v54, 0.0 }
 0x20c   :  { %v1682_v30 = vadd.f32 1e-05, %v1672_v52 }
 0x20e   :  { %11254 = vrsqrt.f32 %v1682_v30  ;;  %v10982_v30 = vld [vmem:[#allocation6 + $0x2f8] sm:$0xff]  }
 0x21b   :  { %v11255_v59 = vpop.eup %11254 }
 0x21c   :  { %v1684_v60 = vmul.f32 %v11255_v59, %v1673_v40  ;;  %v1685_v8 = vmul.f32 %v11255_v59, %v1674_v26  ;;  %v1686_v51 = vmul.f32 %v11255_v59, %v1675_v16  ;;  %v1687_v27 = vmul.f32 %v11255_v59, %v1676_v0 }
 0x21d   :  { %v1688_v36 = vmul.f32 %v11255_v59, %v1677_v4  ;;  %v1689_v28 = vmul.f32 %v11255_v59, %v1678_v17  ;;  %v1690_v23 = vmul.f32 %v11255_v59, %v1679_v42  ;;  %v1691_v61 = vmul.f32 %v11255_v59, %v1680_v20 }
 0x21e   :  { %v1692_v24 = vmul.f32 %v11255_v59, %v1681_v19  ;;  %v1700_v62 = vmul.f32 %v8288_v5, %v1684_v60  ;;  %v1701_v33 = vmul.f32 %v8288_v5, %v1685_v8  ;;  %v1702_v14 = vmul.f32 %v8288_v5, %v1686_v51  ;;  %v10984_v60 = vld [vmem:[#allocation6 + $0x2f0] sm:$0xff]  }
 0x21f   :  { %v1703_v6 = vmul.f32 %v8288_v5, %v1687_v27  ;;  %v1704_v35 = vmul.f32 %v8288_v5, %v1688_v36  ;;  %v1705_v44 = vmul.f32 %v8288_v5, %v1689_v28  ;;  %v1706_v15 = vmul.f32 %v8288_v5, %v1690_v23  ;;  %v10985_v27 = vld [vmem:[#allocation6 + $0x330] sm:$0xff]  }
 0x220   :  { %v1707_v41 = vmul.f32 %v8288_v5, %v1691_v61  ;;  %v1708_v45 = vmul.f32 %v8288_v5, %v1692_v24  ;;  %v1716_v38 = vadd.f32 %v8289_v2, %v1700_v62  ;;  %v1717_v31 = vadd.f32 %v8289_v2, %v1701_v33  ;;  %v10983_v5 = vld [vmem:[#allocation6 + $0x338] sm:$0xff]   ;;  %v10986_v61 = vld [vmem:[#allocation6 + $0x2e8] sm:$0xff]   ;;  %v10988_v62 = vld [vmem:[#allocation6 + $0x2e0] sm:$0xff]  }
 0x221   :  { %v1718_v57 = vadd.f32 %v8289_v2, %v1702_v14  ;;  %v1719_v3 = vadd.f32 %v8289_v2, %v1703_v6  ;;  %v1720_v49 = vadd.f32 %v8289_v2, %v1704_v35  ;;  %v1721_v56 = vadd.f32 %v8289_v2, %v1705_v44  ;;  %v10987_v24 = vld [vmem:[#allocation6 + $0x328] sm:$0xff]   ;;  %v10989_v6 = vld [vmem:[#allocation6 + $0x320] sm:$0xff]  }
 0x222   :  { %v1722_v55 = vadd.f32 %v8289_v2, %v1706_v15  ;;  %v1723_v7 = vadd.f32 %v8289_v2, %v1707_v41  ;;  %v1724_v39 = vadd.f32 %v8289_v2, %v1708_v45  ;;  %v1725_v32 = vmax.f32 %v1716_v38, 0.0  ;;  %v10990_v41 = vld [vmem:[#allocation6 + $0x2d8] sm:$0xff]  }
 0x223   :  { %v1726_v9 = vmax.f32 %v1717_v31, 0.0  ;;  %v1727_v63 = vmax.f32 %v1718_v57, 0.0  ;;  %v1728_v10 = vmax.f32 %v1719_v3, 0.0  ;;  %v1729_v18 = vmax.f32 %v1720_v49, 0.0  ;;  %v10991_v38 = vld [vmem:[#allocation6 + $0x318] sm:$0xff]   ;;  %v10992_v31 = vld [vmem:[#allocation6 + $0x2d0] sm:$0xff]  }
 0x224   :  { %v1730_v21 = vmax.f32 %v1721_v56, 0.0  ;;  %v1731_v1 = vmax.f32 %v1722_v55, 0.0  ;;  %v1732_v47 = vmax.f32 %v1723_v7, 0.0  ;;  %v1733_v11 = vmax.f32 %v1724_v39, 0.0  ;;  %v10993_v49 = vld [vmem:[#allocation6 + $0x310] sm:$0xff]   ;;  %v10994_v39 = vld [vmem:[#allocation6 + $0x2c8] sm:$0xff]  }
 0x225   :  { %v11975_v58 = vmul.f32 %v1725_v32, %v11882_v25  ;;  %v11978_v53 = vmul.f32 %v1726_v9, %v11892_v13  ;;  %v11981_v12 = vmul.f32 %v1727_v63, %v11900_v22  ;;  %v11984_v40 = vmul.f32 %v1728_v10, %v11915_v50  ;;  %v10995_v9 = vld [vmem:[#allocation6 + $0x308] sm:$0xff]   ;;  %v10996_v63 = vld [vmem:[#allocation6 + $0x2c0] sm:$0xff]  }
 0x226   :  { %v11987_v26 = vmul.f32 %v1729_v18, %v11925_v37  ;;  %v11990_v16 = vmul.f32 %v1730_v21, %v11938_v29  ;;  %v11993_v0 = vmul.f32 %v1731_v1, %v11949_v48  ;;  %v11996_v4 = vmul.f32 %v1732_v47, %v11958_v34  ;;  %v10997_v18 = vld [vmem:[#allocation6 + $0x300] sm:$0xff]  }
 0x227   :  { %v11999_v17 = vmul.f32 %v1733_v11, %v11963_v46  ;;  %1743 = vst [vmem:[#allocation2 + $0x8] sm:$0xff] %v11975_v58  ;;  %1744 = vst [vmem:[#allocation2 + $0x10] sm:$0xff] %v11978_v53 }
 0x228   :  { %1745 = vst [vmem:[#allocation2 + $0x18] sm:$0xff] %v11981_v12  ;;  %1746 = vst [vmem:[#allocation2 + $0x20] sm:$0xff] %v11984_v40 }
 0x229   :  { %1747 = vst [vmem:[#allocation2 + $0x28] sm:$0xff] %v11987_v26  ;;  %1748 = vst [vmem:[#allocation2 + $0x30] sm:$0xff] %v11990_v16 }
 0x22a   :  { %1749 = vst [vmem:[#allocation2 + $0x38] sm:$0xff] %v11993_v0  ;;  %1750 = vst [vmem:[#allocation2 + $0x40] sm:$0xff] %v11996_v4 }
 0x22b   :  { %1751 = vst [vmem:[#allocation2 + $0x48] sm:$0xff] %v11999_v17 }
 0x22e   :  { %v1783_v54 = vld [vmem:[#allocation2 + $0x2] sm:$0xff]  ;;  %v1784_v42 = vld [vmem:[#allocation2 + $0xa] sm:$0xff] }
 0x22f   :  { %v1752_v20 = vld [vmem:[#allocation2 + $0x1] sm:$0xff]  ;;  %v1792_v19 = vpack.c.bf16 %v1784_v42, %v1783_v54  ;;  %v12010_v52 = vld [vmem:[#allocation2 + $0x9] sm:$0xff]  ;;  %v1785_v8 = vld [vmem:[#allocation2 + $0x12] sm:$0xff] }
 0x230   :  { %v1761_v59 = vpack.c.bf16 %v12010_v52, %v1752_v20  ;;  %v1786_v51 = vld [vmem:[#allocation2 + $0x1a] sm:$0xff]  ;;  %v12018_v36 = vld [vmem:[#allocation2 + $0x11] sm:$0xff]  ;;  %v1787_v33 = vld [vmem:[#allocation2 + $0x22] sm:$0xff] }
 0x231   :  { %9541 = vmatmul.mubr.bf16.vlgmr.msra.gmra.mxu1 %v1792_v19  ;;  %v12020_v28 = vld [vmem:[#allocation2 + $0x19] sm:$0xff]  ;;  %v1793_v23 = vpack.c.bf16 %v1786_v51, %v1785_v8  ;;  %v1788_v14 = vld [vmem:[#allocation2 + $0x2a] sm:$0xff]  ;;  %v12032_v35 = vld [vmem:[#allocation2 + $0x21] sm:$0xff] }
 0x232   :  { %9577 = vmatmul.mubr.bf16.vlgmr.msra.gmra.mxu0 %v1761_v59  ;;  %9544 = vmatprep.mubr.msk.bf16.mxu1 %vm11447_vm0, %v11837_v43  ;;  %v1762_v2 = vpack.c.bf16 %v12020_v28, %v12018_v36  ;;  %v12034_v44 = vld [vmem:[#allocation2 + $0x29] sm:$0xff]  ;;  %v1794_v15 = vpack.c.bf16 %v1788_v14, %v1787_v33  ;;  %v1789_v57 = vld [vmem:[#allocation2 + $0x32] sm:$0xff]  ;;  %v1790_v3 = vld [vmem:[#allocation2 + $0x3a] sm:$0xff] }
 0x233   :  { %9580 = vmatprep.mubr.msk.bf16.mxu0 %vm11447_vm0, %v11837_v43  ;;  %9597 = vmatpush3.bf16.msra.mxu1 %v10982_v30  ;;  %v1763_v45 = vpack.c.bf16 %v12034_v44, %v12032_v35  ;;  %v12046_v56 = vld [vmem:[#allocation2 + $0x31] sm:$0xff]  ;;  %v12048_v55 = vld [vmem:[#allocation2 + $0x39] sm:$0xff]  ;;  %v1795_v7 = vpack.c.bf16 %v1790_v3, %v1789_v57  ;;  %v1791_v10 = vld [vmem:[#allocation2 + $0x42] sm:$0xff] }
 0x234   :  { %9633 = vmatpush3.bf16.msra.mxu0 %v10983_v5  ;;  %9598 = vmatprep.subr.bf16.mxu1 %v11837_v43  ;;  %v1764_v32 = vpack.c.bf16 %v12048_v55, %v12046_v56  ;;  %v12060_v21 = vld [vmem:[#allocation2 + $0x41] sm:$0xff]  ;;  %v1796_v1 = vpack.c.bf16 %v1791_v10, %v1791_v10  ;;  %v2055_v54 = vld [vmem:[#allocation2 + $0xb] sm:$0xff]  ;;  %v2056_v8 = vld [vmem:[#allocation2 + $0x13] sm:$0xff] }
 0x235   :  { %9634 = vmatprep.subr.bf16.mxu0 %v11837_v43  ;;  %v1765_v47 = vpack.c.bf16 %v12060_v21, %v12060_v21  ;;  %v2054_v11 = vld [vmem:[#allocation2 + $0x3] sm:$0xff]  ;;  %v12071_v20 = vld [vmem:[#allocation2 + $0xf] sm:$0xff]  ;;  %v2057_v51 = vld [vmem:[#allocation2 + $0x1b] sm:$0xff] }
 0x236   :  { %v2214_v42 = vld [vmem:[#allocation2 + $0x7] sm:$0xff]  ;;  %v2063_v19 = vpack.c.bf16 %v2055_v54, %v2054_v11  ;;  %v10998_v30 = vld [vmem:[#allocation6 + $0x378] sm:$0xff]   ;;  %v11004_v14 = vld [vmem:[#allocation6 + $0x360] sm:$0xff]  }
 0x237   :  { %9599 = vmatpush3.bf16.msra.mxu1 %v10984_v60  ;;  %v2223_v59 = vpack.c.bf16 %v12071_v20, %v2214_v42  ;;  %v10999_v5 = vld [vmem:[#allocation6 + $0x3b8] sm:$0xff]   ;;  %v11000_v60 = vld [vmem:[#allocation6 + $0x370] sm:$0xff]   ;;  %v11003_v33 = vld [vmem:[#allocation6 + $0x3a8] sm:$0xff]  }
 0x238   :  { %9635 = vmatpush3.bf16.msra.mxu0 %v10985_v27  ;;  %9600 = vmatprep.subr.bf16.mxu1 %v11837_v43  ;;  %v11001_v27 = vld [vmem:[#allocation6 + $0x3b0] sm:$0xff]   ;;  %v11006_v57 = vld [vmem:[#allocation6 + $0x358] sm:$0xff]   ;;  %v12109_v10 = vld [vmem:[#allocation2 + $0x3f] sm:$0xff] }
 0x239   :  { %9545 = vmatmul.mubr.bf16.gmra.mxu1 %v1793_v23  ;;  %9636 = vmatprep.subr.bf16.mxu0 %v11837_v43  ;;  %v12079_v23 = vld [vmem:[#allocation2 + $0x17] sm:$0xff]  ;;  %v11011_v11 = vld [vmem:[#allocation6 + $0x388] sm:$0xff]  }
 0x23a   :  { %9581 = vmatmul.mubr.bf16.gmra.mxu0 %v1762_v2  ;;  %9548 = vmatprep.mubr.msk.bf16.mxu1 %vm11447_vm0, %v11837_v43  ;;  %v2064_v2 = vpack.c.bf16 %v2057_v51, %v2056_v8  ;;  %v11012_v54 = vld [vmem:[#allocation6 + $0x340] sm:$0xff]   ;;  %v2062_v42 = vld [vmem:[#allocation2 + $0x43] sm:$0xff]  ;;  %v11014_v8 = vld [vmem:[#allocation6 + $0x3f8] sm:$0xff]   ;;  %v2543_v51 = vpack.c.bf16 %v12018_v36, %v12010_v52  ;;  %v2384_v52 = vpack.c.bf16 %v11984_v40, %v11981_v12 }
 0x23b   :  { %9584 = vmatprep.mubr.msk.bf16.mxu0 %vm11447_vm0, %v11837_v43  ;;  %9601 = vmatpush3.bf16.msra.mxu1 %v10986_v61  ;;  %v12081_v61 = vld [vmem:[#allocation2 + $0x1f] sm:$0xff] }
 0x23c   :  { %9637 = vmatpush3.bf16.msra.mxu0 %v10987_v24  ;;  %9602 = vmatprep.subr.bf16.mxu1 %v11837_v43  ;;  %v11002_v24 = vld [vmem:[#allocation6 + $0x368] sm:$0xff]  }
 0x23d   :  { %9638 = vmatprep.subr.bf16.mxu0 %v11837_v43  ;;  %v11018_v36 = vld [vmem:[#allocation6 + $0x3e8] sm:$0xff]  }
 0x23f   :  { %9603 = vmatpush3.bf16.msra.mxu1 %v10988_v62  ;;  %v2224_v62 = vpack.c.bf16 %v12081_v61, %v12079_v23 }
 0x240   :  { %9639 = vmatpush3.bf16.msra.mxu0 %v10989_v6  ;;  %9604 = vmatprep.subr.bf16.mxu1 %v11837_v43  ;;  %v2058_v6 = vld [vmem:[#allocation2 + $0x23] sm:$0xff] }
 0x241   :  { %9549 = vmatmul.mubr.bf16.gmra.mxu1 %v1794_v15  ;;  %9640 = vmatprep.subr.bf16.mxu0 %v11837_v43  ;;  %v2059_v15 = vld [vmem:[#allocation2 + $0x2b] sm:$0xff] }
 0x242   :  { %9585 = vmatmul.mubr.bf16.gmra.mxu0 %v1763_v45  ;;  %9552 = vmatprep.mubr.msk.bf16.mxu1 %vm11447_vm0, %v11837_v43  ;;  %v12093_v45 = vld [vmem:[#allocation2 + $0x27] sm:$0xff] }
 0x243   :  { %9588 = vmatprep.mubr.msk.bf16.mxu0 %vm11447_vm0, %v11837_v43  ;;  %9605 = vmatpush3.bf16.msra.mxu1 %v10990_v41  ;;  %v11005_v41 = vld [vmem:[#allocation6 + $0x3a0] sm:$0xff]  }
 0x244   :  { %9641 = vmatpush3.bf16.msra.mxu0 %v10991_v38  ;;  %9606 = vmatprep.subr.bf16.mxu1 %v11837_v43  ;;  %v12095_v38 = vld [vmem:[#allocation2 + $0x2f] sm:$0xff] }
 0x245   :  { %9642 = vmatprep.subr.bf16.mxu0 %v11837_v43  ;;  %v2225_v3 = vpack.c.bf16 %v12095_v38, %v12093_v45 }
 0x247   :  { %9607 = vmatpush3.bf16.msra.mxu1 %v10992_v31  ;;  %v2065_v31 = vpack.c.bf16 %v2059_v15, %v2058_v6  ;;  %v11020_v6 = vld [vmem:[#allocation6 + $0x3e0] sm:$0xff]   ;;  %v11022_v15 = vld [vmem:[#allocation6 + $0x3d8] sm:$0xff]  }
 0x248   :  { %9643 = vmatpush3.bf16.msra.mxu0 %v10993_v49  ;;  %9608 = vmatprep.subr.bf16.mxu1 %v11837_v43  ;;  %v11007_v49 = vld [vmem:[#allocation6 + $0x398] sm:$0xff]  }
 0x249   :  { %9553 = vmatmul.mubr.bf16.gmra.mxu1 %v1795_v7  ;;  %9644 = vmatprep.subr.bf16.mxu0 %v11837_v43  ;;  %v11008_v7 = vld [vmem:[#allocation6 + $0x350] sm:$0xff]  }
 0x24a   :  { %9589 = vmatmul.mubr.bf16.gmra.mxu0 %v1764_v32  ;;  %9556 = vmatprep.mubr.msk.bf16.mxu1 %vm11447_vm0, %v11837_v43  ;;  %v2061_v32 = vld [vmem:[#allocation2 + $0x3b] sm:$0xff] }
 0x24b   :  { %9592 = vmatprep.mubr.msk.bf16.mxu0 %vm11447_vm0, %v11837_v43  ;;  %9609 = vmatpush3.bf16.msra.mxu1 %v10994_v39  ;;  %v2060_v39 = vld [vmem:[#allocation2 + $0x33] sm:$0xff] }
 0x24c   :  { %9645 = vmatpush3.bf16.msra.mxu0 %v10995_v9  ;;  %9610 = vmatprep.subr.bf16.mxu1 %v11837_v43  ;;  %v11009_v9 = vld [vmem:[#allocation6 + $0x390] sm:$0xff]  }
 0x24d   :  { %9646 = vmatprep.subr.bf16.mxu0 %v11837_v43 }
 0x24f   :  { %9611 = vmatpush3.bf16.msra.mxu1 %v10996_v63  ;;  %v12107_v63 = vld [vmem:[#allocation2 + $0x37] sm:$0xff] }
 0x250   :  { %9647 = vmatpush3.bf16.msra.mxu0 %v10997_v18  ;;  %9668 = vmatprep.subr.bf16.mxu1 %v11837_v43  ;;  %v2066_v18 = vpack.c.bf16 %v2061_v32, %v2060_v39  ;;  %v2387_v39 = vpack.c.bf16 %v11999_v17, %v11999_v17 }
 0x251   :  { %9557 = vmatmul.mubr.bf16.gmra.mxu1 %v1796_v1  ;;  %9704 = vmatprep.subr.bf16.mxu0 %v11837_v43  ;;  %v11010_v1 = vld [vmem:[#allocation6 + $0x348] sm:$0xff]  }
 0x252   :  { %9593 = vmatmul.mubr.bf16.gmra.mxu0 %v1765_v47  ;;  %9612 = vmatprep.mubr.msk.bf16.mxu1 %vm11447_vm0, %v11837_v43  ;;  %v2226_v47 = vpack.c.bf16 %v12109_v10, %v12107_v63 }
 0x253   :  { %9648 = vmatprep.mubr.msk.bf16.mxu0 %vm11447_vm0, %v11837_v43 }
 0x259   :  { %9613 = vmatmul.mubr.bf16.vlgmr.msra.gmra.mxu1 %v2063_v19  ;;  %v11013_v19 = vld [vmem:[#allocation6 + $0x380] sm:$0xff]  }
 0x25a   :  { %9649 = vmatmul.mubr.bf16.vlgmr.msra.gmra.mxu0 %v2223_v59  ;;  %9616 = vmatprep.mubr.msk.bf16.mxu1 %vm11447_vm0, %v11837_v43  ;;  %v2067_v59 = vpack.c.bf16 %v2062_v42, %v2062_v42 }
 0x25b   :  { %9652 = vmatprep.mubr.msk.bf16.mxu0 %vm11447_vm0, %v11837_v43  ;;  %9669 = vmatpush3.bf16.msra.mxu1 %v10998_v30  ;;  %v12121_v30 = vld [vmem:[#allocation2 + $0x47] sm:$0xff] }
 0x25c   :  { %9705 = vmatpush3.bf16.msra.mxu0 %v10999_v5  ;;  %9670 = vmatprep.subr.bf16.mxu1 %v11837_v43  ;;  %v2227_v5 = vpack.c.bf16 %v12121_v30, %v12121_v30 }
 0x25d   :  { %9706 = vmatprep.subr.bf16.mxu0 %v11837_v43 }
 0x25f   :  { %9671 = vmatpush3.bf16.msra.mxu1 %v11000_v60  ;;  %v2383_v60 = vpack.c.bf16 %v11978_v53, %v11975_v58 }
 0x260   :  { %9707 = vmatpush3.bf16.msra.mxu0 %v11001_v27  ;;  %9672 = vmatprep.subr.bf16.mxu1 %v11837_v43  ;;  %v11015_v27 = vld [vmem:[#allocation6 + $0x438] sm:$0xff]  }
 0x261   :  { %9617 = vmatmul.mubr.bf16.gmra.mxu1 %v2064_v2  ;;  %9708 = vmatprep.subr.bf16.mxu0 %v11837_v43  ;;  %v11016_v2 = vld [vmem:[#allocation6 + $0x3f0] sm:$0xff]  }
 0x262   :  { %9653 = vmatmul.mubr.bf16.gmra.mxu0 %v2224_v62  ;;  %9620 = vmatprep.mubr.msk.bf16.mxu1 %vm11447_vm0, %v11837_v43  ;;  %v2544_v62 = vpack.c.bf16 %v12032_v35, %v12020_v28  ;;  %v11021_v28 = vld [vmem:[#allocation6 + $0x420] sm:$0xff]   ;;  %v2385_v35 = vpack.c.bf16 %v11990_v16, %v11987_v26 }
 0x263   :  { %9656 = vmatprep.mubr.msk.bf16.mxu0 %vm11447_vm0, %v11837_v43  ;;  %9673 = vmatpush3.bf16.msra.mxu1 %v11002_v24  ;;  %v11017_v24 = vld [vmem:[#allocation6 + $0x430] sm:$0xff]  }
 0x264   :  { %9709 = vmatpush3.bf16.msra.mxu0 %v11003_v33  ;;  %9674 = vmatprep.subr.bf16.mxu1 %v11837_v43  ;;  %v11019_v33 = vld [vmem:[#allocation6 + $0x428] sm:$0xff]  }
 0x265   :  { %9710 = vmatprep.subr.bf16.mxu0 %v11837_v43 }
 0x267   :  { %9675 = vmatpush3.bf16.msra.mxu1 %v11004_v14  ;;  %v12150_v14 = vld [vmem:[#allocation2] sm:$0xff] }
 0x268   :  { %9711 = vmatpush3.bf16.msra.mxu0 %v11005_v41  ;;  %9676 = vmatprep.subr.bf16.mxu1 %v11837_v43  ;;  %v11023_v41 = vld [vmem:[#allocation6 + $0x418] sm:$0xff]  }
 0x269   :  { %9621 = vmatmul.mubr.bf16.gmra.mxu1 %v2065_v31  ;;  %9712 = vmatprep.subr.bf16.mxu0 %v11837_v43  ;;  %v11024_v31 = vld [vmem:[#allocation6 + $0x3d0] sm:$0xff]  }
 0x26a   :  { %9657 = vmatmul.mubr.bf16.gmra.mxu0 %v2225_v3  ;;  %9624 = vmatprep.mubr.msk.bf16.mxu1 %vm11447_vm0, %v11837_v43  ;;  %v2546_v3 = vpack.c.bf16 %v12060_v21, %v12048_v55  ;;  %v11029_v55 = vld [vmem:[#allocation6 + $0x400] sm:$0xff]   ;;  %v2542_v21 = vld [vmem:[#allocation2 + $0x49] sm:$0xff] }
 0x26b   :  { %9660 = vmatprep.mubr.msk.bf16.mxu0 %vm11447_vm0, %v11837_v43  ;;  %9677 = vmatpush3.bf16.msra.mxu1 %v11006_v57  ;;  %v11026_v57 = vld [vmem:[#allocation6 + $0x3c8] sm:$0xff]   ;;  %v2547_v32 = vpack.c.bf16 %v2542_v21, %v2542_v21 }
 0x26c   :  { %9713 = vmatpush3.bf16.msra.mxu0 %v11007_v49  ;;  %9678 = vmatprep.subr.bf16.mxu1 %v11837_v43  ;;  %v11027_v49 = vld [vmem:[#allocation6 + $0x408] sm:$0xff]  }
 0x26d   :  { %9714 = vmatprep.subr.bf16.mxu0 %v11837_v43 }
 0x26f   :  { %9679 = vmatpush3.bf16.msra.mxu1 %v11008_v7  ;;  %v11028_v7 = vld [vmem:[#allocation6 + $0x3c0] sm:$0xff]  }
 0x270   :  { %9715 = vmatpush3.bf16.msra.mxu0 %v11009_v9  ;;  %9680 = vmatprep.subr.bf16.mxu1 %v11837_v43  ;;  %v2694_v9 = vld [vmem:[#allocation2 + $0xd] sm:$0xff] }
 0x271   :  { %9625 = vmatmul.mubr.bf16.gmra.mxu1 %v2066_v18  ;;  %9716 = vmatprep.subr.bf16.mxu0 %v11837_v43  ;;  %v2695_v18 = vld [vmem:[#allocation2 + $0x15] sm:$0xff] }
 0x272   :  { %9661 = vmatmul.mubr.bf16.gmra.mxu0 %v2226_v47  ;;  %9628 = vmatprep.mubr.msk.bf16.mxu1 %vm11447_vm0, %v11837_v43  ;;  %v2855_v47 = vld [vmem:[#allocation2 + $0x16] sm:$0xff] }
 0x273   :  { %9664 = vmatprep.mubr.msk.bf16.mxu0 %vm11447_vm0, %v11837_v43  ;;  %9681 = vmatpush3.bf16.msra.mxu1 %v11010_v1  ;;  %v2854_v1 = vld [vmem:[#allocation2 + $0xe] sm:$0xff] }
 0x274   :  { %9717 = vmatpush3.bf16.msra.mxu0 %v11011_v11  ;;  %9682 = vmatprep.subr.bf16.mxu1 %v11837_v43  ;;  %v2703_v11 = vpack.c.bf16 %v2695_v18, %v2694_v9  ;;  %v2863_v42 = vpack.c.bf16 %v2855_v47, %v2854_v1  ;;  %v3024_v9 = vpack.c.bf16 %v12093_v45, %v12081_v61 }
 0x275   :  { %9718 = vmatprep.subr.bf16.mxu0 %v11837_v43  ;;  %v3025_v18 = vpack.c.bf16 %v12107_v63, %v12095_v38 }
 0x277   :  { %9683 = vmatpush3.bf16.msra.mxu1 %v11012_v54  ;;  %v11030_v54 = vld [vmem:[#allocation6 + $0x478] sm:$0xff]  }
 0x278   :  { %9719 = vmatpush3.bf16.msra.mxu0 %v11013_v19  ;;  %9740 = vmatprep.subr.bf16.mxu1 %v11837_v43  ;;  %v11031_v19 = vld [vmem:[#allocation6 + $0x470] sm:$0xff]  }
 0x279   :  { %9629 = vmatmul.mubr.bf16.gmra.mxu1 %v2067_v59  ;;  %9776 = vmatprep.subr.bf16.mxu0 %v11837_v43  ;;  %v2696_v59 = vld [vmem:[#allocation2 + $0x1d] sm:$0xff] }
 0x27a   :  { %9665 = vmatmul.mubr.bf16.gmra.mxu0 %v2227_v5  ;;  %9684 = vmatprep.mubr.msk.bf16.mxu1 %vm11447_vm0, %v11837_v43  ;;  %v2697_v5 = vld [vmem:[#allocation2 + $0x25] sm:$0xff] }
 0x27b   :  { %9720 = vmatprep.mubr.msk.bf16.mxu0 %vm11447_vm0, %v11837_v43 }
 0x281   :  { %9685 = vmatmul.mubr.bf16.vlgmr.msra.gmra.mxu1 %v2383_v60  ;;  %v2856_v60 = vld [vmem:[#allocation2 + $0x1e] sm:$0xff] }
 0x282   :  { %9721 = vmatmul.mubr.bf16.vlgmr.msra.gmra.mxu0 %v2543_v51  ;;  %9688 = vmatprep.mubr.msk.bf16.mxu1 %vm11447_vm0, %v11837_v43  ;;  %v2704_v51 = vpack.c.bf16 %v2697_v5, %v2696_v59 }
 0x283   :  { %9724 = vmatprep.mubr.msk.bf16.mxu0 %vm11447_vm0, %v11837_v43  ;;  %9741 = vmatpush3.bf16.msra.mxu1 %v11014_v8  ;;  %v2857_v8 = vld [vmem:[#allocation2 + $0x26] sm:$0xff] }
 0x284   :  { %9777 = vmatpush3.bf16.msra.mxu0 %v11015_v27  ;;  %9742 = vmatprep.subr.bf16.mxu1 %v11837_v43  ;;  %v11032_v27 = vld [vmem:[#allocation6 + $0x468] sm:$0xff]  }
 0x285   :  { %9778 = vmatprep.subr.bf16.mxu0 %v11837_v43 }
 0x287   :  { %9743 = vmatpush3.bf16.msra.mxu1 %v11016_v2  ;;  %v2864_v2 = vpack.c.bf16 %v2857_v8, %v2856_v60 }
 0x288   :  { %9779 = vmatpush3.bf16.msra.mxu0 %v11017_v24  ;;  %9744 = vmatprep.subr.bf16.mxu1 %v11837_v43  ;;  %v11033_v24 = vld [vmem:[#allocation6 + $0x460] sm:$0xff]  }
 0x289   :  { %9689 = vmatmul.mubr.bf16.gmra.mxu1 %v2384_v52  ;;  %9780 = vmatprep.subr.bf16.mxu0 %v11837_v43  ;;  %v2698_v52 = vld [vmem:[#allocation2 + $0x2d] sm:$0xff] }
 0x28a   :  { %9725 = vmatmul.mubr.bf16.gmra.mxu0 %v2544_v62  ;;  %9692 = vmatprep.mubr.msk.bf16.mxu1 %vm11447_vm0, %v11837_v43  ;;  %v2545_v43 = vpack.c.bf16 %v12046_v56, %v12034_v44  ;;  %v11025_v44 = vld [vmem:[#allocation6 + $0x410] sm:$0xff]   ;;  %v2386_v56 = vpack.c.bf16 %v11996_v4, %v11993_v0 }
 0x28b   :  { %9728 = vmatprep.mubr.msk.bf16.mxu0 %vm11447_vm0, %v12150_v14  ;;  %9745 = vmatpush3.bf16.msra.mxu1 %v11018_v36  ;;  %v2699_v36 = vld [vmem:[#allocation2 + $0x35] sm:$0xff] }
 0x28c   :  { %9781 = vmatpush3.bf16.msra.mxu0 %v11019_v33  ;;  %9746 = vmatprep.subr.bf16.mxu1 %v12150_v14  ;;  %v2858_v62 = vld [vmem:[#allocation2 + $0x2e] sm:$0xff]  ;;  %v2859_v33 = vld [vmem:[#allocation2 + $0x36] sm:$0xff] }
 0x28d   :  { %9782 = vmatprep.subr.bf16.mxu0 %v12150_v14 }
 0x28f   :  { %9747 = vmatpush3.bf16.msra.mxu1 %v11020_v6  ;;  %v2705_v6 = vpack.c.bf16 %v2699_v36, %v2698_v52 }
 0x290   :  { %9783 = vmatpush3.bf16.msra.mxu0 %v11021_v28  ;;  %9748 = vmatprep.subr.bf16.mxu1 %v12150_v14  ;;  %v11034_v28 = vld [vmem:[#allocation6 + $0x458] sm:$0xff]  }
 0x291   :  { %9693 = vmatmul.mubr.bf16.gmra.mxu1 %v2385_v35  ;;  %9784 = vmatprep.subr.bf16.mxu0 %v12150_v14  ;;  %v2865_v35 = vpack.c.bf16 %v2859_v33, %v2858_v62 }
 0x292   :  { %9729 = vmatmul.mubr.bf16.gmra.mxu0 %v2545_v43  ;;  %9696 = vmatprep.mubr.msk.bf16.mxu1 %vm11447_vm0, %v12150_v14  ;;  %v2700_v43 = vld [vmem:[#allocation2 + $0x3d] sm:$0xff] }
 0x293   :  { %9732 = vmatprep.mubr.msk.bf16.mxu0 %vm11447_vm0, %v12150_v14  ;;  %9749 = vmatpush3.bf16.msra.mxu1 %v11022_v15  ;;  %v11035_v15 = vld [vmem:[#allocation6 + $0x450] sm:$0xff]  }
 0x294   :  { %9785 = vmatpush3.bf16.msra.mxu0 %v11023_v41  ;;  %9750 = vmatprep.subr.bf16.mxu1 %v12150_v14  ;;  %v2701_v41 = vld [vmem:[#allocation2 + $0x45] sm:$0xff] }
 0x295   :  { %9786 = vmatprep.subr.bf16.mxu0 %v12150_v14 }
 0x297   :  { %9751 = vmatpush3.bf16.msra.mxu1 %v11024_v31  ;;  %v2860_v31 = vld [vmem:[#allocation2 + $0x3e] sm:$0xff] }
 0x298   :  { %9787 = vmatpush3.bf16.msra.mxu0 %v11025_v44  ;;  %9752 = vmatprep.subr.bf16.mxu1 %v12150_v14  ;;  %v2861_v44 = vld [vmem:[#allocation2 + $0x46] sm:$0xff] }
 0x299   :  { %9697 = vmatmul.mubr.bf16.gmra.mxu1 %v2386_v56  ;;  %9788 = vmatprep.subr.bf16.mxu0 %v12150_v14  ;;  %v2706_v56 = vpack.c.bf16 %v2701_v41, %v2700_v43 }
 0x29a   :  { %9733 = vmatmul.mubr.bf16.gmra.mxu0 %v2546_v3  ;;  %9700 = vmatprep.mubr.msk.bf16.mxu1 %vm11447_vm0, %v12150_v14  ;;  %v2866_v3 = vpack.c.bf16 %v2861_v44, %v2860_v31 }
 0x29b   :  { %9736 = vmatprep.mubr.msk.bf16.mxu0 %vm11447_vm0, %v12150_v14  ;;  %9753 = vmatpush3.bf16.msra.mxu1 %v11026_v57  ;;  %v11036_v57 = vld [vmem:[#allocation6 + $0x448] sm:$0xff]  }
 0x29c   :  { %9789 = vmatpush3.bf16.msra.mxu0 %v11027_v49  ;;  %9754 = vmatprep.subr.bf16.mxu1 %v12150_v14  ;;  %v11037_v49 = vld [vmem:[#allocation6 + $0x440] sm:$0xff]  }
 0x29d   :  { %9790 = vmatprep.subr.bf16.mxu0 %v12150_v14 }
 0x29f   :  { %9755 = vmatpush3.bf16.msra.mxu1 %v11028_v7  ;;  %v2702_v7 = vld [vmem:[#allocation2 + $0x4d] sm:$0xff] }
 0x2a0   :  { %9791 = vmatpush3.bf16.msra.mxu0 %v11029_v55  ;;  %9812 = vmatprep.subr.bf16.mxu1 %v12150_v14  ;;  %v2862_v55 = vld [vmem:[#allocation2 + $0x4e] sm:$0xff]  ;;  %v2707_v21 = vpack.c.bf16 %v2702_v7, %v2702_v7 }
 0x2a1   :  { %9701 = vmatmul.mubr.bf16.gmra.mxu1 %v2387_v39  ;;  %9848 = vmatprep.subr.bf16.mxu0 %v12150_v14  ;;  %v2867_v39 = vpack.c.bf16 %v2862_v55, %v2862_v55 }
 0x2a2   :  { %9737 = vmatmul.mubr.bf16.gmra.mxu0 %v2547_v32  ;;  %9756 = vmatprep.mubr.msk.bf16.mxu1 %vm11447_vm0, %v12150_v14  ;;  %v3023_v32 = vpack.c.bf16 %v12079_v23, %v12071_v20  ;;  %v3026_v20 = vpack.c.bf16 %v12121_v30, %v12109_v10  ;;  %v3022_v23 = vld [vmem:[#allocation2 + $0x4f] sm:$0xff] }
 0x2a3   :  { %9792 = vmatprep.mubr.msk.bf16.mxu0 %vm11447_vm0, %v12150_v14  ;;  %v3027_v61 = vpack.c.bf16 %v3022_v23, %v3022_v23 }
 0x2a9   :  { %9757 = vmatmul.mubr.bf16.vlgmr.msra.gmra.mxu1 %v2703_v11 }
 0x2aa   :  { %9793 = vmatmul.mubr.bf16.vlgmr.msra.gmra.mxu0 %v2863_v42  ;;  %9760 = vmatprep.mubr.msk.bf16.mxu1 %vm11447_vm0, %v12150_v14 }
 0x2ab   :  { %9796 = vmatprep.mubr.msk.bf16.mxu0 %vm11447_vm0, %v12150_v14  ;;  %9813 = vmatpush3.bf16.msra.mxu1 %v11030_v54 }
 0x2ac   :  { %9814 = vmatprep.subr.bf16.mxu1 %v12150_v14 }
 0x2af   :  { %9815 = vmatpush3.bf16.msra.mxu1 %v11031_v19 }
 0x2b0   :  { %9816 = vmatprep.subr.bf16.mxu1 %v12150_v14 }
 0x2b1   :  { %9761 = vmatmul.mubr.bf16.gmra.mxu1 %v2704_v51 }
 0x2b2   :  { %9797 = vmatmul.mubr.bf16.gmra.mxu0 %v2864_v2  ;;  %9764 = vmatprep.mubr.msk.bf16.mxu1 %vm11447_vm0, %v12150_v14 }
 0x2b3   :  { %9800 = vmatprep.mubr.msk.bf16.mxu0 %vm11447_vm0, %v12150_v14  ;;  %9817 = vmatpush3.bf16.msra.mxu1 %v11032_v27 }
 0x2b4   :  { %9818 = vmatprep.subr.bf16.mxu1 %v12150_v14 }
 0x2b7   :  { %9819 = vmatpush3.bf16.msra.mxu1 %v11033_v24 }
 0x2b8   :  { %9820 = vmatprep.subr.bf16.mxu1 %v12150_v14 }
 0x2b9   :  { %9765 = vmatmul.mubr.bf16.gmra.mxu1 %v2705_v6 }
 0x2ba   :  { %9801 = vmatmul.mubr.bf16.gmra.mxu0 %v2865_v35  ;;  %9768 = vmatprep.mubr.msk.bf16.mxu1 %vm11447_vm0, %v12150_v14 }
 0x2bb   :  { %9804 = vmatprep.mubr.msk.bf16.mxu0 %vm11447_vm0, %v12150_v14  ;;  %9821 = vmatpush3.bf16.msra.mxu1 %v11034_v28 }
 0x2bc   :  { %9822 = vmatprep.subr.bf16.mxu1 %v12150_v14 }
 0x2bf   :  { %9823 = vmatpush3.bf16.msra.mxu1 %v11035_v15 }
 0x2c0   :  { %9824 = vmatprep.subr.bf16.mxu1 %v12150_v14 }
 0x2c1   :  { %9769 = vmatmul.mubr.bf16.gmra.mxu1 %v2706_v56 }
 0x2c2   :  { %9805 = vmatmul.mubr.bf16.gmra.mxu0 %v2866_v3  ;;  %9772 = vmatprep.mubr.msk.bf16.mxu1 %vm11447_vm0, %v12150_v14 }
 0x2c3   :  { %9808 = vmatprep.mubr.msk.bf16.mxu0 %vm11447_vm0, %v12150_v14  ;;  %9825 = vmatpush3.bf16.msra.mxu1 %v11036_v57 }
 0x2c4   :  { %9826 = vmatprep.subr.bf16.mxu1 %v12150_v14 }
 0x2c7   :  { %9827 = vmatpush3.bf16.msra.mxu1 %v11037_v49 }
 0x2c8   :  { %9884 = vmatprep.subr.bf16.mxu1 %v12150_v14 }
 0x2c9   :  { %9773 = vmatmul.mubr.bf16.gmra.mxu1 %v2707_v21 }
 0x2ca   :  { %9809 = vmatmul.mubr.bf16.gmra.mxu0 %v2867_v39  ;;  %9828 = vmatprep.mubr.msk.bf16.mxu1 %vm11447_vm0, %v12150_v14 }
 0x2cb   :  { %9864 = vmatprep.mubr.msk.bf16.mxu0 %vm11447_vm0, %v12150_v14 }
 0x2d1   :  { %9829 = vmatmul.mubr.bf16.vlgmr.msra.gmra.mxu1 %v3023_v32 }
 0x2d2   :  { %9832 = vmatprep.mubr.msk.bf16.mxu1 %vm11447_vm0, %v12150_v14 }
 0x2d9   :  { %9833 = vmatmul.mubr.bf16.gmra.mxu1 %v3024_v9 }
 0x2da   :  { %9836 = vmatprep.mubr.msk.bf16.mxu1 %vm11447_vm0, %v12150_v14 }
 0x2e1   :  { %9837 = vmatmul.mubr.bf16.gmra.mxu1 %v3025_v18 }
 0x2e2   :  { %9840 = vmatprep.mubr.msk.bf16.mxu1 %vm11447_vm0, %v12150_v14 }
 0x2e9   :  { %9841 = vmatmul.mubr.bf16.gmra.mxu1 %v3026_v20 }
 0x2ea   :  { %9844 = vmatprep.mubr.msk.bf16.mxu1 %vm11447_vm0, %v12150_v14 }
 0x2f1   :  { %v1896_v45 = vpop.f32.mrf.mxu1  ;;  %9845 = vmatmul.mubr.bf16.gmra.mxu1 %v3027_v61 }
 0x2f2   :  { %v2016_v1 = vpop.f32.mrf.mxu0  ;;  %9900 = vmatprep.mubr.msk.bf16.mxu1 %vm11447_vm0, %v12150_v14 }
 0x2f3   :  { %v2017_v38 = vadd.f32 %v2016_v1, %v1896_v45  ;;  %v9542_v63 = vpop.f32.mrf.mxu1 }
 0x2f4   :  { %v9578_v47 = vpop.f32.mrf.mxu0 }
 0x2f5   :  { %v1899_v11 = vpop.f32.mrf.mxu1 }
 0x2f6   :  { %v2019_v54 = vpop.f32.mrf.mxu0 }
 0x2f7   :  { %v2020_v42 = vadd.f32 %v2019_v54, %v1899_v11  ;;  %v9543_v19 = vpop.f32.mrf.mxu1 }
 0x2f8   :  { %v9579_v10 = vpop.f32.mrf.mxu0 }
 0x2f9   :  { %v1904_v30 = vpop.f32.mrf.mxu1 }
 0x2fa   :  { %v2024_v59 = vpop.f32.mrf.mxu0 }
 0x2fb   :  { %v2025_v5 = vadd.f32 %v2024_v59, %v1904_v30  ;;  %v9546_v60 = vpop.f32.mrf.mxu1 }
 0x2fc   :  { %v9582_v8 = vpop.f32.mrf.mxu0 }
 0x2fd   :  { %v1907_v51 = vpop.f32.mrf.mxu1 }
 0x2fe   :  { %v2027_v27 = vpop.f32.mrf.mxu0 }
 0x2ff   :  { %v2028_v2 = vadd.f32 %v2027_v27, %v1907_v51  ;;  %v9547_v24 = vpop.f32.mrf.mxu1 }
 0x300   :  { %v9583_v52 = vpop.f32.mrf.mxu0 }
 0x301   :  { %v1912_v36 = vpop.f32.mrf.mxu1 }
 0x302   :  { %v2032_v62 = vpop.f32.mrf.mxu0 }
 0x303   :  { %v2033_v33 = vadd.f32 %v2032_v62, %v1912_v36  ;;  %v9550_v6 = vpop.f32.mrf.mxu1 }
 0x304   :  { %v9586_v28 = vpop.f32.mrf.mxu0 }
 0x305   :  { %v1915_v35 = vpop.f32.mrf.mxu1 }
 0x306   :  { %v2035_v15 = vpop.f32.mrf.mxu0 }
 0x307   :  { %v2036_v43 = vadd.f32 %v2035_v15, %v1915_v35  ;;  %v9551_v41 = vpop.f32.mrf.mxu1 }
 0x308   :  { %v9587_v31 = vpop.f32.mrf.mxu0 }
 0x309   :  { %v1920_v44 = vpop.f32.mrf.mxu1 }
 0x30a   :  { %v2040_v56 = vpop.f32.mrf.mxu0 }
 0x30b   :  { %v2041_v57 = vadd.f32 %v2040_v56, %v1920_v44  ;;  %v9554_v3 = vpop.f32.mrf.mxu1 }
 0x30c   :  { %v9590_v49 = vpop.f32.mrf.mxu0 }
 0x30d   :  { %v1923_v7 = vpop.f32.mrf.mxu1 }
 0x30e   :  { %v2043_v55 = vpop.f32.mrf.mxu0 }
 0x30f   :  { %v2044_v21 = vadd.f32 %v2043_v55, %v1923_v7  ;;  %v9555_v39 = vpop.f32.mrf.mxu1 }
 0x310   :  { %v9591_v32 = vpop.f32.mrf.mxu0 }
 0x311   :  { %v1928_v9 = vpop.f32.mrf.mxu1 }
 0x312   :  { %v2048_v18 = vpop.f32.mrf.mxu0 }
 0x313   :  { %v2049_v20 = vadd.f32 %v2048_v18, %v1928_v9  ;;  %v9558_v23 = vpop.f32.mrf.mxu1 }
 0x314   :  { %v9594_v61 = vpop.f32.mrf.mxu0 }
 0x315   :  { %v1931_v45 = vpop.f32.mrf.mxu1 }
 0x316   :  { %v2051_v1 = vpop.f32.mrf.mxu0 }
 0x317   :  { %v9559_v63 = vpop.f32.mrf.mxu1 }
 0x318   :  { %v9595_v47 = vpop.f32.mrf.mxu0 }
 0x319   :  { %v2167_v11 = vpop.f32.mrf.mxu1 }
 0x31a   :  { %v2205_v54 = vadd.f32 %v2167_v11, %v2017_v38  ;;  %v2327_v19 = vpop.f32.mrf.mxu0 }
 0x31b   :  { %v9614_v10 = vpop.f32.mrf.mxu1 }
 0x31c   :  { %v2365_v30 = vadd.f32 %v2327_v19, %v2205_v54  ;;  %v9650_v59 = vpop.f32.mrf.mxu0 }
 0x31d   :  { %v2170_v60 = vpop.f32.mrf.mxu1 }
 0x31e   :  { %v2206_v8 = vadd.f32 %v2170_v60, %v2020_v42  ;;  %v2330_v51 = vpop.f32.mrf.mxu0 }
 0x31f   :  { %v9615_v27 = vpop.f32.mrf.mxu1 }
 0x320   :  { %v2366_v24 = vadd.f32 %v2330_v51, %v2206_v8  ;;  %v9651_v52 = vpop.f32.mrf.mxu0 }
 0x321   :  { %v2175_v36 = vpop.f32.mrf.mxu1 }
 0x322   :  { %v2207_v62 = vadd.f32 %v2175_v36, %v2025_v5  ;;  %v2335_v6 = vpop.f32.mrf.mxu0 }
 0x323   :  { %v9618_v28 = vpop.f32.mrf.mxu1 }
 0x324   :  { %v2367_v35 = vadd.f32 %v2335_v6, %v2207_v62  ;;  %v9654_v15 = vpop.f32.mrf.mxu0 }
 0x325   :  { %v2178_v41 = vpop.f32.mrf.mxu1 }
 0x326   :  { %v2208_v31 = vadd.f32 %v2178_v41, %v2028_v2  ;;  %v2338_v44 = vpop.f32.mrf.mxu0 }
 0x327   :  { %v9619_v38 = vpop.f32.mrf.mxu1 }
 0x328   :  { %v2368_v56 = vadd.f32 %v2338_v44, %v2208_v31  ;;  %v9655_v3 = vpop.f32.mrf.mxu0 }
 0x329   :  { %v2183_v49 = vpop.f32.mrf.mxu1 }
 0x32a   :  { %v2209_v7 = vadd.f32 %v2183_v49, %v2033_v33  ;;  %v2343_v55 = vpop.f32.mrf.mxu0 }
 0x32b   :  { %v9622_v42 = vpop.f32.mrf.mxu1 }
 0x32c   :  { %v2369_v39 = vadd.f32 %v2343_v55, %v2209_v7  ;;  %v9658_v32 = vpop.f32.mrf.mxu0 }
 0x32d   :  { %v2186_v9 = vpop.f32.mrf.mxu1 }
 0x32e   :  { %v2210_v18 = vadd.f32 %v2186_v9, %v2036_v43  ;;  %v2346_v23 = vpop.f32.mrf.mxu0 }
 0x32f   :  { %v9623_v5 = vpop.f32.mrf.mxu1 }
 0x330   :  { %v2370_v61 = vadd.f32 %v2346_v23, %v2210_v18  ;;  %v9659_v45 = vpop.f32.mrf.mxu0 }
 0x331   :  { %v2191_v1 = vpop.f32.mrf.mxu1 }
 0x332   :  { %v2211_v63 = vadd.f32 %v2191_v1, %v2041_v57  ;;  %v2351_v47 = vpop.f32.mrf.mxu0 }
 0x333   :  { %v9626_v2 = vpop.f32.mrf.mxu1 }
 0x334   :  { %v2371_v11 = vadd.f32 %v2351_v47, %v2211_v63  ;;  %v9662_v54 = vpop.f32.mrf.mxu0 }
 0x335   :  { %v2194_v19 = vpop.f32.mrf.mxu1 }
 0x336   :  { %v2212_v10 = vadd.f32 %v2194_v19, %v2044_v21  ;;  %v2354_v59 = vpop.f32.mrf.mxu0 }
 0x337   :  { %v9627_v33 = vpop.f32.mrf.mxu1 }
 0x338   :  { %v2372_v60 = vadd.f32 %v2354_v59, %v2212_v10  ;;  %v9663_v8 = vpop.f32.mrf.mxu0 }
 0x339   :  { %v2199_v51 = vpop.f32.mrf.mxu1 }
 0x33a   :  { %v2213_v27 = vadd.f32 %v2199_v51, %v2049_v20  ;;  %v2359_v52 = vpop.f32.mrf.mxu0 }
 0x33b   :  { %v9630_v43 = vpop.f32.mrf.mxu1 }
 0x33c   :  { %v2373_v36 = vadd.f32 %v2359_v52, %v2213_v27  ;;  %v9666_v62 = vpop.f32.mrf.mxu0 }
 0x33d   :  { %v2202_v6 = vpop.f32.mrf.mxu1 }
 0x33e   :  { %v2362_v28 = vpop.f32.mrf.mxu0 }
 0x33f   :  { %v9631_v15 = vpop.f32.mrf.mxu1 }
 0x340   :  { %v9667_v57 = vpop.f32.mrf.mxu0 }
 0x341   :  { %v2487_v41 = vpop.f32.mrf.mxu1 }
 0x342   :  { %v2525_v31 = vadd.f32 %v2487_v41, %v2365_v30  ;;  %v2647_v44 = vpop.f32.mrf.mxu0 }
 0x343   :  { %v9686_v38 = vpop.f32.mrf.mxu1 }
 0x344   :  { %v12234_v3 = vadd.f32 %v2647_v44, %v2525_v31  ;;  %v9722_v21 = vpop.f32.mrf.mxu0 }
 0x345   :  { %v2490_v49 = vpop.f32.mrf.mxu1 }
 0x346   :  { %v2526_v7 = vadd.f32 %v2490_v49, %v2366_v24  ;;  %v2650_v55 = vpop.f32.mrf.mxu0 }
 0x347   :  { %v9687_v42 = vpop.f32.mrf.mxu1 }
 0x348   :  { %v12236_v20 = vadd.f32 %v2650_v55, %v2526_v7  ;;  %v9723_v32 = vpop.f32.mrf.mxu0 }
 0x349   :  { %v2495_v9 = vpop.f32.mrf.mxu1  ;;  %v11038_v32 = vld [vmem:[#allocation6 + $0x4f8] sm:$0xff]  }
 0x34a   :  { %v2527_v18 = vadd.f32 %v2495_v9, %v2367_v35  ;;  %v2655_v23 = vpop.f32.mrf.mxu0  ;;  %v11039_v9 = vld [vmem:[#allocation6 + $0x4b8] sm:$0xff]   ;;  %9849 = vmatpush3.bf16.msra.mxu0 %v11038_v32 }
 0x34b   :  { %v9690_v5 = vpop.f32.mrf.mxu1  ;;  %9885 = vmatpush3.bf16.msra.mxu1 %v11039_v9  ;;  %9850 = vmatprep.subr.bf16.mxu0 %v12150_v14 }
 0x34c   :  { %v12238_v45 = vadd.f32 %v2655_v23, %v2527_v18  ;;  %v9726_v1 = vpop.f32.mrf.mxu0  ;;  %9886 = vmatprep.subr.bf16.mxu1 %v12150_v14 }
 0x34d   :  { %v2498_v30 = vpop.f32.mrf.mxu1  ;;  %v11040_v1 = vld [vmem:[#allocation6 + $0x4f0] sm:$0xff]  }
 0x34e   :  { %v2528_v63 = vadd.f32 %v2498_v30, %v2368_v56  ;;  %v2658_v47 = vpop.f32.mrf.mxu0  ;;  %v11041_v30 = vld [vmem:[#allocation6 + $0x4b0] sm:$0xff]   ;;  %9851 = vmatpush3.bf16.msra.mxu0 %v11040_v1 }
 0x34f   :  { %v9691_v2 = vpop.f32.mrf.mxu1  ;;  %9887 = vmatpush3.bf16.msra.mxu1 %v11041_v30  ;;  %9852 = vmatprep.subr.bf16.mxu0 %v12150_v14 }
 0x350   :  { %v12240_v54 = vadd.f32 %v2658_v47, %v2528_v63  ;;  %v9727_v19 = vpop.f32.mrf.mxu0  ;;  %9888 = vmatprep.subr.bf16.mxu1 %v12150_v14  ;;  %v11042_v2 = vld [vmem:[#allocation6 + $0x4e8] sm:$0xff]  }
 0x351   :  { %v2503_v24 = vpop.f32.mrf.mxu1  ;;  %v11043_v19 = vld [vmem:[#allocation6 + $0x4a8] sm:$0xff]  }
 0x352   :  { %v2529_v10 = vadd.f32 %v2503_v24, %v2369_v39  ;;  %v2663_v59 = vpop.f32.mrf.mxu0  ;;  %9853 = vmatpush3.bf16.msra.mxu0 %v11042_v2 }
 0x353   :  { %v9694_v33 = vpop.f32.mrf.mxu1  ;;  %9889 = vmatpush3.bf16.msra.mxu1 %v11043_v19  ;;  %9854 = vmatprep.subr.bf16.mxu0 %v12150_v14 }
 0x354   :  { %v12242_v8 = vadd.f32 %v2663_v59, %v2529_v10  ;;  %v9730_v51 = vpop.f32.mrf.mxu0  ;;  %v11044_v33 = vld [vmem:[#allocation6 + $0x4e0] sm:$0xff]   ;;  %9890 = vmatprep.subr.bf16.mxu1 %v12150_v14 }
 0x355   :  { %v2506_v35 = vpop.f32.mrf.mxu1  ;;  %v11045_v51 = vld [vmem:[#allocation6 + $0x4a0] sm:$0xff]  }
 0x356   :  { %v2530_v27 = vadd.f32 %v2506_v35, %v2370_v61  ;;  %v2666_v52 = vpop.f32.mrf.mxu0  ;;  %9855 = vmatpush3.bf16.msra.mxu0 %v11044_v33 }
 0x357   :  { %v9695_v43 = vpop.f32.mrf.mxu1  ;;  %9891 = vmatpush3.bf16.msra.mxu1 %v11045_v51  ;;  %9856 = vmatprep.subr.bf16.mxu0 %v12150_v14 }
 0x358   :  { %v12244_v62 = vadd.f32 %v2666_v52, %v2530_v27  ;;  %v9731_v6 = vpop.f32.mrf.mxu0  ;;  %9892 = vmatprep.subr.bf16.mxu1 %v12150_v14 }
 0x359   :  { %v2511_v56 = vpop.f32.mrf.mxu1  ;;  %v11046_v6 = vld [vmem:[#allocation6 + $0x4d8] sm:$0xff]  }
 0x35a   :  { %v2531_v28 = vadd.f32 %v2511_v56, %v2371_v11  ;;  %v2671_v15 = vpop.f32.mrf.mxu0  ;;  %v11047_v56 = vld [vmem:[#allocation6 + $0x498] sm:$0xff]   ;;  %9857 = vmatpush3.bf16.msra.mxu0 %v11046_v6 }
 0x35b   :  { %v9698_v57 = vpop.f32.mrf.mxu1  ;;  %9893 = vmatpush3.bf16.msra.mxu1 %v11047_v56  ;;  %9858 = vmatprep.subr.bf16.mxu0 %v12150_v14 }
 0x35c   :  { %v12246_v41 = vadd.f32 %v2671_v15, %v2531_v28  ;;  %v9734_v31 = vpop.f32.mrf.mxu0  ;;  %9894 = vmatprep.subr.bf16.mxu1 %v12150_v14 }
 0x35d   :  { %v2514_v39 = vpop.f32.mrf.mxu1 }
 0x35e   :  { %v2532_v44 = vadd.f32 %v2514_v39, %v2372_v60  ;;  %v2674_v38 = vpop.f32.mrf.mxu0  ;;  %v11048_v39 = vld [vmem:[#allocation6 + $0x4d0] sm:$0xff]  }
 0x35f   :  { %v9699_v21 = vpop.f32.mrf.mxu1  ;;  %9859 = vmatpush3.bf16.msra.mxu0 %v11048_v39 }
 0x360   :  { %v12248_v49 = vadd.f32 %v2674_v38, %v2532_v44  ;;  %v9735_v7 = vpop.f32.mrf.mxu0  ;;  %v11049_v44 = vld [vmem:[#allocation6 + $0x490] sm:$0xff]   ;;  %9860 = vmatprep.subr.bf16.mxu0 %v12150_v14 }
 0x361   :  { %v2519_v61 = vpop.f32.mrf.mxu1  ;;  %9895 = vmatpush3.bf16.msra.mxu1 %v11049_v44 }
 0x362   :  { %v2533_v55 = vadd.f32 %v2519_v61, %v2373_v36  ;;  %v2679_v42 = vpop.f32.mrf.mxu0  ;;  %9896 = vmatprep.subr.bf16.mxu1 %v12150_v14 }
 0x363   :  { %v9702_v18 = vpop.f32.mrf.mxu1 }
 0x364   :  { %v12250_v23 = vadd.f32 %v2679_v42, %v2533_v55  ;;  %v9738_v11 = vpop.f32.mrf.mxu0  ;;  %v11050_v55 = vld [vmem:[#allocation6 + $0x4c8] sm:$0xff]  }
 0x365   :  { %v2522_v5 = vpop.f32.mrf.mxu1  ;;  %v11051_v42 = vld [vmem:[#allocation6 + $0x488] sm:$0xff]   ;;  %9861 = vmatpush3.bf16.msra.mxu0 %v11050_v55 }
 0x366   :  { %v2682_v60 = vpop.f32.mrf.mxu0  ;;  %9897 = vmatpush3.bf16.msra.mxu1 %v11051_v42  ;;  %v11052_v5 = vld [vmem:[#allocation6 + $0x4c0] sm:$0xff]   ;;  %9862 = vmatprep.subr.bf16.mxu0 %v12150_v14 }
 0x367   :  { %v9703_v63 = vpop.f32.mrf.mxu1  ;;  %v11053_v60 = vld [vmem:[#allocation6 + $0x480] sm:$0xff]   ;;  %9898 = vmatprep.subr.bf16.mxu1 %v12150_v14 }
 0x368   :  { %v9739_v47 = vpop.f32.mrf.mxu0 }
 0x369   :  { %v12254_v36 = vpop.f32.mrf.mxu1  ;;  %9863 = vmatpush3.bf16.msra.mxu0 %v11052_v5 }
 0x36a   :  { %v12258_v24 = vpop.f32.mrf.mxu0  ;;  %9899 = vmatpush3.bf16.msra.mxu1 %v11053_v60  ;;  %9920 = vmatprep.subr.bf16.mxu0 %v12150_v14 }
 0x36b   :  { %v9758_v10 = vpop.f32.mrf.mxu1  ;;  %9956 = vmatprep.subr.bf16.mxu1 %v12150_v14 }
 0x36c   :  { %v9794_v59 = vpop.f32.mrf.mxu0 }
 0x36d   :  { %v12260_v35 = vpop.f32.mrf.mxu1 }
 0x36e   :  { %v12264_v27 = vpop.f32.mrf.mxu0  ;;  %v2846_v55 = vadd.f32 %v12260_v35, %v12236_v20 }
 0x36f   :  { %v9759_v52 = vpop.f32.mrf.mxu1 }
 0x370   :  { %v9795_v43 = vpop.f32.mrf.mxu0  ;;  %v3006_v60 = vadd.f32 %v12264_v27, %v2846_v55 }
 0x371   :  { %v12266_v28 = vpop.f32.mrf.mxu1 }
 0x372   :  { %v12270_v15 = vpop.f32.mrf.mxu0 }
 0x373   :  { %v9762_v57 = vpop.f32.mrf.mxu1 }
 0x374   :  { %v9798_v31 = vpop.f32.mrf.mxu0 }
 0x375   :  { %v2818_v38 = vpop.f32.mrf.mxu1  ;;  %v2845_v31 = vadd.f32 %v12254_v36, %v12234_v3 }
 0x376   :  { %v12274_v21 = vpop.f32.mrf.mxu0 }
 0x377   :  { %v9763_v7 = vpop.f32.mrf.mxu1 }
 0x378   :  { %v9799_v61 = vpop.f32.mrf.mxu0 }
 0x379   :  { %v2823_v32 = vpop.f32.mrf.mxu1  ;;  %v3005_v61 = vadd.f32 %v12258_v24, %v2845_v31  ;;  %v2848_v24 = vadd.f32 %v2818_v38, %v12240_v54 }
 0x37a   :  { %v12278_v9 = vpop.f32.mrf.mxu0  ;;  %v2849_v38 = vadd.f32 %v2823_v32, %v12242_v8 }
 0x37b   :  { %v9766_v18 = vpop.f32.mrf.mxu1  ;;  %v3008_v54 = vadd.f32 %v12274_v21, %v2848_v24 }
 0x37c   :  { %v9802_v11 = vpop.f32.mrf.mxu0  ;;  %v3009_v21 = vadd.f32 %v12278_v9, %v2849_v38 }
 0x37d   :  { %v2826_v1 = vpop.f32.mrf.mxu1 }
 0x37e   :  { %v12282_v30 = vpop.f32.mrf.mxu0 }
 0x37f   :  { %v9767_v63 = vpop.f32.mrf.mxu1 }
 0x380   :  { %v9803_v47 = vpop.f32.mrf.mxu0  ;;  %v2847_v63 = vadd.f32 %v12266_v28, %v12238_v45 }
 0x381   :  { %v2831_v2 = vpop.f32.mrf.mxu1 }
 0x382   :  { %v12286_v19 = vpop.f32.mrf.mxu0  ;;  %v3007_v20 = vadd.f32 %v12270_v15, %v2847_v63 }
 0x383   :  { %v9770_v10 = vpop.f32.mrf.mxu1 }
 0x384   :  { %v9806_v59 = vpop.f32.mrf.mxu0 }
 0x385   :  { %v12288_v33 = vpop.f32.mrf.mxu1 }
 0x386   :  { %v12290_v51 = vpop.f32.mrf.mxu0 }
 0x387   :  { %v9771_v52 = vpop.f32.mrf.mxu1 }
 0x388   :  { %v9807_v43 = vpop.f32.mrf.mxu0 }
 0x389   :  { %v12292_v6 = vpop.f32.mrf.mxu1 }
 0x38a   :  { %v12294_v56 = vpop.f32.mrf.mxu0 }
 0x38b   :  { %v9774_v57 = vpop.f32.mrf.mxu1 }
 0x38c   :  { %v9810_v39 = vpop.f32.mrf.mxu0 }
 0x38d   :  { %v2842_v14 = vpop.f32.mrf.mxu1 }
 0x38e   :  { %v3002_v44 = vpop.f32.mrf.mxu0 }
 0x38f   :  { %v9775_v7 = vpop.f32.mrf.mxu1 }
 0x390   :  { %v9811_v42 = vpop.f32.mrf.mxu0 }
 0x391   :  { %v3127_v18 = vpop.f32.mrf.mxu1  ;;  %v2850_v42 = vadd.f32 %v2826_v1, %v12244_v62  ;;  %v2851_v62 = vadd.f32 %v2831_v2, %v12246_v41 }
 0x392   :  { %v12301_v11 = vadd.f32 %v3127_v18, %v3005_v61 }
 0x393   :  { %v9830_v5 = vpop.f32.mrf.mxu1  ;;  %v3010_v24 = vadd.f32 %v12282_v30, %v2850_v42 }
 0x394   :  { %v3197_v36 = vmul.f32 %v12301_v11, %v12301_v11  ;;  %v3174_v35 = vmul.f32 %v12301_v11, %v11882_v25 }
 0x395   :  { %v3130_v3 = vpop.f32.mrf.mxu1 }
 0x396   :  { %v12308_v47 = vadd.f32 %v3130_v3, %v3006_v60  ;;  %v3206_v59 = vmul.f32 %v3197_v36, %v11882_v25 }
 0x397   :  { %v9831_v10 = vpop.f32.mrf.mxu1 }
 0x398   :  { %v3175_v27 = vmul.f32 %v12308_v47, %v11892_v13  ;;  %v3198_v45 = vmul.f32 %v12308_v47, %v12308_v47 }
 0x399   :  { %v3135_v28 = vpop.f32.mrf.mxu1 }
 0x39a   :  { %v3183_v52 = vadd.f32 %v3175_v27, %v3174_v35  ;;  %v3207_v43 = vmul.f32 %v3198_v45, %v11892_v13  ;;  %v12320_v57 = vadd.f32 %v3135_v28, %v3007_v20 }
 0x39b   :  { %v9834_v15 = vpop.f32.mrf.mxu1 }
 0x39c   :  { %v3215_v31 = vadd.f32 %v3207_v43, %v3206_v59  ;;  %v3176_v39 = vmul.f32 %v12320_v57, %v11900_v22  ;;  %v3199_v14 = vmul.f32 %v12320_v57, %v12320_v57  ;;  %v2852_v59 = vadd.f32 %v12288_v33, %v12248_v49 }
 0x39d   :  { %v3138_v44 = vpop.f32.mrf.mxu1  ;;  %v2853_v49 = vadd.f32 %v12292_v6, %v12250_v23 }
 0x39e   :  { %v3184_v7 = vadd.f32 %v3183_v52, %v3176_v39  ;;  %v3208_v61 = vmul.f32 %v3199_v14, %v11900_v22  ;;  %v12329_v55 = vadd.f32 %v3138_v44, %v3008_v54  ;;  %v3011_v52 = vadd.f32 %v12286_v19, %v2851_v62 }
 0x39f   :  { %v9835_v18 = vpop.f32.mrf.mxu1  ;;  %v3012_v39 = vadd.f32 %v12290_v51, %v2852_v59 }
 0x3a0   :  { %v3216_v5 = vadd.f32 %v3215_v31, %v3208_v61  ;;  %v3177_v8 = vmul.f32 %v12329_v55, %v11915_v50  ;;  %v3200_v32 = vmul.f32 %v12329_v55, %v12329_v55 }
 0x3a1   :  { %v3143_v60 = vpop.f32.mrf.mxu1 }
 0x3a2   :  { %v3185_v63 = vadd.f32 %v3184_v7, %v3177_v8  ;;  %v3209_v3 = vmul.f32 %v3200_v32, %v11915_v50  ;;  %v12338_v36 = vadd.f32 %v3143_v60, %v3009_v21 }
 0x3a3   :  { %v9838_v10 = vpop.f32.mrf.mxu1 }
 0x3a4   :  { %v3217_v1 = vadd.f32 %v3216_v5, %v3209_v3  ;;  %v3178_v9 = vmul.f32 %v12338_v36, %v11925_v37  ;;  %v3201_v20 = vmul.f32 %v12338_v36, %v12338_v36  ;;  %v3013_v5 = vadd.f32 %v12294_v56, %v2853_v49 }
 0x3a5   :  { %v3146_v35 = vpop.f32.mrf.mxu1 }
 0x3a6   :  { %v3186_v27 = vadd.f32 %v3185_v63, %v3178_v9  ;;  %v3210_v45 = vmul.f32 %v3201_v20, %v11925_v37  ;;  %v12347_v28 = vadd.f32 %v3146_v35, %v3010_v24 }
 0x3a7   :  { %v9839_v30 = vpop.f32.mrf.mxu1 }
 0x3a8   :  { %v3218_v41 = vadd.f32 %v3217_v1, %v3210_v45  ;;  %v3179_v2 = vmul.f32 %v12347_v28, %v11938_v29  ;;  %v3202_v43 = vmul.f32 %v12347_v28, %v12347_v28 }
 0x3a9   :  { %v3151_v54 = vpop.f32.mrf.mxu1 }
 0x3aa   :  { %v3187_v15 = vadd.f32 %v3186_v27, %v3179_v2  ;;  %v3211_v38 = vmul.f32 %v3202_v43, %v11938_v29  ;;  %v12357_v31 = vadd.f32 %v3151_v54, %v3011_v52 }
 0x3ab   :  { %v9842_v14 = vpop.f32.mrf.mxu1 }
 0x3ac   :  { %v3219_v19 = vadd.f32 %v3218_v41, %v3211_v38  ;;  %v3180_v33 = vmul.f32 %v12357_v31, %v11949_v48  ;;  %v3203_v44 = vmul.f32 %v12357_v31, %v12357_v31 }
 0x3ad   :  { %v3154_v7 = vpop.f32.mrf.mxu1 }
 0x3ae   :  { %v3188_v61 = vadd.f32 %v3187_v15, %v3180_v33  ;;  %v3212_v42 = vmul.f32 %v3203_v44, %v11949_v48  ;;  %v3172_v18 = vadd.f32 %v3154_v7, %v3012_v39 }
 0x3af   :  { %v9843_v21 = vpop.f32.mrf.mxu1 }
 0x3b0   :  { %v3220_v51 = vadd.f32 %v3219_v19, %v3212_v42  ;;  %v3181_v8 = vmul.f32 %v3172_v18, %v11958_v34  ;;  %v3204_v32 = vmul.f32 %v3172_v18, %v3172_v18 }
 0x3b1   :  { %v3159_v23 = vpop.f32.mrf.mxu1 }
 0x3b2   :  { %v3189_v6 = vadd.f32 %v3188_v61, %v3181_v8  ;;  %v3213_v60 = vmul.f32 %v3204_v32, %v11958_v34  ;;  %v3173_v63 = vadd.f32 %v3159_v23, %v3013_v5 }
 0x3b3   :  { %v9846_v3 = vpop.f32.mrf.mxu1 }
 0x3b4   :  { %v3221_v24 = vadd.f32 %v3220_v51, %v3213_v60  ;;  %v3182_v10 = vmul.f32 %v3173_v63, %v11963_v46  ;;  %v3205_v62 = vmul.f32 %v3173_v63, %v3173_v63 }
 0x3b5   :  { %v3162_v1 = vpop.f32.mrf.mxu1 }
 0x3b6   :  { %v3190_v9 = vadd.f32 %v3189_v6, %v3182_v10  ;;  %v3214_v20 = vmul.f32 %v3205_v62, %v11963_v46  ;;  %v8363_v1 = vld [vmem:[#allocation9 + $0x1] ss:$0 sm:$0xff] }
 0x3b7   :  { %v9847_v35 = vpop.f32.mrf.mxu1 }
 0x3b8   :  { %v3191_v56 = vrot.slane %v3190_v9, 4  ;;  %v3222_v27 = vadd.f32 %v3221_v24, %v3214_v20 }
 0x3ba   :  { %v3192_v45 = vadd.f32 %v3191_v56, %v3190_v9  ;;  %v3223_v59 = vrot.slane %v3222_v27, 4 }
 0x3bc   :  { %v3193_v30 = vrot.slane %v3192_v45, 2  ;;  %v3224_v52 = vadd.f32 %v3223_v59, %v3222_v27 }
 0x3be   :  { %v3194_v41 = vadd.f32 %v3193_v30, %v3192_v45  ;;  %v3225_v2 = vrot.slane %v3224_v52, 2 }
 0x3c0   :  { %v3195_v43 = vrot.slane %v3194_v41, 1  ;;  %v3226_v54 = vadd.f32 %v3225_v2, %v3224_v52 }
 0x3c2   :  { %v3196_v15 = vadd.f32 %v3195_v43, %v3194_v41  ;;  %v3227_v38 = vrot.slane %v3226_v54, 1 }
 0x3c4   :  { %v3228_v39 = vadd.f32 %v3227_v38, %v3226_v54  ;;  %v3229_v14 = vmul.f32 0.03125, %v3196_v15 }
 0x3c6   :  { %v3230_v49 = vmul.f32 0.03125, %v3228_v39  ;;  %v3231_v19 = vmul.f32 %v3229_v14, %v3229_v14  ;;  %v3234_v33 = vsub.f32 %v12301_v11, %v3229_v14  ;;  %v3235_v44 = vsub.f32 %v12308_v47, %v3229_v14  ;;  %v8362_v11 = vld [vmem:[#allocation8 + $0x1] ss:$0 sm:$0xff] }
 0x3c7   :  { %v3236_v7 = vsub.f32 %v12320_v57, %v3229_v14  ;;  %v3237_v61 = vsub.f32 %v12329_v55, %v3229_v14  ;;  %v3238_v42 = vsub.f32 %v12338_v36, %v3229_v14  ;;  %v3239_v21 = vsub.f32 %v12347_v28, %v3229_v14 }
 0x3c8   :  { %v3232_v5 = vsub.f32 %v3230_v49, %v3231_v19  ;;  %v3240_v51 = vsub.f32 %v12357_v31, %v3229_v14  ;;  %v3241_v8 = vsub.f32 %v3172_v18, %v3229_v14  ;;  %v3242_v32 = vsub.f32 %v3173_v63, %v3229_v14 }
 0x3ca   :  { %v3233_v23 = vmax.f32 %v3232_v5, 0.0 }
 0x3cc   :  { %v3243_v6 = vadd.f32 1e-05, %v3233_v23 }
 0x3ce   :  { %11256 = vrsqrt.f32 %v3243_v6 }
 0x3db   :  { %v11257_v60 = vpop.eup %11256 }
 0x3dc   :  { %v3245_v3 = vmul.f32 %v11257_v60, %v3234_v33  ;;  %v3246_v47 = vmul.f32 %v11257_v60, %v3235_v44  ;;  %v3247_v24 = vmul.f32 %v11257_v60, %v3236_v7  ;;  %v3248_v57 = vmul.f32 %v11257_v60, %v3237_v61 }
 0x3dd   :  { %v3249_v10 = vmul.f32 %v11257_v60, %v3238_v42  ;;  %v3250_v55 = vmul.f32 %v11257_v60, %v3239_v21  ;;  %v3251_v62 = vmul.f32 %v11257_v60, %v3240_v51  ;;  %v3252_v36 = vmul.f32 %v11257_v60, %v3241_v8 }
 0x3de   :  { %v3253_v28 = vmul.f32 %v11257_v60, %v3242_v32  ;;  %v3262_v9 = vmul.f32 %v8362_v11, %v3245_v3  ;;  %v3263_v20 = vmul.f32 %v8362_v11, %v3246_v47  ;;  %v3264_v31 = vmul.f32 %v8362_v11, %v3247_v24 }
 0x3df   :  { %v3265_v18 = vmul.f32 %v8362_v11, %v3248_v57  ;;  %v3266_v63 = vmul.f32 %v8362_v11, %v3249_v10  ;;  %v3267_v35 = vmul.f32 %v8362_v11, %v3250_v55  ;;  %v3268_v56 = vmul.f32 %v8362_v11, %v3251_v62 }
 0x3e0   :  { %v3269_v27 = vmul.f32 %v8362_v11, %v3252_v36  ;;  %v3270_v45 = vmul.f32 %v8362_v11, %v3253_v28  ;;  %v3279_v59 = vadd.f32 %v8363_v1, %v3262_v9  ;;  %v3280_v30 = vadd.f32 %v8363_v1, %v3263_v20  ;;  %v11054_v28 = vld [vmem:[#allocation6 + $0x538] sm:$0xff]  }
 0x3e1   :  { %v3281_v52 = vadd.f32 %v8363_v1, %v3264_v31  ;;  %v3282_v41 = vadd.f32 %v8363_v1, %v3265_v18  ;;  %v3283_v2 = vadd.f32 %v8363_v1, %v3266_v63  ;;  %v3284_v43 = vadd.f32 %v8363_v1, %v3267_v35  ;;  %v11055_v20 = vld [vmem:[#allocation6 + $0x578] sm:$0xff]   ;;  %v12426_v31 = vld [vmem:[#allocation2] sm:$0xff]  ;;  %v11056_v18 = vld [vmem:[#allocation6 + $0x530] sm:$0xff]  }
 0x3e2   :  { %v3285_v54 = vadd.f32 %v8363_v1, %v3268_v56  ;;  %v3286_v15 = vadd.f32 %v8363_v1, %v3269_v27  ;;  %v3287_v38 = vadd.f32 %v8363_v1, %v3270_v45  ;;  %v3288_v39 = vmax.f32 %v3279_v59, 0.0  ;;  %v11057_v56 = vld [vmem:[#allocation6 + $0x570] sm:$0xff]  }
 0x3e3   :  { %v3289_v14 = vmax.f32 %v3280_v30, 0.0  ;;  %v3290_v49 = vmax.f32 %v3281_v52, 0.0  ;;  %v3291_v19 = vmax.f32 %v3282_v41, 0.0  ;;  %v3292_v33 = vmax.f32 %v3283_v2, 0.0  ;;  %v11058_v30 = vld [vmem:[#allocation6 + $0x528] sm:$0xff]   ;;  %v11060_v2 = vld [vmem:[#allocation6 + $0x520] sm:$0xff]  }
 0x3e4   :  { %v3293_v44 = vmax.f32 %v3284_v43, 0.0  ;;  %v3294_v7 = vmax.f32 %v3285_v54, 0.0  ;;  %v3295_v61 = vmax.f32 %v3286_v15, 0.0  ;;  %v3296_v42 = vmax.f32 %v3287_v38, 0.0  ;;  %v11059_v41 = vld [vmem:[#allocation6 + $0x568] sm:$0xff]   ;;  %v11061_v15 = vld [vmem:[#allocation6 + $0x560] sm:$0xff]  }
 0x3e5   :  { %v12380_v21 = vmul.f32 %v3288_v39, %v11882_v25  ;;  %v12383_v5 = vmul.f32 %v3289_v14, %v11892_v13  ;;  %v12386_v51 = vmul.f32 %v3290_v49, %v11900_v22  ;;  %v12389_v8 = vmul.f32 %v3291_v19, %v11915_v50  ;;  %v11062_v49 = vld [vmem:[#allocation6 + $0x518] sm:$0xff]  }
 0x3e6   :  { %v12392_v32 = vmul.f32 %v3292_v33, %v11925_v37  ;;  %v12395_v23 = vmul.f32 %v3293_v44, %v11938_v29  ;;  %v12398_v6 = vmul.f32 %v3294_v7, %v11949_v48  ;;  %v12401_v60 = vmul.f32 %v3295_v61, %v11958_v34  ;;  %v11063_v33 = vld [vmem:[#allocation6 + $0x558] sm:$0xff]   ;;  %v11064_v44 = vld [vmem:[#allocation6 + $0x510] sm:$0xff]  }
 0x3e7   :  { %v12404_v11 = vmul.f32 %v3296_v42, %v11963_v46  ;;  %3306 = vst [vmem:[#allocation2 + $0x8] sm:$0xff] %v12380_v21  ;;  %3307 = vst [vmem:[#allocation2 + $0x10] sm:$0xff] %v12383_v5  ;;  %v3946_v3 = vpack.c.bf16 %v12383_v5, %v12380_v21  ;;  %v3947_v47 = vpack.c.bf16 %v12389_v8, %v12386_v51  ;;  %v11065_v42 = vld [vmem:[#allocation6 + $0x550] sm:$0xff]   ;;  %v11091_v5 = vld [vmem:[#allocation6 + $0x668] sm:$0xff]  }
 0x3e8   :  { %3308 = vst [vmem:[#allocation2 + $0x18] sm:$0xff] %v12386_v51  ;;  %3309 = vst [vmem:[#allocation2 + $0x20] sm:$0xff] %v12389_v8  ;;  %v3948_v24 = vpack.c.bf16 %v12395_v23, %v12392_v32  ;;  %v3949_v57 = vpack.c.bf16 %v12401_v60, %v12398_v6  ;;  %v11094_v51 = vld [vmem:[#allocation6 + $0x618] sm:$0xff]  }
 0x3e9   :  { %3310 = vst [vmem:[#allocation2 + $0x28] sm:$0xff] %v12392_v32  ;;  %3311 = vst [vmem:[#allocation2 + $0x30] sm:$0xff] %v12395_v23  ;;  %v11098_v32 = vld [vmem:[#allocation6 + $0x608] sm:$0xff]  }
 0x3ea   :  { %3312 = vst [vmem:[#allocation2 + $0x38] sm:$0xff] %v12398_v6  ;;  %3313 = vst [vmem:[#allocation2 + $0x40] sm:$0xff] %v12401_v60  ;;  %v3950_v6 = vpack.c.bf16 %v12404_v11, %v12404_v11 }
 0x3eb   :  { %3314 = vst [vmem:[#allocation2 + $0x48] sm:$0xff] %v12404_v11 }
 0x3ee   :  { %v3346_v10 = vld [vmem:[#allocation2 + $0x2] sm:$0xff]  ;;  %v3347_v55 = vld [vmem:[#allocation2 + $0xa] sm:$0xff] }
 0x3ef   :  { %v3315_v62 = vld [vmem:[#allocation2 + $0x1] sm:$0xff]  ;;  %v3355_v36 = vpack.c.bf16 %v3347_v55, %v3346_v10  ;;  %v12423_v1 = vld [vmem:[#allocation2 + $0x9] sm:$0xff]  ;;  %v3348_v63 = vld [vmem:[#allocation2 + $0x12] sm:$0xff] }
 0x3f0   :  { %v3324_v9 = vpack.c.bf16 %v12423_v1, %v3315_v62  ;;  %v3349_v35 = vld [vmem:[#allocation2 + $0x1a] sm:$0xff]  ;;  %v12433_v27 = vld [vmem:[#allocation2 + $0x11] sm:$0xff]  ;;  %v3350_v43 = vld [vmem:[#allocation2 + $0x22] sm:$0xff] }
 0x3f1   :  { %9865 = vmatmul.mubr.bf16.vlgmr.msra.gmra.mxu0 %v3355_v36  ;;  %v12435_v45 = vld [vmem:[#allocation2 + $0x19] sm:$0xff]  ;;  %v3356_v59 = vpack.c.bf16 %v3349_v35, %v3348_v63  ;;  %v3351_v54 = vld [vmem:[#allocation2 + $0x2a] sm:$0xff]  ;;  %v12447_v38 = vld [vmem:[#allocation2 + $0x21] sm:$0xff] }
 0x3f2   :  { %9901 = vmatmul.mubr.bf16.vlgmr.msra.gmra.mxu1 %v3324_v9  ;;  %9868 = vmatprep.mubr.msk.bf16.mxu0 %vm11447_vm0, %v12426_v31  ;;  %v3325_v52 = vpack.c.bf16 %v12435_v45, %v12433_v27  ;;  %v12449_v39 = vld [vmem:[#allocation2 + $0x29] sm:$0xff]  ;;  %v3357_v14 = vpack.c.bf16 %v3351_v54, %v3350_v43  ;;  %v3352_v7 = vld [vmem:[#allocation2 + $0x32] sm:$0xff]  ;;  %v3353_v61 = vld [vmem:[#allocation2 + $0x3a] sm:$0xff]  ;;  %v4107_v21 = vpack.c.bf16 %v12447_v38, %v12435_v45 }
 0x3f3   :  { %9904 = vmatprep.mubr.msk.bf16.mxu1 %vm11447_vm0, %v12426_v31  ;;  %9921 = vmatpush3.bf16.msra.mxu0 %v11054_v28  ;;  %v3326_v19 = vpack.c.bf16 %v12449_v39, %v12447_v38  ;;  %v12461_v10 = vld [vmem:[#allocation2 + $0x31] sm:$0xff]  ;;  %v12463_v55 = vld [vmem:[#allocation2 + $0x39] sm:$0xff]  ;;  %v3358_v62 = vpack.c.bf16 %v3353_v61, %v3352_v7  ;;  %v11066_v36 = vld [vmem:[#allocation6 + $0x508] sm:$0xff]  }
 0x3f4   :  { %9957 = vmatpush3.bf16.msra.mxu1 %v11055_v20  ;;  %9922 = vmatprep.subr.bf16.mxu0 %v12426_v31  ;;  %v3327_v28 = vpack.c.bf16 %v12463_v55, %v12461_v10  ;;  %v11067_v9 = vld [vmem:[#allocation6 + $0x548] sm:$0xff]   ;;  %v11068_v20 = vld [vmem:[#allocation6 + $0x500] sm:$0xff]   ;;  %v11070_v54 = vld [vmem:[#allocation6 + $0x5b8] sm:$0xff]   ;;  %v4108_v8 = vpack.c.bf16 %v12461_v10, %v12449_v39 }
 0x3f5   :  { %9958 = vmatprep.subr.bf16.mxu1 %v12426_v31  ;;  %v11069_v63 = vld [vmem:[#allocation6 + $0x540] sm:$0xff]   ;;  %v11096_v45 = vld [vmem:[#allocation6 + $0x610] sm:$0xff]  }
 0x3f6   :  { %v12475_v35 = vld [vmem:[#allocation2 + $0x41] sm:$0xff]  ;;  %v12494_v7 = vld [vmem:[#allocation2 + $0x17] sm:$0xff]  ;;  %v11097_v38 = vld [vmem:[#allocation6 + $0x650] sm:$0xff]  }
 0x3f7   :  { %9923 = vmatpush3.bf16.msra.mxu0 %v11056_v18  ;;  %v3354_v18 = vld [vmem:[#allocation2 + $0x42] sm:$0xff]  ;;  %v4109_v23 = vpack.c.bf16 %v12475_v35, %v12463_v55  ;;  %v11100_v39 = vld [vmem:[#allocation6 + $0x600] sm:$0xff]  }
 0x3f8   :  { %9959 = vmatpush3.bf16.msra.mxu1 %v11057_v56  ;;  %9924 = vmatprep.subr.bf16.mxu0 %v12426_v31  ;;  %v3359_v56 = vpack.c.bf16 %v3354_v18, %v3354_v18  ;;  %v12496_v61 = vld [vmem:[#allocation2 + $0x1f] sm:$0xff]  ;;  %v3622_v18 = vld [vmem:[#allocation2 + $0x2b] sm:$0xff] }
 0x3f9   :  { %9869 = vmatmul.mubr.bf16.gmra.mxu0 %v3356_v59  ;;  %9960 = vmatprep.subr.bf16.mxu1 %v12426_v31  ;;  %v3328_v59 = vpack.c.bf16 %v12475_v35, %v12475_v35  ;;  %v11101_v10 = vld [vmem:[#allocation6 + $0x640] sm:$0xff]   ;;  %v4105_v55 = vld [vmem:[#allocation2 + $0x49] sm:$0xff] }
 0x3fa   :  { %9905 = vmatmul.mubr.bf16.gmra.mxu1 %v3325_v52  ;;  %9872 = vmatprep.mubr.msk.bf16.mxu0 %vm11447_vm0, %v12426_v31  ;;  %v3618_v52 = vld [vmem:[#allocation2 + $0xb] sm:$0xff]  ;;  %v4110_v60 = vpack.c.bf16 %v4105_v55, %v4105_v55  ;;  %v4258_v35 = vld [vmem:[#allocation2 + $0x15] sm:$0xff] }
 0x3fb   :  { %9908 = vmatprep.mubr.msk.bf16.mxu1 %vm11447_vm0, %v12426_v31  ;;  %9925 = vmatpush3.bf16.msra.mxu0 %v11058_v30  ;;  %v3617_v30 = vld [vmem:[#allocation2 + $0x3] sm:$0xff] }
 0x3fc   :  { %9961 = vmatpush3.bf16.msra.mxu1 %v11059_v41  ;;  %9926 = vmatprep.subr.bf16.mxu0 %v12426_v31  ;;  %v3777_v41 = vld [vmem:[#allocation2 + $0x7] sm:$0xff]  ;;  %v3626_v43 = vpack.c.bf16 %v3618_v52, %v3617_v30  ;;  %v11078_v52 = vld [vmem:[#allocation6 + $0x598] sm:$0xff]  }
 0x3fd   :  { %9962 = vmatprep.subr.bf16.mxu1 %v12426_v31 }
 0x3ff   :  { %9927 = vmatpush3.bf16.msra.mxu0 %v11060_v2  ;;  %v12486_v2 = vld [vmem:[#allocation2 + $0xf] sm:$0xff] }
 0x400   :  { %9963 = vmatpush3.bf16.msra.mxu1 %v11061_v15  ;;  %9928 = vmatprep.subr.bf16.mxu0 %v12426_v31  ;;  %v3786_v15 = vpack.c.bf16 %v12486_v2, %v3777_v41 }
 0x401   :  { %9873 = vmatmul.mubr.bf16.gmra.mxu0 %v3357_v14  ;;  %9964 = vmatprep.subr.bf16.mxu1 %v12426_v31  ;;  %v11071_v14 = vld [vmem:[#allocation6 + $0x5f8] sm:$0xff]  }
 0x402   :  { %9909 = vmatmul.mubr.bf16.gmra.mxu1 %v3326_v19  ;;  %9876 = vmatprep.mubr.msk.bf16.mxu0 %vm11447_vm0, %v12426_v31  ;;  %v3619_v19 = vld [vmem:[#allocation2 + $0x13] sm:$0xff] }
 0x403   :  { %9912 = vmatprep.mubr.msk.bf16.mxu1 %vm11447_vm0, %v12426_v31  ;;  %9929 = vmatpush3.bf16.msra.mxu0 %v11062_v49  ;;  %v11072_v49 = vld [vmem:[#allocation6 + $0x5b0] sm:$0xff]  }
 0x404   :  { %9965 = vmatpush3.bf16.msra.mxu1 %v11063_v33  ;;  %9930 = vmatprep.subr.bf16.mxu0 %v12426_v31  ;;  %v3620_v33 = vld [vmem:[#allocation2 + $0x1b] sm:$0xff] }
 0x405   :  { %9966 = vmatprep.subr.bf16.mxu1 %v12426_v31 }
 0x407   :  { %9931 = vmatpush3.bf16.msra.mxu0 %v11064_v44  ;;  %v11073_v44 = vld [vmem:[#allocation6 + $0x5f0] sm:$0xff]  }
 0x408   :  { %9967 = vmatpush3.bf16.msra.mxu1 %v11065_v42  ;;  %9932 = vmatprep.subr.bf16.mxu0 %v12426_v31  ;;  %v3627_v42 = vpack.c.bf16 %v3620_v33, %v3619_v19  ;;  %v12522_v19 = vld [vmem:[#allocation2 + $0x37] sm:$0xff]  ;;  %v12524_v33 = vld [vmem:[#allocation2 + $0x3f] sm:$0xff] }
 0x409   :  { %9877 = vmatmul.mubr.bf16.gmra.mxu0 %v3358_v62  ;;  %9968 = vmatprep.subr.bf16.mxu1 %v12426_v31  ;;  %v11074_v62 = vld [vmem:[#allocation6 + $0x5a8] sm:$0xff]  }
 0x40a   :  { %9913 = vmatmul.mubr.bf16.gmra.mxu1 %v3327_v28  ;;  %9880 = vmatprep.mubr.msk.bf16.mxu0 %vm11447_vm0, %v12426_v31  ;;  %v11075_v28 = vld [vmem:[#allocation6 + $0x5e8] sm:$0xff]  }
 0x40b   :  { %9916 = vmatprep.mubr.msk.bf16.mxu1 %vm11447_vm0, %v12426_v31  ;;  %9933 = vmatpush3.bf16.msra.mxu0 %v11066_v36  ;;  %v3787_v36 = vpack.c.bf16 %v12496_v61, %v12494_v7 }
 0x40c   :  { %9969 = vmatpush3.bf16.msra.mxu1 %v11067_v9  ;;  %9934 = vmatprep.subr.bf16.mxu0 %v12426_v31  ;;  %v11076_v9 = vld [vmem:[#allocation6 + $0x5a0] sm:$0xff]  }
 0x40d   :  { %9970 = vmatprep.subr.bf16.mxu1 %v12426_v31 }
 0x40f   :  { %9935 = vmatpush3.bf16.msra.mxu0 %v11068_v20  ;;  %v3621_v20 = vld [vmem:[#allocation2 + $0x23] sm:$0xff] }
 0x410   :  { %9971 = vmatpush3.bf16.msra.mxu1 %v11069_v63  ;;  %9992 = vmatprep.subr.bf16.mxu0 %v12426_v31  ;;  %v11077_v63 = vld [vmem:[#allocation6 + $0x5e0] sm:$0xff]   ;;  %v3628_v30 = vpack.c.bf16 %v3622_v18, %v3621_v20  ;;  %v12536_v18 = vld [vmem:[#allocation2 + $0x47] sm:$0xff] }
 0x411   :  { %9881 = vmatmul.mubr.bf16.gmra.mxu0 %v3359_v56  ;;  %10028 = vmatprep.subr.bf16.mxu1 %v12426_v31  ;;  %v12508_v56 = vld [vmem:[#allocation2 + $0x27] sm:$0xff]  ;;  %v11085_v20 = vld [vmem:[#allocation6 + $0x5c0] sm:$0xff]  }
 0x412   :  { %9917 = vmatmul.mubr.bf16.gmra.mxu1 %v3328_v59  ;;  %9936 = vmatprep.mubr.msk.bf16.mxu0 %vm11447_vm0, %v12426_v31  ;;  %v12510_v59 = vld [vmem:[#allocation2 + $0x2f] sm:$0xff] }
 0x413   :  { %9972 = vmatprep.mubr.msk.bf16.mxu1 %vm11447_vm0, %v12426_v31  ;;  %v3788_v41 = vpack.c.bf16 %v12510_v59, %v12508_v56 }
 0x419   :  { %9937 = vmatmul.mubr.bf16.vlgmr.msra.gmra.mxu0 %v3626_v43  ;;  %v11079_v43 = vld [vmem:[#allocation6 + $0x5d8] sm:$0xff]  }
 0x41a   :  { %9973 = vmatmul.mubr.bf16.vlgmr.msra.gmra.mxu1 %v3786_v15  ;;  %9940 = vmatprep.mubr.msk.bf16.mxu0 %vm11447_vm0, %v12426_v31  ;;  %v3623_v15 = vld [vmem:[#allocation2 + $0x33] sm:$0xff] }
 0x41b   :  { %9976 = vmatprep.mubr.msk.bf16.mxu1 %vm11447_vm0, %v12426_v31  ;;  %9993 = vmatpush3.bf16.msra.mxu0 %v11070_v54  ;;  %v11080_v54 = vld [vmem:[#allocation6 + $0x590] sm:$0xff]  }
 0x41c   :  { %10029 = vmatpush3.bf16.msra.mxu1 %v11071_v14  ;;  %9994 = vmatprep.subr.bf16.mxu0 %v12426_v31  ;;  %v3624_v14 = vld [vmem:[#allocation2 + $0x3b] sm:$0xff] }
 0x41d   :  { %10030 = vmatprep.subr.bf16.mxu1 %v12426_v31 }
 0x41f   :  { %9995 = vmatpush3.bf16.msra.mxu0 %v11072_v49  ;;  %v11081_v49 = vld [vmem:[#allocation6 + $0x5d0] sm:$0xff]  }
 0x420   :  { %10031 = vmatpush3.bf16.msra.mxu1 %v11073_v44  ;;  %9996 = vmatprep.subr.bf16.mxu0 %v12426_v31  ;;  %v3629_v44 = vpack.c.bf16 %v3624_v14, %v3623_v15  ;;  %v11089_v15 = vld [vmem:[#allocation6 + $0x670] sm:$0xff]  }
 0x421   :  { %9941 = vmatmul.mubr.bf16.gmra.mxu0 %v3627_v42  ;;  %10032 = vmatprep.subr.bf16.mxu1 %v12426_v31  ;;  %v11082_v42 = vld [vmem:[#allocation6 + $0x588] sm:$0xff]   ;;  %v4417_v14 = vld [vmem:[#allocation2 + $0xe] sm:$0xff] }
 0x422   :  { %9977 = vmatmul.mubr.bf16.gmra.mxu1 %v3787_v36  ;;  %9944 = vmatprep.mubr.msk.bf16.mxu0 %vm11447_vm0, %v12426_v31  ;;  %v11083_v36 = vld [vmem:[#allocation6 + $0x5c8] sm:$0xff]  }
 0x423   :  { %9980 = vmatprep.mubr.msk.bf16.mxu1 %vm11447_vm0, %v12426_v31  ;;  %9997 = vmatpush3.bf16.msra.mxu0 %v11074_v62  ;;  %v3789_v62 = vpack.c.bf16 %v12524_v33, %v12522_v19 }
 0x424   :  { %10033 = vmatpush3.bf16.msra.mxu1 %v11075_v28  ;;  %9998 = vmatprep.subr.bf16.mxu0 %v12426_v31  ;;  %v11084_v28 = vld [vmem:[#allocation6 + $0x580] sm:$0xff]  }
 0x425   :  { %10034 = vmatprep.subr.bf16.mxu1 %v12426_v31 }
 0x427   :  { %9999 = vmatpush3.bf16.msra.mxu0 %v11076_v9  ;;  %v3625_v9 = vld [vmem:[#allocation2 + $0x43] sm:$0xff] }
 0x428   :  { %10035 = vmatpush3.bf16.msra.mxu1 %v11077_v63  ;;  %10000 = vmatprep.subr.bf16.mxu0 %v12426_v31  ;;  %v3630_v63 = vpack.c.bf16 %v3625_v9, %v3625_v9  ;;  %v4419_v9 = vld [vmem:[#allocation2 + $0x1e] sm:$0xff] }
 0x429   :  { %9945 = vmatmul.mubr.bf16.gmra.mxu0 %v3628_v30  ;;  %10036 = vmatprep.subr.bf16.mxu1 %v12426_v31  ;;  %v3790_v30 = vpack.c.bf16 %v12536_v18, %v12536_v18 }
 0x42a   :  { %9981 = vmatmul.mubr.bf16.gmra.mxu1 %v3788_v41  ;;  %9948 = vmatprep.mubr.msk.bf16.mxu0 %vm11447_vm0, %v12426_v31  ;;  %v4106_v41 = vpack.c.bf16 %v12433_v27, %v12423_v1  ;;  %v11090_v1 = vld [vmem:[#allocation6 + $0x628] sm:$0xff]   ;;  %v11093_v27 = vld [vmem:[#allocation6 + $0x660] sm:$0xff]  }
 0x42b   :  { %9984 = vmatprep.mubr.msk.bf16.mxu1 %vm11447_vm0, %v12426_v31  ;;  %10001 = vmatpush3.bf16.msra.mxu0 %v11078_v52  ;;  %v11086_v52 = vld [vmem:[#allocation6 + $0x638] sm:$0xff]  }
 0x42c   :  { %10037 = vmatpush3.bf16.msra.mxu1 %v11079_v43  ;;  %10002 = vmatprep.subr.bf16.mxu0 %v12426_v31  ;;  %v11087_v43 = vld [vmem:[#allocation6 + $0x678] sm:$0xff]  }
 0x42d   :  { %10038 = vmatprep.subr.bf16.mxu1 %v12426_v31 }
 0x42f   :  { %10003 = vmatpush3.bf16.msra.mxu0 %v11080_v54  ;;  %v11088_v54 = vld [vmem:[#allocation6 + $0x630] sm:$0xff]  }
 0x430   :  { %10039 = vmatpush3.bf16.msra.mxu1 %v11081_v49  ;;  %10004 = vmatprep.subr.bf16.mxu0 %v12426_v31  ;;  %v4418_v49 = vld [vmem:[#allocation2 + $0x16] sm:$0xff] }
 0x431   :  { %9949 = vmatmul.mubr.bf16.gmra.mxu0 %v3629_v44  ;;  %10040 = vmatprep.subr.bf16.mxu1 %v12426_v31  ;;  %v11102_v44 = vld [vmem:[#allocation6 + $0x6b8] sm:$0xff]  }
 0x432   :  { %9985 = vmatmul.mubr.bf16.gmra.mxu1 %v3789_v62  ;;  %9952 = vmatprep.mubr.msk.bf16.mxu0 %vm11447_vm0, %v12426_v31  ;;  %v11103_v62 = vld [vmem:[#allocation6 + $0x6b0] sm:$0xff]  }
 0x433   :  { %9988 = vmatprep.mubr.msk.bf16.mxu1 %vm11447_vm0, %v12426_v31  ;;  %10005 = vmatpush3.bf16.msra.mxu0 %v11082_v42  ;;  %v4426_v42 = vpack.c.bf16 %v4418_v49, %v4417_v14 }
 0x434   :  { %10041 = vmatpush3.bf16.msra.mxu1 %v11083_v36  ;;  %10006 = vmatprep.subr.bf16.mxu0 %v12426_v31  ;;  %v4259_v36 = vld [vmem:[#allocation2 + $0x1d] sm:$0xff] }
 0x435   :  { %10042 = vmatprep.subr.bf16.mxu1 %v12426_v31 }
 0x437   :  { %10007 = vmatpush3.bf16.msra.mxu0 %v11084_v28  ;;  %v4260_v28 = vld [vmem:[#allocation2 + $0x25] sm:$0xff] }
 0x438   :  { %10043 = vmatpush3.bf16.msra.mxu1 %v11085_v20  ;;  %10064 = vmatprep.subr.bf16.mxu0 %v12426_v31  ;;  %v4420_v20 = vld [vmem:[#allocation2 + $0x26] sm:$0xff] }
 0x439   :  { %9953 = vmatmul.mubr.bf16.gmra.mxu0 %v3630_v63  ;;  %10100 = vmatprep.subr.bf16.mxu1 %v12426_v31  ;;  %v4267_v63 = vpack.c.bf16 %v4260_v28, %v4259_v36 }
 0x43a   :  { %9989 = vmatmul.mubr.bf16.gmra.mxu1 %v3790_v30  ;;  %10008 = vmatprep.mubr.msk.bf16.mxu0 %vm11447_vm0, %v12426_v31  ;;  %v11104_v30 = vld [vmem:[#allocation6 + $0x6a8] sm:$0xff]  }
 0x43b   :  { %10044 = vmatprep.mubr.msk.bf16.mxu1 %vm11447_vm0, %v12426_v31 }
 0x441   :  { %10009 = vmatmul.mubr.bf16.vlgmr.msra.gmra.mxu0 %v3946_v3  ;;  %v11092_v3 = vld [vmem:[#allocation6 + $0x620] sm:$0xff]  }
 0x442   :  { %10045 = vmatmul.mubr.bf16.vlgmr.msra.gmra.mxu1 %v4106_v41  ;;  %10012 = vmatprep.mubr.msk.bf16.mxu0 %vm11447_vm0, %v12426_v31  ;;  %v11105_v41 = vld [vmem:[#allocation6 + $0x6a0] sm:$0xff]  }
 0x443   :  { %10048 = vmatprep.mubr.msk.bf16.mxu1 %vm11447_vm0, %v12426_v31  ;;  %10065 = vmatpush3.bf16.msra.mxu0 %v11086_v52  ;;  %v4427_v52 = vpack.c.bf16 %v4420_v20, %v4419_v9 }
 0x444   :  { %10101 = vmatpush3.bf16.msra.mxu1 %v11087_v43  ;;  %10066 = vmatprep.subr.bf16.mxu0 %v12426_v31  ;;  %v4261_v43 = vld [vmem:[#allocation2 + $0x2d] sm:$0xff] }
 0x445   :  { %10102 = vmatprep.subr.bf16.mxu1 %v12426_v31 }
 0x447   :  { %10067 = vmatpush3.bf16.msra.mxu0 %v11088_v54  ;;  %v4262_v54 = vld [vmem:[#allocation2 + $0x35] sm:$0xff] }
 0x448   :  { %10103 = vmatpush3.bf16.msra.mxu1 %v11089_v15  ;;  %10068 = vmatprep.subr.bf16.mxu0 %v12426_v31  ;;  %v4421_v15 = vld [vmem:[#allocation2 + $0x2e] sm:$0xff] }
 0x449   :  { %10013 = vmatmul.mubr.bf16.gmra.mxu0 %v3947_v47  ;;  %10104 = vmatprep.subr.bf16.mxu1 %v12426_v31  ;;  %v11095_v47 = vld [vmem:[#allocation6 + $0x658] sm:$0xff]  }
 0x44a   :  { %10049 = vmatmul.mubr.bf16.gmra.mxu1 %v4107_v21  ;;  %10016 = vmatprep.mubr.msk.bf16.mxu0 %vm11447_vm0, %v12426_v31  ;;  %v4268_v21 = vpack.c.bf16 %v4262_v54, %v4261_v43 }
 0x44b   :  { %10052 = vmatprep.mubr.msk.bf16.mxu1 %vm11447_vm0, %v12426_v31  ;;  %10069 = vmatpush3.bf16.msra.mxu0 %v11090_v1  ;;  %v4422_v1 = vld [vmem:[#allocation2 + $0x36] sm:$0xff] }
 0x44c   :  { %10105 = vmatpush3.bf16.msra.mxu1 %v11091_v5  ;;  %10070 = vmatprep.subr.bf16.mxu0 %v12426_v31  ;;  %v11106_v5 = vld [vmem:[#allocation6 + $0x698] sm:$0xff]  }
 0x44d   :  { %10106 = vmatprep.subr.bf16.mxu1 %v12426_v31 }
 0x44f   :  { %10071 = vmatpush3.bf16.msra.mxu0 %v11092_v3  ;;  %v4428_v3 = vpack.c.bf16 %v4422_v1, %v4421_v15 }
 0x450   :  { %10107 = vmatpush3.bf16.msra.mxu1 %v11093_v27  ;;  %10072 = vmatprep.subr.bf16.mxu0 %v12426_v31  ;;  %v11107_v27 = vld [vmem:[#allocation6 + $0x690] sm:$0xff]  }
 0x451   :  { %10017 = vmatmul.mubr.bf16.gmra.mxu0 %v3948_v24  ;;  %10108 = vmatprep.subr.bf16.mxu1 %v12426_v31  ;;  %v11099_v24 = vld [vmem:[#allocation6 + $0x648] sm:$0xff]  }
 0x452   :  { %10053 = vmatmul.mubr.bf16.gmra.mxu1 %v4108_v8  ;;  %10020 = vmatprep.mubr.msk.bf16.mxu0 %vm11447_vm0, %v12426_v31  ;;  %v4264_v8 = vld [vmem:[#allocation2 + $0x45] sm:$0xff] }
 0x453   :  { %10056 = vmatprep.mubr.msk.bf16.mxu1 %vm11447_vm0, %v12426_v31  ;;  %10073 = vmatpush3.bf16.msra.mxu0 %v11094_v51  ;;  %v4263_v51 = vld [vmem:[#allocation2 + $0x3d] sm:$0xff] }
 0x454   :  { %10109 = vmatpush3.bf16.msra.mxu1 %v11095_v47  ;;  %10074 = vmatprep.subr.bf16.mxu0 %v12426_v31  ;;  %v4423_v47 = vld [vmem:[#allocation2 + $0x3e] sm:$0xff] }
 0x455   :  { %10110 = vmatprep.subr.bf16.mxu1 %v12426_v31 }
 0x457   :  { %10075 = vmatpush3.bf16.msra.mxu0 %v11096_v45  ;;  %v4424_v45 = vld [vmem:[#allocation2 + $0x46] sm:$0xff] }
 0x458   :  { %10111 = vmatpush3.bf16.msra.mxu1 %v11097_v38  ;;  %10076 = vmatprep.subr.bf16.mxu0 %v12426_v31  ;;  %v4269_v38 = vpack.c.bf16 %v4264_v8, %v4263_v51 }
 0x459   :  { %10021 = vmatmul.mubr.bf16.gmra.mxu0 %v3949_v57  ;;  %10112 = vmatprep.subr.bf16.mxu1 %v12426_v31  ;;  %v4257_v57 = vld [vmem:[#allocation2 + $0xd] sm:$0xff] }
 0x45a   :  { %10057 = vmatmul.mubr.bf16.gmra.mxu1 %v4109_v23  ;;  %10024 = vmatprep.mubr.msk.bf16.mxu0 %vm11447_vm0, %v12426_v31  ;;  %v4266_v11 = vpack.c.bf16 %v4258_v35, %v4257_v57  ;;  %v4429_v23 = vpack.c.bf16 %v4424_v45, %v4423_v47  ;;  %v4587_v57 = vpack.c.bf16 %v12508_v56, %v12496_v61 }
 0x45b   :  { %10060 = vmatprep.mubr.msk.bf16.mxu1 %vm11447_vm0, %v12426_v31  ;;  %10077 = vmatpush3.bf16.msra.mxu0 %v11098_v32  ;;  %v11108_v32 = vld [vmem:[#allocation6 + $0x688] sm:$0xff]   ;;  %v4588_v35 = vpack.c.bf16 %v12522_v19, %v12510_v59 }
 0x45c   :  { %10113 = vmatpush3.bf16.msra.mxu1 %v11099_v24  ;;  %10078 = vmatprep.subr.bf16.mxu0 %v12426_v31  ;;  %v11109_v24 = vld [vmem:[#allocation6 + $0x680] sm:$0xff]  }
 0x45d   :  { %10114 = vmatprep.subr.bf16.mxu1 %v12426_v31 }
 0x45f   :  { %10079 = vmatpush3.bf16.msra.mxu0 %v11100_v39  ;;  %v4265_v39 = vld [vmem:[#allocation2 + $0x4d] sm:$0xff] }
 0x460   :  { %10115 = vmatpush3.bf16.msra.mxu1 %v11101_v10  ;;  %10136 = vmatprep.subr.bf16.mxu0 %v12426_v31  ;;  %v4425_v10 = vld [vmem:[#allocation2 + $0x4e] sm:$0xff]  ;;  %v4270_v55 = vpack.c.bf16 %v4265_v39, %v4265_v39 }
 0x461   :  { %10025 = vmatmul.mubr.bf16.gmra.mxu0 %v3950_v6  ;;  %10172 = vmatprep.subr.bf16.mxu1 %v12426_v31  ;;  %v4430_v6 = vpack.c.bf16 %v4425_v10, %v4425_v10 }
 0x462   :  { %10061 = vmatmul.mubr.bf16.gmra.mxu1 %v4110_v60  ;;  %10080 = vmatprep.mubr.msk.bf16.mxu0 %vm11447_vm0, %v12426_v31  ;;  %v4586_v60 = vpack.c.bf16 %v12494_v7, %v12486_v2  ;;  %v4589_v2 = vpack.c.bf16 %v12536_v18, %v12524_v33  ;;  %v4585_v7 = vld [vmem:[#allocation2 + $0x4f] sm:$0xff] }
 0x463   :  { %10116 = vmatprep.mubr.msk.bf16.mxu1 %vm11447_vm0, %v12426_v31  ;;  %v4590_v61 = vpack.c.bf16 %v4585_v7, %v4585_v7 }
 0x469   :  { %10081 = vmatmul.mubr.bf16.vlgmr.msra.gmra.mxu0 %v4266_v11 }
 0x46a   :  { %10117 = vmatmul.mubr.bf16.vlgmr.msra.gmra.mxu1 %v4426_v42  ;;  %10084 = vmatprep.mubr.msk.bf16.mxu0 %vm11447_vm0, %v12426_v31 }
 0x46b   :  { %10120 = vmatprep.mubr.msk.bf16.mxu1 %vm11447_vm0, %v12426_v31  ;;  %10137 = vmatpush3.bf16.msra.mxu0 %v11102_v44 }
 0x46c   :  { %10138 = vmatprep.subr.bf16.mxu0 %v12426_v31 }
 0x46f   :  { %10139 = vmatpush3.bf16.msra.mxu0 %v11103_v62 }
 0x470   :  { %10140 = vmatprep.subr.bf16.mxu0 %v12426_v31 }
 0x471   :  { %10085 = vmatmul.mubr.bf16.gmra.mxu0 %v4267_v63 }
 0x472   :  { %10121 = vmatmul.mubr.bf16.gmra.mxu1 %v4427_v52  ;;  %10088 = vmatprep.mubr.msk.bf16.mxu0 %vm11447_vm0, %v12426_v31 }
 0x473   :  { %10124 = vmatprep.mubr.msk.bf16.mxu1 %vm11447_vm0, %v12426_v31  ;;  %10141 = vmatpush3.bf16.msra.mxu0 %v11104_v30 }
 0x474   :  { %10142 = vmatprep.subr.bf16.mxu0 %v12426_v31 }
 0x477   :  { %10143 = vmatpush3.bf16.msra.mxu0 %v11105_v41 }
 0x478   :  { %10144 = vmatprep.subr.bf16.mxu0 %v12426_v31 }
 0x479   :  { %10089 = vmatmul.mubr.bf16.gmra.mxu0 %v4268_v21 }
 0x47a   :  { %10125 = vmatmul.mubr.bf16.gmra.mxu1 %v4428_v3  ;;  %10092 = vmatprep.mubr.msk.bf16.mxu0 %vm11447_vm0, %v12426_v31 }
 0x47b   :  { %10128 = vmatprep.mubr.msk.bf16.mxu1 %vm11447_vm0, %v12426_v31  ;;  %10145 = vmatpush3.bf16.msra.mxu0 %v11106_v5 }
 0x47c   :  { %10146 = vmatprep.subr.bf16.mxu0 %v12426_v31 }
 0x47f   :  { %10147 = vmatpush3.bf16.msra.mxu0 %v11107_v27 }
 0x480   :  { %10148 = vmatprep.subr.bf16.mxu0 %v12426_v31 }
 0x481   :  { %10093 = vmatmul.mubr.bf16.gmra.mxu0 %v4269_v38 }
 0x482   :  { %10129 = vmatmul.mubr.bf16.gmra.mxu1 %v4429_v23  ;;  %10096 = vmatprep.mubr.msk.bf16.mxu0 %vm11447_vm0, %v12426_v31 }
 0x483   :  { %10132 = vmatprep.mubr.msk.bf16.mxu1 %vm11447_vm0, %v12426_v31  ;;  %10149 = vmatpush3.bf16.msra.mxu0 %v11108_v32 }
 0x484   :  { %10150 = vmatprep.subr.bf16.mxu0 %v12426_v31 }
 0x487   :  { %10151 = vmatpush3.bf16.msra.mxu0 %v11109_v24 }
 0x488   :  { %10208 = vmatprep.subr.bf16.mxu0 %v12426_v31 }
 0x489   :  { %10097 = vmatmul.mubr.bf16.gmra.mxu0 %v4270_v55 }
 0x48a   :  { %10133 = vmatmul.mubr.bf16.gmra.mxu1 %v4430_v6  ;;  %10152 = vmatprep.mubr.msk.bf16.mxu0 %vm11447_vm0, %v12426_v31 }
 0x48b   :  { %10188 = vmatprep.mubr.msk.bf16.mxu1 %vm11447_vm0, %v12426_v31 }
 0x491   :  { %10153 = vmatmul.mubr.bf16.vlgmr.msra.gmra.mxu0 %v4586_v60 }
 0x492   :  { %10156 = vmatprep.mubr.msk.bf16.mxu0 %vm11447_vm0, %v12426_v31 }
 0x499   :  { %10157 = vmatmul.mubr.bf16.gmra.mxu0 %v4587_v57 }
 0x49a   :  { %10160 = vmatprep.mubr.msk.bf16.mxu0 %vm11447_vm0, %v12426_v31 }
 0x4a1   :  { %10161 = vmatmul.mubr.bf16.gmra.mxu0 %v4588_v35 }
 0x4a2   :  { %10164 = vmatprep.mubr.msk.bf16.mxu0 %vm11447_vm0, %v12426_v31 }
 0x4a9   :  { %10165 = vmatmul.mubr.bf16.gmra.mxu0 %v4589_v2 }
 0x4aa   :  { %10168 = vmatprep.mubr.msk.bf16.mxu0 %vm11447_vm0, %v12426_v31 }
 0x4b1   :  { %v3459_v56 = vpop.f32.mrf.mxu0  ;;  %10169 = vmatmul.mubr.bf16.gmra.mxu0 %v4590_v61 }
 0x4b2   :  { %v3579_v14 = vpop.f32.mrf.mxu1  ;;  %10224 = vmatprep.mubr.msk.bf16.mxu0 %vm11447_vm0, %v12426_v31 }
 0x4b3   :  { %v3580_v59 = vadd.f32 %v3579_v14, %v3459_v56  ;;  %v9866_v19 = vpop.f32.mrf.mxu0 }
 0x4b4   :  { %v9902_v49 = vpop.f32.mrf.mxu1 }
 0x4b5   :  { %v3462_v11 = vpop.f32.mrf.mxu0 }
 0x4b6   :  { %v3582_v44 = vpop.f32.mrf.mxu1 }
 0x4b7   :  { %v3583_v42 = vadd.f32 %v3582_v44, %v3462_v11  ;;  %v9867_v62 = vpop.f32.mrf.mxu0 }
 0x4b8   :  { %v9903_v33 = vpop.f32.mrf.mxu1 }
 0x4b9   :  { %v3467_v18 = vpop.f32.mrf.mxu0 }
 0x4ba   :  { %v3587_v36 = vpop.f32.mrf.mxu1 }
 0x4bb   :  { %v3588_v28 = vadd.f32 %v3587_v36, %v3467_v18  ;;  %v9870_v9 = vpop.f32.mrf.mxu0 }
 0x4bc   :  { %v9906_v20 = vpop.f32.mrf.mxu1 }
 0x4bd   :  { %v3470_v63 = vpop.f32.mrf.mxu0 }
 0x4be   :  { %v3590_v30 = vpop.f32.mrf.mxu1 }
 0x4bf   :  { %v3591_v52 = vadd.f32 %v3590_v30, %v3470_v63  ;;  %v9871_v41 = vpop.f32.mrf.mxu0 }
 0x4c0   :  { %v9907_v43 = vpop.f32.mrf.mxu1 }
 0x4c1   :  { %v3475_v54 = vpop.f32.mrf.mxu0 }
 0x4c2   :  { %v3595_v31 = vpop.f32.mrf.mxu1 }
 0x4c3   :  { %v3596_v15 = vadd.f32 %v3595_v31, %v3475_v54  ;;  %v9874_v1 = vpop.f32.mrf.mxu0 }
 0x4c4   :  { %v9910_v21 = vpop.f32.mrf.mxu1 }
 0x4c5   :  { %v3478_v5 = vpop.f32.mrf.mxu0 }
 0x4c6   :  { %v3598_v3 = vpop.f32.mrf.mxu1 }
 0x4c7   :  { %v3599_v27 = vadd.f32 %v3598_v3, %v3478_v5  ;;  %v9875_v51 = vpop.f32.mrf.mxu0 }
 0x4c8   :  { %v9911_v8 = vpop.f32.mrf.mxu1 }
 0x4c9   :  { %v3483_v47 = vpop.f32.mrf.mxu0 }
 0x4ca   :  { %v3603_v45 = vpop.f32.mrf.mxu1 }
 0x4cb   :  { %v3604_v38 = vadd.f32 %v3603_v45, %v3483_v47  ;;  %v9878_v32 = vpop.f32.mrf.mxu0 }
 0x4cc   :  { %v9914_v23 = vpop.f32.mrf.mxu1 }
 0x4cd   :  { %v3486_v24 = vpop.f32.mrf.mxu0 }
 0x4ce   :  { %v3606_v39 = vpop.f32.mrf.mxu1 }
 0x4cf   :  { %v3607_v10 = vadd.f32 %v3606_v39, %v3486_v24  ;;  %v9879_v55 = vpop.f32.mrf.mxu0 }
 0x4d0   :  { %v9915_v6 = vpop.f32.mrf.mxu1 }
 0x4d1   :  { %v3491_v60 = vpop.f32.mrf.mxu0 }
 0x4d2   :  { %v3611_v57 = vpop.f32.mrf.mxu1 }
 0x4d3   :  { %v3612_v35 = vadd.f32 %v3611_v57, %v3491_v60  ;;  %v9882_v2 = vpop.f32.mrf.mxu0 }
 0x4d4   :  { %v9918_v7 = vpop.f32.mrf.mxu1 }
 0x4d5   :  { %v3494_v61 = vpop.f32.mrf.mxu0 }
 0x4d6   :  { %v3614_v56 = vpop.f32.mrf.mxu1 }
 0x4d7   :  { %v9883_v14 = vpop.f32.mrf.mxu0 }
 0x4d8   :  { %v9919_v19 = vpop.f32.mrf.mxu1 }
 0x4d9   :  { %v3730_v49 = vpop.f32.mrf.mxu0 }
 0x4da   :  { %v3768_v11 = vadd.f32 %v3730_v49, %v3580_v59  ;;  %v3890_v44 = vpop.f32.mrf.mxu1 }
 0x4db   :  { %v9938_v62 = vpop.f32.mrf.mxu0 }
 0x4dc   :  { %v3928_v33 = vadd.f32 %v3890_v44, %v3768_v11  ;;  %v9974_v18 = vpop.f32.mrf.mxu1 }
 0x4dd   :  { %v3733_v36 = vpop.f32.mrf.mxu0 }
 0x4de   :  { %v3769_v9 = vadd.f32 %v3733_v36, %v3583_v42  ;;  %v3893_v20 = vpop.f32.mrf.mxu1 }
 0x4df   :  { %v9939_v63 = vpop.f32.mrf.mxu0 }
 0x4e0   :  { %v3929_v30 = vadd.f32 %v3893_v20, %v3769_v9  ;;  %v9975_v41 = vpop.f32.mrf.mxu1 }
 0x4e1   :  { %v3738_v43 = vpop.f32.mrf.mxu0 }
 0x4e2   :  { %v3770_v54 = vadd.f32 %v3738_v43, %v3588_v28  ;;  %v3898_v31 = vpop.f32.mrf.mxu1 }
 0x4e3   :  { %v9942_v1 = vpop.f32.mrf.mxu0 }
 0x4e4   :  { %v3930_v21 = vadd.f32 %v3898_v31, %v3770_v54  ;;  %v9978_v5 = vpop.f32.mrf.mxu1 }
 0x4e5   :  { %v3741_v3 = vpop.f32.mrf.mxu0 }
 0x4e6   :  { %v3771_v51 = vadd.f32 %v3741_v3, %v3591_v52  ;;  %v3901_v8 = vpop.f32.mrf.mxu1 }
 0x4e7   :  { %v9943_v59 = vpop.f32.mrf.mxu0 }
 0x4e8   :  { %v3931_v47 = vadd.f32 %v3901_v8, %v3771_v51  ;;  %v9979_v45 = vpop.f32.mrf.mxu1 }
 0x4e9   :  { %v3746_v32 = vpop.f32.mrf.mxu0 }
 0x4ea   :  { %v3772_v23 = vadd.f32 %v3746_v32, %v3596_v15  ;;  %v3906_v24 = vpop.f32.mrf.mxu1 }
 0x4eb   :  { %v9946_v42 = vpop.f32.mrf.mxu0 }
 0x4ec   :  { %v3932_v39 = vadd.f32 %v3906_v24, %v3772_v23  ;;  %v9982_v55 = vpop.f32.mrf.mxu1 }
 0x4ed   :  { %v3749_v6 = vpop.f32.mrf.mxu0 }
 0x4ee   :  { %v3773_v60 = vadd.f32 %v3749_v6, %v3599_v27  ;;  %v3909_v57 = vpop.f32.mrf.mxu1 }
 0x4ef   :  { %v9947_v28 = vpop.f32.mrf.mxu0 }
 0x4f0   :  { %v3933_v2 = vadd.f32 %v3909_v57, %v3773_v60  ;;  %v9983_v7 = vpop.f32.mrf.mxu1 }
 0x4f1   :  { %v3754_v61 = vpop.f32.mrf.mxu0 }
 0x4f2   :  { %v3774_v56 = vadd.f32 %v3754_v61, %v3604_v38  ;;  %v3914_v14 = vpop.f32.mrf.mxu1 }
 0x4f3   :  { %v9950_v52 = vpop.f32.mrf.mxu0 }
 0x4f4   :  { %v3934_v19 = vadd.f32 %v3914_v14, %v3774_v56  ;;  %v9986_v49 = vpop.f32.mrf.mxu1 }
 0x4f5   :  { %v3757_v11 = vpop.f32.mrf.mxu0 }
 0x4f6   :  { %v3775_v44 = vadd.f32 %v3757_v11, %v3607_v10  ;;  %v3917_v62 = vpop.f32.mrf.mxu1 }
 0x4f7   :  { %v9951_v15 = vpop.f32.mrf.mxu0 }
 0x4f8   :  { %v3935_v18 = vadd.f32 %v3917_v62, %v3775_v44  ;;  %v9987_v36 = vpop.f32.mrf.mxu1 }
 0x4f9   :  { %v3762_v9 = vpop.f32.mrf.mxu0 }
 0x4fa   :  { %v3776_v20 = vadd.f32 %v3762_v9, %v3612_v35  ;;  %v3922_v63 = vpop.f32.mrf.mxu1 }
 0x4fb   :  { %v9954_v27 = vpop.f32.mrf.mxu0 }
 0x4fc   :  { %v3936_v41 = vadd.f32 %v3922_v63, %v3776_v20  ;;  %v9990_v43 = vpop.f32.mrf.mxu1 }
 0x4fd   :  { %v3765_v54 = vpop.f32.mrf.mxu0 }
 0x4fe   :  { %v3925_v31 = vpop.f32.mrf.mxu1 }
 0x4ff   :  { %v9955_v1 = vpop.f32.mrf.mxu0 }
 0x500   :  { %v9991_v38 = vpop.f32.mrf.mxu1 }
 0x501   :  { %v4050_v5 = vpop.f32.mrf.mxu0 }
 0x502   :  { %v4088_v3 = vadd.f32 %v4050_v5, %v3928_v33  ;;  %v4210_v51 = vpop.f32.mrf.mxu1 }
 0x503   :  { %v10010_v8 = vpop.f32.mrf.mxu0 }
 0x504   :  { %v12651_v59 = vadd.f32 %v4210_v51, %v4088_v3  ;;  %v10046_v10 = vpop.f32.mrf.mxu1 }
 0x505   :  { %v4053_v45 = vpop.f32.mrf.mxu0 }
 0x506   :  { %v4089_v32 = vadd.f32 %v4053_v45, %v3929_v30  ;;  %v4213_v23 = vpop.f32.mrf.mxu1 }
 0x507   :  { %v10011_v24 = vpop.f32.mrf.mxu0 }
 0x508   :  { %v12653_v35 = vadd.f32 %v4213_v23, %v4089_v32  ;;  %v10047_v42 = vpop.f32.mrf.mxu1 }
 0x509   :  { %v4058_v55 = vpop.f32.mrf.mxu0 }
 0x50a   :  { %v4090_v6 = vadd.f32 %v4058_v55, %v3930_v21  ;;  %v4218_v60 = vpop.f32.mrf.mxu1 }
 0x50b   :  { %v10014_v57 = vpop.f32.mrf.mxu0 }
 0x50c   :  { %v12655_v28 = vadd.f32 %v4218_v60, %v4090_v6  ;;  %v10050_v7 = vpop.f32.mrf.mxu1  ;;  %v11111_v6 = vld [vmem:[#allocation6 + $0x6f8] sm:$0xff]  }
 0x50d   :  { %v4061_v33 = vpop.f32.mrf.mxu0  ;;  %10209 = vmatpush3.bf16.msra.mxu0 %v11111_v6 }
 0x50e   :  { %v4091_v61 = vadd.f32 %v4061_v33, %v3931_v47  ;;  %v4221_v56 = vpop.f32.mrf.mxu1 }
 0x50f   :  { %v10015_v14 = vpop.f32.mrf.mxu0 }
 0x510   :  { %v12657_v52 = vadd.f32 %v4221_v56, %v4091_v61  ;;  %v10051_v49 = vpop.f32.mrf.mxu1  ;;  %v11113_v61 = vld [vmem:[#allocation6 + $0x6f0] sm:$0xff]  }
 0x511   :  { %v4066_v30 = vpop.f32.mrf.mxu0 }
 0x512   :  { %v4092_v11 = vadd.f32 %v4066_v30, %v3932_v39  ;;  %v4226_v44 = vpop.f32.mrf.mxu1  ;;  %v11114_v30 = vld [vmem:[#allocation6 + $0x728] sm:$0xff]  }
 0x513   :  { %v10018_v62 = vpop.f32.mrf.mxu0 }
 0x514   :  { %v12659_v15 = vadd.f32 %v4226_v44, %v4092_v11  ;;  %v10054_v36 = vpop.f32.mrf.mxu1  ;;  %v11115_v11 = vld [vmem:[#allocation6 + $0x6e8] sm:$0xff]  }
 0x515   :  { %v4069_v21 = vpop.f32.mrf.mxu0 }
 0x516   :  { %v4093_v9 = vadd.f32 %v4069_v21, %v3933_v2  ;;  %v4229_v20 = vpop.f32.mrf.mxu1  ;;  %v11116_v21 = vld [vmem:[#allocation6 + $0x720] sm:$0xff]  }
 0x517   :  { %v10019_v63 = vpop.f32.mrf.mxu0 }
 0x518   :  { %v12661_v27 = vadd.f32 %v4229_v20, %v4093_v9  ;;  %v10055_v43 = vpop.f32.mrf.mxu1  ;;  %v11117_v9 = vld [vmem:[#allocation6 + $0x6e0] sm:$0xff]  }
 0x519   :  { %v4074_v47 = vpop.f32.mrf.mxu0 }
 0x51a   :  { %v4094_v54 = vadd.f32 %v4074_v47, %v3934_v19  ;;  %v4234_v31 = vpop.f32.mrf.mxu1  ;;  %v11110_v19 = vld [vmem:[#allocation6 + $0x738] sm:$0xff]  }
 0x51b   :  { %v10022_v1 = vpop.f32.mrf.mxu0  ;;  %10173 = vmatpush3.bf16.msra.mxu1 %v11110_v19 }
 0x51c   :  { %v12663_v38 = vadd.f32 %v4234_v31, %v4094_v54  ;;  %v10058_v5 = vpop.f32.mrf.mxu1  ;;  %v11118_v54 = vld [vmem:[#allocation6 + $0x718] sm:$0xff]  }
 0x51d   :  { %v4077_v39 = vpop.f32.mrf.mxu0  ;;  %v11119_v31 = vld [vmem:[#allocation6 + $0x6d8] sm:$0xff]  }
 0x51e   :  { %v4095_v3 = vadd.f32 %v4077_v39, %v3935_v18  ;;  %v4237_v51 = vpop.f32.mrf.mxu1  ;;  %v12669_v18 = vld [vmem:[#allocation2] sm:$0xff] }
 0x51f   :  { %v10023_v8 = vpop.f32.mrf.mxu0  ;;  %10174 = vmatprep.subr.bf16.mxu1 %v12669_v18  ;;  %10210 = vmatprep.subr.bf16.mxu0 %v12669_v18 }
 0x520   :  { %v12665_v10 = vadd.f32 %v4237_v51, %v4095_v3  ;;  %v10059_v45 = vpop.f32.mrf.mxu1  ;;  %10211 = vmatpush3.bf16.msra.mxu0 %v11113_v61  ;;  %v11120_v51 = vld [vmem:[#allocation6 + $0x710] sm:$0xff]  }
 0x521   :  { %v4082_v2 = vpop.f32.mrf.mxu0  ;;  %10212 = vmatprep.subr.bf16.mxu0 %v12669_v18  ;;  %v11121_v8 = vld [vmem:[#allocation6 + $0x6d0] sm:$0xff]  }
 0x522   :  { %v4096_v32 = vadd.f32 %v4082_v2, %v3936_v41  ;;  %v4242_v23 = vpop.f32.mrf.mxu1  ;;  %v11112_v41 = vld [vmem:[#allocation6 + $0x730] sm:$0xff]  }
 0x523   :  { %v10026_v24 = vpop.f32.mrf.mxu0  ;;  %10175 = vmatpush3.bf16.msra.mxu1 %v11112_v41 }
 0x524   :  { %v12667_v42 = vadd.f32 %v4242_v23, %v4096_v32  ;;  %v10062_v55 = vpop.f32.mrf.mxu1  ;;  %10176 = vmatprep.subr.bf16.mxu1 %v12669_v18  ;;  %10213 = vmatpush3.bf16.msra.mxu0 %v11115_v11  ;;  %v11122_v24 = vld [vmem:[#allocation6 + $0x708] sm:$0xff]  }
 0x525   :  { %v4085_v60 = vpop.f32.mrf.mxu0  ;;  %10214 = vmatprep.subr.bf16.mxu0 %v12669_v18  ;;  %v11123_v55 = vld [vmem:[#allocation6 + $0x6c8] sm:$0xff]  }
 0x526   :  { %v4245_v57 = vpop.f32.mrf.mxu1 }
 0x527   :  { %v10027_v7 = vpop.f32.mrf.mxu0  ;;  %10177 = vmatpush3.bf16.msra.mxu1 %v11114_v30 }
 0x528   :  { %v10063_v33 = vpop.f32.mrf.mxu1  ;;  %10178 = vmatprep.subr.bf16.mxu1 %v12669_v18  ;;  %10215 = vmatpush3.bf16.msra.mxu0 %v11117_v9  ;;  %v11124_v7 = vld [vmem:[#allocation6 + $0x700] sm:$0xff]  }
 0x529   :  { %v12673_v56 = vpop.f32.mrf.mxu0  ;;  %10216 = vmatprep.subr.bf16.mxu0 %v12669_v18  ;;  %v11125_v33 = vld [vmem:[#allocation6 + $0x6c0] sm:$0xff]  }
 0x52a   :  { %v12675_v14 = vpop.f32.mrf.mxu1 }
 0x52b   :  { %v10082_v49 = vpop.f32.mrf.mxu0  ;;  %10179 = vmatpush3.bf16.msra.mxu1 %v11116_v21 }
 0x52c   :  { %v10118_v44 = vpop.f32.mrf.mxu1  ;;  %10180 = vmatprep.subr.bf16.mxu1 %v12669_v18  ;;  %10217 = vmatpush3.bf16.msra.mxu0 %v11119_v31 }
 0x52d   :  { %v12679_v62 = vpop.f32.mrf.mxu0  ;;  %10218 = vmatprep.subr.bf16.mxu0 %v12669_v18 }
 0x52e   :  { %v12681_v36 = vpop.f32.mrf.mxu1 }
 0x52f   :  { %v10083_v20 = vpop.f32.mrf.mxu0  ;;  %10181 = vmatpush3.bf16.msra.mxu1 %v11118_v54 }
 0x530   :  { %v10119_v63 = vpop.f32.mrf.mxu1  ;;  %10182 = vmatprep.subr.bf16.mxu1 %v12669_v18  ;;  %10219 = vmatpush3.bf16.msra.mxu0 %v11121_v8 }
 0x531   :  { %v12685_v43 = vpop.f32.mrf.mxu0  ;;  %10220 = vmatprep.subr.bf16.mxu0 %v12669_v18 }
 0x532   :  { %v12687_v47 = vpop.f32.mrf.mxu1 }
 0x533   :  { %v10086_v1 = vpop.f32.mrf.mxu0  ;;  %10183 = vmatpush3.bf16.msra.mxu1 %v11120_v51 }
 0x534   :  { %v10122_v5 = vpop.f32.mrf.mxu1  ;;  %10184 = vmatprep.subr.bf16.mxu1 %v12669_v18  ;;  %10221 = vmatpush3.bf16.msra.mxu0 %v11123_v55  ;;  %v4409_v55 = vadd.f32 %v12679_v62, %v12653_v35 }
 0x535   :  { %v4381_v39 = vpop.f32.mrf.mxu0  ;;  %10222 = vmatprep.subr.bf16.mxu0 %v12669_v18  ;;  %v4408_v5 = vadd.f32 %v12673_v56, %v12651_v59 }
 0x536   :  { %v12691_v3 = vpop.f32.mrf.mxu1 }
 0x537   :  { %v10087_v45 = vpop.f32.mrf.mxu0  ;;  %10185 = vmatpush3.bf16.msra.mxu1 %v11122_v24  ;;  %v4568_v24 = vadd.f32 %v12675_v14, %v4408_v5  ;;  %v4411_v14 = vadd.f32 %v4381_v39, %v12657_v52 }
 0x538   :  { %v10123_v2 = vpop.f32.mrf.mxu1  ;;  %10186 = vmatprep.subr.bf16.mxu1 %v12669_v18  ;;  %10223 = vmatpush3.bf16.msra.mxu0 %v11125_v33 }
 0x539   :  { %v12695_v32 = vpop.f32.mrf.mxu0  ;;  %10280 = vmatprep.subr.bf16.mxu0 %v12669_v18  ;;  %v4571_v52 = vadd.f32 %v12691_v3, %v4411_v14 }
 0x53a   :  { %v12697_v23 = vpop.f32.mrf.mxu1  ;;  %v4412_v39 = vadd.f32 %v12695_v32, %v12659_v15 }
 0x53b   :  { %v10090_v19 = vpop.f32.mrf.mxu0  ;;  %10187 = vmatpush3.bf16.msra.mxu1 %v11124_v7 }
 0x53c   :  { %v10126_v6 = vpop.f32.mrf.mxu1  ;;  %10244 = vmatprep.subr.bf16.mxu1 %v12669_v18 }
 0x53d   :  { %v4389_v60 = vpop.f32.mrf.mxu0 }
 0x53e   :  { %v12701_v57 = vpop.f32.mrf.mxu1 }
 0x53f   :  { %v10091_v41 = vpop.f32.mrf.mxu0 }
 0x540   :  { %v10127_v61 = vpop.f32.mrf.mxu1  ;;  %v4569_v41 = vadd.f32 %v12681_v36, %v4409_v55 }
 0x541   :  { %v12705_v49 = vpop.f32.mrf.mxu0  ;;  %v4410_v61 = vadd.f32 %v12685_v43, %v12655_v28 }
 0x542   :  { %v12707_v30 = vpop.f32.mrf.mxu1 }
 0x543   :  { %v10094_v11 = vpop.f32.mrf.mxu0  ;;  %v4570_v35 = vadd.f32 %v12687_v47, %v4410_v61 }
 0x544   :  { %v10130_v44 = vpop.f32.mrf.mxu1 }
 0x545   :  { %v12711_v21 = vpop.f32.mrf.mxu0 }
 0x546   :  { %v12713_v9 = vpop.f32.mrf.mxu1 }
 0x547   :  { %v10095_v20 = vpop.f32.mrf.mxu0 }
 0x548   :  { %v10131_v63 = vpop.f32.mrf.mxu1 }
 0x549   :  { %v12715_v54 = vpop.f32.mrf.mxu0 }
 0x54a   :  { %v12717_v31 = vpop.f32.mrf.mxu1 }
 0x54b   :  { %v10098_v1 = vpop.f32.mrf.mxu0 }
 0x54c   :  { %v10134_v51 = vpop.f32.mrf.mxu1 }
 0x54d   :  { %v4405_v8 = vpop.f32.mrf.mxu0 }
 0x54e   :  { %v4565_v45 = vpop.f32.mrf.mxu1 }
 0x54f   :  { %v10099_v2 = vpop.f32.mrf.mxu0 }
 0x550   :  { %v10135_v19 = vpop.f32.mrf.mxu1 }
 0x551   :  { %v4690_v6 = vpop.f32.mrf.mxu0 }
 0x552   :  { %v12724_v7 = vadd.f32 %v4690_v6, %v4568_v24  ;;  %v4413_v6 = vadd.f32 %v4389_v60, %v12661_v27  ;;  %v4414_v27 = vadd.f32 %v12705_v49, %v12663_v38 }
 0x553   :  { %v10154_v33 = vpop.f32.mrf.mxu0 }
 0x554   :  { %v4760_v56 = vmul.f32 %v12724_v7, %v12724_v7  ;;  %v4737_v62 = vmul.f32 %v12724_v7, %v11882_v25  ;;  %v4572_v33 = vadd.f32 %v12697_v23, %v4412_v39 }
 0x555   :  { %v4693_v59 = vpop.f32.mrf.mxu0 }
 0x556   :  { %v12731_v11 = vadd.f32 %v4693_v59, %v4569_v41  ;;  %v4769_v20 = vmul.f32 %v4760_v56, %v11882_v25 }
 0x557   :  { %v10155_v44 = vpop.f32.mrf.mxu0 }
 0x558   :  { %v4738_v36 = vmul.f32 %v12731_v11, %v11892_v13  ;;  %v4761_v28 = vmul.f32 %v12731_v11, %v12731_v11  ;;  %v4573_v44 = vadd.f32 %v12701_v57, %v4413_v6  ;;  %v4415_v57 = vadd.f32 %v12711_v21, %v12665_v10 }
 0x559   :  { %v4698_v43 = vpop.f32.mrf.mxu0  ;;  %v4416_v10 = vadd.f32 %v12715_v54, %v12667_v42 }
 0x55a   :  { %v4746_v63 = vadd.f32 %v4738_v36, %v4737_v62  ;;  %v4770_v1 = vmul.f32 %v4761_v28, %v11892_v13  ;;  %v12743_v5 = vadd.f32 %v4698_v43, %v4570_v35 }
 0x55b   :  { %v10158_v47 = vpop.f32.mrf.mxu0 }
 0x55c   :  { %v4778_v51 = vadd.f32 %v4770_v1, %v4769_v20  ;;  %v4739_v8 = vmul.f32 %v12743_v5, %v11900_v22  ;;  %v4762_v45 = vmul.f32 %v12743_v5, %v12743_v5  ;;  %v4574_v1 = vadd.f32 %v12707_v30, %v4414_v27 }
 0x55d   :  { %v4701_v2 = vpop.f32.mrf.mxu0 }
 0x55e   :  { %v4747_v24 = vadd.f32 %v4746_v63, %v4739_v8  ;;  %v4771_v55 = vmul.f32 %v4762_v45, %v11900_v22  ;;  %v12753_v19 = vadd.f32 %v4701_v2, %v4571_v52  ;;  %v4575_v45 = vadd.f32 %v12713_v9, %v4415_v57 }
 0x55f   :  { %v10159_v3 = vpop.f32.mrf.mxu0 }
 0x560   :  { %v4779_v41 = vadd.f32 %v4778_v51, %v4771_v55  ;;  %v4740_v15 = vmul.f32 %v12753_v19, %v11915_v50  ;;  %v4763_v32 = vmul.f32 %v12753_v19, %v12753_v19 }
 0x561   :  { %v4706_v61 = vpop.f32.mrf.mxu0 }
 0x562   :  { %v4748_v59 = vadd.f32 %v4747_v24, %v4740_v15  ;;  %v4772_v56 = vmul.f32 %v4763_v32, %v11915_v50  ;;  %v12762_v14 = vadd.f32 %v4706_v61, %v4572_v33  ;;  %v4576_v15 = vadd.f32 %v12717_v31, %v4416_v10 }
 0x563   :  { %v10162_v35 = vpop.f32.mrf.mxu0 }
 0x564   :  { %v4780_v23 = vadd.f32 %v4779_v41, %v4772_v56  ;;  %v4741_v60 = vmul.f32 %v12762_v14, %v11925_v37  ;;  %v4764_v62 = vmul.f32 %v12762_v14, %v12762_v14 }
 0x565   :  { %v4709_v36 = vpop.f32.mrf.mxu0 }
 0x566   :  { %v4749_v28 = vadd.f32 %v4748_v59, %v4741_v60  ;;  %v4773_v43 = vmul.f32 %v4764_v62, %v11925_v37  ;;  %v12772_v20 = vadd.f32 %v4709_v36, %v4573_v44 }
 0x567   :  { %v10163_v63 = vpop.f32.mrf.mxu0 }
 0x568   :  { %v4781_v38 = vadd.f32 %v4780_v23, %v4773_v43  ;;  %v4742_v49 = vmul.f32 %v12772_v20, %v11938_v29  ;;  %v4765_v52 = vmul.f32 %v12772_v20, %v12772_v20 }
 0x569   :  { %v4714_v47 = vpop.f32.mrf.mxu0 }
 0x56a   :  { %v4750_v39 = vadd.f32 %v4749_v28, %v4742_v49  ;;  %v4774_v51 = vmul.f32 %v4765_v52, %v11938_v29  ;;  %v12782_v8 = vadd.f32 %v4714_v47, %v4574_v1 }
 0x56b   :  { %v10166_v2 = vpop.f32.mrf.mxu0 }
 0x56c   :  { %v4782_v30 = vadd.f32 %v4781_v38, %v4774_v51  ;;  %v4743_v21 = vmul.f32 %v12782_v8, %v11949_v48  ;;  %v4766_v24 = vmul.f32 %v12782_v8, %v12782_v8 }
 0x56d   :  { %v4717_v55 = vpop.f32.mrf.mxu0 }
 0x56e   :  { %v4751_v6 = vadd.f32 %v4750_v39, %v4743_v21  ;;  %v4775_v3 = vmul.f32 %v4766_v24, %v11949_v48  ;;  %v4735_v33 = vadd.f32 %v4717_v55, %v4575_v45 }
 0x56f   :  { %v10167_v41 = vpop.f32.mrf.mxu0 }
 0x570   :  { %v4783_v9 = vadd.f32 %v4782_v30, %v4775_v3  ;;  %v4744_v32 = vmul.f32 %v4735_v33, %v11958_v34  ;;  %v4767_v61 = vmul.f32 %v4735_v33, %v4735_v33 }
 0x571   :  { %v4722_v42 = vpop.f32.mrf.mxu0 }
 0x572   :  { %v4752_v54 = vadd.f32 %v4751_v6, %v4744_v32  ;;  %v4776_v59 = vmul.f32 %v4767_v61, %v11958_v34  ;;  %v4736_v56 = vadd.f32 %v4722_v42, %v4576_v15 }
 0x573   :  { %v10170_v44 = vpop.f32.mrf.mxu0 }
 0x574   :  { %v4784_v35 = vadd.f32 %v4783_v9, %v4776_v59  ;;  %v4745_v27 = vmul.f32 %v4736_v56, %v11963_v46  ;;  %v4768_v23 = vmul.f32 %v4736_v56, %v4736_v56 }
 0x575   :  { %v4725_v60 = vpop.f32.mrf.mxu0 }
 0x576   :  { %v4753_v62 = vadd.f32 %v4752_v54, %v4745_v27  ;;  %v4777_v36 = vmul.f32 %v4768_v23, %v11963_v46 }
 0x577   :  { %v10171_v28 = vpop.f32.mrf.mxu0 }
 0x578   :  { %v4754_v31 = vrot.slane %v4753_v62, 4  ;;  %v4785_v43 = vadd.f32 %v4784_v35, %v4777_v36 }
 0x57a   :  { %v4755_v57 = vadd.f32 %v4754_v31, %v4753_v62  ;;  %v4786_v63 = vrot.slane %v4785_v43, 4  ;;  %v8437_v62 = vld [vmem:[#allocation9 + $0x2] ss:$0 sm:$0xff] }
 0x57c   :  { %v4756_v1 = vrot.slane %v4755_v57, 2  ;;  %v4787_v38 = vadd.f32 %v4786_v63, %v4785_v43 }
 0x57e   :  { %v4757_v49 = vadd.f32 %v4756_v1, %v4755_v57  ;;  %v4788_v52 = vrot.slane %v4787_v38, 2 }
 0x580   :  { %v4758_v47 = vrot.slane %v4757_v49, 1  ;;  %v4789_v39 = vadd.f32 %v4788_v52, %v4787_v38 }
 0x582   :  { %v4759_v51 = vadd.f32 %v4758_v47, %v4757_v49  ;;  %v4790_v45 = vrot.slane %v4789_v39, 1 }
 0x584   :  { %v4791_v2 = vadd.f32 %v4790_v45, %v4789_v39  ;;  %v4792_v10 = vmul.f32 0.03125, %v4759_v51 }
 0x586   :  { %v4793_v30 = vmul.f32 0.03125, %v4791_v2  ;;  %v4794_v21 = vmul.f32 %v4792_v10, %v4792_v10  ;;  %v4797_v24 = vsub.f32 %v12724_v7, %v4792_v10  ;;  %v4798_v55 = vsub.f32 %v12731_v11, %v4792_v10  ;;  %v8436_v7 = vld [vmem:[#allocation8 + $0x2] ss:$0 sm:$0xff] }
 0x587   :  { %v4799_v6 = vsub.f32 %v12743_v5, %v4792_v10  ;;  %v4800_v3 = vsub.f32 %v12753_v19, %v4792_v10  ;;  %v4801_v41 = vsub.f32 %v12762_v14, %v4792_v10  ;;  %v4802_v15 = vsub.f32 %v12772_v20, %v4792_v10 }
 0x588   :  { %v4795_v9 = vsub.f32 %v4793_v30, %v4794_v21  ;;  %v4803_v32 = vsub.f32 %v12782_v8, %v4792_v10  ;;  %v4804_v61 = vsub.f32 %v4735_v33, %v4792_v10  ;;  %v4805_v42 = vsub.f32 %v4736_v56, %v4792_v10 }
 0x58a   :  { %v4796_v54 = vmax.f32 %v4795_v9, 0.0 }
 0x58c   :  { %v4806_v59 = vadd.f32 1e-05, %v4796_v54 }
 0x58e   :  { %11258 = vrsqrt.f32 %v4806_v59 }
 0x59b   :  { %v11259_v44 = vpop.eup %11258 }
 0x59c   :  { %v4808_v35 = vmul.f32 %v11259_v44, %v4797_v24  ;;  %v4809_v11 = vmul.f32 %v11259_v44, %v4798_v55  ;;  %v4810_v27 = vmul.f32 %v11259_v44, %v4799_v6  ;;  %v4811_v5 = vmul.f32 %v11259_v44, %v4800_v3 }
 0x59d   :  { %v4812_v23 = vmul.f32 %v11259_v44, %v4801_v41  ;;  %v4813_v19 = vmul.f32 %v11259_v44, %v4802_v15  ;;  %v4814_v60 = vmul.f32 %v11259_v44, %v4803_v32  ;;  %v4815_v14 = vmul.f32 %v11259_v44, %v4804_v61 }
 0x59e   :  { %v4816_v20 = vmul.f32 %v11259_v44, %v4805_v42  ;;  %v4825_v36 = vmul.f32 %v8436_v7, %v4808_v35  ;;  %v4826_v28 = vmul.f32 %v8436_v7, %v4809_v11  ;;  %v4827_v8 = vmul.f32 %v8436_v7, %v4810_v27 }
 0x59f   :  { %v4828_v33 = vmul.f32 %v8436_v7, %v4811_v5  ;;  %v4829_v56 = vmul.f32 %v8436_v7, %v4812_v23  ;;  %v4830_v31 = vmul.f32 %v8436_v7, %v4813_v19  ;;  %v4831_v43 = vmul.f32 %v8436_v7, %v4814_v60  ;;  %v11126_v60 = vld [vmem:[#allocation6 + $0x778] sm:$0xff]  }
 0x5a0   :  { %v4832_v57 = vmul.f32 %v8436_v7, %v4815_v14  ;;  %v4833_v63 = vmul.f32 %v8436_v7, %v4816_v20  ;;  %v4842_v1 = vadd.f32 %v8437_v62, %v4825_v36  ;;  %v4843_v38 = vadd.f32 %v8437_v62, %v4826_v28  ;;  %v11128_v20 = vld [vmem:[#allocation6 + $0x770] sm:$0xff]  }
 0x5a1   :  { %v4844_v49 = vadd.f32 %v8437_v62, %v4827_v8  ;;  %v4845_v52 = vadd.f32 %v8437_v62, %v4828_v33  ;;  %v4846_v47 = vadd.f32 %v8437_v62, %v4829_v56  ;;  %v4847_v39 = vadd.f32 %v8437_v62, %v4830_v31  ;;  %v11129_v8 = vld [vmem:[#allocation6 + $0x7b0] sm:$0xff]  }
 0x5a2   :  { %v4848_v51 = vadd.f32 %v8437_v62, %v4831_v43  ;;  %v4849_v45 = vadd.f32 %v8437_v62, %v4832_v57  ;;  %v4850_v2 = vadd.f32 %v8437_v62, %v4833_v63  ;;  %v4851_v10 = vadd.f32 %v4842_v1, %v11975_v58  ;;  %v11127_v62 = vld [vmem:[#allocation6 + $0x7b8] sm:$0xff]   ;;  %v11130_v43 = vld [vmem:[#allocation6 + $0x768] sm:$0xff]   ;;  %v11132_v1 = vld [vmem:[#allocation6 + $0x760] sm:$0xff]  }
 0x5a3   :  { %v4852_v30 = vadd.f32 %v4843_v38, %v11978_v53  ;;  %v4853_v21 = vadd.f32 %v4844_v49, %v11981_v12  ;;  %v4854_v24 = vadd.f32 %v4845_v52, %v11984_v40  ;;  %v4855_v55 = vadd.f32 %v4846_v47, %v11987_v26  ;;  %v11131_v63 = vld [vmem:[#allocation6 + $0x7a8] sm:$0xff]   ;;  %v11133_v52 = vld [vmem:[#allocation6 + $0x7a0] sm:$0xff]  }
 0x5a4   :  { %v4856_v6 = vadd.f32 %v4847_v39, %v11990_v16  ;;  %v4857_v3 = vadd.f32 %v4848_v51, %v11993_v0  ;;  %v4858_v41 = vadd.f32 %v4849_v45, %v11996_v4  ;;  %v4859_v15 = vadd.f32 %v4850_v2, %v11999_v17  ;;  %v11134_v45 = vld [vmem:[#allocation6 + $0x758] sm:$0xff]  }
 0x5a5   :  { %v4860_v9 = vmax.f32 %v4851_v10, 0.0  ;;  %v4861_v32 = vmax.f32 %v4852_v30, 0.0  ;;  %v4862_v61 = vmax.f32 %v4853_v21, 0.0  ;;  %v4863_v58 = vmax.f32 %v4854_v24, 0.0  ;;  %v11135_v10 = vld [vmem:[#allocation6 + $0x798] sm:$0xff]   ;;  %v11136_v30 = vld [vmem:[#allocation6 + $0x750] sm:$0xff]  }
 0x5a6   :  { %v4864_v42 = vmax.f32 %v4855_v55, 0.0  ;;  %v4865_v53 = vmax.f32 %v4856_v6, 0.0  ;;  %v4866_v54 = vmax.f32 %v4857_v3, 0.0  ;;  %v4867_v12 = vmax.f32 %v4858_v41, 0.0  ;;  %v11137_v55 = vld [vmem:[#allocation6 + $0x790] sm:$0xff]  }
 0x5a7   :  { %v4868_v59 = vmax.f32 %v4859_v15, 0.0  ;;  %v12814_v40 = vmul.f32 %v4860_v9, %v11882_v25  ;;  %v12817_v26 = vmul.f32 %v4861_v32, %v11892_v13  ;;  %v12820_v16 = vmul.f32 %v4862_v61, %v11900_v22  ;;  %v11138_v15 = vld [vmem:[#allocation6 + $0x748] sm:$0xff]   ;;  %v11140_v61 = vld [vmem:[#allocation6 + $0x740] sm:$0xff]  }
 0x5a8   :  { %v12823_v0 = vmul.f32 %v4863_v58, %v11915_v50  ;;  %v12826_v4 = vmul.f32 %v4864_v42, %v11925_v37  ;;  %v12829_v17 = vmul.f32 %v4865_v53, %v11938_v29  ;;  %v12832_v44 = vmul.f32 %v4866_v54, %v11949_v48  ;;  %v11139_v32 = vld [vmem:[#allocation6 + $0x788] sm:$0xff]   ;;  %v11141_v42 = vld [vmem:[#allocation6 + $0x780] sm:$0xff]  }
 0x5a9   :  { %v12835_v7 = vmul.f32 %v4867_v12, %v11958_v34  ;;  %v12838_v35 = vmul.f32 %v4868_v59, %v11963_v46  ;;  %4878 = vst [vmem:[#allocation2 + $0x8] sm:$0xff] %v12814_v40  ;;  %4879 = vst [vmem:[#allocation2 + $0x10] sm:$0xff] %v12817_v26 }
 0x5aa   :  { %4880 = vst [vmem:[#allocation2 + $0x18] sm:$0xff] %v12820_v16  ;;  %4881 = vst [vmem:[#allocation2 + $0x20] sm:$0xff] %v12823_v0 }
 0x5ab   :  { %4882 = vst [vmem:[#allocation2 + $0x28] sm:$0xff] %v12826_v4  ;;  %4883 = vst [vmem:[#allocation2 + $0x30] sm:$0xff] %v12829_v17 }
 0x5ac   :  { %4884 = vst [vmem:[#allocation2 + $0x38] sm:$0xff] %v12832_v44  ;;  %4885 = vst [vmem:[#allocation2 + $0x40] sm:$0xff] %v12835_v7 }
 0x5ad   :  { %4886 = vst [vmem:[#allocation2 + $0x48] sm:$0xff] %v12838_v35 }
 0x5b0   :  { %v4918_v11 = vld [vmem:[#allocation2 + $0x2] sm:$0xff]  ;;  %v4919_v27 = vld [vmem:[#allocation2 + $0xa] sm:$0xff] }
 0x5b1   :  { %v4887_v5 = vld [vmem:[#allocation2 + $0x1] sm:$0xff]  ;;  %v4927_v23 = vpack.c.bf16 %v4919_v27, %v4918_v11  ;;  %v12849_v19 = vld [vmem:[#allocation2 + $0x9] sm:$0xff]  ;;  %v4920_v36 = vld [vmem:[#allocation2 + $0x12] sm:$0xff] }
 0x5b2   :  { %v4896_v14 = vpack.c.bf16 %v12849_v19, %v4887_v5  ;;  %v4921_v28 = vld [vmem:[#allocation2 + $0x1a] sm:$0xff]  ;;  %v12857_v33 = vld [vmem:[#allocation2 + $0x11] sm:$0xff]  ;;  %v4922_v38 = vld [vmem:[#allocation2 + $0x22] sm:$0xff] }
 0x5b3   :  { %10189 = vmatmul.mubr.bf16.vlgmr.msra.gmra.mxu1 %v4927_v23  ;;  %v12859_v56 = vld [vmem:[#allocation2 + $0x19] sm:$0xff]  ;;  %v4928_v31 = vpack.c.bf16 %v4921_v28, %v4920_v36  ;;  %v4923_v49 = vld [vmem:[#allocation2 + $0x2a] sm:$0xff]  ;;  %v12871_v47 = vld [vmem:[#allocation2 + $0x21] sm:$0xff] }
 0x5b4   :  { %10225 = vmatmul.mubr.bf16.vlgmr.msra.gmra.mxu0 %v4896_v14  ;;  %10192 = vmatprep.mubr.msk.bf16.mxu1 %vm11447_vm0, %v12669_v18  ;;  %v4897_v57 = vpack.c.bf16 %v12859_v56, %v12857_v33  ;;  %v12873_v39 = vld [vmem:[#allocation2 + $0x29] sm:$0xff]  ;;  %v4929_v51 = vpack.c.bf16 %v4923_v49, %v4922_v38  ;;  %v4924_v21 = vld [vmem:[#allocation2 + $0x32] sm:$0xff]  ;;  %v4925_v24 = vld [vmem:[#allocation2 + $0x3a] sm:$0xff] }
 0x5b5   :  { %10228 = vmatprep.mubr.msk.bf16.mxu0 %vm11447_vm0, %v12669_v18  ;;  %10245 = vmatpush3.bf16.msra.mxu1 %v11126_v60  ;;  %v4898_v2 = vpack.c.bf16 %v12873_v39, %v12871_v47  ;;  %v12885_v6 = vld [vmem:[#allocation2 + $0x31] sm:$0xff]  ;;  %v12887_v3 = vld [vmem:[#allocation2 + $0x39] sm:$0xff]  ;;  %v4930_v41 = vpack.c.bf16 %v4925_v24, %v4924_v21  ;;  %v4926_v58 = vld [vmem:[#allocation2 + $0x42] sm:$0xff] }
 0x5b6   :  { %10281 = vmatpush3.bf16.msra.mxu0 %v11127_v62  ;;  %10246 = vmatprep.subr.bf16.mxu1 %v12669_v18  ;;  %v4899_v9 = vpack.c.bf16 %v12887_v3, %v12885_v6  ;;  %v12899_v53 = vld [vmem:[#allocation2 + $0x41] sm:$0xff]  ;;  %v4931_v54 = vpack.c.bf16 %v4926_v58, %v4926_v58  ;;  %v5190_v11 = vld [vmem:[#allocation2 + $0xb] sm:$0xff]  ;;  %v5191_v36 = vld [vmem:[#allocation2 + $0x13] sm:$0xff] }
 0x5b7   :  { %10282 = vmatprep.subr.bf16.mxu0 %v12669_v18  ;;  %v4900_v12 = vpack.c.bf16 %v12899_v53, %v12899_v53  ;;  %v5189_v59 = vld [vmem:[#allocation2 + $0x3] sm:$0xff]  ;;  %v12910_v5 = vld [vmem:[#allocation2 + $0xf] sm:$0xff]  ;;  %v5192_v28 = vld [vmem:[#allocation2 + $0x1b] sm:$0xff] }
 0x5b8   :  { %v5349_v27 = vld [vmem:[#allocation2 + $0x7] sm:$0xff]  ;;  %v5198_v23 = vpack.c.bf16 %v5190_v11, %v5189_v59  ;;  %v11142_v60 = vld [vmem:[#allocation6 + $0x7f8] sm:$0xff]   ;;  %v11148_v49 = vld [vmem:[#allocation6 + $0x7e0] sm:$0xff]  }
 0x5b9   :  { %10247 = vmatpush3.bf16.msra.mxu1 %v11128_v20  ;;  %v5358_v14 = vpack.c.bf16 %v12910_v5, %v5349_v27  ;;  %v11143_v62 = vld [vmem:[#allocation6 + $0x838] sm:$0xff]   ;;  %v11144_v20 = vld [vmem:[#allocation6 + $0x7f0] sm:$0xff]   ;;  %v11147_v38 = vld [vmem:[#allocation6 + $0x828] sm:$0xff]  }
 0x5ba   :  { %10283 = vmatpush3.bf16.msra.mxu0 %v11129_v8  ;;  %10248 = vmatprep.subr.bf16.mxu1 %v12669_v18  ;;  %v11145_v8 = vld [vmem:[#allocation6 + $0x830] sm:$0xff]   ;;  %v11150_v21 = vld [vmem:[#allocation6 + $0x7d8] sm:$0xff]   ;;  %v12948_v58 = vld [vmem:[#allocation2 + $0x3f] sm:$0xff] }
 0x5bb   :  { %10193 = vmatmul.mubr.bf16.gmra.mxu1 %v4928_v31  ;;  %10284 = vmatprep.subr.bf16.mxu0 %v12669_v18  ;;  %v12918_v31 = vld [vmem:[#allocation2 + $0x17] sm:$0xff]  ;;  %v11155_v59 = vld [vmem:[#allocation6 + $0x808] sm:$0xff]  }
 0x5bc   :  { %10229 = vmatmul.mubr.bf16.gmra.mxu0 %v4897_v57  ;;  %10196 = vmatprep.mubr.msk.bf16.mxu1 %vm11447_vm0, %v12669_v18  ;;  %v5199_v57 = vpack.c.bf16 %v5192_v28, %v5191_v36  ;;  %v11156_v11 = vld [vmem:[#allocation6 + $0x7c0] sm:$0xff]   ;;  %v5197_v27 = vld [vmem:[#allocation2 + $0x43] sm:$0xff]  ;;  %v11158_v36 = vld [vmem:[#allocation6 + $0x878] sm:$0xff]   ;;  %v5678_v28 = vpack.c.bf16 %v12857_v33, %v12849_v19  ;;  %v5519_v19 = vpack.c.bf16 %v12823_v0, %v12820_v16 }
 0x5bd   :  { %10232 = vmatprep.mubr.msk.bf16.mxu0 %vm11447_vm0, %v12669_v18  ;;  %10249 = vmatpush3.bf16.msra.mxu1 %v11130_v43  ;;  %v12920_v43 = vld [vmem:[#allocation2 + $0x1f] sm:$0xff] }
 0x5be   :  { %10285 = vmatpush3.bf16.msra.mxu0 %v11131_v63  ;;  %10250 = vmatprep.subr.bf16.mxu1 %v12669_v18  ;;  %v11146_v63 = vld [vmem:[#allocation6 + $0x7e8] sm:$0xff]  }
 0x5bf   :  { %10286 = vmatprep.subr.bf16.mxu0 %v12669_v18  ;;  %v11162_v33 = vld [vmem:[#allocation6 + $0x868] sm:$0xff]  }
 0x5c1   :  { %10251 = vmatpush3.bf16.msra.mxu1 %v11132_v1  ;;  %v5359_v1 = vpack.c.bf16 %v12920_v43, %v12918_v31 }
 0x5c2   :  { %10287 = vmatpush3.bf16.msra.mxu0 %v11133_v52  ;;  %10252 = vmatprep.subr.bf16.mxu1 %v12669_v18  ;;  %v5193_v52 = vld [vmem:[#allocation2 + $0x23] sm:$0xff] }
 0x5c3   :  { %10197 = vmatmul.mubr.bf16.gmra.mxu1 %v4929_v51  ;;  %10288 = vmatprep.subr.bf16.mxu0 %v12669_v18  ;;  %v5194_v51 = vld [vmem:[#allocation2 + $0x2b] sm:$0xff] }
 0x5c4   :  { %10233 = vmatmul.mubr.bf16.gmra.mxu0 %v4898_v2  ;;  %10200 = vmatprep.mubr.msk.bf16.mxu1 %vm11447_vm0, %v12669_v18  ;;  %v12932_v2 = vld [vmem:[#allocation2 + $0x27] sm:$0xff] }
 0x5c5   :  { %10236 = vmatprep.mubr.msk.bf16.mxu0 %vm11447_vm0, %v12669_v18  ;;  %10253 = vmatpush3.bf16.msra.mxu1 %v11134_v45  ;;  %v11149_v45 = vld [vmem:[#allocation6 + $0x820] sm:$0xff]  }
 0x5c6   :  { %10289 = vmatpush3.bf16.msra.mxu0 %v11135_v10  ;;  %10254 = vmatprep.subr.bf16.mxu1 %v12669_v18  ;;  %v12934_v10 = vld [vmem:[#allocation2 + $0x2f] sm:$0xff] }
 0x5c7   :  { %10290 = vmatprep.subr.bf16.mxu0 %v12669_v18  ;;  %v5360_v24 = vpack.c.bf16 %v12934_v10, %v12932_v2 }
 0x5c9   :  { %10255 = vmatpush3.bf16.msra.mxu1 %v11136_v30  ;;  %v5200_v30 = vpack.c.bf16 %v5194_v51, %v5193_v52  ;;  %v11166_v52 = vld [vmem:[#allocation6 + $0x858] sm:$0xff]   ;;  %v5680_v51 = vpack.c.bf16 %v12885_v6, %v12873_v39  ;;  %v11169_v39 = vld [vmem:[#allocation6 + $0x890] sm:$0xff]   ;;  %v5521_v6 = vpack.c.bf16 %v12835_v7, %v12832_v44 }
 0x5ca   :  { %10291 = vmatpush3.bf16.msra.mxu0 %v11137_v55  ;;  %10256 = vmatprep.subr.bf16.mxu1 %v12669_v18  ;;  %v11151_v55 = vld [vmem:[#allocation6 + $0x818] sm:$0xff]  }
 0x5cb   :  { %10201 = vmatmul.mubr.bf16.gmra.mxu1 %v4930_v41  ;;  %10292 = vmatprep.subr.bf16.mxu0 %v12669_v18  ;;  %v11152_v41 = vld [vmem:[#allocation6 + $0x7d0] sm:$0xff]  }
 0x5cc   :  { %10237 = vmatmul.mubr.bf16.gmra.mxu0 %v4899_v9  ;;  %10204 = vmatprep.mubr.msk.bf16.mxu1 %vm11447_vm0, %v12669_v18  ;;  %v5196_v9 = vld [vmem:[#allocation2 + $0x3b] sm:$0xff] }
 0x5cd   :  { %10240 = vmatprep.mubr.msk.bf16.mxu0 %vm11447_vm0, %v12669_v18  ;;  %10257 = vmatpush3.bf16.msra.mxu1 %v11138_v15  ;;  %v5195_v15 = vld [vmem:[#allocation2 + $0x33] sm:$0xff] }
 0x5ce   :  { %10293 = vmatpush3.bf16.msra.mxu0 %v11139_v32  ;;  %10258 = vmatprep.subr.bf16.mxu1 %v12669_v18  ;;  %v11153_v32 = vld [vmem:[#allocation6 + $0x810] sm:$0xff]  }
 0x5cf   :  { %10294 = vmatprep.subr.bf16.mxu0 %v12669_v18 }
 0x5d1   :  { %10259 = vmatpush3.bf16.msra.mxu1 %v11140_v61  ;;  %v12946_v61 = vld [vmem:[#allocation2 + $0x37] sm:$0xff] }
 0x5d2   :  { %10295 = vmatpush3.bf16.msra.mxu0 %v11141_v42  ;;  %10316 = vmatprep.subr.bf16.mxu1 %v12669_v18  ;;  %v5201_v42 = vpack.c.bf16 %v5196_v9, %v5195_v15  ;;  %v5522_v15 = vpack.c.bf16 %v12838_v35, %v12838_v35 }
 0x5d3   :  { %10205 = vmatmul.mubr.bf16.gmra.mxu1 %v4931_v54  ;;  %10352 = vmatprep.subr.bf16.mxu0 %v12669_v18  ;;  %v11154_v54 = vld [vmem:[#allocation6 + $0x7c8] sm:$0xff]  }
 0x5d4   :  { %10241 = vmatmul.mubr.bf16.gmra.mxu0 %v4900_v12  ;;  %10260 = vmatprep.mubr.msk.bf16.mxu1 %vm11447_vm0, %v12669_v18  ;;  %v5361_v12 = vpack.c.bf16 %v12948_v58, %v12946_v61 }
 0x5d5   :  { %10296 = vmatprep.mubr.msk.bf16.mxu0 %vm11447_vm0, %v12669_v18 }
 0x5db   :  { %10261 = vmatmul.mubr.bf16.vlgmr.msra.gmra.mxu1 %v5198_v23  ;;  %v11157_v23 = vld [vmem:[#allocation6 + $0x800] sm:$0xff]  }
 0x5dc   :  { %10297 = vmatmul.mubr.bf16.vlgmr.msra.gmra.mxu0 %v5358_v14  ;;  %10264 = vmatprep.mubr.msk.bf16.mxu1 %vm11447_vm0, %v12669_v18  ;;  %v5202_v14 = vpack.c.bf16 %v5197_v27, %v5197_v27 }
 0x5dd   :  { %10300 = vmatprep.mubr.msk.bf16.mxu0 %vm11447_vm0, %v12669_v18  ;;  %10317 = vmatpush3.bf16.msra.mxu1 %v11142_v60  ;;  %v12960_v60 = vld [vmem:[#allocation2 + $0x47] sm:$0xff] }
 0x5de   :  { %10353 = vmatpush3.bf16.msra.mxu0 %v11143_v62  ;;  %10318 = vmatprep.subr.bf16.mxu1 %v12669_v18  ;;  %v5362_v62 = vpack.c.bf16 %v12960_v60, %v12960_v60 }
 0x5df   :  { %10354 = vmatprep.subr.bf16.mxu0 %v12669_v18 }
 0x5e1   :  { %10319 = vmatpush3.bf16.msra.mxu1 %v11144_v20  ;;  %v5518_v20 = vpack.c.bf16 %v12817_v26, %v12814_v40 }
 0x5e2   :  { %10355 = vmatpush3.bf16.msra.mxu0 %v11145_v8  ;;  %10320 = vmatprep.subr.bf16.mxu1 %v12669_v18  ;;  %v11159_v8 = vld [vmem:[#allocation6 + $0x8b8] sm:$0xff]  }
 0x5e3   :  { %10265 = vmatmul.mubr.bf16.gmra.mxu1 %v5199_v57  ;;  %10356 = vmatprep.subr.bf16.mxu0 %v12669_v18  ;;  %v11160_v57 = vld [vmem:[#allocation6 + $0x870] sm:$0xff]  }
 0x5e4   :  { %10301 = vmatmul.mubr.bf16.gmra.mxu0 %v5359_v1  ;;  %10268 = vmatprep.mubr.msk.bf16.mxu1 %vm11447_vm0, %v12669_v18  ;;  %v5679_v1 = vpack.c.bf16 %v12871_v47, %v12859_v56  ;;  %v11165_v56 = vld [vmem:[#allocation6 + $0x8a0] sm:$0xff]   ;;  %v5520_v47 = vpack.c.bf16 %v12829_v17, %v12826_v4 }
 0x5e5   :  { %10304 = vmatprep.mubr.msk.bf16.mxu0 %vm11447_vm0, %v12669_v18  ;;  %10321 = vmatpush3.bf16.msra.mxu1 %v11146_v63  ;;  %v11161_v63 = vld [vmem:[#allocation6 + $0x8b0] sm:$0xff]  }
 0x5e6   :  { %10357 = vmatpush3.bf16.msra.mxu0 %v11147_v38  ;;  %10322 = vmatprep.subr.bf16.mxu1 %v12669_v18  ;;  %v11163_v38 = vld [vmem:[#allocation6 + $0x8a8] sm:$0xff]  }
 0x5e7   :  { %10358 = vmatprep.subr.bf16.mxu0 %v12669_v18 }
 0x5e9   :  { %10323 = vmatpush3.bf16.msra.mxu1 %v11148_v49  ;;  %v11164_v49 = vld [vmem:[#allocation6 + $0x860] sm:$0xff]  }
 0x5ea   :  { %10359 = vmatpush3.bf16.msra.mxu0 %v11149_v45  ;;  %10324 = vmatprep.subr.bf16.mxu1 %v12669_v18  ;;  %v11167_v45 = vld [vmem:[#allocation6 + $0x898] sm:$0xff]  }
 0x5eb   :  { %10269 = vmatmul.mubr.bf16.gmra.mxu1 %v5200_v30  ;;  %10360 = vmatprep.subr.bf16.mxu0 %v12669_v18  ;;  %v11168_v30 = vld [vmem:[#allocation6 + $0x850] sm:$0xff]  }
 0x5ec   :  { %10305 = vmatmul.mubr.bf16.gmra.mxu0 %v5360_v24  ;;  %10272 = vmatprep.mubr.msk.bf16.mxu1 %vm11447_vm0, %v12669_v18  ;;  %v5681_v24 = vpack.c.bf16 %v12899_v53, %v12887_v3  ;;  %v11173_v3 = vld [vmem:[#allocation6 + $0x880] sm:$0xff]   ;;  %v5677_v53 = vld [vmem:[#allocation2 + $0x49] sm:$0xff] }
 0x5ed   :  { %10308 = vmatprep.mubr.msk.bf16.mxu0 %vm11447_vm0, %v12669_v18  ;;  %10325 = vmatpush3.bf16.msra.mxu1 %v11150_v21  ;;  %v11170_v21 = vld [vmem:[#allocation6 + $0x848] sm:$0xff]   ;;  %v5682_v9 = vpack.c.bf16 %v5677_v53, %v5677_v53 }
 0x5ee   :  { %10361 = vmatpush3.bf16.msra.mxu0 %v11151_v55  ;;  %10326 = vmatprep.subr.bf16.mxu1 %v12669_v18  ;;  %v13009_v55 = vld [vmem:[#allocation2] sm:$0xff] }
 0x5ef   :  { %10362 = vmatprep.subr.bf16.mxu0 %v12669_v18 }
 0x5f1   :  { %10327 = vmatpush3.bf16.msra.mxu1 %v11152_v41  ;;  %v11171_v41 = vld [vmem:[#allocation6 + $0x888] sm:$0xff]  }
 0x5f2   :  { %10363 = vmatpush3.bf16.msra.mxu0 %v11153_v32  ;;  %10328 = vmatprep.subr.bf16.mxu1 %v12669_v18  ;;  %v5829_v32 = vld [vmem:[#allocation2 + $0xd] sm:$0xff] }
 0x5f3   :  { %10273 = vmatmul.mubr.bf16.gmra.mxu1 %v5201_v42  ;;  %10364 = vmatprep.subr.bf16.mxu0 %v12669_v18  ;;  %v5830_v42 = vld [vmem:[#allocation2 + $0x15] sm:$0xff] }
 0x5f4   :  { %10309 = vmatmul.mubr.bf16.gmra.mxu0 %v5361_v12  ;;  %10276 = vmatprep.mubr.msk.bf16.mxu1 %vm11447_vm0, %v12669_v18  ;;  %v5990_v12 = vld [vmem:[#allocation2 + $0x16] sm:$0xff] }
 0x5f5   :  { %10312 = vmatprep.mubr.msk.bf16.mxu0 %vm11447_vm0, %v12669_v18  ;;  %10329 = vmatpush3.bf16.msra.mxu1 %v11154_v54  ;;  %v5989_v54 = vld [vmem:[#allocation2 + $0xe] sm:$0xff] }
 0x5f6   :  { %10365 = vmatpush3.bf16.msra.mxu0 %v11155_v59  ;;  %10330 = vmatprep.subr.bf16.mxu1 %v12669_v18  ;;  %v5838_v59 = vpack.c.bf16 %v5830_v42, %v5829_v32  ;;  %v5998_v27 = vpack.c.bf16 %v5990_v12, %v5989_v54  ;;  %v6159_v32 = vpack.c.bf16 %v12932_v2, %v12920_v43 }
 0x5f7   :  { %10366 = vmatprep.subr.bf16.mxu0 %v12669_v18  ;;  %v6160_v42 = vpack.c.bf16 %v12946_v61, %v12934_v10 }
 0x5f9   :  { %10331 = vmatpush3.bf16.msra.mxu1 %v11156_v11  ;;  %v11174_v11 = vld [vmem:[#allocation6 + $0x8f8] sm:$0xff]  }
 0x5fa   :  { %10367 = vmatpush3.bf16.msra.mxu0 %v11157_v23  ;;  %10388 = vmatprep.subr.bf16.mxu1 %v12669_v18  ;;  %v11175_v23 = vld [vmem:[#allocation6 + $0x8f0] sm:$0xff]  }
 0x5fb   :  { %10277 = vmatmul.mubr.bf16.gmra.mxu1 %v5202_v14  ;;  %10424 = vmatprep.subr.bf16.mxu0 %v12669_v18  ;;  %v5831_v14 = vld [vmem:[#allocation2 + $0x1d] sm:$0xff] }
 0x5fc   :  { %10313 = vmatmul.mubr.bf16.gmra.mxu0 %v5362_v62  ;;  %10332 = vmatprep.mubr.msk.bf16.mxu1 %vm11447_vm0, %v12669_v18  ;;  %v5832_v62 = vld [vmem:[#allocation2 + $0x25] sm:$0xff] }
 0x5fd   :  { %10368 = vmatprep.mubr.msk.bf16.mxu0 %vm11447_vm0, %v12669_v18 }
 0x603   :  { %10333 = vmatmul.mubr.bf16.vlgmr.msra.gmra.mxu1 %v5518_v20  ;;  %v5991_v20 = vld [vmem:[#allocation2 + $0x1e] sm:$0xff] }
 0x604   :  { %10369 = vmatmul.mubr.bf16.vlgmr.msra.gmra.mxu0 %v5678_v28  ;;  %10336 = vmatprep.mubr.msk.bf16.mxu1 %vm11447_vm0, %v12669_v18  ;;  %v5839_v28 = vpack.c.bf16 %v5832_v62, %v5831_v14 }
 0x605   :  { %10372 = vmatprep.mubr.msk.bf16.mxu0 %vm11447_vm0, %v12669_v18  ;;  %10389 = vmatpush3.bf16.msra.mxu1 %v11158_v36  ;;  %v5992_v36 = vld [vmem:[#allocation2 + $0x26] sm:$0xff] }
 0x606   :  { %10425 = vmatpush3.bf16.msra.mxu0 %v11159_v8  ;;  %10390 = vmatprep.subr.bf16.mxu1 %v12669_v18  ;;  %v11176_v8 = vld [vmem:[#allocation6 + $0x8e8] sm:$0xff]  }
 0x607   :  { %10426 = vmatprep.subr.bf16.mxu0 %v12669_v18 }
 0x609   :  { %10391 = vmatpush3.bf16.msra.mxu1 %v11160_v57  ;;  %v5999_v57 = vpack.c.bf16 %v5992_v36, %v5991_v20 }
 0x60a   :  { %10427 = vmatpush3.bf16.msra.mxu0 %v11161_v63  ;;  %10392 = vmatprep.subr.bf16.mxu1 %v12669_v18  ;;  %v11177_v63 = vld [vmem:[#allocation6 + $0x8e0] sm:$0xff]  }
 0x60b   :  { %10337 = vmatmul.mubr.bf16.gmra.mxu1 %v5519_v19  ;;  %10428 = vmatprep.subr.bf16.mxu0 %v12669_v18  ;;  %v5833_v19 = vld [vmem:[#allocation2 + $0x2d] sm:$0xff] }
 0x60c   :  { %10373 = vmatmul.mubr.bf16.gmra.mxu0 %v5679_v1  ;;  %10340 = vmatprep.mubr.msk.bf16.mxu1 %vm11447_vm0, %v12669_v18  ;;  %v5993_v1 = vld [vmem:[#allocation2 + $0x2e] sm:$0xff] }
 0x60d   :  { %10376 = vmatprep.mubr.msk.bf16.mxu0 %vm11447_vm0, %v12669_v18  ;;  %10393 = vmatpush3.bf16.msra.mxu1 %v11162_v33  ;;  %v5834_v33 = vld [vmem:[#allocation2 + $0x35] sm:$0xff] }
 0x60e   :  { %10429 = vmatpush3.bf16.msra.mxu0 %v11163_v38  ;;  %10394 = vmatprep.subr.bf16.mxu1 %v12669_v18  ;;  %v5994_v38 = vld [vmem:[#allocation2 + $0x36] sm:$0xff] }
 0x60f   :  { %10430 = vmatprep.subr.bf16.mxu0 %v12669_v18 }
 0x611   :  { %10395 = vmatpush3.bf16.msra.mxu1 %v11164_v49  ;;  %v5840_v49 = vpack.c.bf16 %v5834_v33, %v5833_v19 }
 0x612   :  { %10431 = vmatpush3.bf16.msra.mxu0 %v11165_v56  ;;  %10396 = vmatprep.subr.bf16.mxu1 %v12669_v18  ;;  %v11178_v56 = vld [vmem:[#allocation6 + $0x8d8] sm:$0xff]  }
 0x613   :  { %10341 = vmatmul.mubr.bf16.gmra.mxu1 %v5520_v47  ;;  %10432 = vmatprep.subr.bf16.mxu0 %v12669_v18  ;;  %v6000_v47 = vpack.c.bf16 %v5994_v38, %v5993_v1 }
 0x614   :  { %10377 = vmatmul.mubr.bf16.gmra.mxu0 %v5680_v51  ;;  %10344 = vmatprep.mubr.msk.bf16.mxu1 %vm11447_vm0, %v12669_v18  ;;  %v5835_v51 = vld [vmem:[#allocation2 + $0x3d] sm:$0xff] }
 0x615   :  { %10380 = vmatprep.mubr.msk.bf16.mxu0 %vm11447_vm0, %v12669_v18  ;;  %10397 = vmatpush3.bf16.msra.mxu1 %v11166_v52  ;;  %v11179_v52 = vld [vmem:[#allocation6 + $0x8d0] sm:$0xff]  }
 0x616   :  { %10433 = vmatpush3.bf16.msra.mxu0 %v11167_v45  ;;  %10398 = vmatprep.subr.bf16.mxu1 %v12669_v18  ;;  %v5836_v45 = vld [vmem:[#allocation2 + $0x45] sm:$0xff] }
 0x617   :  { %10434 = vmatprep.subr.bf16.mxu0 %v12669_v18  ;;  %v11172_v18 = vld [vmem:[#allocation6 + $0x840] sm:$0xff]  }
 0x619   :  { %10399 = vmatpush3.bf16.msra.mxu1 %v11168_v30  ;;  %v5995_v30 = vld [vmem:[#allocation2 + $0x3e] sm:$0xff] }
 0x61a   :  { %10435 = vmatpush3.bf16.msra.mxu0 %v11169_v39  ;;  %10400 = vmatprep.subr.bf16.mxu1 %v13009_v55  ;;  %v5996_v39 = vld [vmem:[#allocation2 + $0x46] sm:$0xff] }
 0x61b   :  { %10345 = vmatmul.mubr.bf16.gmra.mxu1 %v5521_v6  ;;  %10436 = vmatprep.subr.bf16.mxu0 %v13009_v55  ;;  %v5841_v6 = vpack.c.bf16 %v5836_v45, %v5835_v51 }
 0x61c   :  { %10381 = vmatmul.mubr.bf16.gmra.mxu0 %v5681_v24  ;;  %10348 = vmatprep.mubr.msk.bf16.mxu1 %vm11447_vm0, %v13009_v55  ;;  %v6001_v24 = vpack.c.bf16 %v5996_v39, %v5995_v30 }
 0x61d   :  { %10384 = vmatprep.mubr.msk.bf16.mxu0 %vm11447_vm0, %v13009_v55  ;;  %10401 = vmatpush3.bf16.msra.mxu1 %v11170_v21  ;;  %v11180_v21 = vld [vmem:[#allocation6 + $0x8c8] sm:$0xff]  }
 0x61e   :  { %10437 = vmatpush3.bf16.msra.mxu0 %v11171_v41  ;;  %10402 = vmatprep.subr.bf16.mxu1 %v13009_v55  ;;  %v11181_v41 = vld [vmem:[#allocation6 + $0x8c0] sm:$0xff]  }
 0x61f   :  { %10438 = vmatprep.subr.bf16.mxu0 %v13009_v55 }
 0x621   :  { %10403 = vmatpush3.bf16.msra.mxu1 %v11172_v18  ;;  %v5837_v18 = vld [vmem:[#allocation2 + $0x4d] sm:$0xff] }
 0x622   :  { %10439 = vmatpush3.bf16.msra.mxu0 %v11173_v3  ;;  %10460 = vmatprep.subr.bf16.mxu1 %v13009_v55  ;;  %v5997_v3 = vld [vmem:[#allocation2 + $0x4e] sm:$0xff]  ;;  %v5842_v53 = vpack.c.bf16 %v5837_v18, %v5837_v18 }
 0x623   :  { %10349 = vmatmul.mubr.bf16.gmra.mxu1 %v5522_v15  ;;  %10496 = vmatprep.subr.bf16.mxu0 %v13009_v55  ;;  %v6002_v15 = vpack.c.bf16 %v5997_v3, %v5997_v3 }
 0x624   :  { %10385 = vmatmul.mubr.bf16.gmra.mxu0 %v5682_v9  ;;  %10404 = vmatprep.mubr.msk.bf16.mxu1 %vm11447_vm0, %v13009_v55  ;;  %v6158_v9 = vpack.c.bf16 %v12918_v31, %v12910_v5  ;;  %v6161_v5 = vpack.c.bf16 %v12960_v60, %v12948_v58  ;;  %v6157_v31 = vld [vmem:[#allocation2 + $0x4f] sm:$0xff] }
 0x625   :  { %10440 = vmatprep.mubr.msk.bf16.mxu0 %vm11447_vm0, %v13009_v55  ;;  %v6162_v43 = vpack.c.bf16 %v6157_v31, %v6157_v31 }
 0x62b   :  { %10405 = vmatmul.mubr.bf16.vlgmr.msra.gmra.mxu1 %v5838_v59 }
 0x62c   :  { %10441 = vmatmul.mubr.bf16.vlgmr.msra.gmra.mxu0 %v5998_v27  ;;  %10408 = vmatprep.mubr.msk.bf16.mxu1 %vm11447_vm0, %v13009_v55 }
 0x62d   :  { %10444 = vmatprep.mubr.msk.bf16.mxu0 %vm11447_vm0, %v13009_v55  ;;  %10461 = vmatpush3.bf16.msra.mxu1 %v11174_v11 }
 0x62e   :  { %10462 = vmatprep.subr.bf16.mxu1 %v13009_v55 }
 0x631   :  { %10463 = vmatpush3.bf16.msra.mxu1 %v11175_v23 }
 0x632   :  { %10464 = vmatprep.subr.bf16.mxu1 %v13009_v55 }
 0x633   :  { %10409 = vmatmul.mubr.bf16.gmra.mxu1 %v5839_v28 }
 0x634   :  { %10445 = vmatmul.mubr.bf16.gmra.mxu0 %v5999_v57  ;;  %10412 = vmatprep.mubr.msk.bf16.mxu1 %vm11447_vm0, %v13009_v55 }
 0x635   :  { %10448 = vmatprep.mubr.msk.bf16.mxu0 %vm11447_vm0, %v13009_v55  ;;  %10465 = vmatpush3.bf16.msra.mxu1 %v11176_v8 }
 0x636   :  { %10466 = vmatprep.subr.bf16.mxu1 %v13009_v55 }
 0x639   :  { %10467 = vmatpush3.bf16.msra.mxu1 %v11177_v63 }
 0x63a   :  { %10468 = vmatprep.subr.bf16.mxu1 %v13009_v55 }
 0x63b   :  { %10413 = vmatmul.mubr.bf16.gmra.mxu1 %v5840_v49 }
 0x63c   :  { %10449 = vmatmul.mubr.bf16.gmra.mxu0 %v6000_v47  ;;  %10416 = vmatprep.mubr.msk.bf16.mxu1 %vm11447_vm0, %v13009_v55 }
 0x63d   :  { %10452 = vmatprep.mubr.msk.bf16.mxu0 %vm11447_vm0, %v13009_v55  ;;  %10469 = vmatpush3.bf16.msra.mxu1 %v11178_v56 }
 0x63e   :  { %10470 = vmatprep.subr.bf16.mxu1 %v13009_v55 }
 0x641   :  { %10471 = vmatpush3.bf16.msra.mxu1 %v11179_v52 }
 0x642   :  { %10472 = vmatprep.subr.bf16.mxu1 %v13009_v55 }
 0x643   :  { %10417 = vmatmul.mubr.bf16.gmra.mxu1 %v5841_v6 }
 0x644   :  { %10453 = vmatmul.mubr.bf16.gmra.mxu0 %v6001_v24  ;;  %10420 = vmatprep.mubr.msk.bf16.mxu1 %vm11447_vm0, %v13009_v55 }
 0x645   :  { %10456 = vmatprep.mubr.msk.bf16.mxu0 %vm11447_vm0, %v13009_v55  ;;  %10473 = vmatpush3.bf16.msra.mxu1 %v11180_v21 }
 0x646   :  { %10474 = vmatprep.subr.bf16.mxu1 %v13009_v55 }
 0x649   :  { %10475 = vmatpush3.bf16.msra.mxu1 %v11181_v41 }
 0x64a   :  { %10532 = vmatprep.subr.bf16.mxu1 %v13009_v55 }
 0x64b   :  { %10421 = vmatmul.mubr.bf16.gmra.mxu1 %v5842_v53 }
 0x64c   :  { %10457 = vmatmul.mubr.bf16.gmra.mxu0 %v6002_v15  ;;  %10476 = vmatprep.mubr.msk.bf16.mxu1 %vm11447_vm0, %v13009_v55 }
 0x64d   :  { %10512 = vmatprep.mubr.msk.bf16.mxu0 %vm11447_vm0, %v13009_v55 }
 0x653   :  { %10477 = vmatmul.mubr.bf16.vlgmr.msra.gmra.mxu1 %v6158_v9 }
 0x654   :  { %10480 = vmatprep.mubr.msk.bf16.mxu1 %vm11447_vm0, %v13009_v55 }
 0x65b   :  { %10481 = vmatmul.mubr.bf16.gmra.mxu1 %v6159_v32 }
 0x65c   :  { %10484 = vmatprep.mubr.msk.bf16.mxu1 %vm11447_vm0, %v13009_v55 }
 0x663   :  { %10485 = vmatmul.mubr.bf16.gmra.mxu1 %v6160_v42 }
 0x664   :  { %10488 = vmatprep.mubr.msk.bf16.mxu1 %vm11447_vm0, %v13009_v55 }
 0x66b   :  { %10489 = vmatmul.mubr.bf16.gmra.mxu1 %v6161_v5 }
 0x66c   :  { %10492 = vmatprep.mubr.msk.bf16.mxu1 %vm11447_vm0, %v13009_v55 }
 0x673   :  { %v5031_v2 = vpop.f32.mrf.mxu1  ;;  %10493 = vmatmul.mubr.bf16.gmra.mxu1 %v6162_v43 }
 0x674   :  { %v5151_v54 = vpop.f32.mrf.mxu0  ;;  %10548 = vmatprep.mubr.msk.bf16.mxu1 %vm11447_vm0, %v13009_v55 }
 0x675   :  { %v5152_v10 = vadd.f32 %v5151_v54, %v5031_v2  ;;  %v10190_v61 = vpop.f32.mrf.mxu1 }
 0x676   :  { %v10226_v12 = vpop.f32.mrf.mxu0 }
 0x677   :  { %v5034_v59 = vpop.f32.mrf.mxu1 }
 0x678   :  { %v5154_v11 = vpop.f32.mrf.mxu0 }
 0x679   :  { %v5155_v27 = vadd.f32 %v5154_v11, %v5034_v59  ;;  %v10191_v23 = vpop.f32.mrf.mxu1 }
 0x67a   :  { %v10227_v58 = vpop.f32.mrf.mxu0 }
 0x67b   :  { %v5039_v60 = vpop.f32.mrf.mxu1 }
 0x67c   :  { %v5159_v14 = vpop.f32.mrf.mxu0 }
 0x67d   :  { %v5160_v62 = vadd.f32 %v5159_v14, %v5039_v60  ;;  %v10194_v20 = vpop.f32.mrf.mxu1 }
 0x67e   :  { %v10230_v36 = vpop.f32.mrf.mxu0 }
 0x67f   :  { %v5042_v28 = vpop.f32.mrf.mxu1 }
 0x680   :  { %v5162_v8 = vpop.f32.mrf.mxu0 }
 0x681   :  { %v5163_v57 = vadd.f32 %v5162_v8, %v5042_v28  ;;  %v10195_v63 = vpop.f32.mrf.mxu1 }
 0x682   :  { %v10231_v19 = vpop.f32.mrf.mxu0 }
 0x683   :  { %v5047_v33 = vpop.f32.mrf.mxu1 }
 0x684   :  { %v5167_v1 = vpop.f32.mrf.mxu0 }
 0x685   :  { %v5168_v38 = vadd.f32 %v5167_v1, %v5047_v33  ;;  %v10198_v49 = vpop.f32.mrf.mxu1 }
 0x686   :  { %v10234_v56 = vpop.f32.mrf.mxu0 }
 0x687   :  { %v5050_v47 = vpop.f32.mrf.mxu1 }
 0x688   :  { %v5170_v52 = vpop.f32.mrf.mxu0 }
 0x689   :  { %v5171_v51 = vadd.f32 %v5170_v52, %v5050_v47  ;;  %v10199_v45 = vpop.f32.mrf.mxu1 }
 0x68a   :  { %v10235_v30 = vpop.f32.mrf.mxu0 }
 0x68b   :  { %v5055_v39 = vpop.f32.mrf.mxu1 }
 0x68c   :  { %v5175_v6 = vpop.f32.mrf.mxu0 }
 0x68d   :  { %v5176_v21 = vadd.f32 %v5175_v6, %v5055_v39  ;;  %v10202_v24 = vpop.f32.mrf.mxu1 }
 0x68e   :  { %v10238_v41 = vpop.f32.mrf.mxu0 }
 0x68f   :  { %v5058_v18 = vpop.f32.mrf.mxu1 }
 0x690   :  { %v5178_v3 = vpop.f32.mrf.mxu0 }
 0x691   :  { %v5179_v53 = vadd.f32 %v5178_v3, %v5058_v18  ;;  %v10203_v15 = vpop.f32.mrf.mxu1 }
 0x692   :  { %v10239_v9 = vpop.f32.mrf.mxu0 }
 0x693   :  { %v5063_v32 = vpop.f32.mrf.mxu1 }
 0x694   :  { %v5183_v42 = vpop.f32.mrf.mxu0 }
 0x695   :  { %v5184_v5 = vadd.f32 %v5183_v42, %v5063_v32  ;;  %v10206_v31 = vpop.f32.mrf.mxu1 }
 0x696   :  { %v10242_v43 = vpop.f32.mrf.mxu0 }
 0x697   :  { %v5066_v2 = vpop.f32.mrf.mxu1 }
 0x698   :  { %v5186_v54 = vpop.f32.mrf.mxu0 }
 0x699   :  { %v10207_v61 = vpop.f32.mrf.mxu1 }
 0x69a   :  { %v10243_v12 = vpop.f32.mrf.mxu0 }
 0x69b   :  { %v5302_v59 = vpop.f32.mrf.mxu1 }
 0x69c   :  { %v5340_v11 = vadd.f32 %v5302_v59, %v5152_v10  ;;  %v5462_v23 = vpop.f32.mrf.mxu0 }
 0x69d   :  { %v10262_v58 = vpop.f32.mrf.mxu1 }
 0x69e   :  { %v5500_v60 = vadd.f32 %v5462_v23, %v5340_v11  ;;  %v10298_v14 = vpop.f32.mrf.mxu0 }
 0x69f   :  { %v5305_v20 = vpop.f32.mrf.mxu1 }
 0x6a0   :  { %v5341_v36 = vadd.f32 %v5305_v20, %v5155_v27  ;;  %v5465_v28 = vpop.f32.mrf.mxu0 }
 0x6a1   :  { %v10263_v8 = vpop.f32.mrf.mxu1 }
 0x6a2   :  { %v5501_v63 = vadd.f32 %v5465_v28, %v5341_v36  ;;  %v10299_v19 = vpop.f32.mrf.mxu0 }
 0x6a3   :  { %v5310_v33 = vpop.f32.mrf.mxu1 }
 0x6a4   :  { %v5342_v1 = vadd.f32 %v5310_v33, %v5160_v62  ;;  %v5470_v49 = vpop.f32.mrf.mxu0 }
 0x6a5   :  { %v10266_v56 = vpop.f32.mrf.mxu1 }
 0x6a6   :  { %v5502_v47 = vadd.f32 %v5470_v49, %v5342_v1  ;;  %v10302_v52 = vpop.f32.mrf.mxu0 }
 0x6a7   :  { %v5313_v45 = vpop.f32.mrf.mxu1 }
 0x6a8   :  { %v5343_v30 = vadd.f32 %v5313_v45, %v5163_v57  ;;  %v5473_v39 = vpop.f32.mrf.mxu0 }
 0x6a9   :  { %v10267_v10 = vpop.f32.mrf.mxu1 }
 0x6aa   :  { %v5503_v6 = vadd.f32 %v5473_v39, %v5343_v30  ;;  %v10303_v24 = vpop.f32.mrf.mxu0 }
 0x6ab   :  { %v5318_v41 = vpop.f32.mrf.mxu1 }
 0x6ac   :  { %v5344_v18 = vadd.f32 %v5318_v41, %v5168_v38  ;;  %v5478_v3 = vpop.f32.mrf.mxu0 }
 0x6ad   :  { %v10270_v27 = vpop.f32.mrf.mxu1 }
 0x6ae   :  { %v5504_v15 = vadd.f32 %v5478_v3, %v5344_v18  ;;  %v10306_v9 = vpop.f32.mrf.mxu0 }
 0x6af   :  { %v5321_v32 = vpop.f32.mrf.mxu1 }
 0x6b0   :  { %v5345_v42 = vadd.f32 %v5321_v32, %v5171_v51  ;;  %v5481_v31 = vpop.f32.mrf.mxu0 }
 0x6b1   :  { %v10271_v62 = vpop.f32.mrf.mxu1 }
 0x6b2   :  { %v5505_v43 = vadd.f32 %v5481_v31, %v5345_v42  ;;  %v10307_v2 = vpop.f32.mrf.mxu0 }
 0x6b3   :  { %v5326_v54 = vpop.f32.mrf.mxu1 }
 0x6b4   :  { %v5346_v61 = vadd.f32 %v5326_v54, %v5176_v21  ;;  %v5486_v12 = vpop.f32.mrf.mxu0 }
 0x6b5   :  { %v10274_v57 = vpop.f32.mrf.mxu1 }
 0x6b6   :  { %v5506_v59 = vadd.f32 %v5486_v12, %v5346_v61  ;;  %v10310_v11 = vpop.f32.mrf.mxu0 }
 0x6b7   :  { %v5329_v23 = vpop.f32.mrf.mxu1 }
 0x6b8   :  { %v5347_v58 = vadd.f32 %v5329_v23, %v5179_v53  ;;  %v5489_v14 = vpop.f32.mrf.mxu0 }
 0x6b9   :  { %v10275_v38 = vpop.f32.mrf.mxu1 }
 0x6ba   :  { %v5507_v20 = vadd.f32 %v5489_v14, %v5347_v58  ;;  %v10311_v36 = vpop.f32.mrf.mxu0 }
 0x6bb   :  { %v5334_v28 = vpop.f32.mrf.mxu1 }
 0x6bc   :  { %v5348_v8 = vadd.f32 %v5334_v28, %v5184_v5  ;;  %v5494_v19 = vpop.f32.mrf.mxu0 }
 0x6bd   :  { %v10278_v51 = vpop.f32.mrf.mxu1 }
 0x6be   :  { %v5508_v33 = vadd.f32 %v5494_v19, %v5348_v8  ;;  %v10314_v1 = vpop.f32.mrf.mxu0 }
 0x6bf   :  { %v5337_v49 = vpop.f32.mrf.mxu1 }
 0x6c0   :  { %v5497_v56 = vpop.f32.mrf.mxu0 }
 0x6c1   :  { %v10279_v52 = vpop.f32.mrf.mxu1 }
 0x6c2   :  { %v10315_v21 = vpop.f32.mrf.mxu0 }
 0x6c3   :  { %v5622_v45 = vpop.f32.mrf.mxu1 }
 0x6c4   :  { %v5660_v30 = vadd.f32 %v5622_v45, %v5500_v60  ;;  %v5782_v39 = vpop.f32.mrf.mxu0 }
 0x6c5   :  { %v10334_v10 = vpop.f32.mrf.mxu1 }
 0x6c6   :  { %v13073_v24 = vadd.f32 %v5782_v39, %v5660_v30  ;;  %v10370_v53 = vpop.f32.mrf.mxu0 }
 0x6c7   :  { %v5625_v41 = vpop.f32.mrf.mxu1 }
 0x6c8   :  { %v5661_v18 = vadd.f32 %v5625_v41, %v5501_v63  ;;  %v5785_v3 = vpop.f32.mrf.mxu0 }
 0x6c9   :  { %v10335_v27 = vpop.f32.mrf.mxu1 }
 0x6ca   :  { %v13075_v5 = vadd.f32 %v5785_v3, %v5661_v18  ;;  %v10371_v9 = vpop.f32.mrf.mxu0 }
 0x6cb   :  { %v5630_v32 = vpop.f32.mrf.mxu1  ;;  %v11182_v9 = vld [vmem:[#allocation6 + $0x978] sm:$0xff]  }
 0x6cc   :  { %v5662_v42 = vadd.f32 %v5630_v32, %v5502_v47  ;;  %v5790_v31 = vpop.f32.mrf.mxu0  ;;  %v11183_v32 = vld [vmem:[#allocation6 + $0x938] sm:$0xff]   ;;  %10497 = vmatpush3.bf16.msra.mxu0 %v11182_v9 }
 0x6cd   :  { %v10338_v62 = vpop.f32.mrf.mxu1  ;;  %10533 = vmatpush3.bf16.msra.mxu1 %v11183_v32  ;;  %10498 = vmatprep.subr.bf16.mxu0 %v13009_v55 }
 0x6ce   :  { %v13077_v2 = vadd.f32 %v5790_v31, %v5662_v42  ;;  %v10374_v54 = vpop.f32.mrf.mxu0  ;;  %10534 = vmatprep.subr.bf16.mxu1 %v13009_v55 }
 0x6cf   :  { %v5633_v60 = vpop.f32.mrf.mxu1  ;;  %v11184_v54 = vld [vmem:[#allocation6 + $0x970] sm:$0xff]  }
 0x6d0   :  { %v5663_v61 = vadd.f32 %v5633_v60, %v5503_v6  ;;  %v5793_v12 = vpop.f32.mrf.mxu0  ;;  %v11185_v60 = vld [vmem:[#allocation6 + $0x930] sm:$0xff]   ;;  %10499 = vmatpush3.bf16.msra.mxu0 %v11184_v54 }
 0x6d1   :  { %v10339_v57 = vpop.f32.mrf.mxu1  ;;  %10535 = vmatpush3.bf16.msra.mxu1 %v11185_v60  ;;  %10500 = vmatprep.subr.bf16.mxu0 %v13009_v55 }
 0x6d2   :  { %v13079_v11 = vadd.f32 %v5793_v12, %v5663_v61  ;;  %v10375_v23 = vpop.f32.mrf.mxu0  ;;  %10536 = vmatprep.subr.bf16.mxu1 %v13009_v55  ;;  %v11186_v57 = vld [vmem:[#allocation6 + $0x968] sm:$0xff]  }
 0x6d3   :  { %v5638_v63 = vpop.f32.mrf.mxu1  ;;  %v11187_v23 = vld [vmem:[#allocation6 + $0x928] sm:$0xff]  }
 0x6d4   :  { %v5664_v58 = vadd.f32 %v5638_v63, %v5504_v15  ;;  %v5798_v14 = vpop.f32.mrf.mxu0  ;;  %10501 = vmatpush3.bf16.msra.mxu0 %v11186_v57 }
 0x6d5   :  { %v10342_v38 = vpop.f32.mrf.mxu1  ;;  %10537 = vmatpush3.bf16.msra.mxu1 %v11187_v23  ;;  %10502 = vmatprep.subr.bf16.mxu0 %v13009_v55 }
 0x6d6   :  { %v13081_v36 = vadd.f32 %v5798_v14, %v5664_v58  ;;  %v10378_v28 = vpop.f32.mrf.mxu0  ;;  %v11188_v38 = vld [vmem:[#allocation6 + $0x960] sm:$0xff]   ;;  %10538 = vmatprep.subr.bf16.mxu1 %v13009_v55 }
 0x6d7   :  { %v5641_v47 = vpop.f32.mrf.mxu1  ;;  %v11189_v28 = vld [vmem:[#allocation6 + $0x920] sm:$0xff]  }
 0x6d8   :  { %v5665_v8 = vadd.f32 %v5641_v47, %v5505_v43  ;;  %v5801_v19 = vpop.f32.mrf.mxu0  ;;  %10503 = vmatpush3.bf16.msra.mxu0 %v11188_v38 }
 0x6d9   :  { %v10343_v51 = vpop.f32.mrf.mxu1  ;;  %10539 = vmatpush3.bf16.msra.mxu1 %v11189_v28  ;;  %10504 = vmatprep.subr.bf16.mxu0 %v13009_v55 }
 0x6da   :  { %v13083_v1 = vadd.f32 %v5801_v19, %v5665_v8  ;;  %v10379_v49 = vpop.f32.mrf.mxu0  ;;  %10540 = vmatprep.subr.bf16.mxu1 %v13009_v55 }
 0x6db   :  { %v5646_v6 = vpop.f32.mrf.mxu1  ;;  %v11190_v49 = vld [vmem:[#allocation6 + $0x958] sm:$0xff]  }
 0x6dc   :  { %v5666_v56 = vadd.f32 %v5646_v6, %v5506_v59  ;;  %v5806_v52 = vpop.f32.mrf.mxu0  ;;  %v11191_v6 = vld [vmem:[#allocation6 + $0x918] sm:$0xff]   ;;  %10505 = vmatpush3.bf16.msra.mxu0 %v11190_v49 }
 0x6dd   :  { %v10346_v21 = vpop.f32.mrf.mxu1  ;;  %10541 = vmatpush3.bf16.msra.mxu1 %v11191_v6  ;;  %10506 = vmatprep.subr.bf16.mxu0 %v13009_v55 }
 0x6de   :  { %v13085_v45 = vadd.f32 %v5806_v52, %v5666_v56  ;;  %v10382_v30 = vpop.f32.mrf.mxu0  ;;  %10542 = vmatprep.subr.bf16.mxu1 %v13009_v55 }
 0x6df   :  { %v5649_v15 = vpop.f32.mrf.mxu1 }
 0x6e0   :  { %v5667_v39 = vadd.f32 %v5649_v15, %v5507_v20  ;;  %v5809_v10 = vpop.f32.mrf.mxu0  ;;  %v11192_v15 = vld [vmem:[#allocation6 + $0x950] sm:$0xff]  }
 0x6e1   :  { %v10347_v53 = vpop.f32.mrf.mxu1  ;;  %10507 = vmatpush3.bf16.msra.mxu0 %v11192_v15 }
 0x6e2   :  { %v13087_v41 = vadd.f32 %v5809_v10, %v5667_v39  ;;  %v10383_v18 = vpop.f32.mrf.mxu0  ;;  %v11193_v39 = vld [vmem:[#allocation6 + $0x910] sm:$0xff]   ;;  %10508 = vmatprep.subr.bf16.mxu0 %v13009_v55 }
 0x6e3   :  { %v5654_v43 = vpop.f32.mrf.mxu1  ;;  %10543 = vmatpush3.bf16.msra.mxu1 %v11193_v39 }
 0x6e4   :  { %v5668_v3 = vadd.f32 %v5654_v43, %v5508_v33  ;;  %v5814_v27 = vpop.f32.mrf.mxu0  ;;  %10544 = vmatprep.subr.bf16.mxu1 %v13009_v55 }
 0x6e5   :  { %v10350_v42 = vpop.f32.mrf.mxu1 }
 0x6e6   :  { %v13089_v31 = vadd.f32 %v5814_v27, %v5668_v3  ;;  %v10386_v59 = vpop.f32.mrf.mxu0  ;;  %v11194_v3 = vld [vmem:[#allocation6 + $0x948] sm:$0xff]  }
 0x6e7   :  { %v5657_v62 = vpop.f32.mrf.mxu1  ;;  %v11195_v27 = vld [vmem:[#allocation6 + $0x908] sm:$0xff]   ;;  %10509 = vmatpush3.bf16.msra.mxu0 %v11194_v3 }
 0x6e8   :  { %v5817_v20 = vpop.f32.mrf.mxu0  ;;  %10545 = vmatpush3.bf16.msra.mxu1 %v11195_v27  ;;  %v11196_v62 = vld [vmem:[#allocation6 + $0x940] sm:$0xff]   ;;  %10510 = vmatprep.subr.bf16.mxu0 %v13009_v55 }
 0x6e9   :  { %v10351_v61 = vpop.f32.mrf.mxu1  ;;  %v11197_v20 = vld [vmem:[#allocation6 + $0x900] sm:$0xff]   ;;  %10546 = vmatprep.subr.bf16.mxu1 %v13009_v55 }
 0x6ea   :  { %v10387_v12 = vpop.f32.mrf.mxu0 }
 0x6eb   :  { %v13093_v33 = vpop.f32.mrf.mxu1  ;;  %10511 = vmatpush3.bf16.msra.mxu0 %v11196_v62 }
 0x6ec   :  { %v13097_v63 = vpop.f32.mrf.mxu0  ;;  %10547 = vmatpush3.bf16.msra.mxu1 %v11197_v20  ;;  %10568 = vmatprep.subr.bf16.mxu0 %v13009_v55 }
 0x6ed   :  { %v10406_v58 = vpop.f32.mrf.mxu1  ;;  %10604 = vmatprep.subr.bf16.mxu1 %v13009_v55 }
 0x6ee   :  { %v10442_v14 = vpop.f32.mrf.mxu0 }
 0x6ef   :  { %v13099_v47 = vpop.f32.mrf.mxu1 }
 0x6f0   :  { %v13103_v8 = vpop.f32.mrf.mxu0  ;;  %v5981_v3 = vadd.f32 %v13099_v47, %v13075_v5 }
 0x6f1   :  { %v10407_v19 = vpop.f32.mrf.mxu1 }
 0x6f2   :  { %v10443_v51 = vpop.f32.mrf.mxu0  ;;  %v6141_v20 = vadd.f32 %v13103_v8, %v5981_v3 }
 0x6f3   :  { %v13105_v56 = vpop.f32.mrf.mxu1 }
 0x6f4   :  { %v13109_v52 = vpop.f32.mrf.mxu0 }
 0x6f5   :  { %v10410_v21 = vpop.f32.mrf.mxu1 }
 0x6f6   :  { %v10446_v30 = vpop.f32.mrf.mxu0 }
 0x6f7   :  { %v5953_v10 = vpop.f32.mrf.mxu1  ;;  %v5980_v30 = vadd.f32 %v13093_v33, %v13073_v24 }
 0x6f8   :  { %v13113_v53 = vpop.f32.mrf.mxu0 }
 0x6f9   :  { %v10411_v18 = vpop.f32.mrf.mxu1 }
 0x6fa   :  { %v10447_v43 = vpop.f32.mrf.mxu0 }
 0x6fb   :  { %v5958_v9 = vpop.f32.mrf.mxu1  ;;  %v6140_v43 = vadd.f32 %v13097_v63, %v5980_v30  ;;  %v5983_v63 = vadd.f32 %v5953_v10, %v13079_v11 }
 0x6fc   :  { %v13117_v32 = vpop.f32.mrf.mxu0  ;;  %v5984_v10 = vadd.f32 %v5958_v9, %v13081_v36 }
 0x6fd   :  { %v10414_v42 = vpop.f32.mrf.mxu1  ;;  %v6143_v11 = vadd.f32 %v13113_v53, %v5983_v63 }
 0x6fe   :  { %v10450_v59 = vpop.f32.mrf.mxu0  ;;  %v6144_v53 = vadd.f32 %v13117_v32, %v5984_v10 }
 0x6ff   :  { %v5961_v54 = vpop.f32.mrf.mxu1 }
 0x700   :  { %v13121_v60 = vpop.f32.mrf.mxu0 }
 0x701   :  { %v10415_v61 = vpop.f32.mrf.mxu1 }
 0x702   :  { %v10451_v12 = vpop.f32.mrf.mxu0  ;;  %v5982_v61 = vadd.f32 %v13105_v56, %v13077_v2 }
 0x703   :  { %v5966_v57 = vpop.f32.mrf.mxu1 }
 0x704   :  { %v13125_v23 = vpop.f32.mrf.mxu0  ;;  %v6142_v5 = vadd.f32 %v13109_v52, %v5982_v61 }
 0x705   :  { %v10418_v58 = vpop.f32.mrf.mxu1 }
 0x706   :  { %v10454_v14 = vpop.f32.mrf.mxu0 }
 0x707   :  { %v13127_v38 = vpop.f32.mrf.mxu1 }
 0x708   :  { %v13129_v28 = vpop.f32.mrf.mxu0 }
 0x709   :  { %v10419_v19 = vpop.f32.mrf.mxu1 }
 0x70a   :  { %v10455_v51 = vpop.f32.mrf.mxu0 }
 0x70b   :  { %v13131_v49 = vpop.f32.mrf.mxu1 }
 0x70c   :  { %v13133_v6 = vpop.f32.mrf.mxu0 }
 0x70d   :  { %v10422_v21 = vpop.f32.mrf.mxu1 }
 0x70e   :  { %v10458_v15 = vpop.f32.mrf.mxu0 }
 0x70f   :  { %v5977_v55 = vpop.f32.mrf.mxu1 }
 0x710   :  { %v6137_v39 = vpop.f32.mrf.mxu0 }
 0x711   :  { %v10423_v18 = vpop.f32.mrf.mxu1 }
 0x712   :  { %v10459_v27 = vpop.f32.mrf.mxu0 }
 0x713   :  { %v6262_v42 = vpop.f32.mrf.mxu1  ;;  %v5985_v27 = vadd.f32 %v5961_v54, %v13083_v1  ;;  %v5986_v1 = vadd.f32 %v5966_v57, %v13085_v45 }
 0x714   :  { %v13140_v59 = vadd.f32 %v6262_v42, %v6140_v43 }
 0x715   :  { %v10478_v62 = vpop.f32.mrf.mxu1  ;;  %v6145_v63 = vadd.f32 %v13121_v60, %v5985_v27 }
 0x716   :  { %v6332_v33 = vmul.f32 %v13140_v59, %v13140_v59  ;;  %v6309_v47 = vmul.f32 %v13140_v59, %v11882_v25 }
 0x717   :  { %v6265_v24 = vpop.f32.mrf.mxu1 }
 0x718   :  { %v13147_v12 = vadd.f32 %v6265_v24, %v6141_v20  ;;  %v6341_v14 = vmul.f32 %v6332_v33, %v11882_v25 }
 0x719   :  { %v10479_v58 = vpop.f32.mrf.mxu1 }
 0x71a   :  { %v6310_v8 = vmul.f32 %v13147_v12, %v11892_v13  ;;  %v6333_v2 = vmul.f32 %v13147_v12, %v13147_v12 }
 0x71b   :  { %v6270_v56 = vpop.f32.mrf.mxu1 }
 0x71c   :  { %v6318_v19 = vadd.f32 %v6310_v8, %v6309_v47  ;;  %v6342_v51 = vmul.f32 %v6333_v2, %v11892_v13  ;;  %v13159_v21 = vadd.f32 %v6270_v56, %v6142_v5 }
 0x71d   :  { %v10482_v52 = vpop.f32.mrf.mxu1 }
 0x71e   :  { %v6350_v30 = vadd.f32 %v6342_v51, %v6341_v14  ;;  %v6311_v15 = vmul.f32 %v13159_v21, %v11900_v22  ;;  %v6334_v55 = vmul.f32 %v13159_v21, %v13159_v21  ;;  %v5987_v14 = vadd.f32 %v13127_v38, %v13087_v41 }
 0x71f   :  { %v6273_v39 = vpop.f32.mrf.mxu1  ;;  %v5988_v41 = vadd.f32 %v13131_v49, %v13089_v31 }
 0x720   :  { %v6319_v18 = vadd.f32 %v6318_v19, %v6311_v15  ;;  %v6343_v43 = vmul.f32 %v6334_v55, %v11900_v22  ;;  %v13168_v3 = vadd.f32 %v6273_v39, %v6143_v11  ;;  %v6146_v19 = vadd.f32 %v13125_v23, %v5986_v1 }
 0x721   :  { %v10483_v42 = vpop.f32.mrf.mxu1  ;;  %v6147_v15 = vadd.f32 %v13129_v28, %v5987_v14 }
 0x722   :  { %v6351_v62 = vadd.f32 %v6350_v30, %v6343_v43  ;;  %v6312_v36 = vmul.f32 %v13168_v3, %v11915_v50  ;;  %v6335_v9 = vmul.f32 %v13168_v3, %v13168_v3 }
 0x723   :  { %v6278_v20 = vpop.f32.mrf.mxu1 }
 0x724   :  { %v6320_v61 = vadd.f32 %v6319_v18, %v6312_v36  ;;  %v6344_v24 = vmul.f32 %v6335_v9, %v11915_v50  ;;  %v13177_v33 = vadd.f32 %v6278_v20, %v6144_v53 }
 0x725   :  { %v10486_v58 = vpop.f32.mrf.mxu1 }
 0x726   :  { %v6352_v54 = vadd.f32 %v6351_v62, %v6344_v24  ;;  %v6313_v32 = vmul.f32 %v13177_v33, %v11925_v37  ;;  %v6336_v5 = vmul.f32 %v13177_v33, %v13177_v33  ;;  %v6148_v62 = vadd.f32 %v13133_v6, %v5988_v41 }
 0x727   :  { %v6281_v47 = vpop.f32.mrf.mxu1 }
 0x728   :  { %v6321_v8 = vadd.f32 %v6320_v61, %v6313_v32  ;;  %v6345_v2 = vmul.f32 %v6336_v5, %v11925_v37  ;;  %v13186_v56 = vadd.f32 %v6281_v47, %v6145_v63 }
 0x729   :  { %v10487_v60 = vpop.f32.mrf.mxu1 }
 0x72a   :  { %v6353_v45 = vadd.f32 %v6352_v54, %v6345_v2  ;;  %v6314_v57 = vmul.f32 %v13186_v56, %v11938_v29  ;;  %v6337_v51 = vmul.f32 %v13186_v56, %v13186_v56 }
 0x72b   :  { %v6286_v11 = vpop.f32.mrf.mxu1 }
 0x72c   :  { %v6322_v52 = vadd.f32 %v6321_v8, %v6314_v57  ;;  %v6346_v10 = vmul.f32 %v6337_v51, %v11938_v29  ;;  %v13196_v30 = vadd.f32 %v6286_v11, %v6146_v19 }
 0x72d   :  { %v10490_v55 = vpop.f32.mrf.mxu1 }
 0x72e   :  { %v6354_v23 = vadd.f32 %v6353_v45, %v6346_v10  ;;  %v6315_v38 = vmul.f32 %v13196_v30, %v11949_v48  ;;  %v6338_v39 = vmul.f32 %v13196_v30, %v13196_v30 }
 0x72f   :  { %v6289_v18 = vpop.f32.mrf.mxu1 }
 0x730   :  { %v6323_v43 = vadd.f32 %v6322_v52, %v6315_v38  ;;  %v6347_v27 = vmul.f32 %v6338_v39, %v11949_v48  ;;  %v6307_v42 = vadd.f32 %v6289_v18, %v6147_v15 }
 0x731   :  { %v10491_v53 = vpop.f32.mrf.mxu1 }
 0x732   :  { %v6355_v28 = vadd.f32 %v6354_v23, %v6347_v27  ;;  %v6316_v36 = vmul.f32 %v6307_v42, %v11958_v34  ;;  %v6339_v9 = vmul.f32 %v6307_v42, %v6307_v42 }
 0x733   :  { %v6294_v31 = vpop.f32.mrf.mxu1 }
 0x734   :  { %v6324_v49 = vadd.f32 %v6323_v43, %v6316_v36  ;;  %v6348_v20 = vmul.f32 %v6339_v9, %v11958_v34  ;;  %v6308_v61 = vadd.f32 %v6294_v31, %v6148_v62 }
 0x735   :  { %v10494_v24 = vpop.f32.mrf.mxu1 }
 0x736   :  { %v6356_v63 = vadd.f32 %v6355_v28, %v6348_v20  ;;  %v6317_v58 = vmul.f32 %v6308_v61, %v11963_v46  ;;  %v6340_v1 = vmul.f32 %v6308_v61, %v6308_v61 }
 0x737   :  { %v6297_v54 = vpop.f32.mrf.mxu1 }
 0x738   :  { %v6325_v32 = vadd.f32 %v6324_v49, %v6317_v58  ;;  %v6349_v5 = vmul.f32 %v6340_v1, %v11963_v46  ;;  %v8511_v54 = vld [vmem:[#allocation9 + $0x3] ss:$0 sm:$0xff] }
 0x739   :  { %v10495_v47 = vpop.f32.mrf.mxu1 }
 0x73a   :  { %v6326_v6 = vrot.slane %v6325_v32, 4  ;;  %v6357_v8 = vadd.f32 %v6356_v63, %v6349_v5 }
 0x73c   :  { %v6327_v2 = vadd.f32 %v6326_v6, %v6325_v32  ;;  %v6358_v14 = vrot.slane %v6357_v8, 4 }
 0x73e   :  { %v6328_v60 = vrot.slane %v6327_v2, 2  ;;  %v6359_v19 = vadd.f32 %v6358_v14, %v6357_v8 }
 0x740   :  { %v6329_v45 = vadd.f32 %v6328_v60, %v6327_v2  ;;  %v6360_v57 = vrot.slane %v6359_v19, 2 }
 0x742   :  { %v6330_v51 = vrot.slane %v6329_v45, 1  ;;  %v6361_v11 = vadd.f32 %v6360_v57, %v6359_v19 }
 0x744   :  { %v6331_v52 = vadd.f32 %v6330_v51, %v6329_v45  ;;  %v6362_v10 = vrot.slane %v6361_v11, 1 }
 0x746   :  { %v6363_v15 = vadd.f32 %v6362_v10, %v6361_v11  ;;  %v6364_v55 = vmul.f32 0.03125, %v6331_v52 }
 0x748   :  { %v6365_v41 = vmul.f32 0.03125, %v6363_v15  ;;  %v6366_v23 = vmul.f32 %v6364_v55, %v6364_v55  ;;  %v6369_v38 = vsub.f32 %v13140_v59, %v6364_v55  ;;  %v6370_v39 = vsub.f32 %v13147_v12, %v6364_v55  ;;  %v8510_v59 = vld [vmem:[#allocation8 + $0x3] ss:$0 sm:$0xff] }
 0x749   :  { %v6371_v18 = vsub.f32 %v13159_v21, %v6364_v55  ;;  %v6372_v43 = vsub.f32 %v13168_v3, %v6364_v55  ;;  %v6373_v27 = vsub.f32 %v13177_v33, %v6364_v55  ;;  %v6374_v53 = vsub.f32 %v13186_v56, %v6364_v55 }
 0x74a   :  { %v6367_v62 = vsub.f32 %v6365_v41, %v6366_v23  ;;  %v6375_v28 = vsub.f32 %v13196_v30, %v6364_v55  ;;  %v6376_v36 = vsub.f32 %v6307_v42, %v6364_v55  ;;  %v6377_v9 = vsub.f32 %v6308_v61, %v6364_v55 }
 0x74c   :  { %v6368_v31 = vmax.f32 %v6367_v62, 0.0 }
 0x74e   :  { %v6378_v49 = vadd.f32 1e-05, %v6368_v31 }
 0x750   :  { %11260 = vrsqrt.f32 %v6378_v49 }
 0x75d   :  { %v11261_v20 = vpop.eup %11260 }
 0x75e   :  { %v6380_v24 = vmul.f32 %v11261_v20, %v6369_v38  ;;  %v6381_v12 = vmul.f32 %v11261_v20, %v6370_v39  ;;  %v6382_v63 = vmul.f32 %v11261_v20, %v6371_v18  ;;  %v6383_v21 = vmul.f32 %v11261_v20, %v6372_v43 }
 0x75f   :  { %v6384_v58 = vmul.f32 %v11261_v20, %v6373_v27  ;;  %v6385_v3 = vmul.f32 %v11261_v20, %v6374_v53  ;;  %v6386_v1 = vmul.f32 %v11261_v20, %v6375_v28  ;;  %v6387_v33 = vmul.f32 %v11261_v20, %v6376_v36 }
 0x760   :  { %v6388_v56 = vmul.f32 %v11261_v20, %v6377_v9  ;;  %v6397_v32 = vmul.f32 %v8510_v59, %v6380_v24  ;;  %v6398_v5 = vmul.f32 %v8510_v59, %v6381_v12  ;;  %v6399_v30 = vmul.f32 %v8510_v59, %v6382_v63 }
 0x761   :  { %v6400_v42 = vmul.f32 %v8510_v59, %v6383_v21  ;;  %v6401_v61 = vmul.f32 %v8510_v59, %v6384_v58  ;;  %v6402_v47 = vmul.f32 %v8510_v59, %v6385_v3  ;;  %v6403_v6 = vmul.f32 %v8510_v59, %v6386_v1 }
 0x762   :  { %v6404_v8 = vmul.f32 %v8510_v59, %v6387_v33  ;;  %v6405_v2 = vmul.f32 %v8510_v59, %v6388_v56  ;;  %v6414_v14 = vadd.f32 %v8511_v54, %v6397_v32  ;;  %v6415_v60 = vadd.f32 %v8511_v54, %v6398_v5  ;;  %v11198_v56 = vld [vmem:[#allocation6 + $0x9b8] sm:$0xff]  }
 0x763   :  { %v6416_v19 = vadd.f32 %v8511_v54, %v6399_v30  ;;  %v6417_v45 = vadd.f32 %v8511_v54, %v6400_v42  ;;  %v6418_v57 = vadd.f32 %v8511_v54, %v6401_v61  ;;  %v6419_v51 = vadd.f32 %v8511_v54, %v6402_v47  ;;  %v11199_v42 = vld [vmem:[#allocation6 + $0x9f8] sm:$0xff]  }
 0x764   :  { %v6420_v11 = vadd.f32 %v8511_v54, %v6403_v6  ;;  %v6421_v52 = vadd.f32 %v8511_v54, %v6404_v8  ;;  %v6422_v10 = vadd.f32 %v8511_v54, %v6405_v2  ;;  %v6423_v15 = vmax.f32 %v6414_v14, 0.0  ;;  %v13275_v8 = vld [vmem:[#allocation2] sm:$0xff] }
 0x765   :  { %v6424_v55 = vmax.f32 %v6415_v60, 0.0  ;;  %v6425_v41 = vmax.f32 %v6416_v19, 0.0  ;;  %v6426_v23 = vmax.f32 %v6417_v45, 0.0  ;;  %v6427_v38 = vmax.f32 %v6418_v57, 0.0  ;;  %v11200_v60 = vld [vmem:[#allocation6 + $0x9b0] sm:$0xff]  }
 0x766   :  { %v6428_v39 = vmax.f32 %v6419_v51, 0.0  ;;  %v6429_v18 = vmax.f32 %v6420_v11, 0.0  ;;  %v6430_v43 = vmax.f32 %v6421_v52, 0.0  ;;  %v6431_v27 = vmax.f32 %v6422_v10, 0.0  ;;  %v11201_v52 = vld [vmem:[#allocation6 + $0x9f0] sm:$0xff]  }
 0x767   :  { %v13219_v53 = vmul.f32 %v6423_v15, %v11882_v25  ;;  %v13222_v62 = vmul.f32 %v6424_v55, %v11892_v13  ;;  %v13225_v28 = vmul.f32 %v6425_v41, %v11900_v22  ;;  %v13228_v36 = vmul.f32 %v6426_v23, %v11915_v50 }
 0x768   :  { %v13231_v9 = vmul.f32 %v6427_v38, %v11925_v37  ;;  %v13234_v31 = vmul.f32 %v6428_v39, %v11938_v29  ;;  %v13237_v49 = vmul.f32 %v6429_v18, %v11949_v48  ;;  %v13240_v20 = vmul.f32 %v6430_v43, %v11958_v34  ;;  %v11202_v38 = vld [vmem:[#allocation6 + $0x9a8] sm:$0xff]  }
 0x769   :  { %v13243_v59 = vmul.f32 %v6431_v27, %v11963_v46  ;;  %6441 = vst [vmem:[#allocation2 + $0x8] sm:$0xff] %v13219_v53  ;;  %6442 = vst [vmem:[#allocation2 + $0x10] sm:$0xff] %v13222_v62  ;;  %v7081_v24 = vpack.c.bf16 %v13222_v62, %v13219_v53  ;;  %v7082_v12 = vpack.c.bf16 %v13228_v36, %v13225_v28  ;;  %v11234_v53 = vld [vmem:[#allocation6 + $0xaa8] sm:$0xff]  }
 0x76a   :  { %6443 = vst [vmem:[#allocation2 + $0x18] sm:$0xff] %v13225_v28  ;;  %6444 = vst [vmem:[#allocation2 + $0x20] sm:$0xff] %v13228_v36  ;;  %v7083_v63 = vpack.c.bf16 %v13234_v31, %v13231_v9  ;;  %v7084_v21 = vpack.c.bf16 %v13240_v20, %v13237_v49  ;;  %v11235_v62 = vld [vmem:[#allocation6 + $0xae8] sm:$0xff]   ;;  %v11238_v28 = vld [vmem:[#allocation6 + $0xa98] sm:$0xff]  }
 0x76b   :  { %6445 = vst [vmem:[#allocation2 + $0x28] sm:$0xff] %v13231_v9  ;;  %6446 = vst [vmem:[#allocation2 + $0x30] sm:$0xff] %v13234_v31  ;;  %v11239_v36 = vld [vmem:[#allocation6 + $0xad8] sm:$0xff]   ;;  %v11242_v9 = vld [vmem:[#allocation6 + $0xa88] sm:$0xff]  }
 0x76c   :  { %6447 = vst [vmem:[#allocation2 + $0x38] sm:$0xff] %v13237_v49  ;;  %6448 = vst [vmem:[#allocation2 + $0x40] sm:$0xff] %v13240_v20  ;;  %v11243_v31 = vld [vmem:[#allocation6 + $0xac8] sm:$0xff]   ;;  %v7085_v20 = vpack.c.bf16 %v13243_v59, %v13243_v59 }
 0x76d   :  { %6449 = vst [vmem:[#allocation2 + $0x48] sm:$0xff] %v13243_v59 }
 0x770   :  { %v6481_v58 = vld [vmem:[#allocation2 + $0x2] sm:$0xff]  ;;  %v6482_v3 = vld [vmem:[#allocation2 + $0xa] sm:$0xff] }
 0x771   :  { %v6450_v1 = vld [vmem:[#allocation2 + $0x1] sm:$0xff]  ;;  %v6490_v33 = vpack.c.bf16 %v6482_v3, %v6481_v58  ;;  %v13262_v54 = vld [vmem:[#allocation2 + $0x9] sm:$0xff]  ;;  %v13265_v5 = vld [vmem:[#allocation2 + $0x11] sm:$0xff] }
 0x772   :  { %v6459_v32 = vpack.c.bf16 %v13262_v54, %v6450_v1  ;;  %v13267_v30 = vld [vmem:[#allocation2 + $0x19] sm:$0xff]  ;;  %v13269_v61 = vld [vmem:[#allocation2 + $0x21] sm:$0xff]  ;;  %v13271_v47 = vld [vmem:[#allocation2 + $0x29] sm:$0xff]  ;;  %v7241_v6 = vpack.c.bf16 %v13265_v5, %v13262_v54 }
 0x773   :  { %10513 = vmatmul.mubr.bf16.vlgmr.msra.gmra.mxu0 %v6490_v33  ;;  %v13279_v2 = vld [vmem:[#allocation2 + $0x31] sm:$0xff]  ;;  %v7242_v14 = vpack.c.bf16 %v13269_v61, %v13267_v30  ;;  %v13285_v19 = vld [vmem:[#allocation2 + $0x39] sm:$0xff]  ;;  %v13301_v39 = vld [vmem:[#allocation2 + $0x27] sm:$0xff]  ;;  %v6460_v27 = vpack.c.bf16 %v13267_v30, %v13265_v5 }
 0x774   :  { %10549 = vmatmul.mubr.bf16.vlgmr.msra.gmra.mxu1 %v6459_v32  ;;  %10516 = vmatprep.mubr.msk.bf16.mxu0 %vm11447_vm0, %v13275_v8  ;;  %v13287_v45 = vld [vmem:[#allocation2 + $0x41] sm:$0xff]  ;;  %v7243_v57 = vpack.c.bf16 %v13279_v2, %v13271_v47  ;;  %v6483_v51 = vld [vmem:[#allocation2 + $0x12] sm:$0xff]  ;;  %v6461_v32 = vpack.c.bf16 %v13271_v47, %v13269_v61  ;;  %v11241_v5 = vld [vmem:[#allocation6 + $0xad0] sm:$0xff]  }
 0x775   :  { %10552 = vmatprep.mubr.msk.bf16.mxu1 %vm11447_vm0, %v13275_v8  ;;  %10569 = vmatpush3.bf16.msra.mxu0 %v11198_v56  ;;  %v6484_v11 = vld [vmem:[#allocation2 + $0x1a] sm:$0xff]  ;;  %v13293_v10 = vld [vmem:[#allocation2 + $0xf] sm:$0xff]  ;;  %v7244_v15 = vpack.c.bf16 %v13287_v45, %v13285_v19  ;;  %v11203_v58 = vld [vmem:[#allocation6 + $0x9e8] sm:$0xff]  }
 0x776   :  { %10605 = vmatpush3.bf16.msra.mxu1 %v11199_v42  ;;  %10570 = vmatprep.subr.bf16.mxu0 %v13275_v8  ;;  %v13297_v55 = vld [vmem:[#allocation2 + $0x17] sm:$0xff]  ;;  %v13299_v41 = vld [vmem:[#allocation2 + $0x1f] sm:$0xff]  ;;  %v6491_v23 = vpack.c.bf16 %v6484_v11, %v6483_v51  ;;  %v13303_v18 = vld [vmem:[#allocation2 + $0x2f] sm:$0xff] }
 0x777   :  { %10606 = vmatprep.subr.bf16.mxu1 %v13275_v8  ;;  %v7721_v43 = vpack.c.bf16 %v13297_v55, %v13293_v10  ;;  %v13310_v3 = vld [vmem:[#allocation2 + $0x37] sm:$0xff]  ;;  %v7722_v1 = vpack.c.bf16 %v13301_v39, %v13299_v41  ;;  %v13315_v33 = vld [vmem:[#allocation2 + $0x3f] sm:$0xff]  ;;  %v13317_v56 = vld [vmem:[#allocation2 + $0x47] sm:$0xff] }
 0x778   :  { %v11204_v42 = vld [vmem:[#allocation6 + $0x9a0] sm:$0xff]   ;;  %v6485_v51 = vld [vmem:[#allocation2 + $0x22] sm:$0xff]  ;;  %v6486_v11 = vld [vmem:[#allocation2 + $0x2a] sm:$0xff] }
 0x779   :  { %10571 = vmatpush3.bf16.msra.mxu0 %v11200_v60  ;;  %v11211_v60 = vld [vmem:[#allocation6 + $0x9c8] sm:$0xff]   ;;  %v11237_v54 = vld [vmem:[#allocation6 + $0xae0] sm:$0xff]   ;;  %v7392_v61 = vld [vmem:[#allocation2 + $0xd] sm:$0xff] }
 0x77a   :  { %10607 = vmatpush3.bf16.msra.mxu1 %v11201_v52  ;;  %10572 = vmatprep.subr.bf16.mxu0 %v13275_v8  ;;  %v11205_v52 = vld [vmem:[#allocation6 + $0x9e0] sm:$0xff]   ;;  %v7240_v49 = vld [vmem:[#allocation2 + $0x49] sm:$0xff] }
 0x77b   :  { %10517 = vmatmul.mubr.bf16.gmra.mxu0 %v6491_v23  ;;  %10608 = vmatprep.subr.bf16.mxu1 %v13275_v8  ;;  %v6492_v23 = vpack.c.bf16 %v6486_v11, %v6485_v51  ;;  %v6488_v51 = vld [vmem:[#allocation2 + $0x3a] sm:$0xff]  ;;  %v11209_v11 = vld [vmem:[#allocation6 + $0x9d0] sm:$0xff]  }
 0x77c   :  { %10553 = vmatmul.mubr.bf16.gmra.mxu1 %v6460_v27  ;;  %10520 = vmatprep.mubr.msk.bf16.mxu0 %vm11447_vm0, %v13275_v8  ;;  %v11206_v27 = vld [vmem:[#allocation6 + $0x998] sm:$0xff]   ;;  %v11245_v30 = vld [vmem:[#allocation6 + $0xac0] sm:$0xff]  }
 0x77d   :  { %10556 = vmatprep.mubr.msk.bf16.mxu1 %vm11447_vm0, %v13275_v8  ;;  %10573 = vmatpush3.bf16.msra.mxu0 %v11202_v38  ;;  %v11207_v38 = vld [vmem:[#allocation6 + $0x9d8] sm:$0xff]  }
 0x77e   :  { %10609 = vmatpush3.bf16.msra.mxu1 %v11203_v58  ;;  %10574 = vmatprep.subr.bf16.mxu0 %v13275_v8  ;;  %v11208_v58 = vld [vmem:[#allocation6 + $0x990] sm:$0xff]   ;;  %v7393_v47 = vld [vmem:[#allocation2 + $0x15] sm:$0xff] }
 0x77f   :  { %10610 = vmatprep.subr.bf16.mxu1 %v13275_v8  ;;  %v7401_v59 = vpack.c.bf16 %v7393_v47, %v7392_v61  ;;  %v13665_v47 = vpack.c.bf16 %v13310_v3, %v13303_v18 }
 0x781   :  { %10575 = vmatpush3.bf16.msra.mxu0 %v11204_v42  ;;  %v6487_v42 = vld [vmem:[#allocation2 + $0x32] sm:$0xff] }
 0x782   :  { %10611 = vmatpush3.bf16.msra.mxu1 %v11205_v52  ;;  %10576 = vmatprep.subr.bf16.mxu0 %v13275_v8  ;;  %v6493_v52 = vpack.c.bf16 %v6488_v51, %v6487_v42  ;;  %v6463_v51 = vpack.c.bf16 %v13287_v45, %v13287_v45  ;;  %v11247_v45 = vld [vmem:[#allocation6 + $0xb30] sm:$0xff]  }
 0x783   :  { %10521 = vmatmul.mubr.bf16.gmra.mxu0 %v6492_v23  ;;  %10612 = vmatprep.subr.bf16.mxu1 %v13275_v8  ;;  %v11210_v23 = vld [vmem:[#allocation6 + $0x988] sm:$0xff]  }
 0x784   :  { %10557 = vmatmul.mubr.bf16.gmra.mxu1 %v6461_v32  ;;  %10524 = vmatprep.mubr.msk.bf16.mxu0 %vm11447_vm0, %v13275_v8  ;;  %v6462_v32 = vpack.c.bf16 %v13285_v19, %v13279_v2  ;;  %v7553_v2 = vld [vmem:[#allocation2 + $0x16] sm:$0xff] }
 0x785   :  { %10560 = vmatprep.mubr.msk.bf16.mxu1 %vm11447_vm0, %v13275_v8  ;;  %10577 = vmatpush3.bf16.msra.mxu0 %v11206_v27  ;;  %v11212_v27 = vld [vmem:[#allocation6 + $0x980] sm:$0xff]  }
 0x786   :  { %10613 = vmatpush3.bf16.msra.mxu1 %v11207_v38  ;;  %10578 = vmatprep.subr.bf16.mxu0 %v13275_v8  ;;  %v6489_v38 = vld [vmem:[#allocation2 + $0x42] sm:$0xff] }
 0x787   :  { %10614 = vmatprep.subr.bf16.mxu1 %v13275_v8  ;;  %v6494_v42 = vpack.c.bf16 %v6489_v38, %v6489_v38  ;;  %v11215_v38 = vld [vmem:[#allocation6 + $0xa78] sm:$0xff]  }
 0x789   :  { %10579 = vmatpush3.bf16.msra.mxu0 %v11208_v58  ;;  %v11213_v58 = vld [vmem:[#allocation6 + $0x9c0] sm:$0xff]  }
 0x78a   :  { %10615 = vmatpush3.bf16.msra.mxu1 %v11209_v11  ;;  %10580 = vmatprep.subr.bf16.mxu0 %v13275_v8  ;;  %v6753_v11 = vld [vmem:[#allocation2 + $0xb] sm:$0xff] }
 0x78b   :  { %10525 = vmatmul.mubr.bf16.gmra.mxu0 %v6493_v52  ;;  %10616 = vmatprep.subr.bf16.mxu1 %v13275_v8  ;;  %v6912_v52 = vld [vmem:[#allocation2 + $0x7] sm:$0xff] }
 0x78c   :  { %10561 = vmatmul.mubr.bf16.gmra.mxu1 %v6462_v32  ;;  %10528 = vmatprep.mubr.msk.bf16.mxu0 %vm11447_vm0, %v13275_v8  ;;  %v11214_v32 = vld [vmem:[#allocation6 + $0xa38] sm:$0xff]  }
 0x78d   :  { %10564 = vmatprep.mubr.msk.bf16.mxu1 %vm11447_vm0, %v13275_v8  ;;  %10581 = vmatpush3.bf16.msra.mxu0 %v11210_v23 }
 0x78e   :  { %10617 = vmatpush3.bf16.msra.mxu1 %v11211_v60  ;;  %10582 = vmatprep.subr.bf16.mxu0 %v13275_v8  ;;  %v6752_v60 = vld [vmem:[#allocation2 + $0x3] sm:$0xff] }
 0x78f   :  { %10618 = vmatprep.subr.bf16.mxu1 %v13275_v8  ;;  %v6761_v23 = vpack.c.bf16 %v6753_v11, %v6752_v60  ;;  %v11217_v60 = vld [vmem:[#allocation6 + $0xa70] sm:$0xff]  }
 0x791   :  { %10583 = vmatpush3.bf16.msra.mxu0 %v11212_v27  ;;  %v6921_v27 = vpack.c.bf16 %v13293_v10, %v6912_v52  ;;  %v11218_v52 = vld [vmem:[#allocation6 + $0xa28] sm:$0xff]   ;;  %v13666_v10 = vpack.c.bf16 %v13317_v56, %v13315_v33 }
 0x792   :  { %10619 = vmatpush3.bf16.msra.mxu1 %v11213_v58  ;;  %10640 = vmatprep.subr.bf16.mxu0 %v13275_v8  ;;  %v11216_v58 = vld [vmem:[#allocation6 + $0xa30] sm:$0xff]  }
 0x793   :  { %10529 = vmatmul.mubr.bf16.gmra.mxu0 %v6494_v42  ;;  %10676 = vmatprep.subr.bf16.mxu1 %v13275_v8  ;;  %v6754_v42 = vld [vmem:[#allocation2 + $0x13] sm:$0xff] }
 0x794   :  { %10565 = vmatmul.mubr.bf16.gmra.mxu1 %v6463_v51  ;;  %10584 = vmatprep.mubr.msk.bf16.mxu0 %vm11447_vm0, %v13275_v8  ;;  %v6755_v51 = vld [vmem:[#allocation2 + $0x1b] sm:$0xff] }
 0x795   :  { %10620 = vmatprep.mubr.msk.bf16.mxu1 %vm11447_vm0, %v13275_v8  ;;  %v6762_v11 = vpack.c.bf16 %v6755_v51, %v6754_v42  ;;  %v11221_v42 = vld [vmem:[#allocation6 + $0xa60] sm:$0xff]  }
 0x79b   :  { %10585 = vmatmul.mubr.bf16.vlgmr.msra.gmra.mxu0 %v6761_v23  ;;  %v6922_v23 = vpack.c.bf16 %v13299_v41, %v13297_v55  ;;  %v7720_v55 = vld [vmem:[#allocation2 + $0x4f] sm:$0xff] }
 0x79c   :  { %10621 = vmatmul.mubr.bf16.vlgmr.msra.gmra.mxu1 %v6921_v27  ;;  %10588 = vmatprep.mubr.msk.bf16.mxu0 %vm11447_vm0, %v13275_v8  ;;  %v11219_v27 = vld [vmem:[#allocation6 + $0xa68] sm:$0xff]   ;;  %v7725_v41 = vpack.c.bf16 %v7720_v55, %v7720_v55 }
 0x79d   :  { %10624 = vmatprep.mubr.msk.bf16.mxu1 %vm11447_vm0, %v13275_v8  ;;  %10641 = vmatpush3.bf16.msra.mxu0 %v11214_v32  ;;  %v11220_v32 = vld [vmem:[#allocation6 + $0xa20] sm:$0xff]  }
 0x79e   :  { %10677 = vmatpush3.bf16.msra.mxu1 %v11215_v38  ;;  %10642 = vmatprep.subr.bf16.mxu0 %v13275_v8  ;;  %v6756_v38 = vld [vmem:[#allocation2 + $0x23] sm:$0xff] }
 0x79f   :  { %10678 = vmatprep.subr.bf16.mxu1 %v13275_v8 }
 0x7a1   :  { %10643 = vmatpush3.bf16.msra.mxu0 %v11216_v58  ;;  %v6757_v58 = vld [vmem:[#allocation2 + $0x2b] sm:$0xff] }
 0x7a2   :  { %10679 = vmatpush3.bf16.msra.mxu1 %v11217_v60  ;;  %10644 = vmatprep.subr.bf16.mxu0 %v13275_v8  ;;  %v6763_v51 = vpack.c.bf16 %v6757_v58, %v6756_v38  ;;  %v11222_v60 = vld [vmem:[#allocation6 + $0xa18] sm:$0xff]   ;;  %v11225_v38 = vld [vmem:[#allocation6 + $0xa50] sm:$0xff]  }
 0x7a3   :  { %10589 = vmatmul.mubr.bf16.gmra.mxu0 %v6762_v11  ;;  %10680 = vmatprep.subr.bf16.mxu1 %v13275_v8  ;;  %v6923_v11 = vpack.c.bf16 %v13303_v18, %v13301_v39 }
 0x7a4   :  { %10625 = vmatmul.mubr.bf16.gmra.mxu1 %v6922_v23  ;;  %10592 = vmatprep.mubr.msk.bf16.mxu0 %vm11447_vm0, %v13275_v8  ;;  %v11223_v23 = vld [vmem:[#allocation6 + $0xa58] sm:$0xff]  }
 0x7a5   :  { %10628 = vmatprep.mubr.msk.bf16.mxu1 %vm11447_vm0, %v13275_v8  ;;  %10645 = vmatpush3.bf16.msra.mxu0 %v11218_v52  ;;  %v11224_v52 = vld [vmem:[#allocation6 + $0xa10] sm:$0xff]  }
 0x7a6   :  { %10681 = vmatpush3.bf16.msra.mxu1 %v11219_v27  ;;  %10646 = vmatprep.subr.bf16.mxu0 %v13275_v8  ;;  %v6758_v27 = vld [vmem:[#allocation2 + $0x33] sm:$0xff] }
 0x7a7   :  { %10682 = vmatprep.subr.bf16.mxu1 %v13275_v8 }
 0x7a9   :  { %10647 = vmatpush3.bf16.msra.mxu0 %v11220_v32  ;;  %v6759_v32 = vld [vmem:[#allocation2 + $0x3b] sm:$0xff] }
 0x7aa   :  { %10683 = vmatpush3.bf16.msra.mxu1 %v11221_v42  ;;  %10648 = vmatprep.subr.bf16.mxu0 %v13275_v8  ;;  %v6764_v58 = vpack.c.bf16 %v6759_v32, %v6758_v27  ;;  %v11226_v42 = vld [vmem:[#allocation6 + $0xa08] sm:$0xff]   ;;  %v6925_v32 = vpack.c.bf16 %v13317_v56, %v13317_v56 }
 0x7ab   :  { %10593 = vmatmul.mubr.bf16.gmra.mxu0 %v6763_v51  ;;  %10684 = vmatprep.subr.bf16.mxu1 %v13275_v8  ;;  %v6924_v51 = vpack.c.bf16 %v13315_v33, %v13310_v3 }
 0x7ac   :  { %10629 = vmatmul.mubr.bf16.gmra.mxu1 %v6923_v11  ;;  %10596 = vmatprep.mubr.msk.bf16.mxu0 %vm11447_vm0, %v13275_v8  ;;  %v11227_v11 = vld [vmem:[#allocation6 + $0xa48] sm:$0xff]  }
 0x7ad   :  { %10632 = vmatprep.mubr.msk.bf16.mxu1 %vm11447_vm0, %v13275_v8  ;;  %10649 = vmatpush3.bf16.msra.mxu0 %v11222_v60  ;;  %v11228_v60 = vld [vmem:[#allocation6 + $0xa00] sm:$0xff]  }
 0x7ae   :  { %10685 = vmatpush3.bf16.msra.mxu1 %v11223_v23  ;;  %10650 = vmatprep.subr.bf16.mxu0 %v13275_v8  ;;  %v6760_v23 = vld [vmem:[#allocation2 + $0x43] sm:$0xff] }
 0x7af   :  { %10686 = vmatprep.subr.bf16.mxu1 %v13275_v8  ;;  %v6765_v27 = vpack.c.bf16 %v6760_v23, %v6760_v23 }
 0x7b1   :  { %10651 = vmatpush3.bf16.msra.mxu0 %v11224_v52  ;;  %v11229_v52 = vld [vmem:[#allocation6 + $0xa40] sm:$0xff]  }
 0x7b2   :  { %10687 = vmatpush3.bf16.msra.mxu1 %v11225_v38  ;;  %10652 = vmatprep.subr.bf16.mxu0 %v13275_v8  ;;  %v11230_v38 = vld [vmem:[#allocation6 + $0xab8] sm:$0xff]  }
 0x7b3   :  { %10597 = vmatmul.mubr.bf16.gmra.mxu0 %v6764_v58  ;;  %10688 = vmatprep.subr.bf16.mxu1 %v13275_v8  ;;  %v11231_v58 = vld [vmem:[#allocation6 + $0xaf8] sm:$0xff]  }
 0x7b4   :  { %10633 = vmatmul.mubr.bf16.gmra.mxu1 %v6924_v51  ;;  %10600 = vmatprep.mubr.msk.bf16.mxu0 %vm11447_vm0, %v13275_v8  ;;  %v11233_v51 = vld [vmem:[#allocation6 + $0xaf0] sm:$0xff]  }
 0x7b5   :  { %10636 = vmatprep.mubr.msk.bf16.mxu1 %vm11447_vm0, %v13275_v8  ;;  %10653 = vmatpush3.bf16.msra.mxu0 %v11226_v42  ;;  %v11232_v42 = vld [vmem:[#allocation6 + $0xab0] sm:$0xff]  }
 0x7b6   :  { %10689 = vmatpush3.bf16.msra.mxu1 %v11227_v11  ;;  %10654 = vmatprep.subr.bf16.mxu0 %v13275_v8  ;;  %v7554_v11 = vld [vmem:[#allocation2 + $0x1e] sm:$0xff] }
 0x7b7   :  { %10690 = vmatprep.subr.bf16.mxu1 %v13275_v8 }
 0x7b9   :  { %10655 = vmatpush3.bf16.msra.mxu0 %v11228_v60  ;;  %v7555_v60 = vld [vmem:[#allocation2 + $0x26] sm:$0xff] }
 0x7ba   :  { %10691 = vmatpush3.bf16.msra.mxu1 %v11229_v52  ;;  %10712 = vmatprep.subr.bf16.mxu0 %v13275_v8  ;;  %v11248_v52 = vld [vmem:[#allocation6 + $0xb28] sm:$0xff]  }
 0x7bb   :  { %10601 = vmatmul.mubr.bf16.gmra.mxu0 %v6765_v27  ;;  %10748 = vmatprep.subr.bf16.mxu1 %v13275_v8  ;;  %v7562_v27 = vpack.c.bf16 %v7555_v60, %v7554_v11 }
 0x7bc   :  { %10637 = vmatmul.mubr.bf16.gmra.mxu1 %v6925_v32  ;;  %10656 = vmatprep.mubr.msk.bf16.mxu0 %vm11447_vm0, %v13275_v8  ;;  %v11249_v32 = vld [vmem:[#allocation6 + $0xb20] sm:$0xff]  }
 0x7bd   :  { %10692 = vmatprep.mubr.msk.bf16.mxu1 %vm11447_vm0, %v13275_v8 }
 0x7c3   :  { %10657 = vmatmul.mubr.bf16.vlgmr.msra.gmra.mxu0 %v7081_v24  ;;  %v11236_v24 = vld [vmem:[#allocation6 + $0xaa0] sm:$0xff]  }
 0x7c4   :  { %10693 = vmatmul.mubr.bf16.vlgmr.msra.gmra.mxu1 %v7241_v6  ;;  %10660 = vmatprep.mubr.msk.bf16.mxu0 %vm11447_vm0, %v13275_v8  ;;  %v7552_v6 = vld [vmem:[#allocation2 + $0xe] sm:$0xff] }
 0x7c5   :  { %10696 = vmatprep.mubr.msk.bf16.mxu1 %vm11447_vm0, %v13275_v8  ;;  %10713 = vmatpush3.bf16.msra.mxu0 %v11230_v38  ;;  %v7561_v19 = vpack.c.bf16 %v7553_v2, %v7552_v6  ;;  %v7396_v38 = vld [vmem:[#allocation2 + $0x2d] sm:$0xff] }
 0x7c6   :  { %10749 = vmatpush3.bf16.msra.mxu1 %v11231_v58  ;;  %10714 = vmatprep.subr.bf16.mxu0 %v13275_v8  ;;  %v7397_v58 = vld [vmem:[#allocation2 + $0x35] sm:$0xff] }
 0x7c7   :  { %10750 = vmatprep.subr.bf16.mxu1 %v13275_v8 }
 0x7c9   :  { %10715 = vmatpush3.bf16.msra.mxu0 %v11232_v42  ;;  %v7556_v42 = vld [vmem:[#allocation2 + $0x2e] sm:$0xff] }
 0x7ca   :  { %10751 = vmatpush3.bf16.msra.mxu1 %v11233_v51  ;;  %10716 = vmatprep.subr.bf16.mxu0 %v13275_v8  ;;  %v7557_v51 = vld [vmem:[#allocation2 + $0x36] sm:$0xff] }
 0x7cb   :  { %10661 = vmatmul.mubr.bf16.gmra.mxu0 %v7082_v12  ;;  %10752 = vmatprep.subr.bf16.mxu1 %v13275_v8  ;;  %v11240_v12 = vld [vmem:[#allocation6 + $0xa90] sm:$0xff]  }
 0x7cc   :  { %10697 = vmatmul.mubr.bf16.gmra.mxu1 %v7242_v14  ;;  %10664 = vmatprep.mubr.msk.bf16.mxu0 %vm11447_vm0, %v13275_v8  ;;  %v11246_v14 = vld [vmem:[#allocation6 + $0xb38] sm:$0xff]  }
 0x7cd   :  { %10700 = vmatprep.mubr.msk.bf16.mxu1 %vm11447_vm0, %v13275_v8  ;;  %10717 = vmatpush3.bf16.msra.mxu0 %v11234_v53  ;;  %v7403_v53 = vpack.c.bf16 %v7397_v58, %v7396_v38 }
 0x7ce   :  { %10753 = vmatpush3.bf16.msra.mxu1 %v11235_v62  ;;  %10718 = vmatprep.subr.bf16.mxu0 %v13275_v8  ;;  %v11250_v62 = vld [vmem:[#allocation6 + $0xb18] sm:$0xff]  }
 0x7cf   :  { %10754 = vmatprep.subr.bf16.mxu1 %v13275_v8 }
 0x7d1   :  { %10719 = vmatpush3.bf16.msra.mxu0 %v11236_v24  ;;  %v7563_v24 = vpack.c.bf16 %v7557_v51, %v7556_v42 }
 0x7d2   :  { %10755 = vmatpush3.bf16.msra.mxu1 %v11237_v54  ;;  %10720 = vmatprep.subr.bf16.mxu0 %v13275_v8  ;;  %v11251_v54 = vld [vmem:[#allocation6 + $0xb10] sm:$0xff]  }
 0x7d3   :  { %10665 = vmatmul.mubr.bf16.gmra.mxu0 %v7083_v63  ;;  %10756 = vmatprep.subr.bf16.mxu1 %v13275_v8  ;;  %v11244_v63 = vld [vmem:[#allocation6 + $0xa80] sm:$0xff]  }
 0x7d4   :  { %10701 = vmatmul.mubr.bf16.gmra.mxu1 %v7243_v57  ;;  %10668 = vmatprep.mubr.msk.bf16.mxu0 %vm11447_vm0, %v13275_v8  ;;  %v7394_v57 = vld [vmem:[#allocation2 + $0x1d] sm:$0xff] }
 0x7d5   :  { %10704 = vmatprep.mubr.msk.bf16.mxu1 %vm11447_vm0, %v13275_v8  ;;  %10721 = vmatpush3.bf16.msra.mxu0 %v11238_v28  ;;  %v7398_v28 = vld [vmem:[#allocation2 + $0x3d] sm:$0xff] }
 0x7d6   :  { %10757 = vmatpush3.bf16.msra.mxu1 %v11239_v36  ;;  %10722 = vmatprep.subr.bf16.mxu0 %v13275_v8  ;;  %v7399_v36 = vld [vmem:[#allocation2 + $0x45] sm:$0xff] }
 0x7d7   :  { %10758 = vmatprep.subr.bf16.mxu1 %v13275_v8 }
 0x7d9   :  { %10723 = vmatpush3.bf16.msra.mxu0 %v11240_v12  ;;  %v7558_v12 = vld [vmem:[#allocation2 + $0x3e] sm:$0xff] }
 0x7da   :  { %10759 = vmatpush3.bf16.msra.mxu1 %v11241_v5  ;;  %10724 = vmatprep.subr.bf16.mxu0 %v13275_v8  ;;  %v7559_v5 = vld [vmem:[#allocation2 + $0x46] sm:$0xff] }
 0x7db   :  { %10669 = vmatmul.mubr.bf16.gmra.mxu0 %v7084_v21  ;;  %10760 = vmatprep.subr.bf16.mxu1 %v13275_v8  ;;  %v7245_v21 = vpack.c.bf16 %v7240_v49, %v7240_v49  ;;  %v7400_v49 = vld [vmem:[#allocation2 + $0x4d] sm:$0xff] }
 0x7dc   :  { %10705 = vmatmul.mubr.bf16.gmra.mxu1 %v7244_v15  ;;  %10672 = vmatprep.mubr.msk.bf16.mxu0 %vm11447_vm0, %v13275_v8  ;;  %v7395_v15 = vld [vmem:[#allocation2 + $0x25] sm:$0xff] }
 0x7dd   :  { %10708 = vmatprep.mubr.msk.bf16.mxu1 %vm11447_vm0, %v13275_v8  ;;  %10725 = vmatpush3.bf16.msra.mxu0 %v11242_v9  ;;  %v7402_v23 = vpack.c.bf16 %v7395_v15, %v7394_v57  ;;  %v7404_v9 = vpack.c.bf16 %v7399_v36, %v7398_v28 }
 0x7de   :  { %10761 = vmatpush3.bf16.msra.mxu1 %v11243_v31  ;;  %10726 = vmatprep.subr.bf16.mxu0 %v13275_v8  ;;  %v11252_v31 = vld [vmem:[#allocation6 + $0xb08] sm:$0xff]  }
 0x7df   :  { %10762 = vmatprep.subr.bf16.mxu1 %v13275_v8 }
 0x7e1   :  { %10727 = vmatpush3.bf16.msra.mxu0 %v11244_v63  ;;  %v7564_v63 = vpack.c.bf16 %v7559_v5, %v7558_v12 }
 0x7e2   :  { %10763 = vmatpush3.bf16.msra.mxu1 %v11245_v30  ;;  %10784 = vmatprep.subr.bf16.mxu0 %v13275_v8  ;;  %v11253_v30 = vld [vmem:[#allocation6 + $0xb00] sm:$0xff]  }
 0x7e3   :  { %10673 = vmatmul.mubr.bf16.gmra.mxu0 %v7085_v20  ;;  %10820 = vmatprep.subr.mxu1 %v13275_v8  ;;  %v7560_v20 = vld [vmem:[#allocation2 + $0x4e] sm:$0xff] }
 0x7e4   :  { %10709 = vmatmul.mubr.bf16.gmra.mxu1 %v7245_v21  ;;  %10728 = vmatprep.mubr.msk.bf16.mxu0 %vm11447_vm0, %v13275_v8  ;;  %v7405_v21 = vpack.c.bf16 %v7400_v49, %v7400_v49  ;;  %v7565_v61 = vpack.c.bf16 %v7560_v20, %v7560_v20 }
 0x7e5   :  { %10764 = vmatprep.mubr.msk.bf16.mxu1 %vm11447_vm0, %v13275_v8 }
 0x7eb   :  { %10729 = vmatmul.mubr.bf16.vlgmr.msra.gmra.mxu0 %v7401_v59 }
 0x7ec   :  { %10765 = vmatmul.mubr.bf16.vlgmr.msra.gmra.mxu1 %v7561_v19  ;;  %10732 = vmatprep.mubr.msk.bf16.mxu0 %vm11447_vm0, %v13275_v8 }
 0x7ed   :  { %10768 = vmatprep.mubr.msk.bf16.mxu1 %vm11447_vm0, %v13275_v8  ;;  %10785 = vmatpush3.bf16.msra.mxu0 %v11246_v14 }
 0x7ee   :  { %10786 = vmatprep.subr.bf16.mxu0 %v13275_v8 }
 0x7f1   :  { %10787 = vmatpush3.bf16.msra.mxu0 %v11247_v45 }
 0x7f2   :  { %10788 = vmatprep.subr.bf16.mxu0 %v13275_v8 }
 0x7f3   :  { %10733 = vmatmul.mubr.bf16.gmra.mxu0 %v7402_v23 }
 0x7f4   :  { %10769 = vmatmul.mubr.bf16.gmra.mxu1 %v7562_v27  ;;  %10736 = vmatprep.mubr.msk.bf16.mxu0 %vm11447_vm0, %v13275_v8 }
 0x7f5   :  { %10772 = vmatprep.mubr.msk.bf16.mxu1 %vm11447_vm0, %v13275_v8  ;;  %10789 = vmatpush3.bf16.msra.mxu0 %v11248_v52 }
 0x7f6   :  { %10790 = vmatprep.subr.bf16.mxu0 %v13275_v8 }
 0x7f9   :  { %10791 = vmatpush3.bf16.msra.mxu0 %v11249_v32 }
 0x7fa   :  { %10792 = vmatprep.subr.bf16.mxu0 %v13275_v8 }
 0x7fb   :  { %10737 = vmatmul.mubr.bf16.gmra.mxu0 %v7403_v53 }
 0x7fc   :  { %10773 = vmatmul.mubr.bf16.gmra.mxu1 %v7563_v24  ;;  %10740 = vmatprep.mubr.msk.bf16.mxu0 %vm11447_vm0, %v13275_v8 }
 0x7fd   :  { %10776 = vmatprep.mubr.msk.bf16.mxu1 %vm11447_vm0, %v13275_v8  ;;  %10793 = vmatpush3.bf16.msra.mxu0 %v11250_v62 }
 0x7fe   :  { %10794 = vmatprep.subr.bf16.mxu0 %v13275_v8 }
 0x801   :  { %10795 = vmatpush3.bf16.msra.mxu0 %v11251_v54 }
 0x802   :  { %10796 = vmatprep.subr.bf16.mxu0 %v13275_v8 }
 0x803   :  { %10741 = vmatmul.mubr.bf16.gmra.mxu0 %v7404_v9 }
 0x804   :  { %10777 = vmatmul.mubr.bf16.gmra.mxu1 %v7564_v63  ;;  %10744 = vmatprep.mubr.msk.bf16.mxu0 %vm11447_vm0, %v13275_v8 }
 0x805   :  { %10780 = vmatprep.mubr.msk.bf16.mxu1 %vm11447_vm0, %v13275_v8  ;;  %10797 = vmatpush3.bf16.msra.mxu0 %v11252_v31 }
 0x806   :  { %10798 = vmatprep.subr.bf16.mxu0 %v13275_v8 }
 0x809   :  { %10799 = vmatpush3.bf16.msra.mxu0 %v11253_v30 }
 0x80b   :  { %10745 = vmatmul.mubr.bf16.gmra.mxu0 %v7405_v21 }
 0x80c   :  { %10781 = vmatmul.mubr.bf16.gmra.mxu1 %v7565_v61  ;;  %10800 = vmatprep.mubr.msk.bf16.mxu0 %vm11447_vm0, %v13275_v8 }
 0x80d   :  { %10838 = vmatprep.mubr.msk.f32.mxu1 %vm11447_vm0, %v13275_v8 }
 0x813   :  { %10801 = vmatmul.mubr.bf16.vlgmr.msra.gmra.mxu0 %v7721_v43 }
 0x814   :  { %10804 = vmatprep.mubr.msk.bf16.mxu0 %vm11447_vm0, %v13275_v8 }
 0x81b   :  { %10805 = vmatmul.mubr.bf16.gmra.mxu0 %v7722_v1 }
 0x81c   :  { %10808 = vmatprep.mubr.msk.bf16.mxu0 %vm11447_vm0, %v13275_v8 }
 0x823   :  { %10809 = vmatmul.mubr.bf16.gmra.mxu0 %v13665_v47 }
 0x824   :  { %10812 = vmatprep.mubr.msk.bf16.mxu0 %vm11447_vm0, %v13275_v8 }
 0x82b   :  { %10813 = vmatmul.mubr.bf16.gmra.mxu0 %v13666_v10 }
 0x82c   :  { %10816 = vmatprep.mubr.msk.bf16.mxu0 %vm11447_vm0, %v13275_v8 }
 0x833   :  { %v6594_v39 = vpop.f32.mrf.mxu0  ;;  %10817 = vmatmul.mubr.bf16.gmra.mxu0 %v7725_v41 }
 0x834   :  { %v6714_v43 = vpop.f32.mrf.mxu1 }
 0x835   :  { %v6715_v1 = vadd.f32 %v6714_v43, %v6594_v39  ;;  %v10514_v6 = vpop.f32.mrf.mxu0 }
 0x836   :  { %v10550_v2 = vpop.f32.mrf.mxu1 }
 0x837   :  { %v6597_v18 = vpop.f32.mrf.mxu0 }
 0x838   :  { %v6717_v3 = vpop.f32.mrf.mxu1 }
 0x839   :  { %v6718_v59 = vadd.f32 %v6717_v3, %v6597_v18  ;;  %v10515_v14 = vpop.f32.mrf.mxu0 }
 0x83a   :  { %v10551_v19 = vpop.f32.mrf.mxu1 }
 0x83b   :  { %v6602_v45 = vpop.f32.mrf.mxu0 }
 0x83c   :  { %v6722_v57 = vpop.f32.mrf.mxu1 }
 0x83d   :  { %v6723_v33 = vadd.f32 %v6722_v57, %v6602_v45  ;;  %v10518_v56 = vpop.f32.mrf.mxu0 }
 0x83e   :  { %v10554_v15 = vpop.f32.mrf.mxu1 }
 0x83f   :  { %v6605_v11 = vpop.f32.mrf.mxu0 }
 0x840   :  { %v6725_v8 = vpop.f32.mrf.mxu1 }
 0x841   :  { %v6726_v60 = vadd.f32 %v6725_v8, %v6605_v11  ;;  %v10519_v23 = vpop.f32.mrf.mxu0 }
 0x842   :  { %v10555_v52 = vpop.f32.mrf.mxu1 }
 0x843   :  { %v6610_v27 = vpop.f32.mrf.mxu0 }
 0x844   :  { %v6730_v32 = vpop.f32.mrf.mxu1 }
 0x845   :  { %v6731_v38 = vadd.f32 %v6730_v32, %v6610_v27  ;;  %v10522_v58 = vpop.f32.mrf.mxu0 }
 0x846   :  { %v10558_v42 = vpop.f32.mrf.mxu1 }
 0x847   :  { %v6613_v51 = vpop.f32.mrf.mxu0 }
 0x848   :  { %v6733_v53 = vpop.f32.mrf.mxu1 }
 0x849   :  { %v6734_v62 = vadd.f32 %v6733_v53, %v6613_v51  ;;  %v10523_v24 = vpop.f32.mrf.mxu0 }
 0x84a   :  { %v10559_v54 = vpop.f32.mrf.mxu1 }
 0x84b   :  { %v6618_v28 = vpop.f32.mrf.mxu0 }
 0x84c   :  { %v6738_v36 = vpop.f32.mrf.mxu1 }
 0x84d   :  { %v6739_v12 = vadd.f32 %v6738_v36, %v6618_v28  ;;  %v10526_v5 = vpop.f32.mrf.mxu0 }
 0x84e   :  { %v10562_v9 = vpop.f32.mrf.mxu1 }
 0x84f   :  { %v6621_v31 = vpop.f32.mrf.mxu0 }
 0x850   :  { %v6741_v63 = vpop.f32.mrf.mxu1 }
 0x851   :  { %v6742_v30 = vadd.f32 %v6741_v63, %v6621_v31  ;;  %v10527_v49 = vpop.f32.mrf.mxu0 }
 0x852   :  { %v10563_v20 = vpop.f32.mrf.mxu1 }
 0x853   :  { %v6626_v21 = vpop.f32.mrf.mxu0 }
 0x854   :  { %v6746_v61 = vpop.f32.mrf.mxu1 }
 0x855   :  { %v6747_v47 = vadd.f32 %v6746_v61, %v6626_v21  ;;  %v10530_v10 = vpop.f32.mrf.mxu0 }
 0x856   :  { %v10566_v55 = vpop.f32.mrf.mxu1 }
 0x857   :  { %v6629_v41 = vpop.f32.mrf.mxu0 }
 0x858   :  { %v6749_v39 = vpop.f32.mrf.mxu1 }
 0x859   :  { %v10531_v43 = vpop.f32.mrf.mxu0 }
 0x85a   :  { %v10567_v6 = vpop.f32.mrf.mxu1 }
 0x85b   :  { %v6865_v2 = vpop.f32.mrf.mxu0 }
 0x85c   :  { %v6903_v18 = vadd.f32 %v6865_v2, %v6715_v1  ;;  %v7025_v3 = vpop.f32.mrf.mxu1 }
 0x85d   :  { %v10586_v14 = vpop.f32.mrf.mxu0 }
 0x85e   :  { %v7063_v19 = vadd.f32 %v7025_v3, %v6903_v18  ;;  %v10622_v45 = vpop.f32.mrf.mxu1 }
 0x85f   :  { %v6868_v57 = vpop.f32.mrf.mxu0 }
 0x860   :  { %v6904_v56 = vadd.f32 %v6868_v57, %v6718_v59  ;;  %v7028_v15 = vpop.f32.mrf.mxu1 }
 0x861   :  { %v10587_v11 = vpop.f32.mrf.mxu0 }
 0x862   :  { %v7064_v8 = vadd.f32 %v7028_v15, %v6904_v56  ;;  %v10623_v23 = vpop.f32.mrf.mxu1 }
 0x863   :  { %v6873_v52 = vpop.f32.mrf.mxu0 }
 0x864   :  { %v6905_v27 = vadd.f32 %v6873_v52, %v6723_v33  ;;  %v7033_v32 = vpop.f32.mrf.mxu1 }
 0x865   :  { %v10590_v58 = vpop.f32.mrf.mxu0 }
 0x866   :  { %v7065_v42 = vadd.f32 %v7033_v32, %v6905_v27  ;;  %v10626_v51 = vpop.f32.mrf.mxu1 }
 0x867   :  { %v6876_v53 = vpop.f32.mrf.mxu0 }
 0x868   :  { %v6906_v24 = vadd.f32 %v6876_v53, %v6726_v60  ;;  %v7036_v54 = vpop.f32.mrf.mxu1 }
 0x869   :  { %v10591_v1 = vpop.f32.mrf.mxu0 }
 0x86a   :  { %v7066_v28 = vadd.f32 %v7036_v54, %v6906_v24  ;;  %v10627_v36 = vpop.f32.mrf.mxu1 }
 0x86b   :  { %v6881_v5 = vpop.f32.mrf.mxu0 }
 0x86c   :  { %v6907_v9 = vadd.f32 %v6881_v5, %v6731_v38  ;;  %v7041_v31 = vpop.f32.mrf.mxu1 }
 0x86d   :  { %v10594_v59 = vpop.f32.mrf.mxu0 }
 0x86e   :  { %v7067_v63 = vadd.f32 %v7041_v31, %v6907_v9  ;;  %v10630_v49 = vpop.f32.mrf.mxu1 }
 0x86f   :  { %v6884_v20 = vpop.f32.mrf.mxu0 }
 0x870   :  { %v6908_v21 = vadd.f32 %v6884_v20, %v6734_v62  ;;  %v7044_v61 = vpop.f32.mrf.mxu1 }
 0x871   :  { %v10595_v33 = vpop.f32.mrf.mxu0 }
 0x872   :  { %v7068_v10 = vadd.f32 %v7044_v61, %v6908_v21  ;;  %v10631_v55 = vpop.f32.mrf.mxu1 }
 0x873   :  { %v6889_v41 = vpop.f32.mrf.mxu0 }
 0x874   :  { %v6909_v39 = vadd.f32 %v6889_v41, %v6739_v12  ;;  %v7049_v43 = vpop.f32.mrf.mxu1 }
 0x875   :  { %v10598_v60 = vpop.f32.mrf.mxu0 }
 0x876   :  { %v7069_v6 = vadd.f32 %v7049_v43, %v6909_v39  ;;  %v10634_v2 = vpop.f32.mrf.mxu1 }
 0x877   :  { %v6892_v18 = vpop.f32.mrf.mxu0 }
 0x878   :  { %v6910_v3 = vadd.f32 %v6892_v18, %v6742_v30  ;;  %v7052_v14 = vpop.f32.mrf.mxu1 }
 0x879   :  { %v10599_v38 = vpop.f32.mrf.mxu0 }
 0x87a   :  { %v7070_v45 = vadd.f32 %v7052_v14, %v6910_v3  ;;  %v10635_v57 = vpop.f32.mrf.mxu1 }
 0x87b   :  { %v6897_v56 = vpop.f32.mrf.mxu0 }
 0x87c   :  { %v6911_v15 = vadd.f32 %v6897_v56, %v6747_v47  ;;  %v7057_v11 = vpop.f32.mrf.mxu1 }
 0x87d   :  { %v10602_v62 = vpop.f32.mrf.mxu0 }
 0x87e   :  { %v7071_v23 = vadd.f32 %v7057_v11, %v6911_v15  ;;  %v10638_v52 = vpop.f32.mrf.mxu1 }
 0x87f   :  { %v6900_v27 = vpop.f32.mrf.mxu0 }
 0x880   :  { %v7060_v32 = vpop.f32.mrf.mxu1 }
 0x881   :  { %v10603_v58 = vpop.f32.mrf.mxu0 }
 0x882   :  { %v10639_v12 = vpop.f32.mrf.mxu1 }
 0x883   :  { %v7185_v51 = vpop.f32.mrf.mxu0 }
 0x884   :  { %v7223_v53 = vadd.f32 %v7185_v51, %v7063_v19  ;;  %v7345_v24 = vpop.f32.mrf.mxu1 }
 0x885   :  { %v10658_v54 = vpop.f32.mrf.mxu0 }
 0x886   :  { %v13511_v1 = vadd.f32 %v7345_v24, %v7223_v53  ;;  %v10694_v30 = vpop.f32.mrf.mxu1 }
 0x887   :  { %v7188_v36 = vpop.f32.mrf.mxu0 }
 0x888   :  { %v7224_v5 = vadd.f32 %v7188_v36, %v7064_v8  ;;  %v7348_v9 = vpop.f32.mrf.mxu1 }
 0x889   :  { %v10659_v31 = vpop.f32.mrf.mxu0 }
 0x88a   :  { %v13513_v47 = vadd.f32 %v7348_v9, %v7224_v5  ;;  %v10695_v59 = vpop.f32.mrf.mxu1 }
 0x88b   :  { %v7193_v49 = vpop.f32.mrf.mxu0 }
 0x88c   :  { %v7225_v20 = vadd.f32 %v7193_v49, %v7065_v42  ;;  %v7353_v21 = vpop.f32.mrf.mxu1 }
 0x88d   :  { %v10662_v61 = vpop.f32.mrf.mxu0 }
 0x88e   :  { %v13515_v33 = vadd.f32 %v7353_v21, %v7225_v20  ;;  %v10698_v55 = vpop.f32.mrf.mxu1 }
 0x88f   :  { %v7196_v19 = vpop.f32.mrf.mxu0 }
 0x890   :  { %v7226_v41 = vadd.f32 %v7196_v19, %v7066_v28  ;;  %v7356_v39 = vpop.f32.mrf.mxu1 }
 0x891   :  { %v10663_v43 = vpop.f32.mrf.mxu0 }
 0x892   :  { %v13517_v60 = vadd.f32 %v7356_v39, %v7226_v41  ;;  %v10699_v2 = vpop.f32.mrf.mxu1 }
 0x893   :  { %v7201_v8 = vpop.f32.mrf.mxu0 }
 0x894   :  { %v7227_v18 = vadd.f32 %v7201_v8, %v7067_v63  ;;  %v7361_v3 = vpop.f32.mrf.mxu1 }
 0x895   :  { %v10666_v14 = vpop.f32.mrf.mxu0 }
 0x896   :  { %v13519_v38 = vadd.f32 %v7361_v3, %v7227_v18  ;;  %v10702_v57 = vpop.f32.mrf.mxu1 }
 0x897   :  { %v7204_v42 = vpop.f32.mrf.mxu0 }
 0x898   :  { %v7228_v56 = vadd.f32 %v7204_v42, %v7068_v10  ;;  %v7364_v15 = vpop.f32.mrf.mxu1 }
 0x899   :  { %v10667_v11 = vpop.f32.mrf.mxu0 }
 0x89a   :  { %v13521_v62 = vadd.f32 %v7364_v15, %v7228_v56  ;;  %v10703_v52 = vpop.f32.mrf.mxu1 }
 0x89b   :  { %v7209_v28 = vpop.f32.mrf.mxu0 }
 0x89c   :  { %v7229_v27 = vadd.f32 %v7209_v28, %v7069_v6  ;;  %v7369_v32 = vpop.f32.mrf.mxu1 }
 0x89d   :  { %v10670_v58 = vpop.f32.mrf.mxu0 }
 0x89e   :  { %v13523_v12 = vadd.f32 %v7369_v32, %v7229_v27  ;;  %v10706_v51 = vpop.f32.mrf.mxu1 }
 0x89f   :  { %v7212_v63 = vpop.f32.mrf.mxu0 }
 0x8a0   :  { %v7230_v53 = vadd.f32 %v7212_v63, %v7070_v45  ;;  %v7372_v24 = vpop.f32.mrf.mxu1 }
 0x8a1   :  { %v10671_v54 = vpop.f32.mrf.mxu0 }
 0x8a2   :  { %v13525_v30 = vadd.f32 %v7372_v24, %v7230_v53  ;;  %v10707_v36 = vpop.f32.mrf.mxu1 }
 0x8a3   :  { %v7217_v10 = vpop.f32.mrf.mxu0 }
 0x8a4   :  { %v7231_v5 = vadd.f32 %v7217_v10, %v7071_v23  ;;  %v7377_v9 = vpop.f32.mrf.mxu1 }
 0x8a5   :  { %v10674_v31 = vpop.f32.mrf.mxu0 }
 0x8a6   :  { %v13527_v59 = vadd.f32 %v7377_v9, %v7231_v5  ;;  %v10710_v49 = vpop.f32.mrf.mxu1 }
 0x8a7   :  { %v7220_v6 = vpop.f32.mrf.mxu0 }
 0x8a8   :  { %v7380_v20 = vpop.f32.mrf.mxu1 }
 0x8a9   :  { %v10675_v21 = vpop.f32.mrf.mxu0 }
 0x8aa   :  { %v10711_v61 = vpop.f32.mrf.mxu1 }
 0x8ab   :  { %v7505_v55 = vpop.f32.mrf.mxu0 }
 0x8ac   :  { %v7665_v19 = vpop.f32.mrf.mxu1  ;;  %v7543_v21 = vadd.f32 %v7505_v55, %v13511_v1 }
 0x8ad   :  { %v10730_v41 = vpop.f32.mrf.mxu0 }
 0x8ae   :  { %v10766_v45 = vpop.f32.mrf.mxu1 }
 0x8af   :  { %v7508_v39 = vpop.f32.mrf.mxu0 }
 0x8b0   :  { %v7668_v43 = vpop.f32.mrf.mxu1 }
 0x8b1   :  { %v10731_v2 = vpop.f32.mrf.mxu0 }
 0x8b2   :  { %v10767_v8 = vpop.f32.mrf.mxu1 }
 0x8b3   :  { %v7513_v18 = vpop.f32.mrf.mxu0  ;;  %v7703_v8 = vadd.f32 %v7665_v19, %v7543_v21 }
 0x8b4   :  { %v7673_v3 = vpop.f32.mrf.mxu1 }
 0x8b5   :  { %v10734_v23 = vpop.f32.mrf.mxu0 }
 0x8b6   :  { %v10770_v14 = vpop.f32.mrf.mxu1  ;;  %v7544_v23 = vadd.f32 %v7508_v39, %v13513_v47 }
 0x8b7   :  { %v7516_v57 = vpop.f32.mrf.mxu0 }
 0x8b8   :  { %v7676_v42 = vpop.f32.mrf.mxu1  ;;  %v7546_v55 = vadd.f32 %v7516_v57, %v13517_v60 }
 0x8b9   :  { %v10735_v56 = vpop.f32.mrf.mxu0 }
 0x8ba   :  { %v10771_v15 = vpop.f32.mrf.mxu1  ;;  %v7706_v60 = vadd.f32 %v7676_v42, %v7546_v55 }
 0x8bb   :  { %v7521_v11 = vpop.f32.mrf.mxu0 }
 0x8bc   :  { %v7681_v52 = vpop.f32.mrf.mxu1 }
 0x8bd   :  { %v10738_v28 = vpop.f32.mrf.mxu0 }
 0x8be   :  { %v10774_v27 = vpop.f32.mrf.mxu1 }
 0x8bf   :  { %v7524_v32 = vpop.f32.mrf.mxu0  ;;  %v7704_v27 = vadd.f32 %v7668_v43, %v7544_v23 }
 0x8c0   :  { %v7684_v58 = vpop.f32.mrf.mxu1 }
 0x8c1   :  { %v10739_v51 = vpop.f32.mrf.mxu0 }
 0x8c2   :  { %v10775_v63 = vpop.f32.mrf.mxu1  ;;  %v7545_v51 = vadd.f32 %v7513_v18, %v13515_v33 }
 0x8c3   :  { %v7529_v53 = vpop.f32.mrf.mxu0 }
 0x8c4   :  { %v13529_v24 = vpop.f32.mrf.mxu1  ;;  %v7705_v19 = vadd.f32 %v7673_v3, %v7545_v51  ;;  %v7547_v3 = vadd.f32 %v7521_v11, %v13519_v38 }
 0x8c5   :  { %v10742_v54 = vpop.f32.mrf.mxu0 }
 0x8c6   :  { %v10778_v36 = vpop.f32.mrf.mxu1  ;;  %v7707_v42 = vadd.f32 %v7681_v52, %v7547_v3 }
 0x8c7   :  { %v13531_v10 = vpop.f32.mrf.mxu0 }
 0x8c8   :  { %v13533_v5 = vpop.f32.mrf.mxu1 }
 0x8c9   :  { %v10743_v9 = vpop.f32.mrf.mxu0 }
 0x8ca   :  { %v10779_v31 = vpop.f32.mrf.mxu1 }
 0x8cb   :  { %v13535_v49 = vpop.f32.mrf.mxu0 }
 0x8cc   :  { %v13537_v6 = vpop.f32.mrf.mxu1 }
 0x8cd   :  { %v10746_v20 = vpop.f32.mrf.mxu0 }
 0x8ce   :  { %v10782_v61 = vpop.f32.mrf.mxu1 }
 0x8cf   :  { %v7540_v41 = vpop.f32.mrf.mxu0 }
 0x8d0   :  { %v7700_v45 = vpop.f32.mrf.mxu1 }
 0x8d1   :  { %v10747_v2 = vpop.f32.mrf.mxu0 }
 0x8d2   :  { %v10783_v14 = vpop.f32.mrf.mxu1 }
 0x8d3   :  { %v7825_v56 = vpop.f32.mrf.mxu0  ;;  %v7548_v14 = vadd.f32 %v7524_v32, %v13521_v62 }
 0x8d4   :  { %v13541_v15 = vadd.f32 %v7825_v56, %v7703_v8 }
 0x8d5   :  { %v10802_v28 = vpop.f32.mrf.mxu0  ;;  %v7708_v55 = vadd.f32 %v7684_v58, %v7548_v14 }
 0x8d6   :  { %v7895_v54 = vmul.f32 %v13541_v15, %v13541_v15  ;;  %v7872_v47 = vmul.f32 %v13541_v15, %v11882_v25 }
 0x8d7   :  { %v7828_v63 = vpop.f32.mrf.mxu0 }
 0x8d8   :  { %v13546_v1 = vadd.f32 %v7828_v63, %v7704_v27  ;;  %v7904_v18 = vmul.f32 %v7895_v54, %v11882_v25 }
 0x8d9   :  { %v10803_v36 = vpop.f32.mrf.mxu0 }
 0x8da   :  { %v7873_v39 = vmul.f32 %v13546_v1, %v11892_v13  ;;  %v7896_v43 = vmul.f32 %v13546_v1, %v13546_v1 }
 0x8db   :  { %v7833_v33 = vpop.f32.mrf.mxu0 }
 0x8dc   :  { %v7881_v9 = vadd.f32 %v7873_v39, %v7872_v47  ;;  %v7905_v31 = vmul.f32 %v7896_v43, %v11892_v13  ;;  %v13557_v20 = vadd.f32 %v7833_v33, %v7705_v19  ;;  %v7549_v19 = vadd.f32 %v7529_v53, %v13523_v12 }
 0x8dd   :  { %v10806_v57 = vpop.f32.mrf.mxu0 }
 0x8de   :  { %v7913_v21 = vadd.f32 %v7905_v31, %v7904_v18  ;;  %v7874_v61 = vmul.f32 %v13557_v20, %v11900_v22  ;;  %v7897_v41 = vmul.f32 %v13557_v20, %v13557_v20  ;;  %v7550_v18 = vadd.f32 %v13531_v10, %v13525_v30 }
 0x8df   :  { %v7836_v45 = vpop.f32.mrf.mxu0  ;;  %v7551_v30 = vadd.f32 %v13535_v49, %v13527_v59 }
 0x8e0   :  { %v7882_v2 = vadd.f32 %v7881_v9, %v7874_v61  ;;  %v7906_v8 = vmul.f32 %v7897_v41, %v11900_v22  ;;  %v13565_v23 = vadd.f32 %v7836_v45, %v7706_v60  ;;  %v7709_v9 = vadd.f32 %v13529_v24, %v7549_v19 }
 0x8e1   :  { %v10807_v56 = vpop.f32.mrf.mxu0  ;;  %v7710_v61 = vadd.f32 %v13533_v5, %v7550_v18 }
 0x8e2   :  { %v7914_v28 = vadd.f32 %v7913_v21, %v7906_v8  ;;  %v7875_v38 = vmul.f32 %v13565_v23, %v11915_v50  ;;  %v7898_v11 = vmul.f32 %v13565_v23, %v13565_v23 }
 0x8e3   :  { %v7841_v27 = vpop.f32.mrf.mxu0 }
 0x8e4   :  { %v7883_v51 = vadd.f32 %v7882_v2, %v7875_v38  ;;  %v7907_v63 = vmul.f32 %v7898_v11, %v11915_v50  ;;  %v13573_v54 = vadd.f32 %v7841_v27, %v7707_v42 }
 0x8e5   :  { %v10810_v36 = vpop.f32.mrf.mxu0 }
 0x8e6   :  { %v7915_v62 = vadd.f32 %v7914_v28, %v7907_v63  ;;  %v7876_v52 = vmul.f32 %v13573_v54, %v11925_v37  ;;  %v7899_v32 = vmul.f32 %v13573_v54, %v13573_v54  ;;  %v7711_v28 = vadd.f32 %v13537_v6, %v7551_v30 }
 0x8e7   :  { %v7844_v47 = vpop.f32.mrf.mxu0 }
 0x8e8   :  { %v7884_v39 = vadd.f32 %v7883_v51, %v7876_v52  ;;  %v7908_v43 = vmul.f32 %v7899_v32, %v11925_v37  ;;  %v13581_v33 = vadd.f32 %v7844_v47, %v7708_v55 }
 0x8e9   :  { %v10811_v58 = vpop.f32.mrf.mxu0 }
 0x8ea   :  { %v7916_v12 = vadd.f32 %v7915_v62, %v7908_v43  ;;  %v7877_v53 = vmul.f32 %v13581_v33, %v11938_v29  ;;  %v7900_v31 = vmul.f32 %v13581_v33, %v13581_v33 }
 0x8eb   :  { %v7849_v60 = vpop.f32.mrf.mxu0 }
 0x8ec   :  { %v7885_v57 = vadd.f32 %v7884_v39, %v7877_v53  ;;  %v7909_v3 = vmul.f32 %v7900_v31, %v11938_v29  ;;  %v7869_v21 = vadd.f32 %v7849_v60, %v7709_v9 }
 0x8ed   :  { %v10814_v41 = vpop.f32.mrf.mxu0 }
 0x8ee   :  { %v7917_v10 = vadd.f32 %v7916_v12, %v7909_v3  ;;  %v7878_v24 = vmul.f32 %v7869_v21, %v11949_v48  ;;  %v7901_v45 = vmul.f32 %v7869_v21, %v7869_v21 }
 0x8ef   :  { %v7852_v2 = vpop.f32.mrf.mxu0 }
 0x8f0   :  { %v7886_v8 = vadd.f32 %v7885_v57, %v7878_v24  ;;  %v7910_v14 = vmul.f32 %v7901_v45, %v11949_v48  ;;  %v7870_v56 = vadd.f32 %v7852_v2, %v7710_v61 }
 0x8f1   :  { %v10815_v42 = vpop.f32.mrf.mxu0 }
 0x8f2   :  { %v7918_v38 = vadd.f32 %v7917_v10, %v7910_v14  ;;  %v7879_v11 = vmul.f32 %v7870_v56, %v11958_v34  ;;  %v7902_v5 = vmul.f32 %v7870_v56, %v7870_v56 }
 0x8f3   :  { %v7857_v27 = vpop.f32.mrf.mxu0 }
 0x8f4   :  { %v7887_v51 = vadd.f32 %v7886_v8, %v7879_v11  ;;  %v7911_v59 = vmul.f32 %v7902_v5, %v11958_v34  ;;  %v7871_v49 = vadd.f32 %v7857_v27, %v7711_v28 }
 0x8f5   :  { %v10818_v63 = vpop.f32.mrf.mxu0 }
 0x8f6   :  { %v7919_v55 = vadd.f32 %v7918_v38, %v7911_v59  ;;  %v7880_v36 = vmul.f32 %v7871_v49, %v11963_v46  ;;  %v7903_v19 = vmul.f32 %v7871_v49, %v7871_v49 }
 0x8f7   :  { %v7860_v62 = vpop.f32.mrf.mxu0 }
 0x8f8   :  { %v7888_v52 = vadd.f32 %v7887_v51, %v7880_v36  ;;  %v7912_v32 = vmul.f32 %v7903_v19, %v11963_v46 }
 0x8f9   :  { %v10819_v47 = vpop.f32.mrf.mxu0 }
 0x8fa   :  { %v7889_v6 = vrot.slane %v7888_v52, 4  ;;  %v7920_v39 = vadd.f32 %v7919_v55, %v7912_v32  ;;  %v8585_v55 = vld [vmem:[#allocation9 + $0x4] ss:$0 sm:$0xff] }
 0x8fc   :  { %v7890_v43 = vadd.f32 %v7889_v6, %v7888_v52  ;;  %v7921_v18 = vrot.slane %v7920_v39, 4 }
 0x8fe   :  { %v7891_v58 = vrot.slane %v7890_v43, 2  ;;  %v7922_v9 = vadd.f32 %v7921_v18, %v7920_v39 }
 0x900   :  { %v7892_v12 = vadd.f32 %v7891_v58, %v7890_v43  ;;  %v7923_v53 = vrot.slane %v7922_v9, 2 }
 0x902   :  { %v7893_v31 = vrot.slane %v7892_v12, 1  ;;  %v7924_v60 = vadd.f32 %v7923_v53, %v7922_v9 }
 0x904   :  { %v7894_v57 = vadd.f32 %v7893_v31, %v7892_v12  ;;  %v7925_v3 = vrot.slane %v7924_v60, 1 }
 0x906   :  { %v7926_v61 = vadd.f32 %v7925_v3, %v7924_v60  ;;  %v7927_v41 = vmul.f32 0.03125, %v7894_v57 }
 0x908   :  { %v7928_v30 = vmul.f32 0.03125, %v7926_v61  ;;  %v7929_v10 = vmul.f32 %v7927_v41, %v7927_v41  ;;  %v7940_v24 = vsub.f32 %v7871_v49, %v7927_v41  ;;  %v7939_v45 = vsub.f32 %v7870_v56, %v7927_v41  ;;  %v8584_v49 = vld [vmem:[#allocation8 + $0x4] ss:$0 sm:$0xff] }
 0x909   :  { %v7938_v2 = vsub.f32 %v7869_v21, %v7927_v41  ;;  %v7937_v8 = vsub.f32 %v13581_v33, %v7927_v41  ;;  %v7936_v14 = vsub.f32 %v13573_v54, %v7927_v41  ;;  %v7935_v42 = vsub.f32 %v13565_v23, %v7927_v41 }
 0x90a   :  { %v7930_v28 = vsub.f32 %v7928_v30, %v7929_v10  ;;  %v7934_v38 = vsub.f32 %v13557_v20, %v7927_v41  ;;  %v7933_v11 = vsub.f32 %v13546_v1, %v7927_v41  ;;  %v7932_v5 = vsub.f32 %v13541_v15, %v7927_v41 }
 0x90c   :  { %v7931_v27 = vmax.f32 %v7930_v28, 0.0 }
 0x90e   :  { %v7941_v51 = vadd.f32 1e-05, %v7931_v27  ;;  %v8013_v27 = vld [vmem:[#allocation3] sm:$0x3] }
 0x910   :  { %11262 = vrsqrt.f32 %v7941_v51  ;;  %v8099_v51 = vld [vmem:[#allocation11 + $0x58] sm:$0xff] }
 0x91d   :  { %v11263_v59 = vpop.eup %11262 }
 0x91e   :  { %v7951_v56 = vmul.f32 %v11263_v59, %v7940_v24  ;;  %v7950_v21 = vmul.f32 %v11263_v59, %v7939_v45  ;;  %v7949_v63 = vmul.f32 %v11263_v59, %v7938_v2  ;;  %v7948_v33 = vmul.f32 %v11263_v59, %v7937_v8  ;;  %v13615_v8 = vld [vmem:[#allocation2] sm:$0xff] }
 0x91f   :  { %v7947_v54 = vmul.f32 %v11263_v59, %v7936_v14  ;;  %v7946_v36 = vmul.f32 %v11263_v59, %v7935_v42  ;;  %v7945_v23 = vmul.f32 %v11263_v59, %v7934_v38  ;;  %v7944_v19 = vmul.f32 %v11263_v59, %v7933_v11 }
 0x920   :  { %v7968_v62 = vmul.f32 %v8584_v49, %v7951_v56  ;;  %v7967_v20 = vmul.f32 %v8584_v49, %v7950_v21  ;;  %v7966_v52 = vmul.f32 %v8584_v49, %v7949_v63  ;;  %v7965_v1 = vmul.f32 %v8584_v49, %v7948_v33  ;;  %v8096_v56 = vld [vmem:[#allocation11 + $0x40] sm:$0xff]  ;;  %v8095_v21 = vld [vmem:[#allocation11 + $0x38] sm:$0xff]  ;;  %v8094_v63 = vld [vmem:[#allocation11 + $0x30] sm:$0xff] }
 0x921   :  { %v7964_v32 = vmul.f32 %v8584_v49, %v7947_v54  ;;  %v7963_v15 = vmul.f32 %v8584_v49, %v7946_v36  ;;  %v7962_v18 = vmul.f32 %v8584_v49, %v7945_v23  ;;  %v7961_v31 = vmul.f32 %v8584_v49, %v7944_v19  ;;  %v8093_v33 = vld [vmem:[#allocation11 + $0x28] sm:$0xff]  ;;  %v8091_v54 = vld [vmem:[#allocation11 + $0x18] sm:$0xff]  ;;  %v8090_v36 = vld [vmem:[#allocation11 + $0x10] sm:$0xff] }
 0x922   :  { %v7985_v47 = vadd.f32 %v8585_v55, %v7968_v62  ;;  %v7984_v6 = vadd.f32 %v8585_v55, %v7967_v20  ;;  %v7983_v39 = vadd.f32 %v8585_v55, %v7966_v52  ;;  %v7982_v43 = vadd.f32 %v8585_v55, %v7965_v1  ;;  %v8089_v23 = vld [vmem:[#allocation11 + $0x8] sm:$0xff]  ;;  %v8088_v19 = vld [vmem:[#allocation11] sm:$0xff] }
 0x923   :  { %v7981_v53 = vadd.f32 %v8585_v55, %v7964_v32  ;;  %v7980_v61 = vadd.f32 %v8585_v55, %v7963_v15  ;;  %v7979_v24 = vadd.f32 %v8585_v55, %v7962_v18  ;;  %v7978_v45 = vadd.f32 %v8585_v55, %v7961_v31  ;;  %v8587_v32 = vld [vmem:[#allocation12] ss:$0 sm:$0xff] }
 0x924   :  { %v7994_v58 = vadd.f32 %v7985_v47, %v12838_v35  ;;  %v7993_v9 = vadd.f32 %v7984_v6, %v12835_v7  ;;  %v7992_v12 = vadd.f32 %v7983_v39, %v12832_v44  ;;  %v7991_v3 = vadd.f32 %v7982_v43, %v12829_v17 }
 0x925   :  { %v7990_v10 = vadd.f32 %v7981_v53, %v12826_v4  ;;  %v7989_v44 = vadd.f32 %v7980_v61, %v12823_v0  ;;  %v7943_v2 = vmul.f32 %v11263_v59, %v7932_v5  ;;  %v7988_v14 = vadd.f32 %v7979_v24, %v12820_v16  ;;  %v8098_v59 = vld [vmem:[#allocation11 + $0x50] sm:$0xff] }
 0x926   :  { %v8003_v60 = vmax.f32 %v7994_v58, 0.0  ;;  %v8002_v57 = vmax.f32 %v7993_v9, 0.0  ;;  %v8001_v30 = vmax.f32 %v7992_v12, 0.0  ;;  %v8000_v7 = vmax.f32 %v7991_v3, 0.0 }
 0x927   :  { %v7960_v4 = vmul.f32 %v8584_v49, %v7943_v2  ;;  %v7998_v42 = vmax.f32 %v7989_v44, 0.0  ;;  %v7987_v0 = vadd.f32 %v7978_v45, %v12817_v26  ;;  %v7997_v11 = vmax.f32 %v7988_v14, 0.0  ;;  %v8097_v49 = vld [vmem:[#allocation11 + $0x48] sm:$0xff] }
 0x928   :  { %v8012_v41 = vmul.f32 %v8003_v60, %v11963_v46  ;;  %v8011_v35 = vmul.f32 %v8002_v57, %v11958_v34  ;;  %v8010_v17 = vmul.f32 %v8001_v30, %v11949_v48  ;;  %v7999_v46 = vmax.f32 %v7990_v10, 0.0 }
 0x929   :  { %v8009_v34 = vmul.f32 %v8000_v7, %v11938_v29  ;;  %v7977_v28 = vadd.f32 %v8585_v55, %v7960_v4  ;;  %v8007_v16 = vmul.f32 %v7998_v42, %v11915_v50  ;;  %v7996_v5 = vmax.f32 %v7987_v0, 0.0  ;;  %v8103_v50 = vld [vmem:[#allocation11 + $0x78] sm:$0xff]  ;;  %v8092_v55 = vld [vmem:[#allocation11 + $0x20] sm:$0xff] }
 0x92a   :  { %10821 = vmatpush3.msra.mxu1 %v8012_v41  ;;  %v8008_v38 = vmul.f32 %v7999_v46, %v11925_v37  ;;  %v8006_v29 = vmul.f32 %v7997_v11, %v11900_v22  ;;  %v8102_v22 = vld [vmem:[#allocation11 + $0x70] sm:$0xff]  ;;  %v8181_v52 = vlaneseq }
 0x92b   :  { %10822 = vmatprep.subr.mxu1 %v13615_v8  ;;  %v7986_v48 = vadd.f32 %v7977_v28, %v12814_v40  ;;  %v8005_v37 = vmul.f32 %v7996_v5, %v11892_v13  ;;  %v8101_v13 = vld [vmem:[#allocation11 + $0x68] sm:$0xff] }
 0x92c   :  { %10823 = vmatpush3.msra.mxu1 %v8011_v35  ;;  %v8182_v1 = vand.u32 127, %v8181_v52 }
 0x92d   :  { %10824 = vmatprep.subr.mxu1 %v13615_v8  ;;  %v7995_v26 = vmax.f32 %v7986_v48, 0.0 }
 0x92e   :  { %10825 = vmatpush3.msra.mxu1 %v8010_v17  ;;  %vm8183_vm2 = vcmp.lt.s32.totalorder %v8182_v1, 10 }
 0x92f   :  { %10826 = vmatprep.subr.mxu1 %v13615_v8  ;;  %v8004_v40 = vmul.f32 %v7995_v26, %v11882_v25  ;;  %v8100_v25 = vld [vmem:[#allocation11 + $0x60] sm:$0xff] }
 0x930   :  { %10827 = vmatpush3.msra.mxu1 %v8009_v34 }
 0x931   :  { %10828 = vmatprep.subr.mxu1 %v13615_v8 }
 0x932   :  { %10829 = vmatpush3.msra.mxu1 %v8008_v38 }
 0x933   :  { %10830 = vmatprep.subr.mxu1 %v13615_v8 }
 0x934   :  { %10831 = vmatpush3.msra.mxu1 %v8007_v16 }
 0x935   :  { %10832 = vmatprep.subr.mxu1 %v13615_v8 }
 0x936   :  { %10833 = vmatpush3.msra.mxu1 %v8006_v29 }
 0x937   :  { %10834 = vmatprep.subr.mxu1 %v13615_v8 }
 0x938   :  { %10835 = vmatpush3.msra.mxu1 %v8005_v37 }
 0x939   :  { %10836 = vmatprep.subr.mxu1 %v13615_v8 }
 0x93a   :  { %10837 = vmatpush3.msra.mxu1 %v8004_v40 }
 0x93b   :  { %10839 = vmatmul.mubr.msk.f32.vlgmr.msra.gmra.mxu1 %vm8014_vm1, %v8013_v27  ;;  %10841 = vmatprep.subr.mxu1 %v13615_v8 }
 0x93c   :  { %10842 = vmatpush3.msra.mxu1 %v8103_v50  ;;  %10873 = vmatprep.mubr.msk.f32.mxu1 %vm11447_vm0, %v13615_v8 }
 0x93d   :  { %10843 = vmatprep.subr.mxu1 %v13615_v8 }
 0x93e   :  { %10844 = vmatpush3.msra.mxu1 %v8102_v22 }
 0x93f   :  { %10845 = vmatprep.subr.mxu1 %v13615_v8 }
 0x940   :  { %10846 = vmatpush3.msra.mxu1 %v8101_v13 }
 0x941   :  { %10847 = vmatprep.subr.mxu1 %v13615_v8 }
 0x942   :  { %10848 = vmatpush3.msra.mxu1 %v8100_v25 }
 0x943   :  { %10849 = vmatprep.subr.mxu1 %v13615_v8 }
 0x944   :  { %10850 = vmatpush3.msra.mxu1 %v8099_v51 }
 0x945   :  { %10851 = vmatprep.subr.mxu1 %v13615_v8 }
 0x946   :  { %10852 = vmatpush3.msra.mxu1 %v8098_v59 }
 0x947   :  { %10853 = vmatprep.subr.mxu1 %v13615_v8 }
 0x948   :  { %10854 = vmatpush3.msra.mxu1 %v8097_v49 }
 0x949   :  { %10855 = vmatprep.subr.mxu1 %v13615_v8 }
 0x94a   :  { %10856 = vmatpush3.msra.mxu1 %v8096_v56 }
 0x94b   :  { %10857 = vmatprep.subr.mxu1 %v13615_v8 }
 0x94c   :  { %10858 = vmatpush3.msra.mxu1 %v8095_v21 }
 0x94d   :  { %10859 = vmatprep.subr.mxu1 %v13615_v8 }
 0x94e   :  { %10860 = vmatpush3.msra.mxu1 %v8094_v63 }
 0x94f   :  { %10861 = vmatprep.subr.mxu1 %v13615_v8 }
 0x950   :  { %10862 = vmatpush3.msra.mxu1 %v8093_v33 }
 0x951   :  { %10863 = vmatprep.subr.mxu1 %v13615_v8 }
 0x952   :  { %10864 = vmatpush3.msra.mxu1 %v8092_v55 }
 0x953   :  { %10865 = vmatprep.subr.mxu1 %v13615_v8 }
 0x954   :  { %10866 = vmatpush3.msra.mxu1 %v8091_v54 }
 0x955   :  { %10867 = vmatprep.subr.mxu1 %v13615_v8 }
 0x956   :  { %10868 = vmatpush3.msra.mxu1 %v8090_v36 }
 0x957   :  { %10869 = vmatprep.subr.mxu1 %v13615_v8 }
 0x958   :  { %10870 = vmatpush3.msra.mxu1 %v8089_v23 }
 0x959   :  { %10871 = vmatprep.subr.mxu1 %v13615_v8 }
 0x95a   :  { %10872 = vmatpush3.msra.mxu1 %v8088_v19 }
 0x9fb   :  { %v8084_v62 = vpop.f32.mrf.mxu1 }
 0x9fc   :  { %10874 = vmatmul.mubr.f32.vlgmr.msra.gmra.mxu1 %v8084_v62 }
 0x9fd   :  { %v10840_v20 = vpop.f32.mrf.mxu1 }
 0xabc   :  { %v8177_v15 = vpop.f32.mrf.mxu1 }
 0xabd   :  { %v8178_v47 = vadd.f32 %v8587_v32, %v8177_v15 }
 0xabe   :  { %v10875_v6 = vpop.f32.mrf.mxu1 }
 0xabf   :  { %v8184_v39 = vsel %vm8183_vm2, %v8178_v47, -1e+30 }
 0xac0   :  { %v8186_v43 = vsel %vm8185_vm3, %v8184_v39, -inf }
 0xac1   :  { %8187 = vmax.xlane.f32.xlu1 %v8186_v43 }
 0xb4a   :  { %v8188_v18 = vpop.xlane.xlu1 %8187 }
 0xb4b   :  { %v8189_v58 = vsub.f32 %v8184_v39, %v8188_v18 }
 0xb4d   :  { %v8190_v9 = vmul.f32 1.442695, %v8189_v58 }
 0xb4f   :  { %11264 = vpow2.f32 %v8190_v9 }
 0xb5c   :  { %v11265_v12 = vpop.eup %11264 }
 0xb5d   :  { %v8192_v53 = vsel %vm8185_vm3, %v11265_v12, 0.0 }
 0xb5e   :  { %8193 = vadd.xlane.f32.xlu0 %v8192_v53 }
 0xbe7   :  { %v8194_v31 = vpop.xlane.xlu0 %8193 }
 0xbe8   :  { %11266 = vrcp.f32 %v8194_v31 }
 0xbf5   :  { %v11267_v60 = vpop.eup %11266 }
 0xbf6   :  { %v8196_v57 = vmul.f32 %v11267_v60, %v11265_v12 }
 0xbf8   :  { %8197 = vst [vmem:[#allocation14] sm:$0x3] %v8196_v57 }
 0xbf9   :  { %11415 = shalt.err (!%p11412_p6)
}
 0xbfa   :  { %8207 = dma.vmem_to_hbm [thread:$0]  %s8205_s22, 32, %s13664_s8, [#allocation5]  }
 0xbfb   :  { %11432 = dma.done.wait [#allocation5], 32  }
 0xbfc   :  { %11433 = vsyncadd [#allocation5], 4294967264 }
 0xbfd   :  { %8211 = vsyncpa [#allocation4], 1 }
 0xbfe   :  { %8212 = vsyncpa [#allocation7], 1 }
 0xbff   :  { %8213 = vsyncpa [#allocation10], 1 }
 0xc00   :  { %8214 = vsyncpa [#allocation13], 1 }
 0xc01   :  { %8215 = vsyncpa [#allocation5], 1 }

</bundles_post_ra>
